<compile_context>
chip_gen: v5e
topology: v5e:2x2
jax: 0.10.0
libtpu: 0.0.40
codegen_flags: <defaults>
</compile_context>

<pallas_src>
import functools

import jax
import jax.numpy as jnp
from jax.experimental import pallas as pl
from jax.experimental.pallas import tpu as pltpu

EPS = 1e-5  # PyTorch InstanceNorm2d default eps


def _round_up(x, m):
    return (x + m - 1) // m * m


def _nbytes(a):
    return int(a.size) * a.dtype.itemsize


def _vmem_limit(need_bytes):
    # Generous headroom for double buffering; stay within v7x's 64 MiB VMEM.
    return int(min(max(4 * need_bytes, 32 * 1024 * 1024), 64 * 1024 * 1024))


def _geom(H, W, K, s, pad, pool=1):
    """Static geometry for a (optionally 2x2-max-pooled) conv in phase layout."""
    OHc = (H + 2 * pad - K) // s + 1          # conv output size
    OWc = (W + 2 * pad - K) // s + 1
    OH, OW = OHc // pool, OWc // pool         # post-pool output size
    S = s * pool                              # output-grid stride in padded input
    nphi = min(s * (pool - 1) + K, S)         # phase residues actually read
    d_max = (s * (pool - 1) + K - 1) // S     # max intra-phase row/col shift
    Wrow = OW + max(d_max, 2) + 1             # common flattened row width
    L = _round_up(OH * Wrow, 128)             # lane-dense flattened output length
    Lph = _round_up(d_max * Wrow + d_max + L, 128)   # phase-grid flat length
    return OHc, OWc, OH, OW, S, nphi, d_max, Wrow, L, Lph


def _phase_grids(x, *, c_p, pad, S, nphi, Wrow, Lph):
    """(N, C, H, W) -> (N, nphi*nphi, c_p, Lph) bf16 stride-S phase grids of the
    zero-padded input, each flattened row-major with row width Wrow."""
    N, C, H, W = x.shape
    xp = jnp.pad(x.astype(jnp.bfloat16),
                 ((0, 0), (0, c_p - C), (pad, pad), (pad, pad)))
    grids = []
    for ri in range(nphi):
        for rj in range(nphi):
            g = xp[:, :, ri::S, rj::S]
            gw = min(g.shape[3], Wrow)
            g = jnp.pad(g[:, :, :, :gw], ((0, 0), (0, 0), (0, 0), (0, Wrow - gw)))
            g = g.reshape(N, c_p, -1)
            if g.shape[2] >= Lph:
                g = g[:, :, :Lph]           # trailing rows are never read
            else:
                g = jnp.pad(g, ((0, 0), (0, 0), (0, Lph - g.shape[2])))
            grids.append(g)
    return jnp.stack(grids, axis=1)


def _pack_w(w, cout_p, cin_p):
    """(Cout, Cin, K, K) -> (cout_p, K*K*cin_p) bf16; column order (ki, kj, cin)
    matches the stacked-window contraction operand built in the kernels."""
    Cout, Cin, K, _ = w.shape
    wp = jnp.pad(w, ((0, cout_p - Cout), (0, cin_p - Cin), (0, 0), (0, 0)))
    wp = jnp.transpose(wp, (0, 2, 3, 1)).reshape(cout_p, K * K * cin_p)
    return wp.astype(jnp.bfloat16)


def _col_mask(OH, OW, Wrow, L):
    col = jax.lax.broadcasted_iota(jnp.int32, (1, L), 1)
    return (((col % Wrow) < OW) & (col < OH * Wrow)).astype(jnp.float32)


def _instance_norm(y, m, inv_cnt):
    """Masked per-channel InstanceNorm (biased variance), f32; returns masked y."""
    mean = jnp.sum(y * m, axis=1, keepdims=True) * inv_cnt
    xc = (y - mean) * m
    var = jnp.sum(xc * xc, axis=1, keepdims=True) * inv_cnt
    return xc * jax.lax.rsqrt(var + EPS)


# ----------------------------------------------------------------------------
# Stem: Conv2d(3, C, 7, stride=2, padding=3, bias=False) + IN + ReLU + MaxPool(2,2)
# ----------------------------------------------------------------------------
def _stem_kernel(xph_ref, w_ref, mask_ref, o_ref, xcol_ref, *,
                 K, s, pool, S, nphi, Wrow, L, OHc, OWc, cin_p):
    m = mask_ref[...]                                    # (1, L) f32
    inv_cnt = 1.0 / float(OHc * OWc)
    ys = []
    for a in range(pool):                                # 2x2 pool phases
        for b in range(pool):
            for ki in range(K):
                for kj in range(K):
                    t = ki * K + kj
                    qi, qj = a * s + ki, b * s + kj
                    p_idx = (qi % S) * nphi + (qj % S)
                    off = (qi // S) * Wrow + (qj // S)
                    xcol_ref[pl.ds(t * cin_p, cin_p), :] = \
                        xph_ref[0, p_idx, :, pl.ds(off, L)]
            ys.append(jnp.dot(w_ref[...], xcol_ref[...],
                              preferred_element_type=jnp.float32))
    # InstanceNorm statistics over the full (pre-pool) conv output.
    mean = sum(jnp.sum(y * m, axis=1, keepdims=True) for y in ys) * inv_cnt
    var = sum(jnp.sum(jnp.square((y - mean) * m), axis=1, keepdims=True)
              for y in ys) * inv_cnt
    best = ys[0]
    for y in ys[1:]:
        best = jnp.maximum(best, y)
    # pool(relu(IN(y))) == relu((max(y) - mean) * rsqrt(var + eps))
    out = jnp.maximum((best - mean) * jax.lax.rsqrt(var + EPS), 0.0)
    o_ref[0] = (out * m).astype(o_ref.dtype)


def stem_forward(x, w):
    N, Cin, H, W = x.shape
    Cout = w.shape[0]
    K, s, pad, pool = 7, 2, 3, 2
    OHc, OWc, OH, OW, S, nphi, d_max, Wrow, L, Lph = _geom(H, W, K, s, pad, pool)
    # TODO(synk): odd conv-output sizes need an unfused floor-maxpool epilogue.
    assert OHc % pool == 0 and OWc % pool == 0
    cin_p, cout_p = _round_up(Cin, 8), _round_up(Cout, 8)

    xph = _phase_grids(x, c_p=cin_p, pad=pad, S=S, nphi=nphi, Wrow=Wrow, Lph=Lph)
    wcol = _pack_w(w, cout_p, cin_p)
    mask = _col_mask(OH, OW, Wrow, L)

    kern = functools.partial(_stem_kernel, K=K, s=s, pool=pool, S=S, nphi=nphi,
                             Wrow=Wrow, L=L, OHc=OHc, OWc=OWc, cin_p=cin_p)
    scratch_bytes = K * K * cin_p * L * 2
    need = (_nbytes(xph) // N + _nbytes(wcol) + _nbytes(mask)
            + cout_p * L * 2 + scratch_bytes)
    out = pl.pallas_call(
        kern,
        out_shape=jax.ShapeDtypeStruct((N, cout_p, L), jnp.bfloat16),
        grid=(N,),
        in_specs=[
            pl.BlockSpec((1, nphi * nphi, cin_p, Lph), lambda n: (n, 0, 0, 0)),
            pl.BlockSpec((cout_p, K * K * cin_p), lambda n: (0, 0)),
            pl.BlockSpec((1, L), lambda n: (0, 0)),
        ],
        out_specs=pl.BlockSpec((1, cout_p, L), lambda n: (n, 0, 0)),
        scratch_shapes=[pltpu.VMEM((K * K * cin_p, L), jnp.bfloat16)],
        cost_estimate=pl.CostEstimate(
            flops=int(2 * N * pool * pool * K * K * cin_p * cout_p * L),
            transcendentals=int(N * cout_p),
            bytes_accessed=int(_nbytes(xph) + _nbytes(wcol) + _nbytes(mask)
                               + N * cout_p * L * 2)),
        compiler_params=pltpu.CompilerParams(
            dimension_semantics=("parallel",),
            vmem_limit_bytes=_vmem_limit(need)),
    )(xph, wcol, mask)
    out = out[:, :, :OH * Wrow].reshape(N, cout_p, OH, Wrow)
    return out[:, :Cout, :, :OW]


# ----------------------------------------------------------------------------
# Fused BasicBlock:
#   conv3x3(stride s, pad 1) + IN + ReLU -> conv3x3(stride 1, pad 1) + IN
#   (+ optional 1x1/stride-s downsample + IN of the input) -> add -> ReLU
# ----------------------------------------------------------------------------
def _block_kernel(*refs, K, s, nphi, Wrow, L, OHc, OWc, G, cin_p, cout_p, has_down):
    if has_down:
        xph_ref, w1_ref, w2_ref, wd_ref, mask_ref, o_ref, xcol1, buf2, xcol2 = refs
    else:
        xph_ref, w1_ref, w2_ref, mask_ref, o_ref, xcol1, buf2, xcol2 = refs
        wd_ref = None

    m = mask_ref[...]                                    # (1, L) f32
    inv_cnt = 1.0 / float(OHc * OWc)

    # conv1: stack the 9 shifted windows along the contraction axis, one matmul.
    for ki in range(K):
        for kj in range(K):
            t = ki * K + kj
            p_idx = (ki % s) * nphi + (kj % s)
            off = (ki // s) * Wrow + (kj // s)
            xcol1[pl.ds(t * cin_p, cin_p), :] = xph_ref[0, p_idx, :, pl.ds(off, L)]
    y1 = jnp.dot(w1_ref[...], xcol1[...], preferred_element_type=jnp.float32)
    y1 = jnp.maximum(_instance_norm(y1, m, inv_cnt), 0.0)

    # conv2 input = zero-padded (pad=1) y1 grid, stored lane-aligned at offset G.
    buf2[...] = jnp.zeros(buf2.shape, buf2.dtype)
    buf2[:, pl.ds(G, L)] = y1.astype(jnp.bfloat16)
    for ki in range(K):
        for kj in range(K):
            t = ki * K + kj
            off = G - Wrow - 1 + ki * Wrow + kj
            xcol2[pl.ds(t * cout_p, cout_p), :] = buf2[:, pl.ds(off, L)]
    y2 = jnp.dot(w2_ref[...], xcol2[...], preferred_element_type=jnp.float32)
    z = _instance_norm(y2, m, inv_cnt)

    # identity / downsample branch (conv1 used pad=1; the 1x1 downsample has pad=0,
    # so x[oh*s, ow*s] = padded_x[oh*s + 1, ow*s + 1]).
    if has_down:
        rd, dd = 1 % s, 1 // s
        xd = xph_ref[0, rd * nphi + rd, :, pl.ds(dd * Wrow + dd, L)]
        yd = jnp.dot(wd_ref[...], xd, preferred_element_type=jnp.float32)
        ident = _instance_norm(yd, m, inv_cnt)
    else:
        ident = xph_ref[0, 0, :, pl.ds(Wrow + 1, L)].astype(jnp.float32)

    out = jnp.maximum(z + ident, 0.0)
    o_ref[0] = (out * m).astype(o_ref.dtype)


def basic_block(x, bp, stride):
    N, Cin, H, W = x.shape
    Cout = bp["conv1"].shape[0]
    K, pad, s = 3, 1, stride
    OHc, OWc, OH, OW, S, nphi, d_max, Wrow, L, Lph = _geom(H, W, K, s, pad, 1)
    cin_p, cout_p = _round_up(Cin, 8), _round_up(Cout, 8)
    G = _round_up(Wrow + 1, 128)                 # lane-aligned start of y1 in buf2
    Lbuf = _round_up(G + Wrow + 1 + L, 128)
    has_down = "down_conv" in bp
    if not has_down:
        assert Cin == Cout and s == 1

    xph = _phase_grids(x, c_p=cin_p, pad=pad, S=s, nphi=nphi, Wrow=Wrow, Lph=Lph)
    w1 = _pack_w(bp["conv1"], cout_p, cin_p)
    w2 = _pack_w(bp["conv2"], cout_p, cout_p)
    mask = _col_mask(OH, OW, Wrow, L)

    inputs = [xph, w1, w2]
    in_specs = [
        pl.BlockSpec((1, nphi * nphi, cin_p, Lph), lambda n: (n, 0, 0, 0)),
        pl.BlockSpec((cout_p, K * K * cin_p), lambda n: (0, 0)),
        pl.BlockSpec((cout_p, K * K * cout_p), lambda n: (0, 0)),
    ]
    if has_down:
        inputs.append(_pack_w(bp["down_conv"], cout_p, cin_p))
        in_specs.append(pl.BlockSpec((cout_p, cin_p), lambda n: (0, 0)))
    inputs.append(mask)
    in_specs.append(pl.BlockSpec((1, L), lambda n: (0, 0)))

    kern = functools.partial(_block_kernel, K=K, s=s, nphi=nphi, Wrow=Wrow, L=L,
                             OHc=OHc, OWc=OWc, G=G, cin_p=cin_p, cout_p=cout_p,
                             has_down=has_down)
    flops = 2 * N * L * cout_p * (K * K * cin_p + K * K * cout_p
                                  + (cin_p if has_down else 0))
    scratch_bytes = (K * K * cin_p * L + cout_p * Lbuf + K * K * cout_p * L) * 2
    need = (_nbytes(xph) // N + sum(_nbytes(a) for a in inputs[1:])
            + cout_p * L * 2 + scratch_bytes)
    out = pl.pallas_call(
        kern,
        out_shape=jax.ShapeDtypeStruct((N, cout_p, L), jnp.bfloat16),
        grid=(N,),
        in_specs=in_specs,
        out_specs=pl.BlockSpec((1, cout_p, L), lambda n: (n, 0, 0)),
        scratch_shapes=[
            pltpu.VMEM((K * K * cin_p, L), jnp.bfloat16),
            pltpu.VMEM((cout_p, Lbuf), jnp.bfloat16),
            pltpu.VMEM((K * K * cout_p, L), jnp.bfloat16),
        ],
        cost_estimate=pl.CostEstimate(
            flops=int(flops),
            transcendentals=int(3 * N * cout_p),
            bytes_accessed=int(sum(_nbytes(a) for a in inputs) + N * cout_p * L * 2)),
        compiler_params=pltpu.CompilerParams(
            dimension_semantics=("parallel",),    # batch over megacore TCs
            vmem_limit_bytes=_vmem_limit(need)),
    )(*inputs)
    out = out[:, :, :OH * Wrow].reshape(N, cout_p, OH, Wrow)
    return out[:, :Cout, :, :OW]


# ----------------------------------------------------------------------------
# ResNetBackbone forward (functional)
# ----------------------------------------------------------------------------
def resnet_backbone_forward(x_nchw, params):
    # first_layer: Conv2d(3, inplanes, 7, s=2, p=3) -> IN -> ReLU -> MaxPool(2,2)
    x = stem_forward(x_nchw, params["first_conv"])
    outputs = []
    cur = x                                    # bf16 between blocks
    for li, blocks in enumerate(params["layers"]):
        layer_stride = 2 if li > 0 else 1
        for bi, bp in enumerate(blocks):
            cur = basic_block(cur, bp, stride=layer_stride if bi == 0 else 1)
        outputs.append(cur.astype(jnp.float32))
    # PyTorch: outputs = [first_layer(x), layer0(...), layer1(...), ...];
    # `return tuple(outputs[1:])` == one feature map per layer (stem excluded),
    # which is exactly what is returned here.
    return tuple(outputs)


# ----------------------------------------------------------------------------
# Deterministic parameter initialization (shapes follow the module __init__).
# ----------------------------------------------------------------------------
def init_params(key, inplanes, block_counts):
    keys = iter(jax.random.split(key, 128))

    def w(shape):
        fan_in = shape[1] * shape[2] * shape[3]
        return jax.random.normal(next(keys), shape, jnp.float32) * (2.0 / fan_in) ** 0.5

    params = {"first_conv": w((inplanes, 3, 7, 7)), "layers": []}
    cur = inplanes
    for i, count in enumerate(block_counts):
        expansion = int(i > 0) + 1
        stride = int(i > 0) + 1
        outp = cur * expansion
        blocks = [{"conv1": w((outp, cur, 3, 3)), "conv2": w((outp, outp, 3, 3))}]
        if stride != 1 or expansion != 1:
            blocks[0]["down_conv"] = w((outp, cur, 1, 1))  # InstanceNorm2d: no params
        for _ in range(1, count):
            blocks.append({"conv1": w((outp, outp, 3, 3)),
                           "conv2": w((outp, outp, 3, 3))})
        params["layers"].append(blocks)
        cur = outp
    return params


if __name__ == "__main__":
    key = jax.random.PRNGKey(0)
    pkey, xkey = jax.random.split(key)

    inplanes = 8
    block_counts = [2, 2]
    params = init_params(pkey, inplanes, block_counts)

    x = jax.random.normal(xkey, (2, 3, 32, 32), jnp.float32)  # NCHW, like PyTorch

    fwd = jax.jit(resnet_backbone_forward)
    outs = jax.block_until_ready(fwd(x, params))

    # shapes implied by the module: layer0 -> (2, 8, 8, 8), layer1 -> (2, 16, 4, 4)
    assert outs[0].shape == (2, inplanes, 8, 8)
    assert outs[1].shape == (2, inplanes * 2, 4, 4)
    assert all(bool(jnp.all(jnp.isfinite(o))) for o in outs)
    print("KERNEL_OK")
</pallas_src>

<mosaic_0001>
module attributes {stable_mosaic.version = 11 : i64} {
  func.func @_block_kernel(%arg0: i32, %arg1: memref<1x1x8x256xbf16, #tpu.memory_space<vmem>>, %arg2: memref<8x72xbf16, #tpu.memory_space<vmem>>, %arg3: memref<8x72xbf16, #tpu.memory_space<vmem>>, %arg4: memref<1x128xf32, #tpu.memory_space<vmem>>, %arg5: memref<1x8x128xbf16, #tpu.memory_space<vmem>>, %arg6: memref<72x128xbf16, #tpu.memory_space<vmem>>, %arg7: memref<8x384xbf16, #tpu.memory_space<vmem>>, %arg8: memref<72x128xbf16, #tpu.memory_space<vmem>>) attributes {dimension_semantics = [#tpu.dimension_semantics<parallel>], iteration_bounds = array<i64: 2>, scalar_prefetch = 0 : i64, scratch_operands = 3 : i64, tpu.core_type = #tpu.core_type<tc>, window_params = [{transform_indices = @transform_0, window_bounds = array<i64: 1, 1, 8, 256>}, {pipeline_mode = #tpu.pipeline_mode<synchronous>, transform_indices = @transform_1, window_bounds = array<i64: 8, 72>}, {pipeline_mode = #tpu.pipeline_mode<synchronous>, transform_indices = @transform_2, window_bounds = array<i64: 8, 72>}, {pipeline_mode = #tpu.pipeline_mode<synchronous>, transform_indices = @transform_3, window_bounds = array<i64: 1, 128>}, {transform_indices = @transform_4, window_bounds = array<i64: 1, 8, 128>}]} {
    %c0 = arith.constant 0 : index
    %c0_0 = arith.constant 0 : index
    %0 = vector.load %arg4[%c0, %c0_0] : memref<1x128xf32, #tpu.memory_space<vmem>>, vector<1x128xf32>
    %c0_1 = arith.constant 0 : index
    %c0_2 = arith.constant 0 : index
    %c0_3 = arith.constant 0 : index
    %c0_4 = arith.constant 0 : index
    %1 = vector.load %arg1[%c0_1, %c0_2, %c0_3, %c0_4] : memref<1x1x8x256xbf16, #tpu.memory_space<vmem>>, vector<1x1x8x128xbf16>
    %2 = vector.shape_cast %1 : vector<1x1x8x128xbf16> to vector<8x128xbf16>
    %c0_5 = arith.constant 0 : index
    %c0_6 = arith.constant 0 : index
    %3 = vector.load %arg6[%c0_5, %c0_6] : memref<72x128xbf16, #tpu.memory_space<vmem>>, vector<8x128xbf16>
    tpu.vector_store %arg6[%c0_5, %c0_6], %2 {strides = array<i32>} : memref<72x128xbf16, #tpu.memory_space<vmem>>, vector<8x128xbf16>,
    %c0_7 = arith.constant 0 : index
    %c0_8 = arith.constant 0 : index
    %c0_9 = arith.constant 0 : index
    %c1 = arith.constant 1 : index
    %4 = vector.load %arg1[%c0_7, %c0_8, %c0_9, %c1] : memref<1x1x8x256xbf16, #tpu.memory_space<vmem>>, vector<1x1x8x128xbf16>
    %5 = vector.shape_cast %4 : vector<1x1x8x128xbf16> to vector<8x128xbf16>
    %c8 = arith.constant 8 : index
    %c0_10 = arith.constant 0 : index
    %6 = vector.load %arg6[%c8, %c0_10] : memref<72x128xbf16, #tpu.memory_space<vmem>>, vector<8x128xbf16>
    tpu.vector_store %arg6[%c8, %c0_10], %5 {strides = array<i32>} : memref<72x128xbf16, #tpu.memory_space<vmem>>, vector<8x128xbf16>,
    %c0_11 = arith.constant 0 : index
    %c0_12 = arith.constant 0 : index
    %c0_13 = arith.constant 0 : index
    %c2 = arith.constant 2 : index
    %7 = vector.load %arg1[%c0_11, %c0_12, %c0_13, %c2] : memref<1x1x8x256xbf16, #tpu.memory_space<vmem>>, vector<1x1x8x128xbf16>
    %8 = vector.shape_cast %7 : vector<1x1x8x128xbf16> to vector<8x128xbf16>
    %c16 = arith.constant 16 : index
    %c0_14 = arith.constant 0 : index
    %9 = vector.load %arg6[%c16, %c0_14] : memref<72x128xbf16, #tpu.memory_space<vmem>>, vector<8x128xbf16>
    tpu.vector_store %arg6[%c16, %c0_14], %8 {strides = array<i32>} : memref<72x128xbf16, #tpu.memory_space<vmem>>, vector<8x128xbf16>,
    %c0_15 = arith.constant 0 : index
    %c0_16 = arith.constant 0 : index
    %c0_17 = arith.constant 0 : index
    %c11 = arith.constant 11 : index
    %10 = vector.load %arg1[%c0_15, %c0_16, %c0_17, %c11] : memref<1x1x8x256xbf16, #tpu.memory_space<vmem>>, vector<1x1x8x128xbf16>
    %11 = vector.shape_cast %10 : vector<1x1x8x128xbf16> to vector<8x128xbf16>
    %c24 = arith.constant 24 : index
    %c0_18 = arith.constant 0 : index
    %12 = vector.load %arg6[%c24, %c0_18] : memref<72x128xbf16, #tpu.memory_space<vmem>>, vector<8x128xbf16>
    tpu.vector_store %arg6[%c24, %c0_18], %11 {strides = array<i32>} : memref<72x128xbf16, #tpu.memory_space<vmem>>, vector<8x128xbf16>,
    %c0_19 = arith.constant 0 : index
    %c0_20 = arith.constant 0 : index
    %c0_21 = arith.constant 0 : index
    %c12 = arith.constant 12 : index
    %13 = vector.load %arg1[%c0_19, %c0_20, %c0_21, %c12] : memref<1x1x8x256xbf16, #tpu.memory_space<vmem>>, vector<1x1x8x128xbf16>
    %14 = vector.shape_cast %13 : vector<1x1x8x128xbf16> to vector<8x128xbf16>
    %c32 = arith.constant 32 : index
    %c0_22 = arith.constant 0 : index
    %15 = vector.load %arg6[%c32, %c0_22] : memref<72x128xbf16, #tpu.memory_space<vmem>>, vector<8x128xbf16>
    tpu.vector_store %arg6[%c32, %c0_22], %14 {strides = array<i32>} : memref<72x128xbf16, #tpu.memory_space<vmem>>, vector<8x128xbf16>,
    %c0_23 = arith.constant 0 : index
    %c0_24 = arith.constant 0 : index
    %c0_25 = arith.constant 0 : index
    %c13 = arith.constant 13 : index
    %16 = vector.load %arg1[%c0_23, %c0_24, %c0_25, %c13] : memref<1x1x8x256xbf16, #tpu.memory_space<vmem>>, vector<1x1x8x128xbf16>
    %17 = vector.shape_cast %16 : vector<1x1x8x128xbf16> to vector<8x128xbf16>
    %c40 = arith.constant 40 : index
    %c0_26 = arith.constant 0 : index
    %18 = vector.load %arg6[%c40, %c0_26] : memref<72x128xbf16, #tpu.memory_space<vmem>>, vector<8x128xbf16>
    tpu.vector_store %arg6[%c40, %c0_26], %17 {strides = array<i32>} : memref<72x128xbf16, #tpu.memory_space<vmem>>, vector<8x128xbf16>,
    %c0_27 = arith.constant 0 : index
    %c0_28 = arith.constant 0 : index
    %c0_29 = arith.constant 0 : index
    %c22 = arith.constant 22 : index
    %19 = vector.load %arg1[%c0_27, %c0_28, %c0_29, %c22] : memref<1x1x8x256xbf16, #tpu.memory_space<vmem>>, vector<1x1x8x128xbf16>
    %20 = vector.shape_cast %19 : vector<1x1x8x128xbf16> to vector<8x128xbf16>
    %c48 = arith.constant 48 : index
    %c0_30 = arith.constant 0 : index
    %21 = vector.load %arg6[%c48, %c0_30] : memref<72x128xbf16, #tpu.memory_space<vmem>>, vector<8x128xbf16>
    tpu.vector_store %arg6[%c48, %c0_30], %20 {strides = array<i32>} : memref<72x128xbf16, #tpu.memory_space<vmem>>, vector<8x128xbf16>,
    %c0_31 = arith.constant 0 : index
    %c0_32 = arith.constant 0 : index
    %c0_33 = arith.constant 0 : index
    %c23 = arith.constant 23 : index
    %22 = vector.load %arg1[%c0_31, %c0_32, %c0_33, %c23] : memref<1x1x8x256xbf16, #tpu.memory_space<vmem>>, vector<1x1x8x128xbf16>
    %23 = vector.shape_cast %22 : vector<1x1x8x128xbf16> to vector<8x128xbf16>
    %c56 = arith.constant 56 : index
    %c0_34 = arith.constant 0 : index
    %24 = vector.load %arg6[%c56, %c0_34] : memref<72x128xbf16, #tpu.memory_space<vmem>>, vector<8x128xbf16>
    tpu.vector_store %arg6[%c56, %c0_34], %23 {strides = array<i32>} : memref<72x128xbf16, #tpu.memory_space<vmem>>, vector<8x128xbf16>,
    %c0_35 = arith.constant 0 : index
    %c0_36 = arith.constant 0 : index
    %c0_37 = arith.constant 0 : index
    %c24_38 = arith.constant 24 : index
    %25 = vector.load %arg1[%c0_35, %c0_36, %c0_37, %c24_38] : memref<1x1x8x256xbf16, #tpu.memory_space<vmem>>, vector<1x1x8x128xbf16>
    %26 = vector.shape_cast %25 : vector<1x1x8x128xbf16> to vector<8x128xbf16>
    %c64 = arith.constant 64 : index
    %c0_39 = arith.constant 0 : index
    %27 = vector.load %arg6[%c64, %c0_39] : memref<72x128xbf16, #tpu.memory_space<vmem>>, vector<8x128xbf16>
    tpu.vector_store %arg6[%c64, %c0_39], %26 {strides = array<i32>} : memref<72x128xbf16, #tpu.memory_space<vmem>>, vector<8x128xbf16>,
    %c0_40 = arith.constant 0 : index
    %c0_41 = arith.constant 0 : index
    %28 = vector.load %arg2[%c0_40, %c0_41] : memref<8x72xbf16, #tpu.memory_space<vmem>>, vector<8x72xbf16>
    %c0_42 = arith.constant 0 : index
    %c0_43 = arith.constant 0 : index
    %29 = vector.load %arg6[%c0_42, %c0_43] : memref<72x128xbf16, #tpu.memory_space<vmem>>, vector<72x128xbf16>
    %cst = arith.constant dense<0.000000e+00> : vector<8x128xf32>
    %30 = tpu.matmul %28, %29, %cst {dimension_numbers = #tpu.dot_dimension_numbers<[1], [0], [0], [1], [0, 0, 1, 1], [], []>} : vector<8x72xbf16>, vector<72x128xbf16>, vector<8x128xf32> -> vector<8x128xf32>
    %31 = vector.broadcast %0 : vector<1x128xf32> to vector<8x128xf32>
    %32 = arith.mulf %30, %31 : vector<8x128xf32>
    %cst_44 = arith.constant dense<0.000000e+00> : vector<8xf32>
    %33 = vector.multi_reduction <add>, %32, %cst_44 [1] : vector<8x128xf32> to vector<8xf32>
    %34 = vector.shape_cast %33 : vector<8xf32> to vector<8x1xf32>
    %cst_45 = arith.constant 1.562500e-02 : f32
    %35 = vector.broadcast %cst_45 : f32 to vector<8x1xf32>
    %36 = arith.mulf %34, %35 : vector<8x1xf32>
    %37 = vector.broadcast %36 : vector<8x1xf32> to vector<8x128xf32>
    %38 = arith.subf %30, %37 : vector<8x128xf32>
    %39 = vector.broadcast %0 : vector<1x128xf32> to vector<8x128xf32>
    %40 = arith.mulf %38, %39 : vector<8x128xf32>
    %41 = arith.mulf %40, %40 : vector<8x128xf32>
    %cst_46 = arith.constant dense<0.000000e+00> : vector<8xf32>
    %42 = vector.multi_reduction <add>, %41, %cst_46 [1] : vector<8x128xf32> to vector<8xf32>
    %43 = vector.shape_cast %42 : vector<8xf32> to vector<8x1xf32>
    %cst_47 = arith.constant 1.562500e-02 : f32
    %44 = vector.broadcast %cst_47 : f32 to vector<8x1xf32>
    %45 = arith.mulf %43, %44 : vector<8x1xf32>
    %cst_48 = arith.constant 9.99999974E-6 : f32
    %46 = vector.broadcast %cst_48 : f32 to vector<8x1xf32>
    %47 = arith.addf %45, %46 : vector<8x1xf32>
    %48 = math.rsqrt %47 : vector<8x1xf32>
    %49 = vector.broadcast %48 : vector<8x1xf32> to vector<8x128xf32>
    %50 = arith.mulf %40, %49 : vector<8x128xf32>
    %cst_49 = arith.constant 0.000000e+00 : f32
    %51 = vector.broadcast %cst_49 : f32 to vector<8x128xf32>
    %52 = arith.maximumf %50, %51 : vector<8x128xf32>
    %cst_50 = arith.constant 0.000000e+00 : bf16
    %53 = vector.broadcast %cst_50 : bf16 to vector<8x384xbf16>
    %c0_51 = arith.constant 0 : index
    %c0_52 = arith.constant 0 : index
    %54 = vector.load %arg7[%c0_51, %c0_52] : memref<8x384xbf16, #tpu.memory_space<vmem>>, vector<8x384xbf16>
    tpu.vector_store %arg7[%c0_51, %c0_52], %53 {strides = array<i32>} : memref<8x384xbf16, #tpu.memory_space<vmem>>, vector<8x384xbf16>,
    %55 = arith.truncf %52 : vector<8x128xf32> to vector<8x128xbf16>
    %c0_53 = arith.constant 0 : index
    %c128 = arith.constant 128 : index
    %56 = vector.load %arg7[%c0_53, %c128] : memref<8x384xbf16, #tpu.memory_space<vmem>>, vector<8x128xbf16>
    tpu.vector_store %arg7[%c0_53, %c128], %55 {strides = array<i32>} : memref<8x384xbf16, #tpu.memory_space<vmem>>, vector<8x128xbf16>,
    %c0_54 = arith.constant 0 : index
    %c116 = arith.constant 116 : index
    %57 = vector.load %arg7[%c0_54, %c116] : memref<8x384xbf16, #tpu.memory_space<vmem>>, vector<8x128xbf16>
    %c0_55 = arith.constant 0 : index
    %c0_56 = arith.constant 0 : index
    %58 = vector.load %arg8[%c0_55, %c0_56] : memref<72x128xbf16, #tpu.memory_space<vmem>>, vector<8x128xbf16>
    tpu.vector_store %arg8[%c0_55, %c0_56], %57 {strides = array<i32>} : memref<72x128xbf16, #tpu.memory_space<vmem>>, vector<8x128xbf16>,
    %c0_57 = arith.constant 0 : index
    %c117 = arith.constant 117 : index
    %59 = vector.load %arg7[%c0_57, %c117] : memref<8x384xbf16, #tpu.memory_space<vmem>>, vector<8x128xbf16>
    %c8_58 = arith.constant 8 : index
    %c0_59 = arith.constant 0 : index
    %60 = vector.load %arg8[%c8_58, %c0_59] : memref<72x128xbf16, #tpu.memory_space<vmem>>, vector<8x128xbf16>
    tpu.vector_store %arg8[%c8_58, %c0_59], %59 {strides = array<i32>} : memref<72x128xbf16, #tpu.memory_space<vmem>>, vector<8x128xbf16>,
    %c0_60 = arith.constant 0 : index
    %c118 = arith.constant 118 : index
    %61 = vector.load %arg7[%c0_60, %c118] : memref<8x384xbf16, #tpu.memory_space<vmem>>, vector<8x128xbf16>
    %c16_61 = arith.constant 16 : index
    %c0_62 = arith.constant 0 : index
    %62 = vector.load %arg8[%c16_61, %c0_62] : memref<72x128xbf16, #tpu.memory_space<vmem>>, vector<8x128xbf16>
    tpu.vector_store %arg8[%c16_61, %c0_62], %61 {strides = array<i32>} : memref<72x128xbf16, #tpu.memory_space<vmem>>, vector<8x128xbf16>,
    %c0_63 = arith.constant 0 : index
    %c127 = arith.constant 127 : index
    %63 = vector.load %arg7[%c0_63, %c127] : memref<8x384xbf16, #tpu.memory_space<vmem>>, vector<8x128xbf16>
    %c24_64 = arith.constant 24 : index
    %c0_65 = arith.constant 0 : index
    %64 = vector.load %arg8[%c24_64, %c0_65] : memref<72x128xbf16, #tpu.memory_space<vmem>>, vector<8x128xbf16>
    tpu.vector_store %arg8[%c24_64, %c0_65], %63 {strides = array<i32>} : memref<72x128xbf16, #tpu.memory_space<vmem>>, vector<8x128xbf16>,
    %c0_66 = arith.constant 0 : index
    %c128_67 = arith.constant 128 : index
    %65 = vector.load %arg7[%c0_66, %c128_67] : memref<8x384xbf16, #tpu.memory_space<vmem>>, vector<8x128xbf16>
    %c32_68 = arith.constant 32 : index
    %c0_69 = arith.constant 0 : index
    %66 = vector.load %arg8[%c32_68, %c0_69] : memref<72x128xbf16, #tpu.memory_space<vmem>>, vector<8x128xbf16>
    tpu.vector_store %arg8[%c32_68, %c0_69], %65 {strides = array<i32>} : memref<72x128xbf16, #tpu.memory_space<vmem>>, vector<8x128xbf16>,
    %c0_70 = arith.constant 0 : index
    %c129 = arith.constant 129 : index
    %67 = vector.load %arg7[%c0_70, %c129] : memref<8x384xbf16, #tpu.memory_space<vmem>>, vector<8x128xbf16>
    %c40_71 = arith.constant 40 : index
    %c0_72 = arith.constant 0 : index
    %68 = vector.load %arg8[%c40_71, %c0_72] : memref<72x128xbf16, #tpu.memory_space<vmem>>, vector<8x128xbf16>
    tpu.vector_store %arg8[%c40_71, %c0_72], %67 {strides = array<i32>} : memref<72x128xbf16, #tpu.memory_space<vmem>>, vector<8x128xbf16>,
    %c0_73 = arith.constant 0 : index
    %c138 = arith.constant 138 : index
    %69 = vector.load %arg7[%c0_73, %c138] : memref<8x384xbf16, #tpu.memory_space<vmem>>, vector<8x128xbf16>
    %c48_74 = arith.constant 48 : index
    %c0_75 = arith.constant 0 : index
    %70 = vector.load %arg8[%c48_74, %c0_75] : memref<72x128xbf16, #tpu.memory_space<vmem>>, vector<8x128xbf16>
    tpu.vector_store %arg8[%c48_74, %c0_75], %69 {strides = array<i32>} : memref<72x128xbf16, #tpu.memory_space<vmem>>, vector<8x128xbf16>,
    %c0_76 = arith.constant 0 : index
    %c139 = arith.constant 139 : index
    %71 = vector.load %arg7[%c0_76, %c139] : memref<8x384xbf16, #tpu.memory_space<vmem>>, vector<8x128xbf16>
    %c56_77 = arith.constant 56 : index
    %c0_78 = arith.constant 0 : index
    %72 = vector.load %arg8[%c56_77, %c0_78] : memref<72x128xbf16, #tpu.memory_space<vmem>>, vector<8x128xbf16>
    tpu.vector_store %arg8[%c56_77, %c0_78], %71 {strides = array<i32>} : memref<72x128xbf16, #tpu.memory_space<vmem>>, vector<8x128xbf16>,
    %c0_79 = arith.constant 0 : index
    %c140 = arith.constant 140 : index
    %73 = vector.load %arg7[%c0_79, %c140] : memref<8x384xbf16, #tpu.memory_space<vmem>>, vector<8x128xbf16>
    %c64_80 = arith.constant 64 : index
    %c0_81 = arith.constant 0 : index
    %74 = vector.load %arg8[%c64_80, %c0_81] : memref<72x128xbf16, #tpu.memory_space<vmem>>, vector<8x128xbf16>
    tpu.vector_store %arg8[%c64_80, %c0_81], %73 {strides = array<i32>} : memref<72x128xbf16, #tpu.memory_space<vmem>>, vector<8x128xbf16>,
    %c0_82 = arith.constant 0 : index
    %c0_83 = arith.constant 0 : index
    %75 = vector.load %arg3[%c0_82, %c0_83] : memref<8x72xbf16, #tpu.memory_space<vmem>>, vector<8x72xbf16>
    %c0_84 = arith.constant 0 : index
    %c0_85 = arith.constant 0 : index
    %76 = vector.load %arg8[%c0_84, %c0_85] : memref<72x128xbf16, #tpu.memory_space<vmem>>, vector<72x128xbf16>
    %cst_86 = arith.constant dense<0.000000e+00> : vector<8x128xf32>
    %77 = tpu.matmul %75, %76, %cst_86 {dimension_numbers = #tpu.dot_dimension_numbers<[1], [0], [0], [1], [0, 0, 1, 1], [], []>} : vector<8x72xbf16>, vector<72x128xbf16>, vector<8x128xf32> -> vector<8x128xf32>
    %78 = vector.broadcast %0 : vector<1x128xf32> to vector<8x128xf32>
    %79 = arith.mulf %77, %78 : vector<8x128xf32>
    %cst_87 = arith.constant dense<0.000000e+00> : vector<8xf32>
    %80 = vector.multi_reduction <add>, %79, %cst_87 [1] : vector<8x128xf32> to vector<8xf32>
    %81 = vector.shape_cast %80 : vector<8xf32> to vector<8x1xf32>
    %cst_88 = arith.constant 1.562500e-02 : f32
    %82 = vector.broadcast %cst_88 : f32 to vector<8x1xf32>
    %83 = arith.mulf %81, %82 : vector<8x1xf32>
    %84 = vector.broadcast %83 : vector<8x1xf32> to vector<8x128xf32>
    %85 = arith.subf %77, %84 : vector<8x128xf32>
    %86 = vector.broadcast %0 : vector<1x128xf32> to vector<8x128xf32>
    %87 = arith.mulf %85, %86 : vector<8x128xf32>
    %88 = arith.mulf %87, %87 : vector<8x128xf32>
    %cst_89 = arith.constant dense<0.000000e+00> : vector<8xf32>
    %89 = vector.multi_reduction <add>, %88, %cst_89 [1] : vector<8x128xf32> to vector<8xf32>
    %90 = vector.shape_cast %89 : vector<8xf32> to vector<8x1xf32>
    %cst_90 = arith.constant 1.562500e-02 : f32
    %91 = vector.broadcast %cst_90 : f32 to vector<8x1xf32>
    %92 = arith.mulf %90, %91 : vector<8x1xf32>
    %cst_91 = arith.constant 9.99999974E-6 : f32
    %93 = vector.broadcast %cst_91 : f32 to vector<8x1xf32>
    %94 = arith.addf %92, %93 : vector<8x1xf32>
    %95 = math.rsqrt %94 : vector<8x1xf32>
    %96 = vector.broadcast %95 : vector<8x1xf32> to vector<8x128xf32>
    %97 = arith.mulf %87, %96 : vector<8x128xf32>
    %c0_92 = arith.constant 0 : index
    %c0_93 = arith.constant 0 : index
    %c0_94 = arith.constant 0 : index
    %c12_95 = arith.constant 12 : index
    %98 = vector.load %arg1[%c0_92, %c0_93, %c0_94, %c12_95] : memref<1x1x8x256xbf16, #tpu.memory_space<vmem>>, vector<1x1x8x128xbf16>
    %99 = vector.shape_cast %98 : vector<1x1x8x128xbf16> to vector<8x128xbf16>
    %100 = arith.extf %99 : vector<8x128xbf16> to vector<8x128xf32>
    %101 = arith.addf %97, %100 : vector<8x128xf32>
    %cst_96 = arith.constant 0.000000e+00 : f32
    %102 = vector.broadcast %cst_96 : f32 to vector<8x128xf32>
    %103 = arith.maximumf %101, %102 : vector<8x128xf32>
    %104 = vector.broadcast %0 : vector<1x128xf32> to vector<8x128xf32>
    %105 = arith.mulf %103, %104 : vector<8x128xf32>
    %106 = arith.truncf %105 : vector<8x128xf32> to vector<8x128xbf16>
    %c0_97 = arith.constant 0 : index
    %c0_98 = arith.constant 0 : index
    %c0_99 = arith.constant 0 : index
    %107 = vector.load %arg5[%c0_97, %c0_98, %c0_99] : memref<1x8x128xbf16, #tpu.memory_space<vmem>>, vector<1x8x128xbf16>
    %108 = vector.shape_cast %107 : vector<1x8x128xbf16> to vector<8x128xbf16>
    %109 = vector.shape_cast %106 : vector<8x128xbf16> to vector<1x8x128xbf16>
    tpu.vector_store %arg5[%c0_97, %c0_98, %c0_99], %109 {strides = array<i32>} : memref<1x8x128xbf16, #tpu.memory_space<vmem>>, vector<1x8x128xbf16>,
    return
  }
  func.func @transform_0(%arg0: i32) -> (i32, i32, i32, i32) {
    %c0_i32 = arith.constant 0 : i32
    %c0_i32_0 = arith.constant 0 : i32
    %c0_i32_1 = arith.constant 0 : i32
    %c0_i32_2 = arith.constant 0 : i32
    return %arg0, %c0_i32, %c0_i32_0, %c0_i32_1 : i32, i32, i32, i32
  }
  func.func @transform_1(%arg0: i32) -> (i32, i32) {
    %c0_i32 = arith.constant 0 : i32
    %c0_i32_0 = arith.constant 0 : i32
    %c0_i32_1 = arith.constant 0 : i32
    return %c0_i32, %c0_i32_0 : i32, i32
  }
  func.func @transform_2(%arg0: i32) -> (i32, i32) {
    %c0_i32 = arith.constant 0 : i32
    %c0_i32_0 = arith.constant 0 : i32
    %c0_i32_1 = arith.constant 0 : i32
    return %c0_i32, %c0_i32_0 : i32, i32
  }
  func.func @transform_3(%arg0: i32) -> (i32, i32) {
    %c0_i32 = arith.constant 0 : i32
    %c0_i32_0 = arith.constant 0 : i32
    %c0_i32_1 = arith.constant 0 : i32
    return %c0_i32, %c0_i32_0 : i32, i32
  }
  func.func @transform_4(%arg0: i32) -> (i32, i32, i32) {
    %c0_i32 = arith.constant 0 : i32
    %c0_i32_0 = arith.constant 0 : i32
    %c0_i32_1 = arith.constant 0 : i32
    return %arg0, %c0_i32, %c0_i32_0 : i32, i32, i32
  }
}

module attributes {stable_mosaic.version = 11 : i64} {
  func.func @_stem_kernel(%arg0: i32, %arg1: memref<1x16x8x256xbf16, #tpu.memory_space<vmem>>, %arg2: memref<8x392xbf16, #tpu.memory_space<vmem>>, %arg3: memref<1x128xf32, #tpu.memory_space<vmem>>, %arg4: memref<1x8x128xbf16, #tpu.memory_space<vmem>>, %arg5: memref<392x128xbf16, #tpu.memory_space<vmem>>) attributes {dimension_semantics = [#tpu.dimension_semantics<parallel>], iteration_bounds = array<i64: 2>, scalar_prefetch = 0 : i64, scratch_operands = 1 : i64, tpu.core_type = #tpu.core_type<tc>, window_params = [{transform_indices = @transform_0, window_bounds = array<i64: 1, 16, 8, 256>}, {pipeline_mode = #tpu.pipeline_mode<synchronous>, transform_indices = @transform_1, window_bounds = array<i64: 8, 392>}, {pipeline_mode = #tpu.pipeline_mode<synchronous>, transform_indices = @transform_2, window_bounds = array<i64: 1, 128>}, {transform_indices = @transform_3, window_bounds = array<i64: 1, 8, 128>}]} {
    %c0 = arith.constant 0 : index
    %c0_0 = arith.constant 0 : index
    %0 = vector.load %arg3[%c0, %c0_0] : memref<1x128xf32, #tpu.memory_space<vmem>>, vector<1x128xf32>
    %c0_1 = arith.constant 0 : index
    %c0_2 = arith.constant 0 : index
    %c0_3 = arith.constant 0 : index
    %c0_4 = arith.constant 0 : index
    %1 = vector.load %arg1[%c0_1, %c0_2, %c0_3, %c0_4] : memref<1x16x8x256xbf16, #tpu.memory_space<vmem>>, vector<1x1x8x128xbf16>
    %2 = vector.shape_cast %1 : vector<1x1x8x128xbf16> to vector<8x128xbf16>
    %c0_5 = arith.constant 0 : index
    %c0_6 = arith.constant 0 : index
    %3 = vector.load %arg5[%c0_5, %c0_6] : memref<392x128xbf16, #tpu.memory_space<vmem>>, vector<8x128xbf16>
    tpu.vector_store %arg5[%c0_5, %c0_6], %2 {strides = array<i32>} : memref<392x128xbf16, #tpu.memory_space<vmem>>, vector<8x128xbf16>,
    %c0_7 = arith.constant 0 : index
    %c1 = arith.constant 1 : index
    %c0_8 = arith.constant 0 : index
    %c0_9 = arith.constant 0 : index
    %4 = vector.load %arg1[%c0_7, %c1, %c0_8, %c0_9] : memref<1x16x8x256xbf16, #tpu.memory_space<vmem>>, vector<1x1x8x128xbf16>
    %5 = vector.shape_cast %4 : vector<1x1x8x128xbf16> to vector<8x128xbf16>
    %c8 = arith.constant 8 : index
    %c0_10 = arith.constant 0 : index
    %6 = vector.load %arg5[%c8, %c0_10] : memref<392x128xbf16, #tpu.memory_space<vmem>>, vector<8x128xbf16>
    tpu.vector_store %arg5[%c8, %c0_10], %5 {strides = array<i32>} : memref<392x128xbf16, #tpu.memory_space<vmem>>, vector<8x128xbf16>,
    %c0_11 = arith.constant 0 : index
    %c2 = arith.constant 2 : index
    %c0_12 = arith.constant 0 : index
    %c0_13 = arith.constant 0 : index
    %7 = vector.load %arg1[%c0_11, %c2, %c0_12, %c0_13] : memref<1x16x8x256xbf16, #tpu.memory_space<vmem>>, vector<1x1x8x128xbf16>
    %8 = vector.shape_cast %7 : vector<1x1x8x128xbf16> to vector<8x128xbf16>
    %c16 = arith.constant 16 : index
    %c0_14 = arith.constant 0 : index
    %9 = vector.load %arg5[%c16, %c0_14] : memref<392x128xbf16, #tpu.memory_space<vmem>>, vector<8x128xbf16>
    tpu.vector_store %arg5[%c16, %c0_14], %8 {strides = array<i32>} : memref<392x128xbf16, #tpu.memory_space<vmem>>, vector<8x128xbf16>,
    %c0_15 = arith.constant 0 : index
    %c3 = arith.constant 3 : index
    %c0_16 = arith.constant 0 : index
    %c0_17 = arith.constant 0 : index
    %10 = vector.load %arg1[%c0_15, %c3, %c0_16, %c0_17] : memref<1x16x8x256xbf16, #tpu.memory_space<vmem>>, vector<1x1x8x128xbf16>
    %11 = vector.shape_cast %10 : vector<1x1x8x128xbf16> to vector<8x128xbf16>
    %c24 = arith.constant 24 : index
    %c0_18 = arith.constant 0 : index
    %12 = vector.load %arg5[%c24, %c0_18] : memref<392x128xbf16, #tpu.memory_space<vmem>>, vector<8x128xbf16>
    tpu.vector_store %arg5[%c24, %c0_18], %11 {strides = array<i32>} : memref<392x128xbf16, #tpu.memory_space<vmem>>, vector<8x128xbf16>,
    %c0_19 = arith.constant 0 : index
    %c0_20 = arith.constant 0 : index
    %c0_21 = arith.constant 0 : index
    %c1_22 = arith.constant 1 : index
    %13 = vector.load %arg1[%c0_19, %c0_20, %c0_21, %c1_22] : memref<1x16x8x256xbf16, #tpu.memory_space<vmem>>, vector<1x1x8x128xbf16>
    %14 = vector.shape_cast %13 : vector<1x1x8x128xbf16> to vector<8x128xbf16>
    %c32 = arith.constant 32 : index
    %c0_23 = arith.constant 0 : index
    %15 = vector.load %arg5[%c32, %c0_23] : memref<392x128xbf16, #tpu.memory_space<vmem>>, vector<8x128xbf16>
    tpu.vector_store %arg5[%c32, %c0_23], %14 {strides = array<i32>} : memref<392x128xbf16, #tpu.memory_space<vmem>>, vector<8x128xbf16>,
    %c0_24 = arith.constant 0 : index
    %c1_25 = arith.constant 1 : index
    %c0_26 = arith.constant 0 : index
    %c1_27 = arith.constant 1 : index
    %16 = vector.load %arg1[%c0_24, %c1_25, %c0_26, %c1_27] : memref<1x16x8x256xbf16, #tpu.memory_space<vmem>>, vector<1x1x8x128xbf16>
    %17 = vector.shape_cast %16 : vector<1x1x8x128xbf16> to vector<8x128xbf16>
    %c40 = arith.constant 40 : index
    %c0_28 = arith.constant 0 : index
    %18 = vector.load %arg5[%c40, %c0_28] : memref<392x128xbf16, #tpu.memory_space<vmem>>, vector<8x128xbf16>
    tpu.vector_store %arg5[%c40, %c0_28], %17 {strides = array<i32>} : memref<392x128xbf16, #tpu.memory_space<vmem>>, vector<8x128xbf16>,
    %c0_29 = arith.constant 0 : index
    %c2_30 = arith.constant 2 : index
    %c0_31 = arith.constant 0 : index
    %c1_32 = arith.constant 1 : index
    %19 = vector.load %arg1[%c0_29, %c2_30, %c0_31, %c1_32] : memref<1x16x8x256xbf16, #tpu.memory_space<vmem>>, vector<1x1x8x128xbf16>
    %20 = vector.shape_cast %19 : vector<1x1x8x128xbf16> to vector<8x128xbf16>
    %c48 = arith.constant 48 : index
    %c0_33 = arith.constant 0 : index
    %21 = vector.load %arg5[%c48, %c0_33] : memref<392x128xbf16, #tpu.memory_space<vmem>>, vector<8x128xbf16>
    tpu.vector_store %arg5[%c48, %c0_33], %20 {strides = array<i32>} : memref<392x128xbf16, #tpu.memory_space<vmem>>, vector<8x128xbf16>,
    %c0_34 = arith.constant 0 : index
    %c4 = arith.constant 4 : index
    %c0_35 = arith.constant 0 : index
    %c0_36 = arith.constant 0 : index
    %22 = vector.load %arg1[%c0_34, %c4, %c0_35, %c0_36] : memref<1x16x8x256xbf16, #tpu.memory_space<vmem>>, vector<1x1x8x128xbf16>
    %23 = vector.shape_cast %22 : vector<1x1x8x128xbf16> to vector<8x128xbf16>
    %c56 = arith.constant 56 : index
    %c0_37 = arith.constant 0 : index
    %24 = vector.load %arg5[%c56, %c0_37] : memref<392x128xbf16, #tpu.memory_space<vmem>>, vector<8x128xbf16>
    tpu.vector_store %arg5[%c56, %c0_37], %23 {strides = array<i32>} : memref<392x128xbf16, #tpu.memory_space<vmem>>, vector<8x128xbf16>,
    %c0_38 = arith.constant 0 : index
    %c5 = arith.constant 5 : index
    %c0_39 = arith.constant 0 : index
    %c0_40 = arith.constant 0 : index
    %25 = vector.load %arg1[%c0_38, %c5, %c0_39, %c0_40] : memref<1x16x8x256xbf16, #tpu.memory_space<vmem>>, vector<1x1x8x128xbf16>
    %26 = vector.shape_cast %25 : vector<1x1x8x128xbf16> to vector<8x128xbf16>
    %c64 = arith.constant 64 : index
    %c0_41 = arith.constant 0 : index
    %27 = vector.load %arg5[%c64, %c0_41] : memref<392x128xbf16, #tpu.memory_space<vmem>>, vector<8x128xbf16>
    tpu.vector_store %arg5[%c64, %c0_41], %26 {strides = array<i32>} : memref<392x128xbf16, #tpu.memory_space<vmem>>, vector<8x128xbf16>,
    %c0_42 = arith.constant 0 : index
    %c6 = arith.constant 6 : index
    %c0_43 = arith.constant 0 : index
    %c0_44 = arith.constant 0 : index
    %28 = vector.load %arg1[%c0_42, %c6, %c0_43, %c0_44] : memref<1x16x8x256xbf16, #tpu.memory_space<vmem>>, vector<1x1x8x128xbf16>
    %29 = vector.shape_cast %28 : vector<1x1x8x128xbf16> to vector<8x128xbf16>
    %c72 = arith.constant 72 : index
    %c0_45 = arith.constant 0 : index
    %30 = vector.load %arg5[%c72, %c0_45] : memref<392x128xbf16, #tpu.memory_space<vmem>>, vector<8x128xbf16>
    tpu.vector_store %arg5[%c72, %c0_45], %29 {strides = array<i32>} : memref<392x128xbf16, #tpu.memory_space<vmem>>, vector<8x128xbf16>,
    %c0_46 = arith.constant 0 : index
    %c7 = arith.constant 7 : index
    %c0_47 = arith.constant 0 : index
    %c0_48 = arith.constant 0 : index
    %31 = vector.load %arg1[%c0_46, %c7, %c0_47, %c0_48] : memref<1x16x8x256xbf16, #tpu.memory_space<vmem>>, vector<1x1x8x128xbf16>
    %32 = vector.shape_cast %31 : vector<1x1x8x128xbf16> to vector<8x128xbf16>
    %c80 = arith.constant 80 : index
    %c0_49 = arith.constant 0 : index
    %33 = vector.load %arg5[%c80, %c0_49] : memref<392x128xbf16, #tpu.memory_space<vmem>>, vector<8x128xbf16>
    tpu.vector_store %arg5[%c80, %c0_49], %32 {strides = array<i32>} : memref<392x128xbf16, #tpu.memory_space<vmem>>, vector<8x128xbf16>,
    %c0_50 = arith.constant 0 : index
    %c4_51 = arith.constant 4 : index
    %c0_52 = arith.constant 0 : index
    %c1_53 = arith.constant 1 : index
    %34 = vector.load %arg1[%c0_50, %c4_51, %c0_52, %c1_53] : memref<1x16x8x256xbf16, #tpu.memory_space<vmem>>, vector<1x1x8x128xbf16>
    %35 = vector.shape_cast %34 : vector<1x1x8x128xbf16> to vector<8x128xbf16>
    %c88 = arith.constant 88 : index
    %c0_54 = arith.constant 0 : index
    %36 = vector.load %arg5[%c88, %c0_54] : memref<392x128xbf16, #tpu.memory_space<vmem>>, vector<8x128xbf16>
    tpu.vector_store %arg5[%c88, %c0_54], %35 {strides = array<i32>} : memref<392x128xbf16, #tpu.memory_space<vmem>>, vector<8x128xbf16>,
    %c0_55 = arith.constant 0 : index
    %c5_56 = arith.constant 5 : index
    %c0_57 = arith.constant 0 : index
    %c1_58 = arith.constant 1 : index
    %37 = vector.load %arg1[%c0_55, %c5_56, %c0_57, %c1_58] : memref<1x16x8x256xbf16, #tpu.memory_space<vmem>>, vector<1x1x8x128xbf16>
    %38 = vector.shape_cast %37 : vector<1x1x8x128xbf16> to vector<8x128xbf16>
    %c96 = arith.constant 96 : index
    %c0_59 = arith.constant 0 : index
    %39 = vector.load %arg5[%c96, %c0_59] : memref<392x128xbf16, #tpu.memory_space<vmem>>, vector<8x128xbf16>
    tpu.vector_store %arg5[%c96, %c0_59], %38 {strides = array<i32>} : memref<392x128xbf16, #tpu.memory_space<vmem>>, vector<8x128xbf16>,
    %c0_60 = arith.constant 0 : index
    %c6_61 = arith.constant 6 : index
    %c0_62 = arith.constant 0 : index
    %c1_63 = arith.constant 1 : index
    %40 = vector.load %arg1[%c0_60, %c6_61, %c0_62, %c1_63] : memref<1x16x8x256xbf16, #tpu.memory_space<vmem>>, vector<1x1x8x128xbf16>
    %41 = vector.shape_cast %40 : vector<1x1x8x128xbf16> to vector<8x128xbf16>
    %c104 = arith.constant 104 : index
    %c0_64 = arith.constant 0 : index
    %42 = vector.load %arg5[%c104, %c0_64] : memref<392x128xbf16, #tpu.memory_space<vmem>>, vector<8x128xbf16>
    tpu.vector_store %arg5[%c104, %c0_64], %41 {strides = array<i32>} : memref<392x128xbf16, #tpu.memory_space<vmem>>, vector<8x128xbf16>,
    %c0_65 = arith.constant 0 : index
    %c8_66 = arith.constant 8 : index
    %c0_67 = arith.constant 0 : index
    %c0_68 = arith.constant 0 : index
    %43 = vector.load %arg1[%c0_65, %c8_66, %c0_67, %c0_68] : memref<1x16x8x256xbf16, #tpu.memory_space<vmem>>, vector<1x1x8x128xbf16>
    %44 = vector.shape_cast %43 : vector<1x1x8x128xbf16> to vector<8x128xbf16>
    %c112 = arith.constant 112 : index
    %c0_69 = arith.constant 0 : index
    %45 = vector.load %arg5[%c112, %c0_69] : memref<392x128xbf16, #tpu.memory_space<vmem>>, vector<8x128xbf16>
    tpu.vector_store %arg5[%c112, %c0_69], %44 {strides = array<i32>} : memref<392x128xbf16, #tpu.memory_space<vmem>>, vector<8x128xbf16>,
    %c0_70 = arith.constant 0 : index
    %c9 = arith.constant 9 : index
    %c0_71 = arith.constant 0 : index
    %c0_72 = arith.constant 0 : index
    %46 = vector.load %arg1[%c0_70, %c9, %c0_71, %c0_72] : memref<1x16x8x256xbf16, #tpu.memory_space<vmem>>, vector<1x1x8x128xbf16>
    %47 = vector.shape_cast %46 : vector<1x1x8x128xbf16> to vector<8x128xbf16>
    %c120 = arith.constant 120 : index
    %c0_73 = arith.constant 0 : index
    %48 = vector.load %arg5[%c120, %c0_73] : memref<392x128xbf16, #tpu.memory_space<vmem>>, vector<8x128xbf16>
    tpu.vector_store %arg5[%c120, %c0_73], %47 {strides = array<i32>} : memref<392x128xbf16, #tpu.memory_space<vmem>>, vector<8x128xbf16>,
    %c0_74 = arith.constant 0 : index
    %c10 = arith.constant 10 : index
    %c0_75 = arith.constant 0 : index
    %c0_76 = arith.constant 0 : index
    %49 = vector.load %arg1[%c0_74, %c10, %c0_75, %c0_76] : memref<1x16x8x256xbf16, #tpu.memory_space<vmem>>, vector<1x1x8x128xbf16>
    %50 = vector.shape_cast %49 : vector<1x1x8x128xbf16> to vector<8x128xbf16>
    %c128 = arith.constant 128 : index
    %c0_77 = arith.constant 0 : index
    %51 = vector.load %arg5[%c128, %c0_77] : memref<392x128xbf16, #tpu.memory_space<vmem>>, vector<8x128xbf16>
    tpu.vector_store %arg5[%c128, %c0_77], %50 {strides = array<i32>} : memref<392x128xbf16, #tpu.memory_space<vmem>>, vector<8x128xbf16>,
    %c0_78 = arith.constant 0 : index
    %c11 = arith.constant 11 : index
    %c0_79 = arith.constant 0 : index
    %c0_80 = arith.constant 0 : index
    %52 = vector.load %arg1[%c0_78, %c11, %c0_79, %c0_80] : memref<1x16x8x256xbf16, #tpu.memory_space<vmem>>, vector<1x1x8x128xbf16>
    %53 = vector.shape_cast %52 : vector<1x1x8x128xbf16> to vector<8x128xbf16>
    %c136 = arith.constant 136 : index
    %c0_81 = arith.constant 0 : index
    %54 = vector.load %arg5[%c136, %c0_81] : memref<392x128xbf16, #tpu.memory_space<vmem>>, vector<8x128xbf16>
    tpu.vector_store %arg5[%c136, %c0_81], %53 {strides = array<i32>} : memref<392x128xbf16, #tpu.memory_space<vmem>>, vector<8x128xbf16>,
    %c0_82 = arith.constant 0 : index
    %c8_83 = arith.constant 8 : index
    %c0_84 = arith.constant 0 : index
    %c1_85 = arith.constant 1 : index
    %55 = vector.load %arg1[%c0_82, %c8_83, %c0_84, %c1_85] : memref<1x16x8x256xbf16, #tpu.memory_space<vmem>>, vector<1x1x8x128xbf16>
    %56 = vector.shape_cast %55 : vector<1x1x8x128xbf16> to vector<8x128xbf16>
    %c144 = arith.constant 144 : index
    %c0_86 = arith.constant 0 : index
    %57 = vector.load %arg5[%c144, %c0_86] : memref<392x128xbf16, #tpu.memory_space<vmem>>, vector<8x128xbf16>
    tpu.vector_store %arg5[%c144, %c0_86], %56 {strides = array<i32>} : memref<392x128xbf16, #tpu.memory_space<vmem>>, vector<8x128xbf16>,
    %c0_87 = arith.constant 0 : index
    %c9_88 = arith.constant 9 : index
    %c0_89 = arith.constant 0 : index
    %c1_90 = arith.constant 1 : index
    %58 = vector.load %arg1[%c0_87, %c9_88, %c0_89, %c1_90] : memref<1x16x8x256xbf16, #tpu.memory_space<vmem>>, vector<1x1x8x128xbf16>
    %59 = vector.shape_cast %58 : vector<1x1x8x128xbf16> to vector<8x128xbf16>
    %c152 = arith.constant 152 : index
    %c0_91 = arith.constant 0 : index
    %60 = vector.load %arg5[%c152, %c0_91] : memref<392x128xbf16, #tpu.memory_space<vmem>>, vector<8x128xbf16>
    tpu.vector_store %arg5[%c152, %c0_91], %59 {strides = array<i32>} : memref<392x128xbf16, #tpu.memory_space<vmem>>, vector<8x128xbf16>,
    %c0_92 = arith.constant 0 : index
    %c10_93 = arith.constant 10 : index
    %c0_94 = arith.constant 0 : index
    %c1_95 = arith.constant 1 : index
    %61 = vector.load %arg1[%c0_92, %c10_93, %c0_94, %c1_95] : memref<1x16x8x256xbf16, #tpu.memory_space<vmem>>, vector<1x1x8x128xbf16>
    %62 = vector.shape_cast %61 : vector<1x1x8x128xbf16> to vector<8x128xbf16>
    %c160 = arith.constant 160 : index
    %c0_96 = arith.constant 0 : index
    %63 = vector.load %arg5[%c160, %c0_96] : memref<392x128xbf16, #tpu.memory_space<vmem>>, vector<8x128xbf16>
    tpu.vector_store %arg5[%c160, %c0_96], %62 {strides = array<i32>} : memref<392x128xbf16, #tpu.memory_space<vmem>>, vector<8x128xbf16>,
    %c0_97 = arith.constant 0 : index
    %c12 = arith.constant 12 : index
    %c0_98 = arith.constant 0 : index
    %c0_99 = arith.constant 0 : index
    %64 = vector.load %arg1[%c0_97, %c12, %c0_98, %c0_99] : memref<1x16x8x256xbf16, #tpu.memory_space<vmem>>, vector<1x1x8x128xbf16>
    %65 = vector.shape_cast %64 : vector<1x1x8x128xbf16> to vector<8x128xbf16>
    %c168 = arith.constant 168 : index
    %c0_100 = arith.constant 0 : index
    %66 = vector.load %arg5[%c168, %c0_100] : memref<392x128xbf16, #tpu.memory_space<vmem>>, vector<8x128xbf16>
    tpu.vector_store %arg5[%c168, %c0_100], %65 {strides = array<i32>} : memref<392x128xbf16, #tpu.memory_space<vmem>>, vector<8x128xbf16>,
    %c0_101 = arith.constant 0 : index
    %c13 = arith.constant 13 : index
    %c0_102 = arith.constant 0 : index
    %c0_103 = arith.constant 0 : index
    %67 = vector.load %arg1[%c0_101, %c13, %c0_102, %c0_103] : memref<1x16x8x256xbf16, #tpu.memory_space<vmem>>, vector<1x1x8x128xbf16>
    %68 = vector.shape_cast %67 : vector<1x1x8x128xbf16> to vector<8x128xbf16>
    %c176 = arith.constant 176 : index
    %c0_104 = arith.constant 0 : index
    %69 = vector.load %arg5[%c176, %c0_104] : memref<392x128xbf16, #tpu.memory_space<vmem>>, vector<8x128xbf16>
    tpu.vector_store %arg5[%c176, %c0_104], %68 {strides = array<i32>} : memref<392x128xbf16, #tpu.memory_space<vmem>>, vector<8x128xbf16>,
    %c0_105 = arith.constant 0 : index
    %c14 = arith.constant 14 : index
    %c0_106 = arith.constant 0 : index
    %c0_107 = arith.constant 0 : index
    %70 = vector.load %arg1[%c0_105, %c14, %c0_106, %c0_107] : memref<1x16x8x256xbf16, #tpu.memory_space<vmem>>, vector<1x1x8x128xbf16>
    %71 = vector.shape_cast %70 : vector<1x1x8x128xbf16> to vector<8x128xbf16>
    %c184 = arith.constant 184 : index
    %c0_108 = arith.constant 0 : index
    %72 = vector.load %arg5[%c184, %c0_108] : memref<392x128xbf16, #tpu.memory_space<vmem>>, vector<8x128xbf16>
    tpu.vector_store %arg5[%c184, %c0_108], %71 {strides = array<i32>} : memref<392x128xbf16, #tpu.memory_space<vmem>>, vector<8x128xbf16>,
    %c0_109 = arith.constant 0 : index
    %c15 = arith.constant 15 : index
    %c0_110 = arith.constant 0 : index
    %c0_111 = arith.constant 0 : index
    %73 = vector.load %arg1[%c0_109, %c15, %c0_110, %c0_111] : memref<1x16x8x256xbf16, #tpu.memory_space<vmem>>, vector<1x1x8x128xbf16>
    %74 = vector.shape_cast %73 : vector<1x1x8x128xbf16> to vector<8x128xbf16>
    %c192 = arith.constant 192 : index
    %c0_112 = arith.constant 0 : index
    %75 = vector.load %arg5[%c192, %c0_112] : memref<392x128xbf16, #tpu.memory_space<vmem>>, vector<8x128xbf16>
    tpu.vector_store %arg5[%c192, %c0_112], %74 {strides = array<i32>} : memref<392x128xbf16, #tpu.memory_space<vmem>>, vector<8x128xbf16>,
    %c0_113 = arith.constant 0 : index
    %c12_114 = arith.constant 12 : index
    %c0_115 = arith.constant 0 : index
    %c1_116 = arith.constant 1 : index
    %76 = vector.load %arg1[%c0_113, %c12_114, %c0_115, %c1_116] : memref<1x16x8x256xbf16, #tpu.memory_space<vmem>>, vector<1x1x8x128xbf16>
    %77 = vector.shape_cast %76 : vector<1x1x8x128xbf16> to vector<8x128xbf16>
    %c200 = arith.constant 200 : index
    %c0_117 = arith.constant 0 : index
    %78 = vector.load %arg5[%c200, %c0_117] : memref<392x128xbf16, #tpu.memory_space<vmem>>, vector<8x128xbf16>
    tpu.vector_store %arg5[%c200, %c0_117], %77 {strides = array<i32>} : memref<392x128xbf16, #tpu.memory_space<vmem>>, vector<8x128xbf16>,
    %c0_118 = arith.constant 0 : index
    %c13_119 = arith.constant 13 : index
    %c0_120 = arith.constant 0 : index
    %c1_121 = arith.constant 1 : index
    %79 = vector.load %arg1[%c0_118, %c13_119, %c0_120, %c1_121] : memref<1x16x8x256xbf16, #tpu.memory_space<vmem>>, vector<1x1x8x128xbf16>
    %80 = vector.shape_cast %79 : vector<1x1x8x128xbf16> to vector<8x128xbf16>
    %c208 = arith.constant 208 : index
    %c0_122 = arith.constant 0 : index
    %81 = vector.load %arg5[%c208, %c0_122] : memref<392x128xbf16, #tpu.memory_space<vmem>>, vector<8x128xbf16>
    tpu.vector_store %arg5[%c208, %c0_122], %80 {strides = array<i32>} : memref<392x128xbf16, #tpu.memory_space<vmem>>, vector<8x128xbf16>,
    %c0_123 = arith.constant 0 : index
    %c14_124 = arith.constant 14 : index
    %c0_125 = arith.constant 0 : index
    %c1_126 = arith.constant 1 : index
    %82 = vector.load %arg1[%c0_123, %c14_124, %c0_125, %c1_126] : memref<1x16x8x256xbf16, #tpu.memory_space<vmem>>, vector<1x1x8x128xbf16>
    %83 = vector.shape_cast %82 : vector<1x1x8x128xbf16> to vector<8x128xbf16>
    %c216 = arith.constant 216 : index
    %c0_127 = arith.constant 0 : index
    %84 = vector.load %arg5[%c216, %c0_127] : memref<392x128xbf16, #tpu.memory_space<vmem>>, vector<8x128xbf16>
    tpu.vector_store %arg5[%c216, %c0_127], %83 {strides = array<i32>} : memref<392x128xbf16, #tpu.memory_space<vmem>>, vector<8x128xbf16>,
    %c0_128 = arith.constant 0 : index
    %c0_129 = arith.constant 0 : index
    %c0_130 = arith.constant 0 : index
    %c11_131 = arith.constant 11 : index
    %85 = vector.load %arg1[%c0_128, %c0_129, %c0_130, %c11_131] : memref<1x16x8x256xbf16, #tpu.memory_space<vmem>>, vector<1x1x8x128xbf16>
    %86 = vector.shape_cast %85 : vector<1x1x8x128xbf16> to vector<8x128xbf16>
    %c224 = arith.constant 224 : index
    %c0_132 = arith.constant 0 : index
    %87 = vector.load %arg5[%c224, %c0_132] : memref<392x128xbf16, #tpu.memory_space<vmem>>, vector<8x128xbf16>
    tpu.vector_store %arg5[%c224, %c0_132], %86 {strides = array<i32>} : memref<392x128xbf16, #tpu.memory_space<vmem>>, vector<8x128xbf16>,
    %c0_133 = arith.constant 0 : index
    %c1_134 = arith.constant 1 : index
    %c0_135 = arith.constant 0 : index
    %c11_136 = arith.constant 11 : index
    %88 = vector.load %arg1[%c0_133, %c1_134, %c0_135, %c11_136] : memref<1x16x8x256xbf16, #tpu.memory_space<vmem>>, vector<1x1x8x128xbf16>
    %89 = vector.shape_cast %88 : vector<1x1x8x128xbf16> to vector<8x128xbf16>
    %c232 = arith.constant 232 : index
    %c0_137 = arith.constant 0 : index
    %90 = vector.load %arg5[%c232, %c0_137] : memref<392x128xbf16, #tpu.memory_space<vmem>>, vector<8x128xbf16>
    tpu.vector_store %arg5[%c232, %c0_137], %89 {strides = array<i32>} : memref<392x128xbf16, #tpu.memory_space<vmem>>, vector<8x128xbf16>,
    %c0_138 = arith.constant 0 : index
    %c2_139 = arith.constant 2 : index
    %c0_140 = arith.constant 0 : index
    %c11_141 = arith.constant 11 : index
    %91 = vector.load %arg1[%c0_138, %c2_139, %c0_140, %c11_141] : memref<1x16x8x256xbf16, #tpu.memory_space<vmem>>, vector<1x1x8x128xbf16>
    %92 = vector.shape_cast %91 : vector<1x1x8x128xbf16> to vector<8x128xbf16>
    %c240 = arith.constant 240 : index
    %c0_142 = arith.constant 0 : index
    %93 = vector.load %arg5[%c240, %c0_142] : memref<392x128xbf16, #tpu.memory_space<vmem>>, vector<8x128xbf16>
    tpu.vector_store %arg5[%c240, %c0_142], %92 {strides = array<i32>} : memref<392x128xbf16, #tpu.memory_space<vmem>>, vector<8x128xbf16>,
    %c0_143 = arith.constant 0 : index
    %c3_144 = arith.constant 3 : index
    %c0_145 = arith.constant 0 : index
    %c11_146 = arith.constant 11 : index
    %94 = vector.load %arg1[%c0_143, %c3_144, %c0_145, %c11_146] : memref<1x16x8x256xbf16, #tpu.memory_space<vmem>>, vector<1x1x8x128xbf16>
    %95 = vector.shape_cast %94 : vector<1x1x8x128xbf16> to vector<8x128xbf16>
    %c248 = arith.constant 248 : index
    %c0_147 = arith.constant 0 : index
    %96 = vector.load %arg5[%c248, %c0_147] : memref<392x128xbf16, #tpu.memory_space<vmem>>, vector<8x128xbf16>
    tpu.vector_store %arg5[%c248, %c0_147], %95 {strides = array<i32>} : memref<392x128xbf16, #tpu.memory_space<vmem>>, vector<8x128xbf16>,
    %c0_148 = arith.constant 0 : index
    %c0_149 = arith.constant 0 : index
    %c0_150 = arith.constant 0 : index
    %c12_151 = arith.constant 12 : index
    %97 = vector.load %arg1[%c0_148, %c0_149, %c0_150, %c12_151] : memref<1x16x8x256xbf16, #tpu.memory_space<vmem>>, vector<1x1x8x128xbf16>
    %98 = vector.shape_cast %97 : vector<1x1x8x128xbf16> to vector<8x128xbf16>
    %c256 = arith.constant 256 : index
    %c0_152 = arith.constant 0 : index
    %99 = vector.load %arg5[%c256, %c0_152] : memref<392x128xbf16, #tpu.memory_space<vmem>>, vector<8x128xbf16>
    tpu.vector_store %arg5[%c256, %c0_152], %98 {strides = array<i32>} : memref<392x128xbf16, #tpu.memory_space<vmem>>, vector<8x128xbf16>,
    %c0_153 = arith.constant 0 : index
    %c1_154 = arith.constant 1 : index
    %c0_155 = arith.constant 0 : index
    %c12_156 = arith.constant 12 : index
    %100 = vector.load %arg1[%c0_153, %c1_154, %c0_155, %c12_156] : memref<1x16x8x256xbf16, #tpu.memory_space<vmem>>, vector<1x1x8x128xbf16>
    %101 = vector.shape_cast %100 : vector<1x1x8x128xbf16> to vector<8x128xbf16>
    %c264 = arith.constant 264 : index
    %c0_157 = arith.constant 0 : index
    %102 = vector.load %arg5[%c264, %c0_157] : memref<392x128xbf16, #tpu.memory_space<vmem>>, vector<8x128xbf16>
    tpu.vector_store %arg5[%c264, %c0_157], %101 {strides = array<i32>} : memref<392x128xbf16, #tpu.memory_space<vmem>>, vector<8x128xbf16>,
    %c0_158 = arith.constant 0 : index
    %c2_159 = arith.constant 2 : index
    %c0_160 = arith.constant 0 : index
    %c12_161 = arith.constant 12 : index
    %103 = vector.load %arg1[%c0_158, %c2_159, %c0_160, %c12_161] : memref<1x16x8x256xbf16, #tpu.memory_space<vmem>>, vector<1x1x8x128xbf16>
    %104 = vector.shape_cast %103 : vector<1x1x8x128xbf16> to vector<8x128xbf16>
    %c272 = arith.constant 272 : index
    %c0_162 = arith.constant 0 : index
    %105 = vector.load %arg5[%c272, %c0_162] : memref<392x128xbf16, #tpu.memory_space<vmem>>, vector<8x128xbf16>
    tpu.vector_store %arg5[%c272, %c0_162], %104 {strides = array<i32>} : memref<392x128xbf16, #tpu.memory_space<vmem>>, vector<8x128xbf16>,
    %c0_163 = arith.constant 0 : index
    %c4_164 = arith.constant 4 : index
    %c0_165 = arith.constant 0 : index
    %c11_166 = arith.constant 11 : index
    %106 = vector.load %arg1[%c0_163, %c4_164, %c0_165, %c11_166] : memref<1x16x8x256xbf16, #tpu.memory_space<vmem>>, vector<1x1x8x128xbf16>
    %107 = vector.shape_cast %106 : vector<1x1x8x128xbf16> to vector<8x128xbf16>
    %c280 = arith.constant 280 : index
    %c0_167 = arith.constant 0 : index
    %108 = vector.load %arg5[%c280, %c0_167] : memref<392x128xbf16, #tpu.memory_space<vmem>>, vector<8x128xbf16>
    tpu.vector_store %arg5[%c280, %c0_167], %107 {strides = array<i32>} : memref<392x128xbf16, #tpu.memory_space<vmem>>, vector<8x128xbf16>,
    %c0_168 = arith.constant 0 : index
    %c5_169 = arith.constant 5 : index
    %c0_170 = arith.constant 0 : index
    %c11_171 = arith.constant 11 : index
    %109 = vector.load %arg1[%c0_168, %c5_169, %c0_170, %c11_171] : memref<1x16x8x256xbf16, #tpu.memory_space<vmem>>, vector<1x1x8x128xbf16>
    %110 = vector.shape_cast %109 : vector<1x1x8x128xbf16> to vector<8x128xbf16>
    %c288 = arith.constant 288 : index
    %c0_172 = arith.constant 0 : index
    %111 = vector.load %arg5[%c288, %c0_172] : memref<392x128xbf16, #tpu.memory_space<vmem>>, vector<8x128xbf16>
    tpu.vector_store %arg5[%c288, %c0_172], %110 {strides = array<i32>} : memref<392x128xbf16, #tpu.memory_space<vmem>>, vector<8x128xbf16>,
    %c0_173 = arith.constant 0 : index
    %c6_174 = arith.constant 6 : index
    %c0_175 = arith.constant 0 : index
    %c11_176 = arith.constant 11 : index
    %112 = vector.load %arg1[%c0_173, %c6_174, %c0_175, %c11_176] : memref<1x16x8x256xbf16, #tpu.memory_space<vmem>>, vector<1x1x8x128xbf16>
    %113 = vector.shape_cast %112 : vector<1x1x8x128xbf16> to vector<8x128xbf16>
    %c296 = arith.constant 296 : index
    %c0_177 = arith.constant 0 : index
    %114 = vector.load %arg5[%c296, %c0_177] : memref<392x128xbf16, #tpu.memory_space<vmem>>, vector<8x128xbf16>
    tpu.vector_store %arg5[%c296, %c0_177], %113 {strides = array<i32>} : memref<392x128xbf16, #tpu.memory_space<vmem>>, vector<8x128xbf16>,
    %c0_178 = arith.constant 0 : index
    %c7_179 = arith.constant 7 : index
    %c0_180 = arith.constant 0 : index
    %c11_181 = arith.constant 11 : index
    %115 = vector.load %arg1[%c0_178, %c7_179, %c0_180, %c11_181] : memref<1x16x8x256xbf16, #tpu.memory_space<vmem>>, vector<1x1x8x128xbf16>
    %116 = vector.shape_cast %115 : vector<1x1x8x128xbf16> to vector<8x128xbf16>
    %c304 = arith.constant 304 : index
    %c0_182 = arith.constant 0 : index
    %117 = vector.load %arg5[%c304, %c0_182] : memref<392x128xbf16, #tpu.memory_space<vmem>>, vector<8x128xbf16>
    tpu.vector_store %arg5[%c304, %c0_182], %116 {strides = array<i32>} : memref<392x128xbf16, #tpu.memory_space<vmem>>, vector<8x128xbf16>,
    %c0_183 = arith.constant 0 : index
    %c4_184 = arith.constant 4 : index
    %c0_185 = arith.constant 0 : index
    %c12_186 = arith.constant 12 : index
    %118 = vector.load %arg1[%c0_183, %c4_184, %c0_185, %c12_186] : memref<1x16x8x256xbf16, #tpu.memory_space<vmem>>, vector<1x1x8x128xbf16>
    %119 = vector.shape_cast %118 : vector<1x1x8x128xbf16> to vector<8x128xbf16>
    %c312 = arith.constant 312 : index
    %c0_187 = arith.constant 0 : index
    %120 = vector.load %arg5[%c312, %c0_187] : memref<392x128xbf16, #tpu.memory_space<vmem>>, vector<8x128xbf16>
    tpu.vector_store %arg5[%c312, %c0_187], %119 {strides = array<i32>} : memref<392x128xbf16, #tpu.memory_space<vmem>>, vector<8x128xbf16>,
    %c0_188 = arith.constant 0 : index
    %c5_189 = arith.constant 5 : index
    %c0_190 = arith.constant 0 : index
    %c12_191 = arith.constant 12 : index
    %121 = vector.load %arg1[%c0_188, %c5_189, %c0_190, %c12_191] : memref<1x16x8x256xbf16, #tpu.memory_space<vmem>>, vector<1x1x8x128xbf16>
    %122 = vector.shape_cast %121 : vector<1x1x8x128xbf16> to vector<8x128xbf16>
    %c320 = arith.constant 320 : index
    %c0_192 = arith.constant 0 : index
    %123 = vector.load %arg5[%c320, %c0_192] : memref<392x128xbf16, #tpu.memory_space<vmem>>, vector<8x128xbf16>
    tpu.vector_store %arg5[%c320, %c0_192], %122 {strides = array<i32>} : memref<392x128xbf16, #tpu.memory_space<vmem>>, vector<8x128xbf16>,
    %c0_193 = arith.constant 0 : index
    %c6_194 = arith.constant 6 : index
    %c0_195 = arith.constant 0 : index
    %c12_196 = arith.constant 12 : index
    %124 = vector.load %arg1[%c0_193, %c6_194, %c0_195, %c12_196] : memref<1x16x8x256xbf16, #tpu.memory_space<vmem>>, vector<1x1x8x128xbf16>
    %125 = vector.shape_cast %124 : vector<1x1x8x128xbf16> to vector<8x128xbf16>
    %c328 = arith.constant 328 : index
    %c0_197 = arith.constant 0 : index
    %126 = vector.load %arg5[%c328, %c0_197] : memref<392x128xbf16, #tpu.memory_space<vmem>>, vector<8x128xbf16>
    tpu.vector_store %arg5[%c328, %c0_197], %125 {strides = array<i32>} : memref<392x128xbf16, #tpu.memory_space<vmem>>, vector<8x128xbf16>,
    %c0_198 = arith.constant 0 : index
    %c8_199 = arith.constant 8 : index
    %c0_200 = arith.constant 0 : index
    %c11_201 = arith.constant 11 : index
    %127 = vector.load %arg1[%c0_198, %c8_199, %c0_200, %c11_201] : memref<1x16x8x256xbf16, #tpu.memory_space<vmem>>, vector<1x1x8x128xbf16>
    %128 = vector.shape_cast %127 : vector<1x1x8x128xbf16> to vector<8x128xbf16>
    %c336 = arith.constant 336 : index
    %c0_202 = arith.constant 0 : index
    %129 = vector.load %arg5[%c336, %c0_202] : memref<392x128xbf16, #tpu.memory_space<vmem>>, vector<8x128xbf16>
    tpu.vector_store %arg5[%c336, %c0_202], %128 {strides = array<i32>} : memref<392x128xbf16, #tpu.memory_space<vmem>>, vector<8x128xbf16>,
    %c0_203 = arith.constant 0 : index
    %c9_204 = arith.constant 9 : index
    %c0_205 = arith.constant 0 : index
    %c11_206 = arith.constant 11 : index
    %130 = vector.load %arg1[%c0_203, %c9_204, %c0_205, %c11_206] : memref<1x16x8x256xbf16, #tpu.memory_space<vmem>>, vector<1x1x8x128xbf16>
    %131 = vector.shape_cast %130 : vector<1x1x8x128xbf16> to vector<8x128xbf16>
    %c344 = arith.constant 344 : index
    %c0_207 = arith.constant 0 : index
    %132 = vector.load %arg5[%c344, %c0_207] : memref<392x128xbf16, #tpu.memory_space<vmem>>, vector<8x128xbf16>
    tpu.vector_store %arg5[%c344, %c0_207], %131 {strides = array<i32>} : memref<392x128xbf16, #tpu.memory_space<vmem>>, vector<8x128xbf16>,
    %c0_208 = arith.constant 0 : index
    %c10_209 = arith.constant 10 : index
    %c0_210 = arith.constant 0 : index
    %c11_211 = arith.constant 11 : index
    %133 = vector.load %arg1[%c0_208, %c10_209, %c0_210, %c11_211] : memref<1x16x8x256xbf16, #tpu.memory_space<vmem>>, vector<1x1x8x128xbf16>
    %134 = vector.shape_cast %133 : vector<1x1x8x128xbf16> to vector<8x128xbf16>
    %c352 = arith.constant 352 : index
    %c0_212 = arith.constant 0 : index
    %135 = vector.load %arg5[%c352, %c0_212] : memref<392x128xbf16, #tpu.memory_space<vmem>>, vector<8x128xbf16>
    tpu.vector_store %arg5[%c352, %c0_212], %134 {strides = array<i32>} : memref<392x128xbf16, #tpu.memory_space<vmem>>, vector<8x128xbf16>,
    %c0_213 = arith.constant 0 : index
    %c11_214 = arith.constant 11 : index
    %c0_215 = arith.constant 0 : index
    %c11_216 = arith.constant 11 : index
    %136 = vector.load %arg1[%c0_213, %c11_214, %c0_215, %c11_216] : memref<1x16x8x256xbf16, #tpu.memory_space<vmem>>, vector<1x1x8x128xbf16>
    %137 = vector.shape_cast %136 : vector<1x1x8x128xbf16> to vector<8x128xbf16>
    %c360 = arith.constant 360 : index
    %c0_217 = arith.constant 0 : index
    %138 = vector.load %arg5[%c360, %c0_217] : memref<392x128xbf16, #tpu.memory_space<vmem>>, vector<8x128xbf16>
    tpu.vector_store %arg5[%c360, %c0_217], %137 {strides = array<i32>} : memref<392x128xbf16, #tpu.memory_space<vmem>>, vector<8x128xbf16>,
    %c0_218 = arith.constant 0 : index
    %c8_219 = arith.constant 8 : index
    %c0_220 = arith.constant 0 : index
    %c12_221 = arith.constant 12 : index
    %139 = vector.load %arg1[%c0_218, %c8_219, %c0_220, %c12_221] : memref<1x16x8x256xbf16, #tpu.memory_space<vmem>>, vector<1x1x8x128xbf16>
    %140 = vector.shape_cast %139 : vector<1x1x8x128xbf16> to vector<8x128xbf16>
    %c368 = arith.constant 368 : index
    %c0_222 = arith.constant 0 : index
    %141 = vector.load %arg5[%c368, %c0_222] : memref<392x128xbf16, #tpu.memory_space<vmem>>, vector<8x128xbf16>
    tpu.vector_store %arg5[%c368, %c0_222], %140 {strides = array<i32>} : memref<392x128xbf16, #tpu.memory_space<vmem>>, vector<8x128xbf16>,
    %c0_223 = arith.constant 0 : index
    %c9_224 = arith.constant 9 : index
    %c0_225 = arith.constant 0 : index
    %c12_226 = arith.constant 12 : index
    %142 = vector.load %arg1[%c0_223, %c9_224, %c0_225, %c12_226] : memref<1x16x8x256xbf16, #tpu.memory_space<vmem>>, vector<1x1x8x128xbf16>
    %143 = vector.shape_cast %142 : vector<1x1x8x128xbf16> to vector<8x128xbf16>
    %c376 = arith.constant 376 : index
    %c0_227 = arith.constant 0 : index
    %144 = vector.load %arg5[%c376, %c0_227] : memref<392x128xbf16, #tpu.memory_space<vmem>>, vector<8x128xbf16>
    tpu.vector_store %arg5[%c376, %c0_227], %143 {strides = array<i32>} : memref<392x128xbf16, #tpu.memory_space<vmem>>, vector<8x128xbf16>,
    %c0_228 = arith.constant 0 : index
    %c10_229 = arith.constant 10 : index
    %c0_230 = arith.constant 0 : index
    %c12_231 = arith.constant 12 : index
    %145 = vector.load %arg1[%c0_228, %c10_229, %c0_230, %c12_231] : memref<1x16x8x256xbf16, #tpu.memory_space<vmem>>, vector<1x1x8x128xbf16>
    %146 = vector.shape_cast %145 : vector<1x1x8x128xbf16> to vector<8x128xbf16>
    %c384 = arith.constant 384 : index
    %c0_232 = arith.constant 0 : index
    %147 = vector.load %arg5[%c384, %c0_232] : memref<392x128xbf16, #tpu.memory_space<vmem>>, vector<8x128xbf16>
    tpu.vector_store %arg5[%c384, %c0_232], %146 {strides = array<i32>} : memref<392x128xbf16, #tpu.memory_space<vmem>>, vector<8x128xbf16>,
    %c0_233 = arith.constant 0 : index
    %c0_234 = arith.constant 0 : index
    %148 = vector.load %arg2[%c0_233, %c0_234] : memref<8x392xbf16, #tpu.memory_space<vmem>>, vector<8x392xbf16>
    %c0_235 = arith.constant 0 : index
    %c0_236 = arith.constant 0 : index
    %149 = vector.load %arg5[%c0_235, %c0_236] : memref<392x128xbf16, #tpu.memory_space<vmem>>, vector<392x128xbf16>
    %cst = arith.constant dense<0.000000e+00> : vector<8x128xf32>
    %150 = tpu.matmul %148, %149, %cst {dimension_numbers = #tpu.dot_dimension_numbers<[1], [0], [0], [1], [0, 0, 1, 1], [], []>} : vector<8x392xbf16>, vector<392x128xbf16>, vector<8x128xf32> -> vector<8x128xf32>
    %c0_237 = arith.constant 0 : index
    %c2_238 = arith.constant 2 : index
    %c0_239 = arith.constant 0 : index
    %c0_240 = arith.constant 0 : index
    %151 = vector.load %arg1[%c0_237, %c2_238, %c0_239, %c0_240] : memref<1x16x8x256xbf16, #tpu.memory_space<vmem>>, vector<1x1x8x128xbf16>
    %152 = vector.shape_cast %151 : vector<1x1x8x128xbf16> to vector<8x128xbf16>
    %c0_241 = arith.constant 0 : index
    %c0_242 = arith.constant 0 : index
    %153 = vector.load %arg5[%c0_241, %c0_242] : memref<392x128xbf16, #tpu.memory_space<vmem>>, vector<8x128xbf16>
    tpu.vector_store %arg5[%c0_241, %c0_242], %152 {strides = array<i32>} : memref<392x128xbf16, #tpu.memory_space<vmem>>, vector<8x128xbf16>,
    %c0_243 = arith.constant 0 : index
    %c3_244 = arith.constant 3 : index
    %c0_245 = arith.constant 0 : index
    %c0_246 = arith.constant 0 : index
    %154 = vector.load %arg1[%c0_243, %c3_244, %c0_245, %c0_246] : memref<1x16x8x256xbf16, #tpu.memory_space<vmem>>, vector<1x1x8x128xbf16>
    %155 = vector.shape_cast %154 : vector<1x1x8x128xbf16> to vector<8x128xbf16>
    %c8_247 = arith.constant 8 : index
    %c0_248 = arith.constant 0 : index
    %156 = vector.load %arg5[%c8_247, %c0_248] : memref<392x128xbf16, #tpu.memory_space<vmem>>, vector<8x128xbf16>
    tpu.vector_store %arg5[%c8_247, %c0_248], %155 {strides = array<i32>} : memref<392x128xbf16, #tpu.memory_space<vmem>>, vector<8x128xbf16>,
    %c0_249 = arith.constant 0 : index
    %c0_250 = arith.constant 0 : index
    %c0_251 = arith.constant 0 : index
    %c1_252 = arith.constant 1 : index
    %157 = vector.load %arg1[%c0_249, %c0_250, %c0_251, %c1_252] : memref<1x16x8x256xbf16, #tpu.memory_space<vmem>>, vector<1x1x8x128xbf16>
    %158 = vector.shape_cast %157 : vector<1x1x8x128xbf16> to vector<8x128xbf16>
    %c16_253 = arith.constant 16 : index
    %c0_254 = arith.constant 0 : index
    %159 = vector.load %arg5[%c16_253, %c0_254] : memref<392x128xbf16, #tpu.memory_space<vmem>>, vector<8x128xbf16>
    tpu.vector_store %arg5[%c16_253, %c0_254], %158 {strides = array<i32>} : memref<392x128xbf16, #tpu.memory_space<vmem>>, vector<8x128xbf16>,
    %c0_255 = arith.constant 0 : index
    %c1_256 = arith.constant 1 : index
    %c0_257 = arith.constant 0 : index
    %c1_258 = arith.constant 1 : index
    %160 = vector.load %arg1[%c0_255, %c1_256, %c0_257, %c1_258] : memref<1x16x8x256xbf16, #tpu.memory_space<vmem>>, vector<1x1x8x128xbf16>
    %161 = vector.shape_cast %160 : vector<1x1x8x128xbf16> to vector<8x128xbf16>
    %c24_259 = arith.constant 24 : index
    %c0_260 = arith.constant 0 : index
    %162 = vector.load %arg5[%c24_259, %c0_260] : memref<392x128xbf16, #tpu.memory_space<vmem>>, vector<8x128xbf16>
    tpu.vector_store %arg5[%c24_259, %c0_260], %161 {strides = array<i32>} : memref<392x128xbf16, #tpu.memory_space<vmem>>, vector<8x128xbf16>,
    %c0_261 = arith.constant 0 : index
    %c2_262 = arith.constant 2 : index
    %c0_263 = arith.constant 0 : index
    %c1_264 = arith.constant 1 : index
    %163 = vector.load %arg1[%c0_261, %c2_262, %c0_263, %c1_264] : memref<1x16x8x256xbf16, #tpu.memory_space<vmem>>, vector<1x1x8x128xbf16>
    %164 = vector.shape_cast %163 : vector<1x1x8x128xbf16> to vector<8x128xbf16>
    %c32_265 = arith.constant 32 : index
    %c0_266 = arith.constant 0 : index
    %165 = vector.load %arg5[%c32_265, %c0_266] : memref<392x128xbf16, #tpu.memory_space<vmem>>, vector<8x128xbf16>
    tpu.vector_store %arg5[%c32_265, %c0_266], %164 {strides = array<i32>} : memref<392x128xbf16, #tpu.memory_space<vmem>>, vector<8x128xbf16>,
    %c0_267 = arith.constant 0 : index
    %c3_268 = arith.constant 3 : index
    %c0_269 = arith.constant 0 : index
    %c1_270 = arith.constant 1 : index
    %166 = vector.load %arg1[%c0_267, %c3_268, %c0_269, %c1_270] : memref<1x16x8x256xbf16, #tpu.memory_space<vmem>>, vector<1x1x8x128xbf16>
    %167 = vector.shape_cast %166 : vector<1x1x8x128xbf16> to vector<8x128xbf16>
    %c40_271 = arith.constant 40 : index
    %c0_272 = arith.constant 0 : index
    %168 = vector.load %arg5[%c40_271, %c0_272] : memref<392x128xbf16, #tpu.memory_space<vmem>>, vector<8x128xbf16>
    tpu.vector_store %arg5[%c40_271, %c0_272], %167 {strides = array<i32>} : memref<392x128xbf16, #tpu.memory_space<vmem>>, vector<8x128xbf16>,
    %c0_273 = arith.constant 0 : index
    %c0_274 = arith.constant 0 : index
    %c0_275 = arith.constant 0 : index
    %c2_276 = arith.constant 2 : index
    %169 = vector.load %arg1[%c0_273, %c0_274, %c0_275, %c2_276] : memref<1x16x8x256xbf16, #tpu.memory_space<vmem>>, vector<1x1x8x128xbf16>
    %170 = vector.shape_cast %169 : vector<1x1x8x128xbf16> to vector<8x128xbf16>
    %c48_277 = arith.constant 48 : index
    %c0_278 = arith.constant 0 : index
    %171 = vector.load %arg5[%c48_277, %c0_278] : memref<392x128xbf16, #tpu.memory_space<vmem>>, vector<8x128xbf16>
    tpu.vector_store %arg5[%c48_277, %c0_278], %170 {strides = array<i32>} : memref<392x128xbf16, #tpu.memory_space<vmem>>, vector<8x128xbf16>,
    %c0_279 = arith.constant 0 : index
    %c6_280 = arith.constant 6 : index
    %c0_281 = arith.constant 0 : index
    %c0_282 = arith.constant 0 : index
    %172 = vector.load %arg1[%c0_279, %c6_280, %c0_281, %c0_282] : memref<1x16x8x256xbf16, #tpu.memory_space<vmem>>, vector<1x1x8x128xbf16>
    %173 = vector.shape_cast %172 : vector<1x1x8x128xbf16> to vector<8x128xbf16>
    %c56_283 = arith.constant 56 : index
    %c0_284 = arith.constant 0 : index
    %174 = vector.load %arg5[%c56_283, %c0_284] : memref<392x128xbf16, #tpu.memory_space<vmem>>, vector<8x128xbf16>
    tpu.vector_store %arg5[%c56_283, %c0_284], %173 {strides = array<i32>} : memref<392x128xbf16, #tpu.memory_space<vmem>>, vector<8x128xbf16>,
    %c0_285 = arith.constant 0 : index
    %c7_286 = arith.constant 7 : index
    %c0_287 = arith.constant 0 : index
    %c0_288 = arith.constant 0 : index
    %175 = vector.load %arg1[%c0_285, %c7_286, %c0_287, %c0_288] : memref<1x16x8x256xbf16, #tpu.memory_space<vmem>>, vector<1x1x8x128xbf16>
    %176 = vector.shape_cast %175 : vector<1x1x8x128xbf16> to vector<8x128xbf16>
    %c64_289 = arith.constant 64 : index
    %c0_290 = arith.constant 0 : index
    %177 = vector.load %arg5[%c64_289, %c0_290] : memref<392x128xbf16, #tpu.memory_space<vmem>>, vector<8x128xbf16>
    tpu.vector_store %arg5[%c64_289, %c0_290], %176 {strides = array<i32>} : memref<392x128xbf16, #tpu.memory_space<vmem>>, vector<8x128xbf16>,
    %c0_291 = arith.constant 0 : index
    %c4_292 = arith.constant 4 : index
    %c0_293 = arith.constant 0 : index
    %c1_294 = arith.constant 1 : index
    %178 = vector.load %arg1[%c0_291, %c4_292, %c0_293, %c1_294] : memref<1x16x8x256xbf16, #tpu.memory_space<vmem>>, vector<1x1x8x128xbf16>
    %179 = vector.shape_cast %178 : vector<1x1x8x128xbf16> to vector<8x128xbf16>
    %c72_295 = arith.constant 72 : index
    %c0_296 = arith.constant 0 : index
    %180 = vector.load %arg5[%c72_295, %c0_296] : memref<392x128xbf16, #tpu.memory_space<vmem>>, vector<8x128xbf16>
    tpu.vector_store %arg5[%c72_295, %c0_296], %179 {strides = array<i32>} : memref<392x128xbf16, #tpu.memory_space<vmem>>, vector<8x128xbf16>,
    %c0_297 = arith.constant 0 : index
    %c5_298 = arith.constant 5 : index
    %c0_299 = arith.constant 0 : index
    %c1_300 = arith.constant 1 : index
    %181 = vector.load %arg1[%c0_297, %c5_298, %c0_299, %c1_300] : memref<1x16x8x256xbf16, #tpu.memory_space<vmem>>, vector<1x1x8x128xbf16>
    %182 = vector.shape_cast %181 : vector<1x1x8x128xbf16> to vector<8x128xbf16>
    %c80_301 = arith.constant 80 : index
    %c0_302 = arith.constant 0 : index
    %183 = vector.load %arg5[%c80_301, %c0_302] : memref<392x128xbf16, #tpu.memory_space<vmem>>, vector<8x128xbf16>
    tpu.vector_store %arg5[%c80_301, %c0_302], %182 {strides = array<i32>} : memref<392x128xbf16, #tpu.memory_space<vmem>>, vector<8x128xbf16>,
    %c0_303 = arith.constant 0 : index
    %c6_304 = arith.constant 6 : index
    %c0_305 = arith.constant 0 : index
    %c1_306 = arith.constant 1 : index
    %184 = vector.load %arg1[%c0_303, %c6_304, %c0_305, %c1_306] : memref<1x16x8x256xbf16, #tpu.memory_space<vmem>>, vector<1x1x8x128xbf16>
    %185 = vector.shape_cast %184 : vector<1x1x8x128xbf16> to vector<8x128xbf16>
    %c88_307 = arith.constant 88 : index
    %c0_308 = arith.constant 0 : index
    %186 = vector.load %arg5[%c88_307, %c0_308] : memref<392x128xbf16, #tpu.memory_space<vmem>>, vector<8x128xbf16>
    tpu.vector_store %arg5[%c88_307, %c0_308], %185 {strides = array<i32>} : memref<392x128xbf16, #tpu.memory_space<vmem>>, vector<8x128xbf16>,
    %c0_309 = arith.constant 0 : index
    %c7_310 = arith.constant 7 : index
    %c0_311 = arith.constant 0 : index
    %c1_312 = arith.constant 1 : index
    %187 = vector.load %arg1[%c0_309, %c7_310, %c0_311, %c1_312] : memref<1x16x8x256xbf16, #tpu.memory_space<vmem>>, vector<1x1x8x128xbf16>
    %188 = vector.shape_cast %187 : vector<1x1x8x128xbf16> to vector<8x128xbf16>
    %c96_313 = arith.constant 96 : index
    %c0_314 = arith.constant 0 : index
    %189 = vector.load %arg5[%c96_313, %c0_314] : memref<392x128xbf16, #tpu.memory_space<vmem>>, vector<8x128xbf16>
    tpu.vector_store %arg5[%c96_313, %c0_314], %188 {strides = array<i32>} : memref<392x128xbf16, #tpu.memory_space<vmem>>, vector<8x128xbf16>,
    %c0_315 = arith.constant 0 : index
    %c4_316 = arith.constant 4 : index
    %c0_317 = arith.constant 0 : index
    %c2_318 = arith.constant 2 : index
    %190 = vector.load %arg1[%c0_315, %c4_316, %c0_317, %c2_318] : memref<1x16x8x256xbf16, #tpu.memory_space<vmem>>, vector<1x1x8x128xbf16>
    %191 = vector.shape_cast %190 : vector<1x1x8x128xbf16> to vector<8x128xbf16>
    %c104_319 = arith.constant 104 : index
    %c0_320 = arith.constant 0 : index
    %192 = vector.load %arg5[%c104_319, %c0_320] : memref<392x128xbf16, #tpu.memory_space<vmem>>, vector<8x128xbf16>
    tpu.vector_store %arg5[%c104_319, %c0_320], %191 {strides = array<i32>} : memref<392x128xbf16, #tpu.memory_space<vmem>>, vector<8x128xbf16>,
    %c0_321 = arith.constant 0 : index
    %c10_322 = arith.constant 10 : index
    %c0_323 = arith.constant 0 : index
    %c0_324 = arith.constant 0 : index
    %193 = vector.load %arg1[%c0_321, %c10_322, %c0_323, %c0_324] : memref<1x16x8x256xbf16, #tpu.memory_space<vmem>>, vector<1x1x8x128xbf16>
    %194 = vector.shape_cast %193 : vector<1x1x8x128xbf16> to vector<8x128xbf16>
    %c112_325 = arith.constant 112 : index
    %c0_326 = arith.constant 0 : index
    %195 = vector.load %arg5[%c112_325, %c0_326] : memref<392x128xbf16, #tpu.memory_space<vmem>>, vector<8x128xbf16>
    tpu.vector_store %arg5[%c112_325, %c0_326], %194 {strides = array<i32>} : memref<392x128xbf16, #tpu.memory_space<vmem>>, vector<8x128xbf16>,
    %c0_327 = arith.constant 0 : index
    %c11_328 = arith.constant 11 : index
    %c0_329 = arith.constant 0 : index
    %c0_330 = arith.constant 0 : index
    %196 = vector.load %arg1[%c0_327, %c11_328, %c0_329, %c0_330] : memref<1x16x8x256xbf16, #tpu.memory_space<vmem>>, vector<1x1x8x128xbf16>
    %197 = vector.shape_cast %196 : vector<1x1x8x128xbf16> to vector<8x128xbf16>
    %c120_331 = arith.constant 120 : index
    %c0_332 = arith.constant 0 : index
    %198 = vector.load %arg5[%c120_331, %c0_332] : memref<392x128xbf16, #tpu.memory_space<vmem>>, vector<8x128xbf16>
    tpu.vector_store %arg5[%c120_331, %c0_332], %197 {strides = array<i32>} : memref<392x128xbf16, #tpu.memory_space<vmem>>, vector<8x128xbf16>,
    %c0_333 = arith.constant 0 : index
    %c8_334 = arith.constant 8 : index
    %c0_335 = arith.constant 0 : index
    %c1_336 = arith.constant 1 : index
    %199 = vector.load %arg1[%c0_333, %c8_334, %c0_335, %c1_336] : memref<1x16x8x256xbf16, #tpu.memory_space<vmem>>, vector<1x1x8x128xbf16>
    %200 = vector.shape_cast %199 : vector<1x1x8x128xbf16> to vector<8x128xbf16>
    %c128_337 = arith.constant 128 : index
    %c0_338 = arith.constant 0 : index
    %201 = vector.load %arg5[%c128_337, %c0_338] : memref<392x128xbf16, #tpu.memory_space<vmem>>, vector<8x128xbf16>
    tpu.vector_store %arg5[%c128_337, %c0_338], %200 {strides = array<i32>} : memref<392x128xbf16, #tpu.memory_space<vmem>>, vector<8x128xbf16>,
    %c0_339 = arith.constant 0 : index
    %c9_340 = arith.constant 9 : index
    %c0_341 = arith.constant 0 : index
    %c1_342 = arith.constant 1 : index
    %202 = vector.load %arg1[%c0_339, %c9_340, %c0_341, %c1_342] : memref<1x16x8x256xbf16, #tpu.memory_space<vmem>>, vector<1x1x8x128xbf16>
    %203 = vector.shape_cast %202 : vector<1x1x8x128xbf16> to vector<8x128xbf16>
    %c136_343 = arith.constant 136 : index
    %c0_344 = arith.constant 0 : index
    %204 = vector.load %arg5[%c136_343, %c0_344] : memref<392x128xbf16, #tpu.memory_space<vmem>>, vector<8x128xbf16>
    tpu.vector_store %arg5[%c136_343, %c0_344], %203 {strides = array<i32>} : memref<392x128xbf16, #tpu.memory_space<vmem>>, vector<8x128xbf16>,
    %c0_345 = arith.constant 0 : index
    %c10_346 = arith.constant 10 : index
    %c0_347 = arith.constant 0 : index
    %c1_348 = arith.constant 1 : index
    %205 = vector.load %arg1[%c0_345, %c10_346, %c0_347, %c1_348] : memref<1x16x8x256xbf16, #tpu.memory_space<vmem>>, vector<1x1x8x128xbf16>
    %206 = vector.shape_cast %205 : vector<1x1x8x128xbf16> to vector<8x128xbf16>
    %c144_349 = arith.constant 144 : index
    %c0_350 = arith.constant 0 : index
    %207 = vector.load %arg5[%c144_349, %c0_350] : memref<392x128xbf16, #tpu.memory_space<vmem>>, vector<8x128xbf16>
    tpu.vector_store %arg5[%c144_349, %c0_350], %206 {strides = array<i32>} : memref<392x128xbf16, #tpu.memory_space<vmem>>, vector<8x128xbf16>,
    %c0_351 = arith.constant 0 : index
    %c11_352 = arith.constant 11 : index
    %c0_353 = arith.constant 0 : index
    %c1_354 = arith.constant 1 : index
    %208 = vector.load %arg1[%c0_351, %c11_352, %c0_353, %c1_354] : memref<1x16x8x256xbf16, #tpu.memory_space<vmem>>, vector<1x1x8x128xbf16>
    %209 = vector.shape_cast %208 : vector<1x1x8x128xbf16> to vector<8x128xbf16>
    %c152_355 = arith.constant 152 : index
    %c0_356 = arith.constant 0 : index
    %210 = vector.load %arg5[%c152_355, %c0_356] : memref<392x128xbf16, #tpu.memory_space<vmem>>, vector<8x128xbf16>
    tpu.vector_store %arg5[%c152_355, %c0_356], %209 {strides = array<i32>} : memref<392x128xbf16, #tpu.memory_space<vmem>>, vector<8x128xbf16>,
    %c0_357 = arith.constant 0 : index
    %c8_358 = arith.constant 8 : index
    %c0_359 = arith.constant 0 : index
    %c2_360 = arith.constant 2 : index
    %211 = vector.load %arg1[%c0_357, %c8_358, %c0_359, %c2_360] : memref<1x16x8x256xbf16, #tpu.memory_space<vmem>>, vector<1x1x8x128xbf16>
    %212 = vector.shape_cast %211 : vector<1x1x8x128xbf16> to vector<8x128xbf16>
    %c160_361 = arith.constant 160 : index
    %c0_362 = arith.constant 0 : index
    %213 = vector.load %arg5[%c160_361, %c0_362] : memref<392x128xbf16, #tpu.memory_space<vmem>>, vector<8x128xbf16>
    tpu.vector_store %arg5[%c160_361, %c0_362], %212 {strides = array<i32>} : memref<392x128xbf16, #tpu.memory_space<vmem>>, vector<8x128xbf16>,
    %c0_363 = arith.constant 0 : index
    %c14_364 = arith.constant 14 : index
    %c0_365 = arith.constant 0 : index
    %c0_366 = arith.constant 0 : index
    %214 = vector.load %arg1[%c0_363, %c14_364, %c0_365, %c0_366] : memref<1x16x8x256xbf16, #tpu.memory_space<vmem>>, vector<1x1x8x128xbf16>
    %215 = vector.shape_cast %214 : vector<1x1x8x128xbf16> to vector<8x128xbf16>
    %c168_367 = arith.constant 168 : index
    %c0_368 = arith.constant 0 : index
    %216 = vector.load %arg5[%c168_367, %c0_368] : memref<392x128xbf16, #tpu.memory_space<vmem>>, vector<8x128xbf16>
    tpu.vector_store %arg5[%c168_367, %c0_368], %215 {strides = array<i32>} : memref<392x128xbf16, #tpu.memory_space<vmem>>, vector<8x128xbf16>,
    %c0_369 = arith.constant 0 : index
    %c15_370 = arith.constant 15 : index
    %c0_371 = arith.constant 0 : index
    %c0_372 = arith.constant 0 : index
    %217 = vector.load %arg1[%c0_369, %c15_370, %c0_371, %c0_372] : memref<1x16x8x256xbf16, #tpu.memory_space<vmem>>, vector<1x1x8x128xbf16>
    %218 = vector.shape_cast %217 : vector<1x1x8x128xbf16> to vector<8x128xbf16>
    %c176_373 = arith.constant 176 : index
    %c0_374 = arith.constant 0 : index
    %219 = vector.load %arg5[%c176_373, %c0_374] : memref<392x128xbf16, #tpu.memory_space<vmem>>, vector<8x128xbf16>
    tpu.vector_store %arg5[%c176_373, %c0_374], %218 {strides = array<i32>} : memref<392x128xbf16, #tpu.memory_space<vmem>>, vector<8x128xbf16>,
    %c0_375 = arith.constant 0 : index
    %c12_376 = arith.constant 12 : index
    %c0_377 = arith.constant 0 : index
    %c1_378 = arith.constant 1 : index
    %220 = vector.load %arg1[%c0_375, %c12_376, %c0_377, %c1_378] : memref<1x16x8x256xbf16, #tpu.memory_space<vmem>>, vector<1x1x8x128xbf16>
    %221 = vector.shape_cast %220 : vector<1x1x8x128xbf16> to vector<8x128xbf16>
    %c184_379 = arith.constant 184 : index
    %c0_380 = arith.constant 0 : index
    %222 = vector.load %arg5[%c184_379, %c0_380] : memref<392x128xbf16, #tpu.memory_space<vmem>>, vector<8x128xbf16>
    tpu.vector_store %arg5[%c184_379, %c0_380], %221 {strides = array<i32>} : memref<392x128xbf16, #tpu.memory_space<vmem>>, vector<8x128xbf16>,
    %c0_381 = arith.constant 0 : index
    %c13_382 = arith.constant 13 : index
    %c0_383 = arith.constant 0 : index
    %c1_384 = arith.constant 1 : index
    %223 = vector.load %arg1[%c0_381, %c13_382, %c0_383, %c1_384] : memref<1x16x8x256xbf16, #tpu.memory_space<vmem>>, vector<1x1x8x128xbf16>
    %224 = vector.shape_cast %223 : vector<1x1x8x128xbf16> to vector<8x128xbf16>
    %c192_385 = arith.constant 192 : index
    %c0_386 = arith.constant 0 : index
    %225 = vector.load %arg5[%c192_385, %c0_386] : memref<392x128xbf16, #tpu.memory_space<vmem>>, vector<8x128xbf16>
    tpu.vector_store %arg5[%c192_385, %c0_386], %224 {strides = array<i32>} : memref<392x128xbf16, #tpu.memory_space<vmem>>, vector<8x128xbf16>,
    %c0_387 = arith.constant 0 : index
    %c14_388 = arith.constant 14 : index
    %c0_389 = arith.constant 0 : index
    %c1_390 = arith.constant 1 : index
    %226 = vector.load %arg1[%c0_387, %c14_388, %c0_389, %c1_390] : memref<1x16x8x256xbf16, #tpu.memory_space<vmem>>, vector<1x1x8x128xbf16>
    %227 = vector.shape_cast %226 : vector<1x1x8x128xbf16> to vector<8x128xbf16>
    %c200_391 = arith.constant 200 : index
    %c0_392 = arith.constant 0 : index
    %228 = vector.load %arg5[%c200_391, %c0_392] : memref<392x128xbf16, #tpu.memory_space<vmem>>, vector<8x128xbf16>
    tpu.vector_store %arg5[%c200_391, %c0_392], %227 {strides = array<i32>} : memref<392x128xbf16, #tpu.memory_space<vmem>>, vector<8x128xbf16>,
    %c0_393 = arith.constant 0 : index
    %c15_394 = arith.constant 15 : index
    %c0_395 = arith.constant 0 : index
    %c1_396 = arith.constant 1 : index
    %229 = vector.load %arg1[%c0_393, %c15_394, %c0_395, %c1_396] : memref<1x16x8x256xbf16, #tpu.memory_space<vmem>>, vector<1x1x8x128xbf16>
    %230 = vector.shape_cast %229 : vector<1x1x8x128xbf16> to vector<8x128xbf16>
    %c208_397 = arith.constant 208 : index
    %c0_398 = arith.constant 0 : index
    %231 = vector.load %arg5[%c208_397, %c0_398] : memref<392x128xbf16, #tpu.memory_space<vmem>>, vector<8x128xbf16>
    tpu.vector_store %arg5[%c208_397, %c0_398], %230 {strides = array<i32>} : memref<392x128xbf16, #tpu.memory_space<vmem>>, vector<8x128xbf16>,
    %c0_399 = arith.constant 0 : index
    %c12_400 = arith.constant 12 : index
    %c0_401 = arith.constant 0 : index
    %c2_402 = arith.constant 2 : index
    %232 = vector.load %arg1[%c0_399, %c12_400, %c0_401, %c2_402] : memref<1x16x8x256xbf16, #tpu.memory_space<vmem>>, vector<1x1x8x128xbf16>
    %233 = vector.shape_cast %232 : vector<1x1x8x128xbf16> to vector<8x128xbf16>
    %c216_403 = arith.constant 216 : index
    %c0_404 = arith.constant 0 : index
    %234 = vector.load %arg5[%c216_403, %c0_404] : memref<392x128xbf16, #tpu.memory_space<vmem>>, vector<8x128xbf16>
    tpu.vector_store %arg5[%c216_403, %c0_404], %233 {strides = array<i32>} : memref<392x128xbf16, #tpu.memory_space<vmem>>, vector<8x128xbf16>,
    %c0_405 = arith.constant 0 : index
    %c2_406 = arith.constant 2 : index
    %c0_407 = arith.constant 0 : index
    %c11_408 = arith.constant 11 : index
    %235 = vector.load %arg1[%c0_405, %c2_406, %c0_407, %c11_408] : memref<1x16x8x256xbf16, #tpu.memory_space<vmem>>, vector<1x1x8x128xbf16>
    %236 = vector.shape_cast %235 : vector<1x1x8x128xbf16> to vector<8x128xbf16>
    %c224_409 = arith.constant 224 : index
    %c0_410 = arith.constant 0 : index
    %237 = vector.load %arg5[%c224_409, %c0_410] : memref<392x128xbf16, #tpu.memory_space<vmem>>, vector<8x128xbf16>
    tpu.vector_store %arg5[%c224_409, %c0_410], %236 {strides = array<i32>} : memref<392x128xbf16, #tpu.memory_space<vmem>>, vector<8x128xbf16>,
    %c0_411 = arith.constant 0 : index
    %c3_412 = arith.constant 3 : index
    %c0_413 = arith.constant 0 : index
    %c11_414 = arith.constant 11 : index
    %238 = vector.load %arg1[%c0_411, %c3_412, %c0_413, %c11_414] : memref<1x16x8x256xbf16, #tpu.memory_space<vmem>>, vector<1x1x8x128xbf16>
    %239 = vector.shape_cast %238 : vector<1x1x8x128xbf16> to vector<8x128xbf16>
    %c232_415 = arith.constant 232 : index
    %c0_416 = arith.constant 0 : index
    %240 = vector.load %arg5[%c232_415, %c0_416] : memref<392x128xbf16, #tpu.memory_space<vmem>>, vector<8x128xbf16>
    tpu.vector_store %arg5[%c232_415, %c0_416], %239 {strides = array<i32>} : memref<392x128xbf16, #tpu.memory_space<vmem>>, vector<8x128xbf16>,
    %c0_417 = arith.constant 0 : index
    %c0_418 = arith.constant 0 : index
    %c0_419 = arith.constant 0 : index
    %c12_420 = arith.constant 12 : index
    %241 = vector.load %arg1[%c0_417, %c0_418, %c0_419, %c12_420] : memref<1x16x8x256xbf16, #tpu.memory_space<vmem>>, vector<1x1x8x128xbf16>
    %242 = vector.shape_cast %241 : vector<1x1x8x128xbf16> to vector<8x128xbf16>
    %c240_421 = arith.constant 240 : index
    %c0_422 = arith.constant 0 : index
    %243 = vector.load %arg5[%c240_421, %c0_422] : memref<392x128xbf16, #tpu.memory_space<vmem>>, vector<8x128xbf16>
    tpu.vector_store %arg5[%c240_421, %c0_422], %242 {strides = array<i32>} : memref<392x128xbf16, #tpu.memory_space<vmem>>, vector<8x128xbf16>,
    %c0_423 = arith.constant 0 : index
    %c1_424 = arith.constant 1 : index
    %c0_425 = arith.constant 0 : index
    %c12_426 = arith.constant 12 : index
    %244 = vector.load %arg1[%c0_423, %c1_424, %c0_425, %c12_426] : memref<1x16x8x256xbf16, #tpu.memory_space<vmem>>, vector<1x1x8x128xbf16>
    %245 = vector.shape_cast %244 : vector<1x1x8x128xbf16> to vector<8x128xbf16>
    %c248_427 = arith.constant 248 : index
    %c0_428 = arith.constant 0 : index
    %246 = vector.load %arg5[%c248_427, %c0_428] : memref<392x128xbf16, #tpu.memory_space<vmem>>, vector<8x128xbf16>
    tpu.vector_store %arg5[%c248_427, %c0_428], %245 {strides = array<i32>} : memref<392x128xbf16, #tpu.memory_space<vmem>>, vector<8x128xbf16>,
    %c0_429 = arith.constant 0 : index
    %c2_430 = arith.constant 2 : index
    %c0_431 = arith.constant 0 : index
    %c12_432 = arith.constant 12 : index
    %247 = vector.load %arg1[%c0_429, %c2_430, %c0_431, %c12_432] : memref<1x16x8x256xbf16, #tpu.memory_space<vmem>>, vector<1x1x8x128xbf16>
    %248 = vector.shape_cast %247 : vector<1x1x8x128xbf16> to vector<8x128xbf16>
    %c256_433 = arith.constant 256 : index
    %c0_434 = arith.constant 0 : index
    %249 = vector.load %arg5[%c256_433, %c0_434] : memref<392x128xbf16, #tpu.memory_space<vmem>>, vector<8x128xbf16>
    tpu.vector_store %arg5[%c256_433, %c0_434], %248 {strides = array<i32>} : memref<392x128xbf16, #tpu.memory_space<vmem>>, vector<8x128xbf16>,
    %c0_435 = arith.constant 0 : index
    %c3_436 = arith.constant 3 : index
    %c0_437 = arith.constant 0 : index
    %c12_438 = arith.constant 12 : index
    %250 = vector.load %arg1[%c0_435, %c3_436, %c0_437, %c12_438] : memref<1x16x8x256xbf16, #tpu.memory_space<vmem>>, vector<1x1x8x128xbf16>
    %251 = vector.shape_cast %250 : vector<1x1x8x128xbf16> to vector<8x128xbf16>
    %c264_439 = arith.constant 264 : index
    %c0_440 = arith.constant 0 : index
    %252 = vector.load %arg5[%c264_439, %c0_440] : memref<392x128xbf16, #tpu.memory_space<vmem>>, vector<8x128xbf16>
    tpu.vector_store %arg5[%c264_439, %c0_440], %251 {strides = array<i32>} : memref<392x128xbf16, #tpu.memory_space<vmem>>, vector<8x128xbf16>,
    %c0_441 = arith.constant 0 : index
    %c0_442 = arith.constant 0 : index
    %c0_443 = arith.constant 0 : index
    %c13_444 = arith.constant 13 : index
    %253 = vector.load %arg1[%c0_441, %c0_442, %c0_443, %c13_444] : memref<1x16x8x256xbf16, #tpu.memory_space<vmem>>, vector<1x1x8x128xbf16>
    %254 = vector.shape_cast %253 : vector<1x1x8x128xbf16> to vector<8x128xbf16>
    %c272_445 = arith.constant 272 : index
    %c0_446 = arith.constant 0 : index
    %255 = vector.load %arg5[%c272_445, %c0_446] : memref<392x128xbf16, #tpu.memory_space<vmem>>, vector<8x128xbf16>
    tpu.vector_store %arg5[%c272_445, %c0_446], %254 {strides = array<i32>} : memref<392x128xbf16, #tpu.memory_space<vmem>>, vector<8x128xbf16>,
    %c0_447 = arith.constant 0 : index
    %c6_448 = arith.constant 6 : index
    %c0_449 = arith.constant 0 : index
    %c11_450 = arith.constant 11 : index
    %256 = vector.load %arg1[%c0_447, %c6_448, %c0_449, %c11_450] : memref<1x16x8x256xbf16, #tpu.memory_space<vmem>>, vector<1x1x8x128xbf16>
    %257 = vector.shape_cast %256 : vector<1x1x8x128xbf16> to vector<8x128xbf16>
    %c280_451 = arith.constant 280 : index
    %c0_452 = arith.constant 0 : index
    %258 = vector.load %arg5[%c280_451, %c0_452] : memref<392x128xbf16, #tpu.memory_space<vmem>>, vector<8x128xbf16>
    tpu.vector_store %arg5[%c280_451, %c0_452], %257 {strides = array<i32>} : memref<392x128xbf16, #tpu.memory_space<vmem>>, vector<8x128xbf16>,
    %c0_453 = arith.constant 0 : index
    %c7_454 = arith.constant 7 : index
    %c0_455 = arith.constant 0 : index
    %c11_456 = arith.constant 11 : index
    %259 = vector.load %arg1[%c0_453, %c7_454, %c0_455, %c11_456] : memref<1x16x8x256xbf16, #tpu.memory_space<vmem>>, vector<1x1x8x128xbf16>
    %260 = vector.shape_cast %259 : vector<1x1x8x128xbf16> to vector<8x128xbf16>
    %c288_457 = arith.constant 288 : index
    %c0_458 = arith.constant 0 : index
    %261 = vector.load %arg5[%c288_457, %c0_458] : memref<392x128xbf16, #tpu.memory_space<vmem>>, vector<8x128xbf16>
    tpu.vector_store %arg5[%c288_457, %c0_458], %260 {strides = array<i32>} : memref<392x128xbf16, #tpu.memory_space<vmem>>, vector<8x128xbf16>,
    %c0_459 = arith.constant 0 : index
    %c4_460 = arith.constant 4 : index
    %c0_461 = arith.constant 0 : index
    %c12_462 = arith.constant 12 : index
    %262 = vector.load %arg1[%c0_459, %c4_460, %c0_461, %c12_462] : memref<1x16x8x256xbf16, #tpu.memory_space<vmem>>, vector<1x1x8x128xbf16>
    %263 = vector.shape_cast %262 : vector<1x1x8x128xbf16> to vector<8x128xbf16>
    %c296_463 = arith.constant 296 : index
    %c0_464 = arith.constant 0 : index
    %264 = vector.load %arg5[%c296_463, %c0_464] : memref<392x128xbf16, #tpu.memory_space<vmem>>, vector<8x128xbf16>
    tpu.vector_store %arg5[%c296_463, %c0_464], %263 {strides = array<i32>} : memref<392x128xbf16, #tpu.memory_space<vmem>>, vector<8x128xbf16>,
    %c0_465 = arith.constant 0 : index
    %c5_466 = arith.constant 5 : index
    %c0_467 = arith.constant 0 : index
    %c12_468 = arith.constant 12 : index
    %265 = vector.load %arg1[%c0_465, %c5_466, %c0_467, %c12_468] : memref<1x16x8x256xbf16, #tpu.memory_space<vmem>>, vector<1x1x8x128xbf16>
    %266 = vector.shape_cast %265 : vector<1x1x8x128xbf16> to vector<8x128xbf16>
    %c304_469 = arith.constant 304 : index
    %c0_470 = arith.constant 0 : index
    %267 = vector.load %arg5[%c304_469, %c0_470] : memref<392x128xbf16, #tpu.memory_space<vmem>>, vector<8x128xbf16>
    tpu.vector_store %arg5[%c304_469, %c0_470], %266 {strides = array<i32>} : memref<392x128xbf16, #tpu.memory_space<vmem>>, vector<8x128xbf16>,
    %c0_471 = arith.constant 0 : index
    %c6_472 = arith.constant 6 : index
    %c0_473 = arith.constant 0 : index
    %c12_474 = arith.constant 12 : index
    %268 = vector.load %arg1[%c0_471, %c6_472, %c0_473, %c12_474] : memref<1x16x8x256xbf16, #tpu.memory_space<vmem>>, vector<1x1x8x128xbf16>
    %269 = vector.shape_cast %268 : vector<1x1x8x128xbf16> to vector<8x128xbf16>
    %c312_475 = arith.constant 312 : index
    %c0_476 = arith.constant 0 : index
    %270 = vector.load %arg5[%c312_475, %c0_476] : memref<392x128xbf16, #tpu.memory_space<vmem>>, vector<8x128xbf16>
    tpu.vector_store %arg5[%c312_475, %c0_476], %269 {strides = array<i32>} : memref<392x128xbf16, #tpu.memory_space<vmem>>, vector<8x128xbf16>,
    %c0_477 = arith.constant 0 : index
    %c7_478 = arith.constant 7 : index
    %c0_479 = arith.constant 0 : index
    %c12_480 = arith.constant 12 : index
    %271 = vector.load %arg1[%c0_477, %c7_478, %c0_479, %c12_480] : memref<1x16x8x256xbf16, #tpu.memory_space<vmem>>, vector<1x1x8x128xbf16>
    %272 = vector.shape_cast %271 : vector<1x1x8x128xbf16> to vector<8x128xbf16>
    %c320_481 = arith.constant 320 : index
    %c0_482 = arith.constant 0 : index
    %273 = vector.load %arg5[%c320_481, %c0_482] : memref<392x128xbf16, #tpu.memory_space<vmem>>, vector<8x128xbf16>
    tpu.vector_store %arg5[%c320_481, %c0_482], %272 {strides = array<i32>} : memref<392x128xbf16, #tpu.memory_space<vmem>>, vector<8x128xbf16>,
    %c0_483 = arith.constant 0 : index
    %c4_484 = arith.constant 4 : index
    %c0_485 = arith.constant 0 : index
    %c13_486 = arith.constant 13 : index
    %274 = vector.load %arg1[%c0_483, %c4_484, %c0_485, %c13_486] : memref<1x16x8x256xbf16, #tpu.memory_space<vmem>>, vector<1x1x8x128xbf16>
    %275 = vector.shape_cast %274 : vector<1x1x8x128xbf16> to vector<8x128xbf16>
    %c328_487 = arith.constant 328 : index
    %c0_488 = arith.constant 0 : index
    %276 = vector.load %arg5[%c328_487, %c0_488] : memref<392x128xbf16, #tpu.memory_space<vmem>>, vector<8x128xbf16>
    tpu.vector_store %arg5[%c328_487, %c0_488], %275 {strides = array<i32>} : memref<392x128xbf16, #tpu.memory_space<vmem>>, vector<8x128xbf16>,
    %c0_489 = arith.constant 0 : index
    %c10_490 = arith.constant 10 : index
    %c0_491 = arith.constant 0 : index
    %c11_492 = arith.constant 11 : index
    %277 = vector.load %arg1[%c0_489, %c10_490, %c0_491, %c11_492] : memref<1x16x8x256xbf16, #tpu.memory_space<vmem>>, vector<1x1x8x128xbf16>
    %278 = vector.shape_cast %277 : vector<1x1x8x128xbf16> to vector<8x128xbf16>
    %c336_493 = arith.constant 336 : index
    %c0_494 = arith.constant 0 : index
    %279 = vector.load %arg5[%c336_493, %c0_494] : memref<392x128xbf16, #tpu.memory_space<vmem>>, vector<8x128xbf16>
    tpu.vector_store %arg5[%c336_493, %c0_494], %278 {strides = array<i32>} : memref<392x128xbf16, #tpu.memory_space<vmem>>, vector<8x128xbf16>,
    %c0_495 = arith.constant 0 : index
    %c11_496 = arith.constant 11 : index
    %c0_497 = arith.constant 0 : index
    %c11_498 = arith.constant 11 : index
    %280 = vector.load %arg1[%c0_495, %c11_496, %c0_497, %c11_498] : memref<1x16x8x256xbf16, #tpu.memory_space<vmem>>, vector<1x1x8x128xbf16>
    %281 = vector.shape_cast %280 : vector<1x1x8x128xbf16> to vector<8x128xbf16>
    %c344_499 = arith.constant 344 : index
    %c0_500 = arith.constant 0 : index
    %282 = vector.load %arg5[%c344_499, %c0_500] : memref<392x128xbf16, #tpu.memory_space<vmem>>, vector<8x128xbf16>
    tpu.vector_store %arg5[%c344_499, %c0_500], %281 {strides = array<i32>} : memref<392x128xbf16, #tpu.memory_space<vmem>>, vector<8x128xbf16>,
    %c0_501 = arith.constant 0 : index
    %c8_502 = arith.constant 8 : index
    %c0_503 = arith.constant 0 : index
    %c12_504 = arith.constant 12 : index
    %283 = vector.load %arg1[%c0_501, %c8_502, %c0_503, %c12_504] : memref<1x16x8x256xbf16, #tpu.memory_space<vmem>>, vector<1x1x8x128xbf16>
    %284 = vector.shape_cast %283 : vector<1x1x8x128xbf16> to vector<8x128xbf16>
    %c352_505 = arith.constant 352 : index
    %c0_506 = arith.constant 0 : index
    %285 = vector.load %arg5[%c352_505, %c0_506] : memref<392x128xbf16, #tpu.memory_space<vmem>>, vector<8x128xbf16>
    tpu.vector_store %arg5[%c352_505, %c0_506], %284 {strides = array<i32>} : memref<392x128xbf16, #tpu.memory_space<vmem>>, vector<8x128xbf16>,
    %c0_507 = arith.constant 0 : index
    %c9_508 = arith.constant 9 : index
    %c0_509 = arith.constant 0 : index
    %c12_510 = arith.constant 12 : index
    %286 = vector.load %arg1[%c0_507, %c9_508, %c0_509, %c12_510] : memref<1x16x8x256xbf16, #tpu.memory_space<vmem>>, vector<1x1x8x128xbf16>
    %287 = vector.shape_cast %286 : vector<1x1x8x128xbf16> to vector<8x128xbf16>
    %c360_511 = arith.constant 360 : index
    %c0_512 = arith.constant 0 : index
    %288 = vector.load %arg5[%c360_511, %c0_512] : memref<392x128xbf16, #tpu.memory_space<vmem>>, vector<8x128xbf16>
    tpu.vector_store %arg5[%c360_511, %c0_512], %287 {strides = array<i32>} : memref<392x128xbf16, #tpu.memory_space<vmem>>, vector<8x128xbf16>,
    %c0_513 = arith.constant 0 : index
    %c10_514 = arith.constant 10 : index
    %c0_515 = arith.constant 0 : index
    %c12_516 = arith.constant 12 : index
    %289 = vector.load %arg1[%c0_513, %c10_514, %c0_515, %c12_516] : memref<1x16x8x256xbf16, #tpu.memory_space<vmem>>, vector<1x1x8x128xbf16>
    %290 = vector.shape_cast %289 : vector<1x1x8x128xbf16> to vector<8x128xbf16>
    %c368_517 = arith.constant 368 : index
    %c0_518 = arith.constant 0 : index
    %291 = vector.load %arg5[%c368_517, %c0_518] : memref<392x128xbf16, #tpu.memory_space<vmem>>, vector<8x128xbf16>
    tpu.vector_store %arg5[%c368_517, %c0_518], %290 {strides = array<i32>} : memref<392x128xbf16, #tpu.memory_space<vmem>>, vector<8x128xbf16>,
    %c0_519 = arith.constant 0 : index
    %c11_520 = arith.constant 11 : index
    %c0_521 = arith.constant 0 : index
    %c12_522 = arith.constant 12 : index
    %292 = vector.load %arg1[%c0_519, %c11_520, %c0_521, %c12_522] : memref<1x16x8x256xbf16, #tpu.memory_space<vmem>>, vector<1x1x8x128xbf16>
    %293 = vector.shape_cast %292 : vector<1x1x8x128xbf16> to vector<8x128xbf16>
    %c376_523 = arith.constant 376 : index
    %c0_524 = arith.constant 0 : index
    %294 = vector.load %arg5[%c376_523, %c0_524] : memref<392x128xbf16, #tpu.memory_space<vmem>>, vector<8x128xbf16>
    tpu.vector_store %arg5[%c376_523, %c0_524], %293 {strides = array<i32>} : memref<392x128xbf16, #tpu.memory_space<vmem>>, vector<8x128xbf16>,
    %c0_525 = arith.constant 0 : index
    %c8_526 = arith.constant 8 : index
    %c0_527 = arith.constant 0 : index
    %c13_528 = arith.constant 13 : index
    %295 = vector.load %arg1[%c0_525, %c8_526, %c0_527, %c13_528] : memref<1x16x8x256xbf16, #tpu.memory_space<vmem>>, vector<1x1x8x128xbf16>
    %296 = vector.shape_cast %295 : vector<1x1x8x128xbf16> to vector<8x128xbf16>
    %c384_529 = arith.constant 384 : index
    %c0_530 = arith.constant 0 : index
    %297 = vector.load %arg5[%c384_529, %c0_530] : memref<392x128xbf16, #tpu.memory_space<vmem>>, vector<8x128xbf16>
    tpu.vector_store %arg5[%c384_529, %c0_530], %296 {strides = array<i32>} : memref<392x128xbf16, #tpu.memory_space<vmem>>, vector<8x128xbf16>,
    %c0_531 = arith.constant 0 : index
    %c0_532 = arith.constant 0 : index
    %298 = vector.load %arg2[%c0_531, %c0_532] : memref<8x392xbf16, #tpu.memory_space<vmem>>, vector<8x392xbf16>
    %c0_533 = arith.constant 0 : index
    %c0_534 = arith.constant 0 : index
    %299 = vector.load %arg5[%c0_533, %c0_534] : memref<392x128xbf16, #tpu.memory_space<vmem>>, vector<392x128xbf16>
    %cst_535 = arith.constant dense<0.000000e+00> : vector<8x128xf32>
    %300 = tpu.matmul %298, %299, %cst_535 {dimension_numbers = #tpu.dot_dimension_numbers<[1], [0], [0], [1], [0, 0, 1, 1], [], []>} : vector<8x392xbf16>, vector<392x128xbf16>, vector<8x128xf32> -> vector<8x128xf32>
    %c0_536 = arith.constant 0 : index
    %c8_537 = arith.constant 8 : index
    %c0_538 = arith.constant 0 : index
    %c0_539 = arith.constant 0 : index
    %301 = vector.load %arg1[%c0_536, %c8_537, %c0_538, %c0_539] : memref<1x16x8x256xbf16, #tpu.memory_space<vmem>>, vector<1x1x8x128xbf16>
    %302 = vector.shape_cast %301 : vector<1x1x8x128xbf16> to vector<8x128xbf16>
    %c0_540 = arith.constant 0 : index
    %c0_541 = arith.constant 0 : index
    %303 = vector.load %arg5[%c0_540, %c0_541] : memref<392x128xbf16, #tpu.memory_space<vmem>>, vector<8x128xbf16>
    tpu.vector_store %arg5[%c0_540, %c0_541], %302 {strides = array<i32>} : memref<392x128xbf16, #tpu.memory_space<vmem>>, vector<8x128xbf16>,
    %c0_542 = arith.constant 0 : index
    %c9_543 = arith.constant 9 : index
    %c0_544 = arith.constant 0 : index
    %c0_545 = arith.constant 0 : index
    %304 = vector.load %arg1[%c0_542, %c9_543, %c0_544, %c0_545] : memref<1x16x8x256xbf16, #tpu.memory_space<vmem>>, vector<1x1x8x128xbf16>
    %305 = vector.shape_cast %304 : vector<1x1x8x128xbf16> to vector<8x128xbf16>
    %c8_546 = arith.constant 8 : index
    %c0_547 = arith.constant 0 : index
    %306 = vector.load %arg5[%c8_546, %c0_547] : memref<392x128xbf16, #tpu.memory_space<vmem>>, vector<8x128xbf16>
    tpu.vector_store %arg5[%c8_546, %c0_547], %305 {strides = array<i32>} : memref<392x128xbf16, #tpu.memory_space<vmem>>, vector<8x128xbf16>,
    %c0_548 = arith.constant 0 : index
    %c10_549 = arith.constant 10 : index
    %c0_550 = arith.constant 0 : index
    %c0_551 = arith.constant 0 : index
    %307 = vector.load %arg1[%c0_548, %c10_549, %c0_550, %c0_551] : memref<1x16x8x256xbf16, #tpu.memory_space<vmem>>, vector<1x1x8x128xbf16>
    %308 = vector.shape_cast %307 : vector<1x1x8x128xbf16> to vector<8x128xbf16>
    %c16_552 = arith.constant 16 : index
    %c0_553 = arith.constant 0 : index
    %309 = vector.load %arg5[%c16_552, %c0_553] : memref<392x128xbf16, #tpu.memory_space<vmem>>, vector<8x128xbf16>
    tpu.vector_store %arg5[%c16_552, %c0_553], %308 {strides = array<i32>} : memref<392x128xbf16, #tpu.memory_space<vmem>>, vector<8x128xbf16>,
    %c0_554 = arith.constant 0 : index
    %c11_555 = arith.constant 11 : index
    %c0_556 = arith.constant 0 : index
    %c0_557 = arith.constant 0 : index
    %310 = vector.load %arg1[%c0_554, %c11_555, %c0_556, %c0_557] : memref<1x16x8x256xbf16, #tpu.memory_space<vmem>>, vector<1x1x8x128xbf16>
    %311 = vector.shape_cast %310 : vector<1x1x8x128xbf16> to vector<8x128xbf16>
    %c24_558 = arith.constant 24 : index
    %c0_559 = arith.constant 0 : index
    %312 = vector.load %arg5[%c24_558, %c0_559] : memref<392x128xbf16, #tpu.memory_space<vmem>>, vector<8x128xbf16>
    tpu.vector_store %arg5[%c24_558, %c0_559], %311 {strides = array<i32>} : memref<392x128xbf16, #tpu.memory_space<vmem>>, vector<8x128xbf16>,
    %c0_560 = arith.constant 0 : index
    %c8_561 = arith.constant 8 : index
    %c0_562 = arith.constant 0 : index
    %c1_563 = arith.constant 1 : index
    %313 = vector.load %arg1[%c0_560, %c8_561, %c0_562, %c1_563] : memref<1x16x8x256xbf16, #tpu.memory_space<vmem>>, vector<1x1x8x128xbf16>
    %314 = vector.shape_cast %313 : vector<1x1x8x128xbf16> to vector<8x128xbf16>
    %c32_564 = arith.constant 32 : index
    %c0_565 = arith.constant 0 : index
    %315 = vector.load %arg5[%c32_564, %c0_565] : memref<392x128xbf16, #tpu.memory_space<vmem>>, vector<8x128xbf16>
    tpu.vector_store %arg5[%c32_564, %c0_565], %314 {strides = array<i32>} : memref<392x128xbf16, #tpu.memory_space<vmem>>, vector<8x128xbf16>,
    %c0_566 = arith.constant 0 : index
    %c9_567 = arith.constant 9 : index
    %c0_568 = arith.constant 0 : index
    %c1_569 = arith.constant 1 : index
    %316 = vector.load %arg1[%c0_566, %c9_567, %c0_568, %c1_569] : memref<1x16x8x256xbf16, #tpu.memory_space<vmem>>, vector<1x1x8x128xbf16>
    %317 = vector.shape_cast %316 : vector<1x1x8x128xbf16> to vector<8x128xbf16>
    %c40_570 = arith.constant 40 : index
    %c0_571 = arith.constant 0 : index
    %318 = vector.load %arg5[%c40_570, %c0_571] : memref<392x128xbf16, #tpu.memory_space<vmem>>, vector<8x128xbf16>
    tpu.vector_store %arg5[%c40_570, %c0_571], %317 {strides = array<i32>} : memref<392x128xbf16, #tpu.memory_space<vmem>>, vector<8x128xbf16>,
    %c0_572 = arith.constant 0 : index
    %c10_573 = arith.constant 10 : index
    %c0_574 = arith.constant 0 : index
    %c1_575 = arith.constant 1 : index
    %319 = vector.load %arg1[%c0_572, %c10_573, %c0_574, %c1_575] : memref<1x16x8x256xbf16, #tpu.memory_space<vmem>>, vector<1x1x8x128xbf16>
    %320 = vector.shape_cast %319 : vector<1x1x8x128xbf16> to vector<8x128xbf16>
    %c48_576 = arith.constant 48 : index
    %c0_577 = arith.constant 0 : index
    %321 = vector.load %arg5[%c48_576, %c0_577] : memref<392x128xbf16, #tpu.memory_space<vmem>>, vector<8x128xbf16>
    tpu.vector_store %arg5[%c48_576, %c0_577], %320 {strides = array<i32>} : memref<392x128xbf16, #tpu.memory_space<vmem>>, vector<8x128xbf16>,
    %c0_578 = arith.constant 0 : index
    %c12_579 = arith.constant 12 : index
    %c0_580 = arith.constant 0 : index
    %c0_581 = arith.constant 0 : index
    %322 = vector.load %arg1[%c0_578, %c12_579, %c0_580, %c0_581] : memref<1x16x8x256xbf16, #tpu.memory_space<vmem>>, vector<1x1x8x128xbf16>
    %323 = vector.shape_cast %322 : vector<1x1x8x128xbf16> to vector<8x128xbf16>
    %c56_582 = arith.constant 56 : index
    %c0_583 = arith.constant 0 : index
    %324 = vector.load %arg5[%c56_582, %c0_583] : memref<392x128xbf16, #tpu.memory_space<vmem>>, vector<8x128xbf16>
    tpu.vector_store %arg5[%c56_582, %c0_583], %323 {strides = array<i32>} : memref<392x128xbf16, #tpu.memory_space<vmem>>, vector<8x128xbf16>,
    %c0_584 = arith.constant 0 : index
    %c13_585 = arith.constant 13 : index
    %c0_586 = arith.constant 0 : index
    %c0_587 = arith.constant 0 : index
    %325 = vector.load %arg1[%c0_584, %c13_585, %c0_586, %c0_587] : memref<1x16x8x256xbf16, #tpu.memory_space<vmem>>, vector<1x1x8x128xbf16>
    %326 = vector.shape_cast %325 : vector<1x1x8x128xbf16> to vector<8x128xbf16>
    %c64_588 = arith.constant 64 : index
    %c0_589 = arith.constant 0 : index
    %327 = vector.load %arg5[%c64_588, %c0_589] : memref<392x128xbf16, #tpu.memory_space<vmem>>, vector<8x128xbf16>
    tpu.vector_store %arg5[%c64_588, %c0_589], %326 {strides = array<i32>} : memref<392x128xbf16, #tpu.memory_space<vmem>>, vector<8x128xbf16>,
    %c0_590 = arith.constant 0 : index
    %c14_591 = arith.constant 14 : index
    %c0_592 = arith.constant 0 : index
    %c0_593 = arith.constant 0 : index
    %328 = vector.load %arg1[%c0_590, %c14_591, %c0_592, %c0_593] : memref<1x16x8x256xbf16, #tpu.memory_space<vmem>>, vector<1x1x8x128xbf16>
    %329 = vector.shape_cast %328 : vector<1x1x8x128xbf16> to vector<8x128xbf16>
    %c72_594 = arith.constant 72 : index
    %c0_595 = arith.constant 0 : index
    %330 = vector.load %arg5[%c72_594, %c0_595] : memref<392x128xbf16, #tpu.memory_space<vmem>>, vector<8x128xbf16>
    tpu.vector_store %arg5[%c72_594, %c0_595], %329 {strides = array<i32>} : memref<392x128xbf16, #tpu.memory_space<vmem>>, vector<8x128xbf16>,
    %c0_596 = arith.constant 0 : index
    %c15_597 = arith.constant 15 : index
    %c0_598 = arith.constant 0 : index
    %c0_599 = arith.constant 0 : index
    %331 = vector.load %arg1[%c0_596, %c15_597, %c0_598, %c0_599] : memref<1x16x8x256xbf16, #tpu.memory_space<vmem>>, vector<1x1x8x128xbf16>
    %332 = vector.shape_cast %331 : vector<1x1x8x128xbf16> to vector<8x128xbf16>
    %c80_600 = arith.constant 80 : index
    %c0_601 = arith.constant 0 : index
    %333 = vector.load %arg5[%c80_600, %c0_601] : memref<392x128xbf16, #tpu.memory_space<vmem>>, vector<8x128xbf16>
    tpu.vector_store %arg5[%c80_600, %c0_601], %332 {strides = array<i32>} : memref<392x128xbf16, #tpu.memory_space<vmem>>, vector<8x128xbf16>,
    %c0_602 = arith.constant 0 : index
    %c12_603 = arith.constant 12 : index
    %c0_604 = arith.constant 0 : index
    %c1_605 = arith.constant 1 : index
    %334 = vector.load %arg1[%c0_602, %c12_603, %c0_604, %c1_605] : memref<1x16x8x256xbf16, #tpu.memory_space<vmem>>, vector<1x1x8x128xbf16>
    %335 = vector.shape_cast %334 : vector<1x1x8x128xbf16> to vector<8x128xbf16>
    %c88_606 = arith.constant 88 : index
    %c0_607 = arith.constant 0 : index
    %336 = vector.load %arg5[%c88_606, %c0_607] : memref<392x128xbf16, #tpu.memory_space<vmem>>, vector<8x128xbf16>
    tpu.vector_store %arg5[%c88_606, %c0_607], %335 {strides = array<i32>} : memref<392x128xbf16, #tpu.memory_space<vmem>>, vector<8x128xbf16>,
    %c0_608 = arith.constant 0 : index
    %c13_609 = arith.constant 13 : index
    %c0_610 = arith.constant 0 : index
    %c1_611 = arith.constant 1 : index
    %337 = vector.load %arg1[%c0_608, %c13_609, %c0_610, %c1_611] : memref<1x16x8x256xbf16, #tpu.memory_space<vmem>>, vector<1x1x8x128xbf16>
    %338 = vector.shape_cast %337 : vector<1x1x8x128xbf16> to vector<8x128xbf16>
    %c96_612 = arith.constant 96 : index
    %c0_613 = arith.constant 0 : index
    %339 = vector.load %arg5[%c96_612, %c0_613] : memref<392x128xbf16, #tpu.memory_space<vmem>>, vector<8x128xbf16>
    tpu.vector_store %arg5[%c96_612, %c0_613], %338 {strides = array<i32>} : memref<392x128xbf16, #tpu.memory_space<vmem>>, vector<8x128xbf16>,
    %c0_614 = arith.constant 0 : index
    %c14_615 = arith.constant 14 : index
    %c0_616 = arith.constant 0 : index
    %c1_617 = arith.constant 1 : index
    %340 = vector.load %arg1[%c0_614, %c14_615, %c0_616, %c1_617] : memref<1x16x8x256xbf16, #tpu.memory_space<vmem>>, vector<1x1x8x128xbf16>
    %341 = vector.shape_cast %340 : vector<1x1x8x128xbf16> to vector<8x128xbf16>
    %c104_618 = arith.constant 104 : index
    %c0_619 = arith.constant 0 : index
    %342 = vector.load %arg5[%c104_618, %c0_619] : memref<392x128xbf16, #tpu.memory_space<vmem>>, vector<8x128xbf16>
    tpu.vector_store %arg5[%c104_618, %c0_619], %341 {strides = array<i32>} : memref<392x128xbf16, #tpu.memory_space<vmem>>, vector<8x128xbf16>,
    %c0_620 = arith.constant 0 : index
    %c0_621 = arith.constant 0 : index
    %c0_622 = arith.constant 0 : index
    %c11_623 = arith.constant 11 : index
    %343 = vector.load %arg1[%c0_620, %c0_621, %c0_622, %c11_623] : memref<1x16x8x256xbf16, #tpu.memory_space<vmem>>, vector<1x1x8x128xbf16>
    %344 = vector.shape_cast %343 : vector<1x1x8x128xbf16> to vector<8x128xbf16>
    %c112_624 = arith.constant 112 : index
    %c0_625 = arith.constant 0 : index
    %345 = vector.load %arg5[%c112_624, %c0_625] : memref<392x128xbf16, #tpu.memory_space<vmem>>, vector<8x128xbf16>
    tpu.vector_store %arg5[%c112_624, %c0_625], %344 {strides = array<i32>} : memref<392x128xbf16, #tpu.memory_space<vmem>>, vector<8x128xbf16>,
    %c0_626 = arith.constant 0 : index
    %c1_627 = arith.constant 1 : index
    %c0_628 = arith.constant 0 : index
    %c11_629 = arith.constant 11 : index
    %346 = vector.load %arg1[%c0_626, %c1_627, %c0_628, %c11_629] : memref<1x16x8x256xbf16, #tpu.memory_space<vmem>>, vector<1x1x8x128xbf16>
    %347 = vector.shape_cast %346 : vector<1x1x8x128xbf16> to vector<8x128xbf16>
    %c120_630 = arith.constant 120 : index
    %c0_631 = arith.constant 0 : index
    %348 = vector.load %arg5[%c120_630, %c0_631] : memref<392x128xbf16, #tpu.memory_space<vmem>>, vector<8x128xbf16>
    tpu.vector_store %arg5[%c120_630, %c0_631], %347 {strides = array<i32>} : memref<392x128xbf16, #tpu.memory_space<vmem>>, vector<8x128xbf16>,
    %c0_632 = arith.constant 0 : index
    %c2_633 = arith.constant 2 : index
    %c0_634 = arith.constant 0 : index
    %c11_635 = arith.constant 11 : index
    %349 = vector.load %arg1[%c0_632, %c2_633, %c0_634, %c11_635] : memref<1x16x8x256xbf16, #tpu.memory_space<vmem>>, vector<1x1x8x128xbf16>
    %350 = vector.shape_cast %349 : vector<1x1x8x128xbf16> to vector<8x128xbf16>
    %c128_636 = arith.constant 128 : index
    %c0_637 = arith.constant 0 : index
    %351 = vector.load %arg5[%c128_636, %c0_637] : memref<392x128xbf16, #tpu.memory_space<vmem>>, vector<8x128xbf16>
    tpu.vector_store %arg5[%c128_636, %c0_637], %350 {strides = array<i32>} : memref<392x128xbf16, #tpu.memory_space<vmem>>, vector<8x128xbf16>,
    %c0_638 = arith.constant 0 : index
    %c3_639 = arith.constant 3 : index
    %c0_640 = arith.constant 0 : index
    %c11_641 = arith.constant 11 : index
    %352 = vector.load %arg1[%c0_638, %c3_639, %c0_640, %c11_641] : memref<1x16x8x256xbf16, #tpu.memory_space<vmem>>, vector<1x1x8x128xbf16>
    %353 = vector.shape_cast %352 : vector<1x1x8x128xbf16> to vector<8x128xbf16>
    %c136_642 = arith.constant 136 : index
    %c0_643 = arith.constant 0 : index
    %354 = vector.load %arg5[%c136_642, %c0_643] : memref<392x128xbf16, #tpu.memory_space<vmem>>, vector<8x128xbf16>
    tpu.vector_store %arg5[%c136_642, %c0_643], %353 {strides = array<i32>} : memref<392x128xbf16, #tpu.memory_space<vmem>>, vector<8x128xbf16>,
    %c0_644 = arith.constant 0 : index
    %c0_645 = arith.constant 0 : index
    %c0_646 = arith.constant 0 : index
    %c12_647 = arith.constant 12 : index
    %355 = vector.load %arg1[%c0_644, %c0_645, %c0_646, %c12_647] : memref<1x16x8x256xbf16, #tpu.memory_space<vmem>>, vector<1x1x8x128xbf16>
    %356 = vector.shape_cast %355 : vector<1x1x8x128xbf16> to vector<8x128xbf16>
    %c144_648 = arith.constant 144 : index
    %c0_649 = arith.constant 0 : index
    %357 = vector.load %arg5[%c144_648, %c0_649] : memref<392x128xbf16, #tpu.memory_space<vmem>>, vector<8x128xbf16>
    tpu.vector_store %arg5[%c144_648, %c0_649], %356 {strides = array<i32>} : memref<392x128xbf16, #tpu.memory_space<vmem>>, vector<8x128xbf16>,
    %c0_650 = arith.constant 0 : index
    %c1_651 = arith.constant 1 : index
    %c0_652 = arith.constant 0 : index
    %c12_653 = arith.constant 12 : index
    %358 = vector.load %arg1[%c0_650, %c1_651, %c0_652, %c12_653] : memref<1x16x8x256xbf16, #tpu.memory_space<vmem>>, vector<1x1x8x128xbf16>
    %359 = vector.shape_cast %358 : vector<1x1x8x128xbf16> to vector<8x128xbf16>
    %c152_654 = arith.constant 152 : index
    %c0_655 = arith.constant 0 : index
    %360 = vector.load %arg5[%c152_654, %c0_655] : memref<392x128xbf16, #tpu.memory_space<vmem>>, vector<8x128xbf16>
    tpu.vector_store %arg5[%c152_654, %c0_655], %359 {strides = array<i32>} : memref<392x128xbf16, #tpu.memory_space<vmem>>, vector<8x128xbf16>,
    %c0_656 = arith.constant 0 : index
    %c2_657 = arith.constant 2 : index
    %c0_658 = arith.constant 0 : index
    %c12_659 = arith.constant 12 : index
    %361 = vector.load %arg1[%c0_656, %c2_657, %c0_658, %c12_659] : memref<1x16x8x256xbf16, #tpu.memory_space<vmem>>, vector<1x1x8x128xbf16>
    %362 = vector.shape_cast %361 : vector<1x1x8x128xbf16> to vector<8x128xbf16>
    %c160_660 = arith.constant 160 : index
    %c0_661 = arith.constant 0 : index
    %363 = vector.load %arg5[%c160_660, %c0_661] : memref<392x128xbf16, #tpu.memory_space<vmem>>, vector<8x128xbf16>
    tpu.vector_store %arg5[%c160_660, %c0_661], %362 {strides = array<i32>} : memref<392x128xbf16, #tpu.memory_space<vmem>>, vector<8x128xbf16>,
    %c0_662 = arith.constant 0 : index
    %c4_663 = arith.constant 4 : index
    %c0_664 = arith.constant 0 : index
    %c11_665 = arith.constant 11 : index
    %364 = vector.load %arg1[%c0_662, %c4_663, %c0_664, %c11_665] : memref<1x16x8x256xbf16, #tpu.memory_space<vmem>>, vector<1x1x8x128xbf16>
    %365 = vector.shape_cast %364 : vector<1x1x8x128xbf16> to vector<8x128xbf16>
    %c168_666 = arith.constant 168 : index
    %c0_667 = arith.constant 0 : index
    %366 = vector.load %arg5[%c168_666, %c0_667] : memref<392x128xbf16, #tpu.memory_space<vmem>>, vector<8x128xbf16>
    tpu.vector_store %arg5[%c168_666, %c0_667], %365 {strides = array<i32>} : memref<392x128xbf16, #tpu.memory_space<vmem>>, vector<8x128xbf16>,
    %c0_668 = arith.constant 0 : index
    %c5_669 = arith.constant 5 : index
    %c0_670 = arith.constant 0 : index
    %c11_671 = arith.constant 11 : index
    %367 = vector.load %arg1[%c0_668, %c5_669, %c0_670, %c11_671] : memref<1x16x8x256xbf16, #tpu.memory_space<vmem>>, vector<1x1x8x128xbf16>
    %368 = vector.shape_cast %367 : vector<1x1x8x128xbf16> to vector<8x128xbf16>
    %c176_672 = arith.constant 176 : index
    %c0_673 = arith.constant 0 : index
    %369 = vector.load %arg5[%c176_672, %c0_673] : memref<392x128xbf16, #tpu.memory_space<vmem>>, vector<8x128xbf16>
    tpu.vector_store %arg5[%c176_672, %c0_673], %368 {strides = array<i32>} : memref<392x128xbf16, #tpu.memory_space<vmem>>, vector<8x128xbf16>,
    %c0_674 = arith.constant 0 : index
    %c6_675 = arith.constant 6 : index
    %c0_676 = arith.constant 0 : index
    %c11_677 = arith.constant 11 : index
    %370 = vector.load %arg1[%c0_674, %c6_675, %c0_676, %c11_677] : memref<1x16x8x256xbf16, #tpu.memory_space<vmem>>, vector<1x1x8x128xbf16>
    %371 = vector.shape_cast %370 : vector<1x1x8x128xbf16> to vector<8x128xbf16>
    %c184_678 = arith.constant 184 : index
    %c0_679 = arith.constant 0 : index
    %372 = vector.load %arg5[%c184_678, %c0_679] : memref<392x128xbf16, #tpu.memory_space<vmem>>, vector<8x128xbf16>
    tpu.vector_store %arg5[%c184_678, %c0_679], %371 {strides = array<i32>} : memref<392x128xbf16, #tpu.memory_space<vmem>>, vector<8x128xbf16>,
    %c0_680 = arith.constant 0 : index
    %c7_681 = arith.constant 7 : index
    %c0_682 = arith.constant 0 : index
    %c11_683 = arith.constant 11 : index
    %373 = vector.load %arg1[%c0_680, %c7_681, %c0_682, %c11_683] : memref<1x16x8x256xbf16, #tpu.memory_space<vmem>>, vector<1x1x8x128xbf16>
    %374 = vector.shape_cast %373 : vector<1x1x8x128xbf16> to vector<8x128xbf16>
    %c192_684 = arith.constant 192 : index
    %c0_685 = arith.constant 0 : index
    %375 = vector.load %arg5[%c192_684, %c0_685] : memref<392x128xbf16, #tpu.memory_space<vmem>>, vector<8x128xbf16>
    tpu.vector_store %arg5[%c192_684, %c0_685], %374 {strides = array<i32>} : memref<392x128xbf16, #tpu.memory_space<vmem>>, vector<8x128xbf16>,
    %c0_686 = arith.constant 0 : index
    %c4_687 = arith.constant 4 : index
    %c0_688 = arith.constant 0 : index
    %c12_689 = arith.constant 12 : index
    %376 = vector.load %arg1[%c0_686, %c4_687, %c0_688, %c12_689] : memref<1x16x8x256xbf16, #tpu.memory_space<vmem>>, vector<1x1x8x128xbf16>
    %377 = vector.shape_cast %376 : vector<1x1x8x128xbf16> to vector<8x128xbf16>
    %c200_690 = arith.constant 200 : index
    %c0_691 = arith.constant 0 : index
    %378 = vector.load %arg5[%c200_690, %c0_691] : memref<392x128xbf16, #tpu.memory_space<vmem>>, vector<8x128xbf16>
    tpu.vector_store %arg5[%c200_690, %c0_691], %377 {strides = array<i32>} : memref<392x128xbf16, #tpu.memory_space<vmem>>, vector<8x128xbf16>,
    %c0_692 = arith.constant 0 : index
    %c5_693 = arith.constant 5 : index
    %c0_694 = arith.constant 0 : index
    %c12_695 = arith.constant 12 : index
    %379 = vector.load %arg1[%c0_692, %c5_693, %c0_694, %c12_695] : memref<1x16x8x256xbf16, #tpu.memory_space<vmem>>, vector<1x1x8x128xbf16>
    %380 = vector.shape_cast %379 : vector<1x1x8x128xbf16> to vector<8x128xbf16>
    %c208_696 = arith.constant 208 : index
    %c0_697 = arith.constant 0 : index
    %381 = vector.load %arg5[%c208_696, %c0_697] : memref<392x128xbf16, #tpu.memory_space<vmem>>, vector<8x128xbf16>
    tpu.vector_store %arg5[%c208_696, %c0_697], %380 {strides = array<i32>} : memref<392x128xbf16, #tpu.memory_space<vmem>>, vector<8x128xbf16>,
    %c0_698 = arith.constant 0 : index
    %c6_699 = arith.constant 6 : index
    %c0_700 = arith.constant 0 : index
    %c12_701 = arith.constant 12 : index
    %382 = vector.load %arg1[%c0_698, %c6_699, %c0_700, %c12_701] : memref<1x16x8x256xbf16, #tpu.memory_space<vmem>>, vector<1x1x8x128xbf16>
    %383 = vector.shape_cast %382 : vector<1x1x8x128xbf16> to vector<8x128xbf16>
    %c216_702 = arith.constant 216 : index
    %c0_703 = arith.constant 0 : index
    %384 = vector.load %arg5[%c216_702, %c0_703] : memref<392x128xbf16, #tpu.memory_space<vmem>>, vector<8x128xbf16>
    tpu.vector_store %arg5[%c216_702, %c0_703], %383 {strides = array<i32>} : memref<392x128xbf16, #tpu.memory_space<vmem>>, vector<8x128xbf16>,
    %c0_704 = arith.constant 0 : index
    %c8_705 = arith.constant 8 : index
    %c0_706 = arith.constant 0 : index
    %c11_707 = arith.constant 11 : index
    %385 = vector.load %arg1[%c0_704, %c8_705, %c0_706, %c11_707] : memref<1x16x8x256xbf16, #tpu.memory_space<vmem>>, vector<1x1x8x128xbf16>
    %386 = vector.shape_cast %385 : vector<1x1x8x128xbf16> to vector<8x128xbf16>
    %c224_708 = arith.constant 224 : index
    %c0_709 = arith.constant 0 : index
    %387 = vector.load %arg5[%c224_708, %c0_709] : memref<392x128xbf16, #tpu.memory_space<vmem>>, vector<8x128xbf16>
    tpu.vector_store %arg5[%c224_708, %c0_709], %386 {strides = array<i32>} : memref<392x128xbf16, #tpu.memory_space<vmem>>, vector<8x128xbf16>,
    %c0_710 = arith.constant 0 : index
    %c9_711 = arith.constant 9 : index
    %c0_712 = arith.constant 0 : index
    %c11_713 = arith.constant 11 : index
    %388 = vector.load %arg1[%c0_710, %c9_711, %c0_712, %c11_713] : memref<1x16x8x256xbf16, #tpu.memory_space<vmem>>, vector<1x1x8x128xbf16>
    %389 = vector.shape_cast %388 : vector<1x1x8x128xbf16> to vector<8x128xbf16>
    %c232_714 = arith.constant 232 : index
    %c0_715 = arith.constant 0 : index
    %390 = vector.load %arg5[%c232_714, %c0_715] : memref<392x128xbf16, #tpu.memory_space<vmem>>, vector<8x128xbf16>
    tpu.vector_store %arg5[%c232_714, %c0_715], %389 {strides = array<i32>} : memref<392x128xbf16, #tpu.memory_space<vmem>>, vector<8x128xbf16>,
    %c0_716 = arith.constant 0 : index
    %c10_717 = arith.constant 10 : index
    %c0_718 = arith.constant 0 : index
    %c11_719 = arith.constant 11 : index
    %391 = vector.load %arg1[%c0_716, %c10_717, %c0_718, %c11_719] : memref<1x16x8x256xbf16, #tpu.memory_space<vmem>>, vector<1x1x8x128xbf16>
    %392 = vector.shape_cast %391 : vector<1x1x8x128xbf16> to vector<8x128xbf16>
    %c240_720 = arith.constant 240 : index
    %c0_721 = arith.constant 0 : index
    %393 = vector.load %arg5[%c240_720, %c0_721] : memref<392x128xbf16, #tpu.memory_space<vmem>>, vector<8x128xbf16>
    tpu.vector_store %arg5[%c240_720, %c0_721], %392 {strides = array<i32>} : memref<392x128xbf16, #tpu.memory_space<vmem>>, vector<8x128xbf16>,
    %c0_722 = arith.constant 0 : index
    %c11_723 = arith.constant 11 : index
    %c0_724 = arith.constant 0 : index
    %c11_725 = arith.constant 11 : index
    %394 = vector.load %arg1[%c0_722, %c11_723, %c0_724, %c11_725] : memref<1x16x8x256xbf16, #tpu.memory_space<vmem>>, vector<1x1x8x128xbf16>
    %395 = vector.shape_cast %394 : vector<1x1x8x128xbf16> to vector<8x128xbf16>
    %c248_726 = arith.constant 248 : index
    %c0_727 = arith.constant 0 : index
    %396 = vector.load %arg5[%c248_726, %c0_727] : memref<392x128xbf16, #tpu.memory_space<vmem>>, vector<8x128xbf16>
    tpu.vector_store %arg5[%c248_726, %c0_727], %395 {strides = array<i32>} : memref<392x128xbf16, #tpu.memory_space<vmem>>, vector<8x128xbf16>,
    %c0_728 = arith.constant 0 : index
    %c8_729 = arith.constant 8 : index
    %c0_730 = arith.constant 0 : index
    %c12_731 = arith.constant 12 : index
    %397 = vector.load %arg1[%c0_728, %c8_729, %c0_730, %c12_731] : memref<1x16x8x256xbf16, #tpu.memory_space<vmem>>, vector<1x1x8x128xbf16>
    %398 = vector.shape_cast %397 : vector<1x1x8x128xbf16> to vector<8x128xbf16>
    %c256_732 = arith.constant 256 : index
    %c0_733 = arith.constant 0 : index
    %399 = vector.load %arg5[%c256_732, %c0_733] : memref<392x128xbf16, #tpu.memory_space<vmem>>, vector<8x128xbf16>
    tpu.vector_store %arg5[%c256_732, %c0_733], %398 {strides = array<i32>} : memref<392x128xbf16, #tpu.memory_space<vmem>>, vector<8x128xbf16>,
    %c0_734 = arith.constant 0 : index
    %c9_735 = arith.constant 9 : index
    %c0_736 = arith.constant 0 : index
    %c12_737 = arith.constant 12 : index
    %400 = vector.load %arg1[%c0_734, %c9_735, %c0_736, %c12_737] : memref<1x16x8x256xbf16, #tpu.memory_space<vmem>>, vector<1x1x8x128xbf16>
    %401 = vector.shape_cast %400 : vector<1x1x8x128xbf16> to vector<8x128xbf16>
    %c264_738 = arith.constant 264 : index
    %c0_739 = arith.constant 0 : index
    %402 = vector.load %arg5[%c264_738, %c0_739] : memref<392x128xbf16, #tpu.memory_space<vmem>>, vector<8x128xbf16>
    tpu.vector_store %arg5[%c264_738, %c0_739], %401 {strides = array<i32>} : memref<392x128xbf16, #tpu.memory_space<vmem>>, vector<8x128xbf16>,
    %c0_740 = arith.constant 0 : index
    %c10_741 = arith.constant 10 : index
    %c0_742 = arith.constant 0 : index
    %c12_743 = arith.constant 12 : index
    %403 = vector.load %arg1[%c0_740, %c10_741, %c0_742, %c12_743] : memref<1x16x8x256xbf16, #tpu.memory_space<vmem>>, vector<1x1x8x128xbf16>
    %404 = vector.shape_cast %403 : vector<1x1x8x128xbf16> to vector<8x128xbf16>
    %c272_744 = arith.constant 272 : index
    %c0_745 = arith.constant 0 : index
    %405 = vector.load %arg5[%c272_744, %c0_745] : memref<392x128xbf16, #tpu.memory_space<vmem>>, vector<8x128xbf16>
    tpu.vector_store %arg5[%c272_744, %c0_745], %404 {strides = array<i32>} : memref<392x128xbf16, #tpu.memory_space<vmem>>, vector<8x128xbf16>,
    %c0_746 = arith.constant 0 : index
    %c12_747 = arith.constant 12 : index
    %c0_748 = arith.constant 0 : index
    %c11_749 = arith.constant 11 : index
    %406 = vector.load %arg1[%c0_746, %c12_747, %c0_748, %c11_749] : memref<1x16x8x256xbf16, #tpu.memory_space<vmem>>, vector<1x1x8x128xbf16>
    %407 = vector.shape_cast %406 : vector<1x1x8x128xbf16> to vector<8x128xbf16>
    %c280_750 = arith.constant 280 : index
    %c0_751 = arith.constant 0 : index
    %408 = vector.load %arg5[%c280_750, %c0_751] : memref<392x128xbf16, #tpu.memory_space<vmem>>, vector<8x128xbf16>
    tpu.vector_store %arg5[%c280_750, %c0_751], %407 {strides = array<i32>} : memref<392x128xbf16, #tpu.memory_space<vmem>>, vector<8x128xbf16>,
    %c0_752 = arith.constant 0 : index
    %c13_753 = arith.constant 13 : index
    %c0_754 = arith.constant 0 : index
    %c11_755 = arith.constant 11 : index
    %409 = vector.load %arg1[%c0_752, %c13_753, %c0_754, %c11_755] : memref<1x16x8x256xbf16, #tpu.memory_space<vmem>>, vector<1x1x8x128xbf16>
    %410 = vector.shape_cast %409 : vector<1x1x8x128xbf16> to vector<8x128xbf16>
    %c288_756 = arith.constant 288 : index
    %c0_757 = arith.constant 0 : index
    %411 = vector.load %arg5[%c288_756, %c0_757] : memref<392x128xbf16, #tpu.memory_space<vmem>>, vector<8x128xbf16>
    tpu.vector_store %arg5[%c288_756, %c0_757], %410 {strides = array<i32>} : memref<392x128xbf16, #tpu.memory_space<vmem>>, vector<8x128xbf16>,
    %c0_758 = arith.constant 0 : index
    %c14_759 = arith.constant 14 : index
    %c0_760 = arith.constant 0 : index
    %c11_761 = arith.constant 11 : index
    %412 = vector.load %arg1[%c0_758, %c14_759, %c0_760, %c11_761] : memref<1x16x8x256xbf16, #tpu.memory_space<vmem>>, vector<1x1x8x128xbf16>
    %413 = vector.shape_cast %412 : vector<1x1x8x128xbf16> to vector<8x128xbf16>
    %c296_762 = arith.constant 296 : index
    %c0_763 = arith.constant 0 : index
    %414 = vector.load %arg5[%c296_762, %c0_763] : memref<392x128xbf16, #tpu.memory_space<vmem>>, vector<8x128xbf16>
    tpu.vector_store %arg5[%c296_762, %c0_763], %413 {strides = array<i32>} : memref<392x128xbf16, #tpu.memory_space<vmem>>, vector<8x128xbf16>,
    %c0_764 = arith.constant 0 : index
    %c15_765 = arith.constant 15 : index
    %c0_766 = arith.constant 0 : index
    %c11_767 = arith.constant 11 : index
    %415 = vector.load %arg1[%c0_764, %c15_765, %c0_766, %c11_767] : memref<1x16x8x256xbf16, #tpu.memory_space<vmem>>, vector<1x1x8x128xbf16>
    %416 = vector.shape_cast %415 : vector<1x1x8x128xbf16> to vector<8x128xbf16>
    %c304_768 = arith.constant 304 : index
    %c0_769 = arith.constant 0 : index
    %417 = vector.load %arg5[%c304_768, %c0_769] : memref<392x128xbf16, #tpu.memory_space<vmem>>, vector<8x128xbf16>
    tpu.vector_store %arg5[%c304_768, %c0_769], %416 {strides = array<i32>} : memref<392x128xbf16, #tpu.memory_space<vmem>>, vector<8x128xbf16>,
    %c0_770 = arith.constant 0 : index
    %c12_771 = arith.constant 12 : index
    %c0_772 = arith.constant 0 : index
    %c12_773 = arith.constant 12 : index
    %418 = vector.load %arg1[%c0_770, %c12_771, %c0_772, %c12_773] : memref<1x16x8x256xbf16, #tpu.memory_space<vmem>>, vector<1x1x8x128xbf16>
    %419 = vector.shape_cast %418 : vector<1x1x8x128xbf16> to vector<8x128xbf16>
    %c312_774 = arith.constant 312 : index
    %c0_775 = arith.constant 0 : index
    %420 = vector.load %arg5[%c312_774, %c0_775] : memref<392x128xbf16, #tpu.memory_space<vmem>>, vector<8x128xbf16>
    tpu.vector_store %arg5[%c312_774, %c0_775], %419 {strides = array<i32>} : memref<392x128xbf16, #tpu.memory_space<vmem>>, vector<8x128xbf16>,
    %c0_776 = arith.constant 0 : index
    %c13_777 = arith.constant 13 : index
    %c0_778 = arith.constant 0 : index
    %c12_779 = arith.constant 12 : index
    %421 = vector.load %arg1[%c0_776, %c13_777, %c0_778, %c12_779] : memref<1x16x8x256xbf16, #tpu.memory_space<vmem>>, vector<1x1x8x128xbf16>
    %422 = vector.shape_cast %421 : vector<1x1x8x128xbf16> to vector<8x128xbf16>
    %c320_780 = arith.constant 320 : index
    %c0_781 = arith.constant 0 : index
    %423 = vector.load %arg5[%c320_780, %c0_781] : memref<392x128xbf16, #tpu.memory_space<vmem>>, vector<8x128xbf16>
    tpu.vector_store %arg5[%c320_780, %c0_781], %422 {strides = array<i32>} : memref<392x128xbf16, #tpu.memory_space<vmem>>, vector<8x128xbf16>,
    %c0_782 = arith.constant 0 : index
    %c14_783 = arith.constant 14 : index
    %c0_784 = arith.constant 0 : index
    %c12_785 = arith.constant 12 : index
    %424 = vector.load %arg1[%c0_782, %c14_783, %c0_784, %c12_785] : memref<1x16x8x256xbf16, #tpu.memory_space<vmem>>, vector<1x1x8x128xbf16>
    %425 = vector.shape_cast %424 : vector<1x1x8x128xbf16> to vector<8x128xbf16>
    %c328_786 = arith.constant 328 : index
    %c0_787 = arith.constant 0 : index
    %426 = vector.load %arg5[%c328_786, %c0_787] : memref<392x128xbf16, #tpu.memory_space<vmem>>, vector<8x128xbf16>
    tpu.vector_store %arg5[%c328_786, %c0_787], %425 {strides = array<i32>} : memref<392x128xbf16, #tpu.memory_space<vmem>>, vector<8x128xbf16>,
    %c0_788 = arith.constant 0 : index
    %c0_789 = arith.constant 0 : index
    %c0_790 = arith.constant 0 : index
    %c22 = arith.constant 22 : index
    %427 = vector.load %arg1[%c0_788, %c0_789, %c0_790, %c22] : memref<1x16x8x256xbf16, #tpu.memory_space<vmem>>, vector<1x1x8x128xbf16>
    %428 = vector.shape_cast %427 : vector<1x1x8x128xbf16> to vector<8x128xbf16>
    %c336_791 = arith.constant 336 : index
    %c0_792 = arith.constant 0 : index
    %429 = vector.load %arg5[%c336_791, %c0_792] : memref<392x128xbf16, #tpu.memory_space<vmem>>, vector<8x128xbf16>
    tpu.vector_store %arg5[%c336_791, %c0_792], %428 {strides = array<i32>} : memref<392x128xbf16, #tpu.memory_space<vmem>>, vector<8x128xbf16>,
    %c0_793 = arith.constant 0 : index
    %c1_794 = arith.constant 1 : index
    %c0_795 = arith.constant 0 : index
    %c22_796 = arith.constant 22 : index
    %430 = vector.load %arg1[%c0_793, %c1_794, %c0_795, %c22_796] : memref<1x16x8x256xbf16, #tpu.memory_space<vmem>>, vector<1x1x8x128xbf16>
    %431 = vector.shape_cast %430 : vector<1x1x8x128xbf16> to vector<8x128xbf16>
    %c344_797 = arith.constant 344 : index
    %c0_798 = arith.constant 0 : index
    %432 = vector.load %arg5[%c344_797, %c0_798] : memref<392x128xbf16, #tpu.memory_space<vmem>>, vector<8x128xbf16>
    tpu.vector_store %arg5[%c344_797, %c0_798], %431 {strides = array<i32>} : memref<392x128xbf16, #tpu.memory_space<vmem>>, vector<8x128xbf16>,
    %c0_799 = arith.constant 0 : index
    %c2_800 = arith.constant 2 : index
    %c0_801 = arith.constant 0 : index
    %c22_802 = arith.constant 22 : index
    %433 = vector.load %arg1[%c0_799, %c2_800, %c0_801, %c22_802] : memref<1x16x8x256xbf16, #tpu.memory_space<vmem>>, vector<1x1x8x128xbf16>
    %434 = vector.shape_cast %433 : vector<1x1x8x128xbf16> to vector<8x128xbf16>
    %c352_803 = arith.constant 352 : index
    %c0_804 = arith.constant 0 : index
    %435 = vector.load %arg5[%c352_803, %c0_804] : memref<392x128xbf16, #tpu.memory_space<vmem>>, vector<8x128xbf16>
    tpu.vector_store %arg5[%c352_803, %c0_804], %434 {strides = array<i32>} : memref<392x128xbf16, #tpu.memory_space<vmem>>, vector<8x128xbf16>,
    %c0_805 = arith.constant 0 : index
    %c3_806 = arith.constant 3 : index
    %c0_807 = arith.constant 0 : index
    %c22_808 = arith.constant 22 : index
    %436 = vector.load %arg1[%c0_805, %c3_806, %c0_807, %c22_808] : memref<1x16x8x256xbf16, #tpu.memory_space<vmem>>, vector<1x1x8x128xbf16>
    %437 = vector.shape_cast %436 : vector<1x1x8x128xbf16> to vector<8x128xbf16>
    %c360_809 = arith.constant 360 : index
    %c0_810 = arith.constant 0 : index
    %438 = vector.load %arg5[%c360_809, %c0_810] : memref<392x128xbf16, #tpu.memory_space<vmem>>, vector<8x128xbf16>
    tpu.vector_store %arg5[%c360_809, %c0_810], %437 {strides = array<i32>} : memref<392x128xbf16, #tpu.memory_space<vmem>>, vector<8x128xbf16>,
    %c0_811 = arith.constant 0 : index
    %c0_812 = arith.constant 0 : index
    %c0_813 = arith.constant 0 : index
    %c23 = arith.constant 23 : index
    %439 = vector.load %arg1[%c0_811, %c0_812, %c0_813, %c23] : memref<1x16x8x256xbf16, #tpu.memory_space<vmem>>, vector<1x1x8x128xbf16>
    %440 = vector.shape_cast %439 : vector<1x1x8x128xbf16> to vector<8x128xbf16>
    %c368_814 = arith.constant 368 : index
    %c0_815 = arith.constant 0 : index
    %441 = vector.load %arg5[%c368_814, %c0_815] : memref<392x128xbf16, #tpu.memory_space<vmem>>, vector<8x128xbf16>
    tpu.vector_store %arg5[%c368_814, %c0_815], %440 {strides = array<i32>} : memref<392x128xbf16, #tpu.memory_space<vmem>>, vector<8x128xbf16>,
    %c0_816 = arith.constant 0 : index
    %c1_817 = arith.constant 1 : index
    %c0_818 = arith.constant 0 : index
    %c23_819 = arith.constant 23 : index
    %442 = vector.load %arg1[%c0_816, %c1_817, %c0_818, %c23_819] : memref<1x16x8x256xbf16, #tpu.memory_space<vmem>>, vector<1x1x8x128xbf16>
    %443 = vector.shape_cast %442 : vector<1x1x8x128xbf16> to vector<8x128xbf16>
    %c376_820 = arith.constant 376 : index
    %c0_821 = arith.constant 0 : index
    %444 = vector.load %arg5[%c376_820, %c0_821] : memref<392x128xbf16, #tpu.memory_space<vmem>>, vector<8x128xbf16>
    tpu.vector_store %arg5[%c376_820, %c0_821], %443 {strides = array<i32>} : memref<392x128xbf16, #tpu.memory_space<vmem>>, vector<8x128xbf16>,
    %c0_822 = arith.constant 0 : index
    %c2_823 = arith.constant 2 : index
    %c0_824 = arith.constant 0 : index
    %c23_825 = arith.constant 23 : index
    %445 = vector.load %arg1[%c0_822, %c2_823, %c0_824, %c23_825] : memref<1x16x8x256xbf16, #tpu.memory_space<vmem>>, vector<1x1x8x128xbf16>
    %446 = vector.shape_cast %445 : vector<1x1x8x128xbf16> to vector<8x128xbf16>
    %c384_826 = arith.constant 384 : index
    %c0_827 = arith.constant 0 : index
    %447 = vector.load %arg5[%c384_826, %c0_827] : memref<392x128xbf16, #tpu.memory_space<vmem>>, vector<8x128xbf16>
    tpu.vector_store %arg5[%c384_826, %c0_827], %446 {strides = array<i32>} : memref<392x128xbf16, #tpu.memory_space<vmem>>, vector<8x128xbf16>,
    %c0_828 = arith.constant 0 : index
    %c0_829 = arith.constant 0 : index
    %448 = vector.load %arg2[%c0_828, %c0_829] : memref<8x392xbf16, #tpu.memory_space<vmem>>, vector<8x392xbf16>
    %c0_830 = arith.constant 0 : index
    %c0_831 = arith.constant 0 : index
    %449 = vector.load %arg5[%c0_830, %c0_831] : memref<392x128xbf16, #tpu.memory_space<vmem>>, vector<392x128xbf16>
    %cst_832 = arith.constant dense<0.000000e+00> : vector<8x128xf32>
    %450 = tpu.matmul %448, %449, %cst_832 {dimension_numbers = #tpu.dot_dimension_numbers<[1], [0], [0], [1], [0, 0, 1, 1], [], []>} : vector<8x392xbf16>, vector<392x128xbf16>, vector<8x128xf32> -> vector<8x128xf32>
    %c0_833 = arith.constant 0 : index
    %c10_834 = arith.constant 10 : index
    %c0_835 = arith.constant 0 : index
    %c0_836 = arith.constant 0 : index
    %451 = vector.load %arg1[%c0_833, %c10_834, %c0_835, %c0_836] : memref<1x16x8x256xbf16, #tpu.memory_space<vmem>>, vector<1x1x8x128xbf16>
    %452 = vector.shape_cast %451 : vector<1x1x8x128xbf16> to vector<8x128xbf16>
    %c0_837 = arith.constant 0 : index
    %c0_838 = arith.constant 0 : index
    %453 = vector.load %arg5[%c0_837, %c0_838] : memref<392x128xbf16, #tpu.memory_space<vmem>>, vector<8x128xbf16>
    tpu.vector_store %arg5[%c0_837, %c0_838], %452 {strides = array<i32>} : memref<392x128xbf16, #tpu.memory_space<vmem>>, vector<8x128xbf16>,
    %c0_839 = arith.constant 0 : index
    %c11_840 = arith.constant 11 : index
    %c0_841 = arith.constant 0 : index
    %c0_842 = arith.constant 0 : index
    %454 = vector.load %arg1[%c0_839, %c11_840, %c0_841, %c0_842] : memref<1x16x8x256xbf16, #tpu.memory_space<vmem>>, vector<1x1x8x128xbf16>
    %455 = vector.shape_cast %454 : vector<1x1x8x128xbf16> to vector<8x128xbf16>
    %c8_843 = arith.constant 8 : index
    %c0_844 = arith.constant 0 : index
    %456 = vector.load %arg5[%c8_843, %c0_844] : memref<392x128xbf16, #tpu.memory_space<vmem>>, vector<8x128xbf16>
    tpu.vector_store %arg5[%c8_843, %c0_844], %455 {strides = array<i32>} : memref<392x128xbf16, #tpu.memory_space<vmem>>, vector<8x128xbf16>,
    %c0_845 = arith.constant 0 : index
    %c8_846 = arith.constant 8 : index
    %c0_847 = arith.constant 0 : index
    %c1_848 = arith.constant 1 : index
    %457 = vector.load %arg1[%c0_845, %c8_846, %c0_847, %c1_848] : memref<1x16x8x256xbf16, #tpu.memory_space<vmem>>, vector<1x1x8x128xbf16>
    %458 = vector.shape_cast %457 : vector<1x1x8x128xbf16> to vector<8x128xbf16>
    %c16_849 = arith.constant 16 : index
    %c0_850 = arith.constant 0 : index
    %459 = vector.load %arg5[%c16_849, %c0_850] : memref<392x128xbf16, #tpu.memory_space<vmem>>, vector<8x128xbf16>
    tpu.vector_store %arg5[%c16_849, %c0_850], %458 {strides = array<i32>} : memref<392x128xbf16, #tpu.memory_space<vmem>>, vector<8x128xbf16>,
    %c0_851 = arith.constant 0 : index
    %c9_852 = arith.constant 9 : index
    %c0_853 = arith.constant 0 : index
    %c1_854 = arith.constant 1 : index
    %460 = vector.load %arg1[%c0_851, %c9_852, %c0_853, %c1_854] : memref<1x16x8x256xbf16, #tpu.memory_space<vmem>>, vector<1x1x8x128xbf16>
    %461 = vector.shape_cast %460 : vector<1x1x8x128xbf16> to vector<8x128xbf16>
    %c24_855 = arith.constant 24 : index
    %c0_856 = arith.constant 0 : index
    %462 = vector.load %arg5[%c24_855, %c0_856] : memref<392x128xbf16, #tpu.memory_space<vmem>>, vector<8x128xbf16>
    tpu.vector_store %arg5[%c24_855, %c0_856], %461 {strides = array<i32>} : memref<392x128xbf16, #tpu.memory_space<vmem>>, vector<8x128xbf16>,
    %c0_857 = arith.constant 0 : index
    %c10_858 = arith.constant 10 : index
    %c0_859 = arith.constant 0 : index
    %c1_860 = arith.constant 1 : index
    %463 = vector.load %arg1[%c0_857, %c10_858, %c0_859, %c1_860] : memref<1x16x8x256xbf16, #tpu.memory_space<vmem>>, vector<1x1x8x128xbf16>
    %464 = vector.shape_cast %463 : vector<1x1x8x128xbf16> to vector<8x128xbf16>
    %c32_861 = arith.constant 32 : index
    %c0_862 = arith.constant 0 : index
    %465 = vector.load %arg5[%c32_861, %c0_862] : memref<392x128xbf16, #tpu.memory_space<vmem>>, vector<8x128xbf16>
    tpu.vector_store %arg5[%c32_861, %c0_862], %464 {strides = array<i32>} : memref<392x128xbf16, #tpu.memory_space<vmem>>, vector<8x128xbf16>,
    %c0_863 = arith.constant 0 : index
    %c11_864 = arith.constant 11 : index
    %c0_865 = arith.constant 0 : index
    %c1_866 = arith.constant 1 : index
    %466 = vector.load %arg1[%c0_863, %c11_864, %c0_865, %c1_866] : memref<1x16x8x256xbf16, #tpu.memory_space<vmem>>, vector<1x1x8x128xbf16>
    %467 = vector.shape_cast %466 : vector<1x1x8x128xbf16> to vector<8x128xbf16>
    %c40_867 = arith.constant 40 : index
    %c0_868 = arith.constant 0 : index
    %468 = vector.load %arg5[%c40_867, %c0_868] : memref<392x128xbf16, #tpu.memory_space<vmem>>, vector<8x128xbf16>
    tpu.vector_store %arg5[%c40_867, %c0_868], %467 {strides = array<i32>} : memref<392x128xbf16, #tpu.memory_space<vmem>>, vector<8x128xbf16>,
    %c0_869 = arith.constant 0 : index
    %c8_870 = arith.constant 8 : index
    %c0_871 = arith.constant 0 : index
    %c2_872 = arith.constant 2 : index
    %469 = vector.load %arg1[%c0_869, %c8_870, %c0_871, %c2_872] : memref<1x16x8x256xbf16, #tpu.memory_space<vmem>>, vector<1x1x8x128xbf16>
    %470 = vector.shape_cast %469 : vector<1x1x8x128xbf16> to vector<8x128xbf16>
    %c48_873 = arith.constant 48 : index
    %c0_874 = arith.constant 0 : index
    %471 = vector.load %arg5[%c48_873, %c0_874] : memref<392x128xbf16, #tpu.memory_space<vmem>>, vector<8x128xbf16>
    tpu.vector_store %arg5[%c48_873, %c0_874], %470 {strides = array<i32>} : memref<392x128xbf16, #tpu.memory_space<vmem>>, vector<8x128xbf16>,
    %c0_875 = arith.constant 0 : index
    %c14_876 = arith.constant 14 : index
    %c0_877 = arith.constant 0 : index
    %c0_878 = arith.constant 0 : index
    %472 = vector.load %arg1[%c0_875, %c14_876, %c0_877, %c0_878] : memref<1x16x8x256xbf16, #tpu.memory_space<vmem>>, vector<1x1x8x128xbf16>
    %473 = vector.shape_cast %472 : vector<1x1x8x128xbf16> to vector<8x128xbf16>
    %c56_879 = arith.constant 56 : index
    %c0_880 = arith.constant 0 : index
    %474 = vector.load %arg5[%c56_879, %c0_880] : memref<392x128xbf16, #tpu.memory_space<vmem>>, vector<8x128xbf16>
    tpu.vector_store %arg5[%c56_879, %c0_880], %473 {strides = array<i32>} : memref<392x128xbf16, #tpu.memory_space<vmem>>, vector<8x128xbf16>,
    %c0_881 = arith.constant 0 : index
    %c15_882 = arith.constant 15 : index
    %c0_883 = arith.constant 0 : index
    %c0_884 = arith.constant 0 : index
    %475 = vector.load %arg1[%c0_881, %c15_882, %c0_883, %c0_884] : memref<1x16x8x256xbf16, #tpu.memory_space<vmem>>, vector<1x1x8x128xbf16>
    %476 = vector.shape_cast %475 : vector<1x1x8x128xbf16> to vector<8x128xbf16>
    %c64_885 = arith.constant 64 : index
    %c0_886 = arith.constant 0 : index
    %477 = vector.load %arg5[%c64_885, %c0_886] : memref<392x128xbf16, #tpu.memory_space<vmem>>, vector<8x128xbf16>
    tpu.vector_store %arg5[%c64_885, %c0_886], %476 {strides = array<i32>} : memref<392x128xbf16, #tpu.memory_space<vmem>>, vector<8x128xbf16>,
    %c0_887 = arith.constant 0 : index
    %c12_888 = arith.constant 12 : index
    %c0_889 = arith.constant 0 : index
    %c1_890 = arith.constant 1 : index
    %478 = vector.load %arg1[%c0_887, %c12_888, %c0_889, %c1_890] : memref<1x16x8x256xbf16, #tpu.memory_space<vmem>>, vector<1x1x8x128xbf16>
    %479 = vector.shape_cast %478 : vector<1x1x8x128xbf16> to vector<8x128xbf16>
    %c72_891 = arith.constant 72 : index
    %c0_892 = arith.constant 0 : index
    %480 = vector.load %arg5[%c72_891, %c0_892] : memref<392x128xbf16, #tpu.memory_space<vmem>>, vector<8x128xbf16>
    tpu.vector_store %arg5[%c72_891, %c0_892], %479 {strides = array<i32>} : memref<392x128xbf16, #tpu.memory_space<vmem>>, vector<8x128xbf16>,
    %c0_893 = arith.constant 0 : index
    %c13_894 = arith.constant 13 : index
    %c0_895 = arith.constant 0 : index
    %c1_896 = arith.constant 1 : index
    %481 = vector.load %arg1[%c0_893, %c13_894, %c0_895, %c1_896] : memref<1x16x8x256xbf16, #tpu.memory_space<vmem>>, vector<1x1x8x128xbf16>
    %482 = vector.shape_cast %481 : vector<1x1x8x128xbf16> to vector<8x128xbf16>
    %c80_897 = arith.constant 80 : index
    %c0_898 = arith.constant 0 : index
    %483 = vector.load %arg5[%c80_897, %c0_898] : memref<392x128xbf16, #tpu.memory_space<vmem>>, vector<8x128xbf16>
    tpu.vector_store %arg5[%c80_897, %c0_898], %482 {strides = array<i32>} : memref<392x128xbf16, #tpu.memory_space<vmem>>, vector<8x128xbf16>,
    %c0_899 = arith.constant 0 : index
    %c14_900 = arith.constant 14 : index
    %c0_901 = arith.constant 0 : index
    %c1_902 = arith.constant 1 : index
    %484 = vector.load %arg1[%c0_899, %c14_900, %c0_901, %c1_902] : memref<1x16x8x256xbf16, #tpu.memory_space<vmem>>, vector<1x1x8x128xbf16>
    %485 = vector.shape_cast %484 : vector<1x1x8x128xbf16> to vector<8x128xbf16>
    %c88_903 = arith.constant 88 : index
    %c0_904 = arith.constant 0 : index
    %486 = vector.load %arg5[%c88_903, %c0_904] : memref<392x128xbf16, #tpu.memory_space<vmem>>, vector<8x128xbf16>
    tpu.vector_store %arg5[%c88_903, %c0_904], %485 {strides = array<i32>} : memref<392x128xbf16, #tpu.memory_space<vmem>>, vector<8x128xbf16>,
    %c0_905 = arith.constant 0 : index
    %c15_906 = arith.constant 15 : index
    %c0_907 = arith.constant 0 : index
    %c1_908 = arith.constant 1 : index
    %487 = vector.load %arg1[%c0_905, %c15_906, %c0_907, %c1_908] : memref<1x16x8x256xbf16, #tpu.memory_space<vmem>>, vector<1x1x8x128xbf16>
    %488 = vector.shape_cast %487 : vector<1x1x8x128xbf16> to vector<8x128xbf16>
    %c96_909 = arith.constant 96 : index
    %c0_910 = arith.constant 0 : index
    %489 = vector.load %arg5[%c96_909, %c0_910] : memref<392x128xbf16, #tpu.memory_space<vmem>>, vector<8x128xbf16>
    tpu.vector_store %arg5[%c96_909, %c0_910], %488 {strides = array<i32>} : memref<392x128xbf16, #tpu.memory_space<vmem>>, vector<8x128xbf16>,
    %c0_911 = arith.constant 0 : index
    %c12_912 = arith.constant 12 : index
    %c0_913 = arith.constant 0 : index
    %c2_914 = arith.constant 2 : index
    %490 = vector.load %arg1[%c0_911, %c12_912, %c0_913, %c2_914] : memref<1x16x8x256xbf16, #tpu.memory_space<vmem>>, vector<1x1x8x128xbf16>
    %491 = vector.shape_cast %490 : vector<1x1x8x128xbf16> to vector<8x128xbf16>
    %c104_915 = arith.constant 104 : index
    %c0_916 = arith.constant 0 : index
    %492 = vector.load %arg5[%c104_915, %c0_916] : memref<392x128xbf16, #tpu.memory_space<vmem>>, vector<8x128xbf16>
    tpu.vector_store %arg5[%c104_915, %c0_916], %491 {strides = array<i32>} : memref<392x128xbf16, #tpu.memory_space<vmem>>, vector<8x128xbf16>,
    %c0_917 = arith.constant 0 : index
    %c2_918 = arith.constant 2 : index
    %c0_919 = arith.constant 0 : index
    %c11_920 = arith.constant 11 : index
    %493 = vector.load %arg1[%c0_917, %c2_918, %c0_919, %c11_920] : memref<1x16x8x256xbf16, #tpu.memory_space<vmem>>, vector<1x1x8x128xbf16>
    %494 = vector.shape_cast %493 : vector<1x1x8x128xbf16> to vector<8x128xbf16>
    %c112_921 = arith.constant 112 : index
    %c0_922 = arith.constant 0 : index
    %495 = vector.load %arg5[%c112_921, %c0_922] : memref<392x128xbf16, #tpu.memory_space<vmem>>, vector<8x128xbf16>
    tpu.vector_store %arg5[%c112_921, %c0_922], %494 {strides = array<i32>} : memref<392x128xbf16, #tpu.memory_space<vmem>>, vector<8x128xbf16>,
    %c0_923 = arith.constant 0 : index
    %c3_924 = arith.constant 3 : index
    %c0_925 = arith.constant 0 : index
    %c11_926 = arith.constant 11 : index
    %496 = vector.load %arg1[%c0_923, %c3_924, %c0_925, %c11_926] : memref<1x16x8x256xbf16, #tpu.memory_space<vmem>>, vector<1x1x8x128xbf16>
    %497 = vector.shape_cast %496 : vector<1x1x8x128xbf16> to vector<8x128xbf16>
    %c120_927 = arith.constant 120 : index
    %c0_928 = arith.constant 0 : index
    %498 = vector.load %arg5[%c120_927, %c0_928] : memref<392x128xbf16, #tpu.memory_space<vmem>>, vector<8x128xbf16>
    tpu.vector_store %arg5[%c120_927, %c0_928], %497 {strides = array<i32>} : memref<392x128xbf16, #tpu.memory_space<vmem>>, vector<8x128xbf16>,
    %c0_929 = arith.constant 0 : index
    %c0_930 = arith.constant 0 : index
    %c0_931 = arith.constant 0 : index
    %c12_932 = arith.constant 12 : index
    %499 = vector.load %arg1[%c0_929, %c0_930, %c0_931, %c12_932] : memref<1x16x8x256xbf16, #tpu.memory_space<vmem>>, vector<1x1x8x128xbf16>
    %500 = vector.shape_cast %499 : vector<1x1x8x128xbf16> to vector<8x128xbf16>
    %c128_933 = arith.constant 128 : index
    %c0_934 = arith.constant 0 : index
    %501 = vector.load %arg5[%c128_933, %c0_934] : memref<392x128xbf16, #tpu.memory_space<vmem>>, vector<8x128xbf16>
    tpu.vector_store %arg5[%c128_933, %c0_934], %500 {strides = array<i32>} : memref<392x128xbf16, #tpu.memory_space<vmem>>, vector<8x128xbf16>,
    %c0_935 = arith.constant 0 : index
    %c1_936 = arith.constant 1 : index
    %c0_937 = arith.constant 0 : index
    %c12_938 = arith.constant 12 : index
    %502 = vector.load %arg1[%c0_935, %c1_936, %c0_937, %c12_938] : memref<1x16x8x256xbf16, #tpu.memory_space<vmem>>, vector<1x1x8x128xbf16>
    %503 = vector.shape_cast %502 : vector<1x1x8x128xbf16> to vector<8x128xbf16>
    %c136_939 = arith.constant 136 : index
    %c0_940 = arith.constant 0 : index
    %504 = vector.load %arg5[%c136_939, %c0_940] : memref<392x128xbf16, #tpu.memory_space<vmem>>, vector<8x128xbf16>
    tpu.vector_store %arg5[%c136_939, %c0_940], %503 {strides = array<i32>} : memref<392x128xbf16, #tpu.memory_space<vmem>>, vector<8x128xbf16>,
    %c0_941 = arith.constant 0 : index
    %c2_942 = arith.constant 2 : index
    %c0_943 = arith.constant 0 : index
    %c12_944 = arith.constant 12 : index
    %505 = vector.load %arg1[%c0_941, %c2_942, %c0_943, %c12_944] : memref<1x16x8x256xbf16, #tpu.memory_space<vmem>>, vector<1x1x8x128xbf16>
    %506 = vector.shape_cast %505 : vector<1x1x8x128xbf16> to vector<8x128xbf16>
    %c144_945 = arith.constant 144 : index
    %c0_946 = arith.constant 0 : index
    %507 = vector.load %arg5[%c144_945, %c0_946] : memref<392x128xbf16, #tpu.memory_space<vmem>>, vector<8x128xbf16>
    tpu.vector_store %arg5[%c144_945, %c0_946], %506 {strides = array<i32>} : memref<392x128xbf16, #tpu.memory_space<vmem>>, vector<8x128xbf16>,
    %c0_947 = arith.constant 0 : index
    %c3_948 = arith.constant 3 : index
    %c0_949 = arith.constant 0 : index
    %c12_950 = arith.constant 12 : index
    %508 = vector.load %arg1[%c0_947, %c3_948, %c0_949, %c12_950] : memref<1x16x8x256xbf16, #tpu.memory_space<vmem>>, vector<1x1x8x128xbf16>
    %509 = vector.shape_cast %508 : vector<1x1x8x128xbf16> to vector<8x128xbf16>
    %c152_951 = arith.constant 152 : index
    %c0_952 = arith.constant 0 : index
    %510 = vector.load %arg5[%c152_951, %c0_952] : memref<392x128xbf16, #tpu.memory_space<vmem>>, vector<8x128xbf16>
    tpu.vector_store %arg5[%c152_951, %c0_952], %509 {strides = array<i32>} : memref<392x128xbf16, #tpu.memory_space<vmem>>, vector<8x128xbf16>,
    %c0_953 = arith.constant 0 : index
    %c0_954 = arith.constant 0 : index
    %c0_955 = arith.constant 0 : index
    %c13_956 = arith.constant 13 : index
    %511 = vector.load %arg1[%c0_953, %c0_954, %c0_955, %c13_956] : memref<1x16x8x256xbf16, #tpu.memory_space<vmem>>, vector<1x1x8x128xbf16>
    %512 = vector.shape_cast %511 : vector<1x1x8x128xbf16> to vector<8x128xbf16>
    %c160_957 = arith.constant 160 : index
    %c0_958 = arith.constant 0 : index
    %513 = vector.load %arg5[%c160_957, %c0_958] : memref<392x128xbf16, #tpu.memory_space<vmem>>, vector<8x128xbf16>
    tpu.vector_store %arg5[%c160_957, %c0_958], %512 {strides = array<i32>} : memref<392x128xbf16, #tpu.memory_space<vmem>>, vector<8x128xbf16>,
    %c0_959 = arith.constant 0 : index
    %c6_960 = arith.constant 6 : index
    %c0_961 = arith.constant 0 : index
    %c11_962 = arith.constant 11 : index
    %514 = vector.load %arg1[%c0_959, %c6_960, %c0_961, %c11_962] : memref<1x16x8x256xbf16, #tpu.memory_space<vmem>>, vector<1x1x8x128xbf16>
    %515 = vector.shape_cast %514 : vector<1x1x8x128xbf16> to vector<8x128xbf16>
    %c168_963 = arith.constant 168 : index
    %c0_964 = arith.constant 0 : index
    %516 = vector.load %arg5[%c168_963, %c0_964] : memref<392x128xbf16, #tpu.memory_space<vmem>>, vector<8x128xbf16>
    tpu.vector_store %arg5[%c168_963, %c0_964], %515 {strides = array<i32>} : memref<392x128xbf16, #tpu.memory_space<vmem>>, vector<8x128xbf16>,
    %c0_965 = arith.constant 0 : index
    %c7_966 = arith.constant 7 : index
    %c0_967 = arith.constant 0 : index
    %c11_968 = arith.constant 11 : index
    %517 = vector.load %arg1[%c0_965, %c7_966, %c0_967, %c11_968] : memref<1x16x8x256xbf16, #tpu.memory_space<vmem>>, vector<1x1x8x128xbf16>
    %518 = vector.shape_cast %517 : vector<1x1x8x128xbf16> to vector<8x128xbf16>
    %c176_969 = arith.constant 176 : index
    %c0_970 = arith.constant 0 : index
    %519 = vector.load %arg5[%c176_969, %c0_970] : memref<392x128xbf16, #tpu.memory_space<vmem>>, vector<8x128xbf16>
    tpu.vector_store %arg5[%c176_969, %c0_970], %518 {strides = array<i32>} : memref<392x128xbf16, #tpu.memory_space<vmem>>, vector<8x128xbf16>,
    %c0_971 = arith.constant 0 : index
    %c4_972 = arith.constant 4 : index
    %c0_973 = arith.constant 0 : index
    %c12_974 = arith.constant 12 : index
    %520 = vector.load %arg1[%c0_971, %c4_972, %c0_973, %c12_974] : memref<1x16x8x256xbf16, #tpu.memory_space<vmem>>, vector<1x1x8x128xbf16>
    %521 = vector.shape_cast %520 : vector<1x1x8x128xbf16> to vector<8x128xbf16>
    %c184_975 = arith.constant 184 : index
    %c0_976 = arith.constant 0 : index
    %522 = vector.load %arg5[%c184_975, %c0_976] : memref<392x128xbf16, #tpu.memory_space<vmem>>, vector<8x128xbf16>
    tpu.vector_store %arg5[%c184_975, %c0_976], %521 {strides = array<i32>} : memref<392x128xbf16, #tpu.memory_space<vmem>>, vector<8x128xbf16>,
    %c0_977 = arith.constant 0 : index
    %c5_978 = arith.constant 5 : index
    %c0_979 = arith.constant 0 : index
    %c12_980 = arith.constant 12 : index
    %523 = vector.load %arg1[%c0_977, %c5_978, %c0_979, %c12_980] : memref<1x16x8x256xbf16, #tpu.memory_space<vmem>>, vector<1x1x8x128xbf16>
    %524 = vector.shape_cast %523 : vector<1x1x8x128xbf16> to vector<8x128xbf16>
    %c192_981 = arith.constant 192 : index
    %c0_982 = arith.constant 0 : index
    %525 = vector.load %arg5[%c192_981, %c0_982] : memref<392x128xbf16, #tpu.memory_space<vmem>>, vector<8x128xbf16>
    tpu.vector_store %arg5[%c192_981, %c0_982], %524 {strides = array<i32>} : memref<392x128xbf16, #tpu.memory_space<vmem>>, vector<8x128xbf16>,
    %c0_983 = arith.constant 0 : index
    %c6_984 = arith.constant 6 : index
    %c0_985 = arith.constant 0 : index
    %c12_986 = arith.constant 12 : index
    %526 = vector.load %arg1[%c0_983, %c6_984, %c0_985, %c12_986] : memref<1x16x8x256xbf16, #tpu.memory_space<vmem>>, vector<1x1x8x128xbf16>
    %527 = vector.shape_cast %526 : vector<1x1x8x128xbf16> to vector<8x128xbf16>
    %c200_987 = arith.constant 200 : index
    %c0_988 = arith.constant 0 : index
    %528 = vector.load %arg5[%c200_987, %c0_988] : memref<392x128xbf16, #tpu.memory_space<vmem>>, vector<8x128xbf16>
    tpu.vector_store %arg5[%c200_987, %c0_988], %527 {strides = array<i32>} : memref<392x128xbf16, #tpu.memory_space<vmem>>, vector<8x128xbf16>,
    %c0_989 = arith.constant 0 : index
    %c7_990 = arith.constant 7 : index
    %c0_991 = arith.constant 0 : index
    %c12_992 = arith.constant 12 : index
    %529 = vector.load %arg1[%c0_989, %c7_990, %c0_991, %c12_992] : memref<1x16x8x256xbf16, #tpu.memory_space<vmem>>, vector<1x1x8x128xbf16>
    %530 = vector.shape_cast %529 : vector<1x1x8x128xbf16> to vector<8x128xbf16>
    %c208_993 = arith.constant 208 : index
    %c0_994 = arith.constant 0 : index
    %531 = vector.load %arg5[%c208_993, %c0_994] : memref<392x128xbf16, #tpu.memory_space<vmem>>, vector<8x128xbf16>
    tpu.vector_store %arg5[%c208_993, %c0_994], %530 {strides = array<i32>} : memref<392x128xbf16, #tpu.memory_space<vmem>>, vector<8x128xbf16>,
    %c0_995 = arith.constant 0 : index
    %c4_996 = arith.constant 4 : index
    %c0_997 = arith.constant 0 : index
    %c13_998 = arith.constant 13 : index
    %532 = vector.load %arg1[%c0_995, %c4_996, %c0_997, %c13_998] : memref<1x16x8x256xbf16, #tpu.memory_space<vmem>>, vector<1x1x8x128xbf16>
    %533 = vector.shape_cast %532 : vector<1x1x8x128xbf16> to vector<8x128xbf16>
    %c216_999 = arith.constant 216 : index
    %c0_1000 = arith.constant 0 : index
    %534 = vector.load %arg5[%c216_999, %c0_1000] : memref<392x128xbf16, #tpu.memory_space<vmem>>, vector<8x128xbf16>
    tpu.vector_store %arg5[%c216_999, %c0_1000], %533 {strides = array<i32>} : memref<392x128xbf16, #tpu.memory_space<vmem>>, vector<8x128xbf16>,
    %c0_1001 = arith.constant 0 : index
    %c10_1002 = arith.constant 10 : index
    %c0_1003 = arith.constant 0 : index
    %c11_1004 = arith.constant 11 : index
    %535 = vector.load %arg1[%c0_1001, %c10_1002, %c0_1003, %c11_1004] : memref<1x16x8x256xbf16, #tpu.memory_space<vmem>>, vector<1x1x8x128xbf16>
    %536 = vector.shape_cast %535 : vector<1x1x8x128xbf16> to vector<8x128xbf16>
    %c224_1005 = arith.constant 224 : index
    %c0_1006 = arith.constant 0 : index
    %537 = vector.load %arg5[%c224_1005, %c0_1006] : memref<392x128xbf16, #tpu.memory_space<vmem>>, vector<8x128xbf16>
    tpu.vector_store %arg5[%c224_1005, %c0_1006], %536 {strides = array<i32>} : memref<392x128xbf16, #tpu.memory_space<vmem>>, vector<8x128xbf16>,
    %c0_1007 = arith.constant 0 : index
    %c11_1008 = arith.constant 11 : index
    %c0_1009 = arith.constant 0 : index
    %c11_1010 = arith.constant 11 : index
    %538 = vector.load %arg1[%c0_1007, %c11_1008, %c0_1009, %c11_1010] : memref<1x16x8x256xbf16, #tpu.memory_space<vmem>>, vector<1x1x8x128xbf16>
    %539 = vector.shape_cast %538 : vector<1x1x8x128xbf16> to vector<8x128xbf16>
    %c232_1011 = arith.constant 232 : index
    %c0_1012 = arith.constant 0 : index
    %540 = vector.load %arg5[%c232_1011, %c0_1012] : memref<392x128xbf16, #tpu.memory_space<vmem>>, vector<8x128xbf16>
    tpu.vector_store %arg5[%c232_1011, %c0_1012], %539 {strides = array<i32>} : memref<392x128xbf16, #tpu.memory_space<vmem>>, vector<8x128xbf16>,
    %c0_1013 = arith.constant 0 : index
    %c8_1014 = arith.constant 8 : index
    %c0_1015 = arith.constant 0 : index
    %c12_1016 = arith.constant 12 : index
    %541 = vector.load %arg1[%c0_1013, %c8_1014, %c0_1015, %c12_1016] : memref<1x16x8x256xbf16, #tpu.memory_space<vmem>>, vector<1x1x8x128xbf16>
    %542 = vector.shape_cast %541 : vector<1x1x8x128xbf16> to vector<8x128xbf16>
    %c240_1017 = arith.constant 240 : index
    %c0_1018 = arith.constant 0 : index
    %543 = vector.load %arg5[%c240_1017, %c0_1018] : memref<392x128xbf16, #tpu.memory_space<vmem>>, vector<8x128xbf16>
    tpu.vector_store %arg5[%c240_1017, %c0_1018], %542 {strides = array<i32>} : memref<392x128xbf16, #tpu.memory_space<vmem>>, vector<8x128xbf16>,
    %c0_1019 = arith.constant 0 : index
    %c9_1020 = arith.constant 9 : index
    %c0_1021 = arith.constant 0 : index
    %c12_1022 = arith.constant 12 : index
    %544 = vector.load %arg1[%c0_1019, %c9_1020, %c0_1021, %c12_1022] : memref<1x16x8x256xbf16, #tpu.memory_space<vmem>>, vector<1x1x8x128xbf16>
    %545 = vector.shape_cast %544 : vector<1x1x8x128xbf16> to vector<8x128xbf16>
    %c248_1023 = arith.constant 248 : index
    %c0_1024 = arith.constant 0 : index
    %546 = vector.load %arg5[%c248_1023, %c0_1024] : memref<392x128xbf16, #tpu.memory_space<vmem>>, vector<8x128xbf16>
    tpu.vector_store %arg5[%c248_1023, %c0_1024], %545 {strides = array<i32>} : memref<392x128xbf16, #tpu.memory_space<vmem>>, vector<8x128xbf16>,
    %c0_1025 = arith.constant 0 : index
    %c10_1026 = arith.constant 10 : index
    %c0_1027 = arith.constant 0 : index
    %c12_1028 = arith.constant 12 : index
    %547 = vector.load %arg1[%c0_1025, %c10_1026, %c0_1027, %c12_1028] : memref<1x16x8x256xbf16, #tpu.memory_space<vmem>>, vector<1x1x8x128xbf16>
    %548 = vector.shape_cast %547 : vector<1x1x8x128xbf16> to vector<8x128xbf16>
    %c256_1029 = arith.constant 256 : index
    %c0_1030 = arith.constant 0 : index
    %549 = vector.load %arg5[%c256_1029, %c0_1030] : memref<392x128xbf16, #tpu.memory_space<vmem>>, vector<8x128xbf16>
    tpu.vector_store %arg5[%c256_1029, %c0_1030], %548 {strides = array<i32>} : memref<392x128xbf16, #tpu.memory_space<vmem>>, vector<8x128xbf16>,
    %c0_1031 = arith.constant 0 : index
    %c11_1032 = arith.constant 11 : index
    %c0_1033 = arith.constant 0 : index
    %c12_1034 = arith.constant 12 : index
    %550 = vector.load %arg1[%c0_1031, %c11_1032, %c0_1033, %c12_1034] : memref<1x16x8x256xbf16, #tpu.memory_space<vmem>>, vector<1x1x8x128xbf16>
    %551 = vector.shape_cast %550 : vector<1x1x8x128xbf16> to vector<8x128xbf16>
    %c264_1035 = arith.constant 264 : index
    %c0_1036 = arith.constant 0 : index
    %552 = vector.load %arg5[%c264_1035, %c0_1036] : memref<392x128xbf16, #tpu.memory_space<vmem>>, vector<8x128xbf16>
    tpu.vector_store %arg5[%c264_1035, %c0_1036], %551 {strides = array<i32>} : memref<392x128xbf16, #tpu.memory_space<vmem>>, vector<8x128xbf16>,
    %c0_1037 = arith.constant 0 : index
    %c8_1038 = arith.constant 8 : index
    %c0_1039 = arith.constant 0 : index
    %c13_1040 = arith.constant 13 : index
    %553 = vector.load %arg1[%c0_1037, %c8_1038, %c0_1039, %c13_1040] : memref<1x16x8x256xbf16, #tpu.memory_space<vmem>>, vector<1x1x8x128xbf16>
    %554 = vector.shape_cast %553 : vector<1x1x8x128xbf16> to vector<8x128xbf16>
    %c272_1041 = arith.constant 272 : index
    %c0_1042 = arith.constant 0 : index
    %555 = vector.load %arg5[%c272_1041, %c0_1042] : memref<392x128xbf16, #tpu.memory_space<vmem>>, vector<8x128xbf16>
    tpu.vector_store %arg5[%c272_1041, %c0_1042], %554 {strides = array<i32>} : memref<392x128xbf16, #tpu.memory_space<vmem>>, vector<8x128xbf16>,
    %c0_1043 = arith.constant 0 : index
    %c14_1044 = arith.constant 14 : index
    %c0_1045 = arith.constant 0 : index
    %c11_1046 = arith.constant 11 : index
    %556 = vector.load %arg1[%c0_1043, %c14_1044, %c0_1045, %c11_1046] : memref<1x16x8x256xbf16, #tpu.memory_space<vmem>>, vector<1x1x8x128xbf16>
    %557 = vector.shape_cast %556 : vector<1x1x8x128xbf16> to vector<8x128xbf16>
    %c280_1047 = arith.constant 280 : index
    %c0_1048 = arith.constant 0 : index
    %558 = vector.load %arg5[%c280_1047, %c0_1048] : memref<392x128xbf16, #tpu.memory_space<vmem>>, vector<8x128xbf16>
    tpu.vector_store %arg5[%c280_1047, %c0_1048], %557 {strides = array<i32>} : memref<392x128xbf16, #tpu.memory_space<vmem>>, vector<8x128xbf16>,
    %c0_1049 = arith.constant 0 : index
    %c15_1050 = arith.constant 15 : index
    %c0_1051 = arith.constant 0 : index
    %c11_1052 = arith.constant 11 : index
    %559 = vector.load %arg1[%c0_1049, %c15_1050, %c0_1051, %c11_1052] : memref<1x16x8x256xbf16, #tpu.memory_space<vmem>>, vector<1x1x8x128xbf16>
    %560 = vector.shape_cast %559 : vector<1x1x8x128xbf16> to vector<8x128xbf16>
    %c288_1053 = arith.constant 288 : index
    %c0_1054 = arith.constant 0 : index
    %561 = vector.load %arg5[%c288_1053, %c0_1054] : memref<392x128xbf16, #tpu.memory_space<vmem>>, vector<8x128xbf16>
    tpu.vector_store %arg5[%c288_1053, %c0_1054], %560 {strides = array<i32>} : memref<392x128xbf16, #tpu.memory_space<vmem>>, vector<8x128xbf16>,
    %c0_1055 = arith.constant 0 : index
    %c12_1056 = arith.constant 12 : index
    %c0_1057 = arith.constant 0 : index
    %c12_1058 = arith.constant 12 : index
    %562 = vector.load %arg1[%c0_1055, %c12_1056, %c0_1057, %c12_1058] : memref<1x16x8x256xbf16, #tpu.memory_space<vmem>>, vector<1x1x8x128xbf16>
    %563 = vector.shape_cast %562 : vector<1x1x8x128xbf16> to vector<8x128xbf16>
    %c296_1059 = arith.constant 296 : index
    %c0_1060 = arith.constant 0 : index
    %564 = vector.load %arg5[%c296_1059, %c0_1060] : memref<392x128xbf16, #tpu.memory_space<vmem>>, vector<8x128xbf16>
    tpu.vector_store %arg5[%c296_1059, %c0_1060], %563 {strides = array<i32>} : memref<392x128xbf16, #tpu.memory_space<vmem>>, vector<8x128xbf16>,
    %c0_1061 = arith.constant 0 : index
    %c13_1062 = arith.constant 13 : index
    %c0_1063 = arith.constant 0 : index
    %c12_1064 = arith.constant 12 : index
    %565 = vector.load %arg1[%c0_1061, %c13_1062, %c0_1063, %c12_1064] : memref<1x16x8x256xbf16, #tpu.memory_space<vmem>>, vector<1x1x8x128xbf16>
    %566 = vector.shape_cast %565 : vector<1x1x8x128xbf16> to vector<8x128xbf16>
    %c304_1065 = arith.constant 304 : index
    %c0_1066 = arith.constant 0 : index
    %567 = vector.load %arg5[%c304_1065, %c0_1066] : memref<392x128xbf16, #tpu.memory_space<vmem>>, vector<8x128xbf16>
    tpu.vector_store %arg5[%c304_1065, %c0_1066], %566 {strides = array<i32>} : memref<392x128xbf16, #tpu.memory_space<vmem>>, vector<8x128xbf16>,
    %c0_1067 = arith.constant 0 : index
    %c14_1068 = arith.constant 14 : index
    %c0_1069 = arith.constant 0 : index
    %c12_1070 = arith.constant 12 : index
    %568 = vector.load %arg1[%c0_1067, %c14_1068, %c0_1069, %c12_1070] : memref<1x16x8x256xbf16, #tpu.memory_space<vmem>>, vector<1x1x8x128xbf16>
    %569 = vector.shape_cast %568 : vector<1x1x8x128xbf16> to vector<8x128xbf16>
    %c312_1071 = arith.constant 312 : index
    %c0_1072 = arith.constant 0 : index
    %570 = vector.load %arg5[%c312_1071, %c0_1072] : memref<392x128xbf16, #tpu.memory_space<vmem>>, vector<8x128xbf16>
    tpu.vector_store %arg5[%c312_1071, %c0_1072], %569 {strides = array<i32>} : memref<392x128xbf16, #tpu.memory_space<vmem>>, vector<8x128xbf16>,
    %c0_1073 = arith.constant 0 : index
    %c15_1074 = arith.constant 15 : index
    %c0_1075 = arith.constant 0 : index
    %c12_1076 = arith.constant 12 : index
    %571 = vector.load %arg1[%c0_1073, %c15_1074, %c0_1075, %c12_1076] : memref<1x16x8x256xbf16, #tpu.memory_space<vmem>>, vector<1x1x8x128xbf16>
    %572 = vector.shape_cast %571 : vector<1x1x8x128xbf16> to vector<8x128xbf16>
    %c320_1077 = arith.constant 320 : index
    %c0_1078 = arith.constant 0 : index
    %573 = vector.load %arg5[%c320_1077, %c0_1078] : memref<392x128xbf16, #tpu.memory_space<vmem>>, vector<8x128xbf16>
    tpu.vector_store %arg5[%c320_1077, %c0_1078], %572 {strides = array<i32>} : memref<392x128xbf16, #tpu.memory_space<vmem>>, vector<8x128xbf16>,
    %c0_1079 = arith.constant 0 : index
    %c12_1080 = arith.constant 12 : index
    %c0_1081 = arith.constant 0 : index
    %c13_1082 = arith.constant 13 : index
    %574 = vector.load %arg1[%c0_1079, %c12_1080, %c0_1081, %c13_1082] : memref<1x16x8x256xbf16, #tpu.memory_space<vmem>>, vector<1x1x8x128xbf16>
    %575 = vector.shape_cast %574 : vector<1x1x8x128xbf16> to vector<8x128xbf16>
    %c328_1083 = arith.constant 328 : index
    %c0_1084 = arith.constant 0 : index
    %576 = vector.load %arg5[%c328_1083, %c0_1084] : memref<392x128xbf16, #tpu.memory_space<vmem>>, vector<8x128xbf16>
    tpu.vector_store %arg5[%c328_1083, %c0_1084], %575 {strides = array<i32>} : memref<392x128xbf16, #tpu.memory_space<vmem>>, vector<8x128xbf16>,
    %c0_1085 = arith.constant 0 : index
    %c2_1086 = arith.constant 2 : index
    %c0_1087 = arith.constant 0 : index
    %c22_1088 = arith.constant 22 : index
    %577 = vector.load %arg1[%c0_1085, %c2_1086, %c0_1087, %c22_1088] : memref<1x16x8x256xbf16, #tpu.memory_space<vmem>>, vector<1x1x8x128xbf16>
    %578 = vector.shape_cast %577 : vector<1x1x8x128xbf16> to vector<8x128xbf16>
    %c336_1089 = arith.constant 336 : index
    %c0_1090 = arith.constant 0 : index
    %579 = vector.load %arg5[%c336_1089, %c0_1090] : memref<392x128xbf16, #tpu.memory_space<vmem>>, vector<8x128xbf16>
    tpu.vector_store %arg5[%c336_1089, %c0_1090], %578 {strides = array<i32>} : memref<392x128xbf16, #tpu.memory_space<vmem>>, vector<8x128xbf16>,
    %c0_1091 = arith.constant 0 : index
    %c3_1092 = arith.constant 3 : index
    %c0_1093 = arith.constant 0 : index
    %c22_1094 = arith.constant 22 : index
    %580 = vector.load %arg1[%c0_1091, %c3_1092, %c0_1093, %c22_1094] : memref<1x16x8x256xbf16, #tpu.memory_space<vmem>>, vector<1x1x8x128xbf16>
    %581 = vector.shape_cast %580 : vector<1x1x8x128xbf16> to vector<8x128xbf16>
    %c344_1095 = arith.constant 344 : index
    %c0_1096 = arith.constant 0 : index
    %582 = vector.load %arg5[%c344_1095, %c0_1096] : memref<392x128xbf16, #tpu.memory_space<vmem>>, vector<8x128xbf16>
    tpu.vector_store %arg5[%c344_1095, %c0_1096], %581 {strides = array<i32>} : memref<392x128xbf16, #tpu.memory_space<vmem>>, vector<8x128xbf16>,
    %c0_1097 = arith.constant 0 : index
    %c0_1098 = arith.constant 0 : index
    %c0_1099 = arith.constant 0 : index
    %c23_1100 = arith.constant 23 : index
    %583 = vector.load %arg1[%c0_1097, %c0_1098, %c0_1099, %c23_1100] : memref<1x16x8x256xbf16, #tpu.memory_space<vmem>>, vector<1x1x8x128xbf16>
    %584 = vector.shape_cast %583 : vector<1x1x8x128xbf16> to vector<8x128xbf16>
    %c352_1101 = arith.constant 352 : index
    %c0_1102 = arith.constant 0 : index
    %585 = vector.load %arg5[%c352_1101, %c0_1102] : memref<392x128xbf16, #tpu.memory_space<vmem>>, vector<8x128xbf16>
    tpu.vector_store %arg5[%c352_1101, %c0_1102], %584 {strides = array<i32>} : memref<392x128xbf16, #tpu.memory_space<vmem>>, vector<8x128xbf16>,
    %c0_1103 = arith.constant 0 : index
    %c1_1104 = arith.constant 1 : index
    %c0_1105 = arith.constant 0 : index
    %c23_1106 = arith.constant 23 : index
    %586 = vector.load %arg1[%c0_1103, %c1_1104, %c0_1105, %c23_1106] : memref<1x16x8x256xbf16, #tpu.memory_space<vmem>>, vector<1x1x8x128xbf16>
    %587 = vector.shape_cast %586 : vector<1x1x8x128xbf16> to vector<8x128xbf16>
    %c360_1107 = arith.constant 360 : index
    %c0_1108 = arith.constant 0 : index
    %588 = vector.load %arg5[%c360_1107, %c0_1108] : memref<392x128xbf16, #tpu.memory_space<vmem>>, vector<8x128xbf16>
    tpu.vector_store %arg5[%c360_1107, %c0_1108], %587 {strides = array<i32>} : memref<392x128xbf16, #tpu.memory_space<vmem>>, vector<8x128xbf16>,
    %c0_1109 = arith.constant 0 : index
    %c2_1110 = arith.constant 2 : index
    %c0_1111 = arith.constant 0 : index
    %c23_1112 = arith.constant 23 : index
    %589 = vector.load %arg1[%c0_1109, %c2_1110, %c0_1111, %c23_1112] : memref<1x16x8x256xbf16, #tpu.memory_space<vmem>>, vector<1x1x8x128xbf16>
    %590 = vector.shape_cast %589 : vector<1x1x8x128xbf16> to vector<8x128xbf16>
    %c368_1113 = arith.constant 368 : index
    %c0_1114 = arith.constant 0 : index
    %591 = vector.load %arg5[%c368_1113, %c0_1114] : memref<392x128xbf16, #tpu.memory_space<vmem>>, vector<8x128xbf16>
    tpu.vector_store %arg5[%c368_1113, %c0_1114], %590 {strides = array<i32>} : memref<392x128xbf16, #tpu.memory_space<vmem>>, vector<8x128xbf16>,
    %c0_1115 = arith.constant 0 : index
    %c3_1116 = arith.constant 3 : index
    %c0_1117 = arith.constant 0 : index
    %c23_1118 = arith.constant 23 : index
    %592 = vector.load %arg1[%c0_1115, %c3_1116, %c0_1117, %c23_1118] : memref<1x16x8x256xbf16, #tpu.memory_space<vmem>>, vector<1x1x8x128xbf16>
    %593 = vector.shape_cast %592 : vector<1x1x8x128xbf16> to vector<8x128xbf16>
    %c376_1119 = arith.constant 376 : index
    %c0_1120 = arith.constant 0 : index
    %594 = vector.load %arg5[%c376_1119, %c0_1120] : memref<392x128xbf16, #tpu.memory_space<vmem>>, vector<8x128xbf16>
    tpu.vector_store %arg5[%c376_1119, %c0_1120], %593 {strides = array<i32>} : memref<392x128xbf16, #tpu.memory_space<vmem>>, vector<8x128xbf16>,
    %c0_1121 = arith.constant 0 : index
    %c0_1122 = arith.constant 0 : index
    %c0_1123 = arith.constant 0 : index
    %c24_1124 = arith.constant 24 : index
    %595 = vector.load %arg1[%c0_1121, %c0_1122, %c0_1123, %c24_1124] : memref<1x16x8x256xbf16, #tpu.memory_space<vmem>>, vector<1x1x8x128xbf16>
    %596 = vector.shape_cast %595 : vector<1x1x8x128xbf16> to vector<8x128xbf16>
    %c384_1125 = arith.constant 384 : index
    %c0_1126 = arith.constant 0 : index
    %597 = vector.load %arg5[%c384_1125, %c0_1126] : memref<392x128xbf16, #tpu.memory_space<vmem>>, vector<8x128xbf16>
    tpu.vector_store %arg5[%c384_1125, %c0_1126], %596 {strides = array<i32>} : memref<392x128xbf16, #tpu.memory_space<vmem>>, vector<8x128xbf16>,
    %c0_1127 = arith.constant 0 : index
    %c0_1128 = arith.constant 0 : index
    %598 = vector.load %arg2[%c0_1127, %c0_1128] : memref<8x392xbf16, #tpu.memory_space<vmem>>, vector<8x392xbf16>
    %c0_1129 = arith.constant 0 : index
    %c0_1130 = arith.constant 0 : index
    %599 = vector.load %arg5[%c0_1129, %c0_1130] : memref<392x128xbf16, #tpu.memory_space<vmem>>, vector<392x128xbf16>
    %cst_1131 = arith.constant dense<0.000000e+00> : vector<8x128xf32>
    %600 = tpu.matmul %598, %599, %cst_1131 {dimension_numbers = #tpu.dot_dimension_numbers<[1], [0], [0], [1], [0, 0, 1, 1], [], []>} : vector<8x392xbf16>, vector<392x128xbf16>, vector<8x128xf32> -> vector<8x128xf32>
    %601 = vector.broadcast %0 : vector<1x128xf32> to vector<8x128xf32>
    %602 = arith.mulf %150, %601 : vector<8x128xf32>
    %cst_1132 = arith.constant dense<0.000000e+00> : vector<8xf32>
    %603 = vector.multi_reduction <add>, %602, %cst_1132 [1] : vector<8x128xf32> to vector<8xf32>
    %604 = vector.shape_cast %603 : vector<8xf32> to vector<8x1xf32>
    %cst_1133 = arith.constant 0.000000e+00 : f32
    %605 = vector.broadcast %cst_1133 : f32 to vector<8x1xf32>
    %606 = arith.addf %605, %604 : vector<8x1xf32>
    %607 = vector.broadcast %0 : vector<1x128xf32> to vector<8x128xf32>
    %608 = arith.mulf %300, %607 : vector<8x128xf32>
    %cst_1134 = arith.constant dense<0.000000e+00> : vector<8xf32>
    %609 = vector.multi_reduction <add>, %608, %cst_1134 [1] : vector<8x128xf32> to vector<8xf32>
    %610 = vector.shape_cast %609 : vector<8xf32> to vector<8x1xf32>
    %611 = arith.addf %606, %610 : vector<8x1xf32>
    %612 = vector.broadcast %0 : vector<1x128xf32> to vector<8x128xf32>
    %613 = arith.mulf %450, %612 : vector<8x128xf32>
    %cst_1135 = arith.constant dense<0.000000e+00> : vector<8xf32>
    %614 = vector.multi_reduction <add>, %613, %cst_1135 [1] : vector<8x128xf32> to vector<8xf32>
    %615 = vector.shape_cast %614 : vector<8xf32> to vector<8x1xf32>
    %616 = arith.addf %611, %615 : vector<8x1xf32>
    %617 = vector.broadcast %0 : vector<1x128xf32> to vector<8x128xf32>
    %618 = arith.mulf %600, %617 : vector<8x128xf32>
    %cst_1136 = arith.constant dense<0.000000e+00> : vector<8xf32>
    %619 = vector.multi_reduction <add>, %618, %cst_1136 [1] : vector<8x128xf32> to vector<8xf32>
    %620 = vector.shape_cast %619 : vector<8xf32> to vector<8x1xf32>
    %621 = arith.addf %616, %620 : vector<8x1xf32>
    %cst_1137 = arith.constant 3.906250e-03 : f32
    %622 = vector.broadcast %cst_1137 : f32 to vector<8x1xf32>
    %623 = arith.mulf %621, %622 : vector<8x1xf32>
    %624 = vector.broadcast %623 : vector<8x1xf32> to vector<8x128xf32>
    %625 = arith.subf %150, %624 : vector<8x128xf32>
    %626 = vector.broadcast %0 : vector<1x128xf32> to vector<8x128xf32>
    %627 = arith.mulf %625, %626 : vector<8x128xf32>
    %628 = arith.mulf %627, %627 : vector<8x128xf32>
    %cst_1138 = arith.constant dense<0.000000e+00> : vector<8xf32>
    %629 = vector.multi_reduction <add>, %628, %cst_1138 [1] : vector<8x128xf32> to vector<8xf32>
    %630 = vector.shape_cast %629 : vector<8xf32> to vector<8x1xf32>
    %cst_1139 = arith.constant 0.000000e+00 : f32
    %631 = vector.broadcast %cst_1139 : f32 to vector<8x1xf32>
    %632 = arith.addf %631, %630 : vector<8x1xf32>
    %633 = vector.broadcast %623 : vector<8x1xf32> to vector<8x128xf32>
    %634 = arith.subf %300, %633 : vector<8x128xf32>
    %635 = vector.broadcast %0 : vector<1x128xf32> to vector<8x128xf32>
    %636 = arith.mulf %634, %635 : vector<8x128xf32>
    %637 = arith.mulf %636, %636 : vector<8x128xf32>
    %cst_1140 = arith.constant dense<0.000000e+00> : vector<8xf32>
    %638 = vector.multi_reduction <add>, %637, %cst_1140 [1] : vector<8x128xf32> to vector<8xf32>
    %639 = vector.shape_cast %638 : vector<8xf32> to vector<8x1xf32>
    %640 = arith.addf %632, %639 : vector<8x1xf32>
    %641 = vector.broadcast %623 : vector<8x1xf32> to vector<8x128xf32>
    %642 = arith.subf %450, %641 : vector<8x128xf32>
    %643 = vector.broadcast %0 : vector<1x128xf32> to vector<8x128xf32>
    %644 = arith.mulf %642, %643 : vector<8x128xf32>
    %645 = arith.mulf %644, %644 : vector<8x128xf32>
    %cst_1141 = arith.constant dense<0.000000e+00> : vector<8xf32>
    %646 = vector.multi_reduction <add>, %645, %cst_1141 [1] : vector<8x128xf32> to vector<8xf32>
    %647 = vector.shape_cast %646 : vector<8xf32> to vector<8x1xf32>
    %648 = arith.addf %640, %647 : vector<8x1xf32>
    %649 = vector.broadcast %623 : vector<8x1xf32> to vector<8x128xf32>
    %650 = arith.subf %600, %649 : vector<8x128xf32>
    %651 = vector.broadcast %0 : vector<1x128xf32> to vector<8x128xf32>
    %652 = arith.mulf %650, %651 : vector<8x128xf32>
    %653 = arith.mulf %652, %652 : vector<8x128xf32>
    %cst_1142 = arith.constant dense<0.000000e+00> : vector<8xf32>
    %654 = vector.multi_reduction <add>, %653, %cst_1142 [1] : vector<8x128xf32> to vector<8xf32>
    %655 = vector.shape_cast %654 : vector<8xf32> to vector<8x1xf32>
    %656 = arith.addf %648, %655 : vector<8x1xf32>
    %cst_1143 = arith.constant 3.906250e-03 : f32
    %657 = vector.broadcast %cst_1143 : f32 to vector<8x1xf32>
    %658 = arith.mulf %656, %657 : vector<8x1xf32>
    %659 = arith.maximumf %150, %300 : vector<8x128xf32>
    %660 = arith.maximumf %659, %450 : vector<8x128xf32>
    %661 = arith.maximumf %660, %600 : vector<8x128xf32>
    %662 = vector.broadcast %623 : vector<8x1xf32> to vector<8x128xf32>
    %663 = arith.subf %661, %662 : vector<8x128xf32>
    %cst_1144 = arith.constant 9.99999974E-6 : f32
    %664 = vector.broadcast %cst_1144 : f32 to vector<8x1xf32>
    %665 = arith.addf %658, %664 : vector<8x1xf32>
    %666 = math.rsqrt %665 : vector<8x1xf32>
    %667 = vector.broadcast %666 : vector<8x1xf32> to vector<8x128xf32>
    %668 = arith.mulf %663, %667 : vector<8x128xf32>
    %cst_1145 = arith.constant 0.000000e+00 : f32
    %669 = vector.broadcast %cst_1145 : f32 to vector<8x128xf32>
    %670 = arith.maximumf %668, %669 : vector<8x128xf32>
    %671 = vector.broadcast %0 : vector<1x128xf32> to vector<8x128xf32>
    %672 = arith.mulf %670, %671 : vector<8x128xf32>
    %673 = arith.truncf %672 : vector<8x128xf32> to vector<8x128xbf16>
    %c0_1146 = arith.constant 0 : index
    %c0_1147 = arith.constant 0 : index
    %c0_1148 = arith.constant 0 : index
    %674 = vector.load %arg4[%c0_1146, %c0_1147, %c0_1148] : memref<1x8x128xbf16, #tpu.memory_space<vmem>>, vector<1x8x128xbf16>
    %675 = vector.shape_cast %674 : vector<1x8x128xbf16> to vector<8x128xbf16>
    %676 = vector.shape_cast %673 : vector<8x128xbf16> to vector<1x8x128xbf16>
    tpu.vector_store %arg4[%c0_1146, %c0_1147, %c0_1148], %676 {strides = array<i32>} : memref<1x8x128xbf16, #tpu.memory_space<vmem>>, vector<1x8x128xbf16>,
    return
  }
  func.func @transform_0(%arg0: i32) -> (i32, i32, i32, i32) {
    %c0_i32 = arith.constant 0 : i32
    %c0_i32_0 = arith.constant 0 : i32
    %c0_i32_1 = arith.constant 0 : i32
    %c0_i32_2 = arith.constant 0 : i32
    return %arg0, %c0_i32, %c0_i32_0, %c0_i32_1 : i32, i32, i32, i32
  }
  func.func @transform_1(%arg0: i32) -> (i32, i32) {
    %c0_i32 = arith.constant 0 : i32
    %c0_i32_0 = arith.constant 0 : i32
    %c0_i32_1 = arith.constant 0 : i32
    return %c0_i32, %c0_i32_0 : i32, i32
  }
  func.func @transform_2(%arg0: i32) -> (i32, i32) {
    %c0_i32 = arith.constant 0 : i32
    %c0_i32_0 = arith.constant 0 : i32
    %c0_i32_1 = arith.constant 0 : i32
    return %c0_i32, %c0_i32_0 : i32, i32
  }
  func.func @transform_3(%arg0: i32) -> (i32, i32, i32) {
    %c0_i32 = arith.constant 0 : i32
    %c0_i32_0 = arith.constant 0 : i32
    %c0_i32_1 = arith.constant 0 : i32
    return %arg0, %c0_i32, %c0_i32_0 : i32, i32, i32
  }
}

module attributes {stable_mosaic.version = 11 : i64} {
  func.func @_block_kernel(%arg0: i32, %arg1: memref<1x4x8x256xbf16, #tpu.memory_space<vmem>>, %arg2: memref<16x72xbf16, #tpu.memory_space<vmem>>, %arg3: memref<16x144xbf16, #tpu.memory_space<vmem>>, %arg4: memref<16x8xbf16, #tpu.memory_space<vmem>>, %arg5: memref<1x128xf32, #tpu.memory_space<vmem>>, %arg6: memref<1x16x128xbf16, #tpu.memory_space<vmem>>, %arg7: memref<72x128xbf16, #tpu.memory_space<vmem>>, %arg8: memref<16x384xbf16, #tpu.memory_space<vmem>>, %arg9: memref<144x128xbf16, #tpu.memory_space<vmem>>) attributes {dimension_semantics = [#tpu.dimension_semantics<parallel>], iteration_bounds = array<i64: 2>, scalar_prefetch = 0 : i64, scratch_operands = 3 : i64, tpu.core_type = #tpu.core_type<tc>, window_params = [{transform_indices = @transform_0, window_bounds = array<i64: 1, 4, 8, 256>}, {pipeline_mode = #tpu.pipeline_mode<synchronous>, transform_indices = @transform_1, window_bounds = array<i64: 16, 72>}, {pipeline_mode = #tpu.pipeline_mode<synchronous>, transform_indices = @transform_2, window_bounds = array<i64: 16, 144>}, {pipeline_mode = #tpu.pipeline_mode<synchronous>, transform_indices = @transform_3, window_bounds = array<i64: 16, 8>}, {pipeline_mode = #tpu.pipeline_mode<synchronous>, transform_indices = @transform_4, window_bounds = array<i64: 1, 128>}, {transform_indices = @transform_5, window_bounds = array<i64: 1, 16, 128>}]} {
    %c0 = arith.constant 0 : index
    %c0_0 = arith.constant 0 : index
    %0 = vector.load %arg5[%c0, %c0_0] : memref<1x128xf32, #tpu.memory_space<vmem>>, vector<1x128xf32>
    %c0_1 = arith.constant 0 : index
    %c0_2 = arith.constant 0 : index
    %c0_3 = arith.constant 0 : index
    %c0_4 = arith.constant 0 : index
    %1 = vector.load %arg1[%c0_1, %c0_2, %c0_3, %c0_4] : memref<1x4x8x256xbf16, #tpu.memory_space<vmem>>, vector<1x1x8x128xbf16>
    %2 = vector.shape_cast %1 : vector<1x1x8x128xbf16> to vector<8x128xbf16>
    %c0_5 = arith.constant 0 : index
    %c0_6 = arith.constant 0 : index
    %3 = vector.load %arg7[%c0_5, %c0_6] : memref<72x128xbf16, #tpu.memory_space<vmem>>, vector<8x128xbf16>
    tpu.vector_store %arg7[%c0_5, %c0_6], %2 {strides = array<i32>} : memref<72x128xbf16, #tpu.memory_space<vmem>>, vector<8x128xbf16>,
    %c0_7 = arith.constant 0 : index
    %c1 = arith.constant 1 : index
    %c0_8 = arith.constant 0 : index
    %c0_9 = arith.constant 0 : index
    %4 = vector.load %arg1[%c0_7, %c1, %c0_8, %c0_9] : memref<1x4x8x256xbf16, #tpu.memory_space<vmem>>, vector<1x1x8x128xbf16>
    %5 = vector.shape_cast %4 : vector<1x1x8x128xbf16> to vector<8x128xbf16>
    %c8 = arith.constant 8 : index
    %c0_10 = arith.constant 0 : index
    %6 = vector.load %arg7[%c8, %c0_10] : memref<72x128xbf16, #tpu.memory_space<vmem>>, vector<8x128xbf16>
    tpu.vector_store %arg7[%c8, %c0_10], %5 {strides = array<i32>} : memref<72x128xbf16, #tpu.memory_space<vmem>>, vector<8x128xbf16>,
    %c0_11 = arith.constant 0 : index
    %c0_12 = arith.constant 0 : index
    %c0_13 = arith.constant 0 : index
    %c1_14 = arith.constant 1 : index
    %7 = vector.load %arg1[%c0_11, %c0_12, %c0_13, %c1_14] : memref<1x4x8x256xbf16, #tpu.memory_space<vmem>>, vector<1x1x8x128xbf16>
    %8 = vector.shape_cast %7 : vector<1x1x8x128xbf16> to vector<8x128xbf16>
    %c16 = arith.constant 16 : index
    %c0_15 = arith.constant 0 : index
    %9 = vector.load %arg7[%c16, %c0_15] : memref<72x128xbf16, #tpu.memory_space<vmem>>, vector<8x128xbf16>
    tpu.vector_store %arg7[%c16, %c0_15], %8 {strides = array<i32>} : memref<72x128xbf16, #tpu.memory_space<vmem>>, vector<8x128xbf16>,
    %c0_16 = arith.constant 0 : index
    %c2 = arith.constant 2 : index
    %c0_17 = arith.constant 0 : index
    %c0_18 = arith.constant 0 : index
    %10 = vector.load %arg1[%c0_16, %c2, %c0_17, %c0_18] : memref<1x4x8x256xbf16, #tpu.memory_space<vmem>>, vector<1x1x8x128xbf16>
    %11 = vector.shape_cast %10 : vector<1x1x8x128xbf16> to vector<8x128xbf16>
    %c24 = arith.constant 24 : index
    %c0_19 = arith.constant 0 : index
    %12 = vector.load %arg7[%c24, %c0_19] : memref<72x128xbf16, #tpu.memory_space<vmem>>, vector<8x128xbf16>
    tpu.vector_store %arg7[%c24, %c0_19], %11 {strides = array<i32>} : memref<72x128xbf16, #tpu.memory_space<vmem>>, vector<8x128xbf16>,
    %c0_20 = arith.constant 0 : index
    %c3 = arith.constant 3 : index
    %c0_21 = arith.constant 0 : index
    %c0_22 = arith.constant 0 : index
    %13 = vector.load %arg1[%c0_20, %c3, %c0_21, %c0_22] : memref<1x4x8x256xbf16, #tpu.memory_space<vmem>>, vector<1x1x8x128xbf16>
    %14 = vector.shape_cast %13 : vector<1x1x8x128xbf16> to vector<8x128xbf16>
    %c32 = arith.constant 32 : index
    %c0_23 = arith.constant 0 : index
    %15 = vector.load %arg7[%c32, %c0_23] : memref<72x128xbf16, #tpu.memory_space<vmem>>, vector<8x128xbf16>
    tpu.vector_store %arg7[%c32, %c0_23], %14 {strides = array<i32>} : memref<72x128xbf16, #tpu.memory_space<vmem>>, vector<8x128xbf16>,
    %c0_24 = arith.constant 0 : index
    %c2_25 = arith.constant 2 : index
    %c0_26 = arith.constant 0 : index
    %c1_27 = arith.constant 1 : index
    %16 = vector.load %arg1[%c0_24, %c2_25, %c0_26, %c1_27] : memref<1x4x8x256xbf16, #tpu.memory_space<vmem>>, vector<1x1x8x128xbf16>
    %17 = vector.shape_cast %16 : vector<1x1x8x128xbf16> to vector<8x128xbf16>
    %c40 = arith.constant 40 : index
    %c0_28 = arith.constant 0 : index
    %18 = vector.load %arg7[%c40, %c0_28] : memref<72x128xbf16, #tpu.memory_space<vmem>>, vector<8x128xbf16>
    tpu.vector_store %arg7[%c40, %c0_28], %17 {strides = array<i32>} : memref<72x128xbf16, #tpu.memory_space<vmem>>, vector<8x128xbf16>,
    %c0_29 = arith.constant 0 : index
    %c0_30 = arith.constant 0 : index
    %c0_31 = arith.constant 0 : index
    %c7 = arith.constant 7 : index
    %19 = vector.load %arg1[%c0_29, %c0_30, %c0_31, %c7] : memref<1x4x8x256xbf16, #tpu.memory_space<vmem>>, vector<1x1x8x128xbf16>
    %20 = vector.shape_cast %19 : vector<1x1x8x128xbf16> to vector<8x128xbf16>
    %c48 = arith.constant 48 : index
    %c0_32 = arith.constant 0 : index
    %21 = vector.load %arg7[%c48, %c0_32] : memref<72x128xbf16, #tpu.memory_space<vmem>>, vector<8x128xbf16>
    tpu.vector_store %arg7[%c48, %c0_32], %20 {strides = array<i32>} : memref<72x128xbf16, #tpu.memory_space<vmem>>, vector<8x128xbf16>,
    %c0_33 = arith.constant 0 : index
    %c1_34 = arith.constant 1 : index
    %c0_35 = arith.constant 0 : index
    %c7_36 = arith.constant 7 : index
    %22 = vector.load %arg1[%c0_33, %c1_34, %c0_35, %c7_36] : memref<1x4x8x256xbf16, #tpu.memory_space<vmem>>, vector<1x1x8x128xbf16>
    %23 = vector.shape_cast %22 : vector<1x1x8x128xbf16> to vector<8x128xbf16>
    %c56 = arith.constant 56 : index
    %c0_37 = arith.constant 0 : index
    %24 = vector.load %arg7[%c56, %c0_37] : memref<72x128xbf16, #tpu.memory_space<vmem>>, vector<8x128xbf16>
    tpu.vector_store %arg7[%c56, %c0_37], %23 {strides = array<i32>} : memref<72x128xbf16, #tpu.memory_space<vmem>>, vector<8x128xbf16>,
    %c0_38 = arith.constant 0 : index
    %c0_39 = arith.constant 0 : index
    %c0_40 = arith.constant 0 : index
    %c8_41 = arith.constant 8 : index
    %25 = vector.load %arg1[%c0_38, %c0_39, %c0_40, %c8_41] : memref<1x4x8x256xbf16, #tpu.memory_space<vmem>>, vector<1x1x8x128xbf16>
    %26 = vector.shape_cast %25 : vector<1x1x8x128xbf16> to vector<8x128xbf16>
    %c64 = arith.constant 64 : index
    %c0_42 = arith.constant 0 : index
    %27 = vector.load %arg7[%c64, %c0_42] : memref<72x128xbf16, #tpu.memory_space<vmem>>, vector<8x128xbf16>
    tpu.vector_store %arg7[%c64, %c0_42], %26 {strides = array<i32>} : memref<72x128xbf16, #tpu.memory_space<vmem>>, vector<8x128xbf16>,
    %c0_43 = arith.constant 0 : index
    %c0_44 = arith.constant 0 : index
    %28 = vector.load %arg2[%c0_43, %c0_44] : memref<16x72xbf16, #tpu.memory_space<vmem>>, vector<16x72xbf16>
    %c0_45 = arith.constant 0 : index
    %c0_46 = arith.constant 0 : index
    %29 = vector.load %arg7[%c0_45, %c0_46] : memref<72x128xbf16, #tpu.memory_space<vmem>>, vector<72x128xbf16>
    %cst = arith.constant dense<0.000000e+00> : vector<16x128xf32>
    %30 = tpu.matmul %28, %29, %cst {dimension_numbers = #tpu.dot_dimension_numbers<[1], [0], [0], [1], [0, 0, 1, 1], [], []>} : vector<16x72xbf16>, vector<72x128xbf16>, vector<16x128xf32> -> vector<16x128xf32>
    %31 = vector.broadcast %0 : vector<1x128xf32> to vector<16x128xf32>
    %32 = arith.mulf %30, %31 : vector<16x128xf32>
    %cst_47 = arith.constant dense<0.000000e+00> : vector<16xf32>
    %33 = vector.multi_reduction <add>, %32, %cst_47 [1] : vector<16x128xf32> to vector<16xf32>
    %34 = vector.shape_cast %33 : vector<16xf32> to vector<16x1xf32>
    %cst_48 = arith.constant 6.250000e-02 : f32
    %35 = vector.broadcast %cst_48 : f32 to vector<16x1xf32>
    %36 = arith.mulf %34, %35 : vector<16x1xf32>
    %37 = vector.broadcast %36 : vector<16x1xf32> to vector<16x128xf32>
    %38 = arith.subf %30, %37 : vector<16x128xf32>
    %39 = vector.broadcast %0 : vector<1x128xf32> to vector<16x128xf32>
    %40 = arith.mulf %38, %39 : vector<16x128xf32>
    %41 = arith.mulf %40, %40 : vector<16x128xf32>
    %cst_49 = arith.constant dense<0.000000e+00> : vector<16xf32>
    %42 = vector.multi_reduction <add>, %41, %cst_49 [1] : vector<16x128xf32> to vector<16xf32>
    %43 = vector.shape_cast %42 : vector<16xf32> to vector<16x1xf32>
    %cst_50 = arith.constant 6.250000e-02 : f32
    %44 = vector.broadcast %cst_50 : f32 to vector<16x1xf32>
    %45 = arith.mulf %43, %44 : vector<16x1xf32>
    %cst_51 = arith.constant 9.99999974E-6 : f32
    %46 = vector.broadcast %cst_51 : f32 to vector<16x1xf32>
    %47 = arith.addf %45, %46 : vector<16x1xf32>
    %48 = math.rsqrt %47 : vector<16x1xf32>
    %49 = vector.broadcast %48 : vector<16x1xf32> to vector<16x128xf32>
    %50 = arith.mulf %40, %49 : vector<16x128xf32>
    %cst_52 = arith.constant 0.000000e+00 : f32
    %51 = vector.broadcast %cst_52 : f32 to vector<16x128xf32>
    %52 = arith.maximumf %50, %51 : vector<16x128xf32>
    %cst_53 = arith.constant 0.000000e+00 : bf16
    %53 = vector.broadcast %cst_53 : bf16 to vector<16x384xbf16>
    %c0_54 = arith.constant 0 : index
    %c0_55 = arith.constant 0 : index
    %54 = vector.load %arg8[%c0_54, %c0_55] : memref<16x384xbf16, #tpu.memory_space<vmem>>, vector<16x384xbf16>
    tpu.vector_store %arg8[%c0_54, %c0_55], %53 {strides = array<i32>} : memref<16x384xbf16, #tpu.memory_space<vmem>>, vector<16x384xbf16>,
    %55 = arith.truncf %52 : vector<16x128xf32> to vector<16x128xbf16>
    %c0_56 = arith.constant 0 : index
    %c128 = arith.constant 128 : index
    %56 = vector.load %arg8[%c0_56, %c128] : memref<16x384xbf16, #tpu.memory_space<vmem>>, vector<16x128xbf16>
    tpu.vector_store %arg8[%c0_56, %c128], %55 {strides = array<i32>} : memref<16x384xbf16, #tpu.memory_space<vmem>>, vector<16x128xbf16>,
    %c0_57 = arith.constant 0 : index
    %c120 = arith.constant 120 : index
    %57 = vector.load %arg8[%c0_57, %c120] : memref<16x384xbf16, #tpu.memory_space<vmem>>, vector<16x128xbf16>
    %c0_58 = arith.constant 0 : index
    %c0_59 = arith.constant 0 : index
    %58 = vector.load %arg9[%c0_58, %c0_59] : memref<144x128xbf16, #tpu.memory_space<vmem>>, vector<16x128xbf16>
    tpu.vector_store %arg9[%c0_58, %c0_59], %57 {strides = array<i32>} : memref<144x128xbf16, #tpu.memory_space<vmem>>, vector<16x128xbf16>,
    %c0_60 = arith.constant 0 : index
    %c121 = arith.constant 121 : index
    %59 = vector.load %arg8[%c0_60, %c121] : memref<16x384xbf16, #tpu.memory_space<vmem>>, vector<16x128xbf16>
    %c16_61 = arith.constant 16 : index
    %c0_62 = arith.constant 0 : index
    %60 = vector.load %arg9[%c16_61, %c0_62] : memref<144x128xbf16, #tpu.memory_space<vmem>>, vector<16x128xbf16>
    tpu.vector_store %arg9[%c16_61, %c0_62], %59 {strides = array<i32>} : memref<144x128xbf16, #tpu.memory_space<vmem>>, vector<16x128xbf16>,
    %c0_63 = arith.constant 0 : index
    %c122 = arith.constant 122 : index
    %61 = vector.load %arg8[%c0_63, %c122] : memref<16x384xbf16, #tpu.memory_space<vmem>>, vector<16x128xbf16>
    %c32_64 = arith.constant 32 : index
    %c0_65 = arith.constant 0 : index
    %62 = vector.load %arg9[%c32_64, %c0_65] : memref<144x128xbf16, #tpu.memory_space<vmem>>, vector<16x128xbf16>
    tpu.vector_store %arg9[%c32_64, %c0_65], %61 {strides = array<i32>} : memref<144x128xbf16, #tpu.memory_space<vmem>>, vector<16x128xbf16>,
    %c0_66 = arith.constant 0 : index
    %c127 = arith.constant 127 : index
    %63 = vector.load %arg8[%c0_66, %c127] : memref<16x384xbf16, #tpu.memory_space<vmem>>, vector<16x128xbf16>
    %c48_67 = arith.constant 48 : index
    %c0_68 = arith.constant 0 : index
    %64 = vector.load %arg9[%c48_67, %c0_68] : memref<144x128xbf16, #tpu.memory_space<vmem>>, vector<16x128xbf16>
    tpu.vector_store %arg9[%c48_67, %c0_68], %63 {strides = array<i32>} : memref<144x128xbf16, #tpu.memory_space<vmem>>, vector<16x128xbf16>,
    %c0_69 = arith.constant 0 : index
    %c128_70 = arith.constant 128 : index
    %65 = vector.load %arg8[%c0_69, %c128_70] : memref<16x384xbf16, #tpu.memory_space<vmem>>, vector<16x128xbf16>
    %c64_71 = arith.constant 64 : index
    %c0_72 = arith.constant 0 : index
    %66 = vector.load %arg9[%c64_71, %c0_72] : memref<144x128xbf16, #tpu.memory_space<vmem>>, vector<16x128xbf16>
    tpu.vector_store %arg9[%c64_71, %c0_72], %65 {strides = array<i32>} : memref<144x128xbf16, #tpu.memory_space<vmem>>, vector<16x128xbf16>,
    %c0_73 = arith.constant 0 : index
    %c129 = arith.constant 129 : index
    %67 = vector.load %arg8[%c0_73, %c129] : memref<16x384xbf16, #tpu.memory_space<vmem>>, vector<16x128xbf16>
    %c80 = arith.constant 80 : index
    %c0_74 = arith.constant 0 : index
    %68 = vector.load %arg9[%c80, %c0_74] : memref<144x128xbf16, #tpu.memory_space<vmem>>, vector<16x128xbf16>
    tpu.vector_store %arg9[%c80, %c0_74], %67 {strides = array<i32>} : memref<144x128xbf16, #tpu.memory_space<vmem>>, vector<16x128xbf16>,
    %c0_75 = arith.constant 0 : index
    %c134 = arith.constant 134 : index
    %69 = vector.load %arg8[%c0_75, %c134] : memref<16x384xbf16, #tpu.memory_space<vmem>>, vector<16x128xbf16>
    %c96 = arith.constant 96 : index
    %c0_76 = arith.constant 0 : index
    %70 = vector.load %arg9[%c96, %c0_76] : memref<144x128xbf16, #tpu.memory_space<vmem>>, vector<16x128xbf16>
    tpu.vector_store %arg9[%c96, %c0_76], %69 {strides = array<i32>} : memref<144x128xbf16, #tpu.memory_space<vmem>>, vector<16x128xbf16>,
    %c0_77 = arith.constant 0 : index
    %c135 = arith.constant 135 : index
    %71 = vector.load %arg8[%c0_77, %c135] : memref<16x384xbf16, #tpu.memory_space<vmem>>, vector<16x128xbf16>
    %c112 = arith.constant 112 : index
    %c0_78 = arith.constant 0 : index
    %72 = vector.load %arg9[%c112, %c0_78] : memref<144x128xbf16, #tpu.memory_space<vmem>>, vector<16x128xbf16>
    tpu.vector_store %arg9[%c112, %c0_78], %71 {strides = array<i32>} : memref<144x128xbf16, #tpu.memory_space<vmem>>, vector<16x128xbf16>,
    %c0_79 = arith.constant 0 : index
    %c136 = arith.constant 136 : index
    %73 = vector.load %arg8[%c0_79, %c136] : memref<16x384xbf16, #tpu.memory_space<vmem>>, vector<16x128xbf16>
    %c128_80 = arith.constant 128 : index
    %c0_81 = arith.constant 0 : index
    %74 = vector.load %arg9[%c128_80, %c0_81] : memref<144x128xbf16, #tpu.memory_space<vmem>>, vector<16x128xbf16>
    tpu.vector_store %arg9[%c128_80, %c0_81], %73 {strides = array<i32>} : memref<144x128xbf16, #tpu.memory_space<vmem>>, vector<16x128xbf16>,
    %c0_82 = arith.constant 0 : index
    %c0_83 = arith.constant 0 : index
    %75 = vector.load %arg3[%c0_82, %c0_83] : memref<16x144xbf16, #tpu.memory_space<vmem>>, vector<16x144xbf16>
    %c0_84 = arith.constant 0 : index
    %c0_85 = arith.constant 0 : index
    %76 = vector.load %arg9[%c0_84, %c0_85] : memref<144x128xbf16, #tpu.memory_space<vmem>>, vector<144x128xbf16>
    %cst_86 = arith.constant dense<0.000000e+00> : vector<16x128xf32>
    %77 = tpu.matmul %75, %76, %cst_86 {dimension_numbers = #tpu.dot_dimension_numbers<[1], [0], [0], [1], [0, 0, 1, 1], [], []>} : vector<16x144xbf16>, vector<144x128xbf16>, vector<16x128xf32> -> vector<16x128xf32>
    %78 = vector.broadcast %0 : vector<1x128xf32> to vector<16x128xf32>
    %79 = arith.mulf %77, %78 : vector<16x128xf32>
    %cst_87 = arith.constant dense<0.000000e+00> : vector<16xf32>
    %80 = vector.multi_reduction <add>, %79, %cst_87 [1] : vector<16x128xf32> to vector<16xf32>
    %81 = vector.shape_cast %80 : vector<16xf32> to vector<16x1xf32>
    %cst_88 = arith.constant 6.250000e-02 : f32
    %82 = vector.broadcast %cst_88 : f32 to vector<16x1xf32>
    %83 = arith.mulf %81, %82 : vector<16x1xf32>
    %84 = vector.broadcast %83 : vector<16x1xf32> to vector<16x128xf32>
    %85 = arith.subf %77, %84 : vector<16x128xf32>
    %86 = vector.broadcast %0 : vector<1x128xf32> to vector<16x128xf32>
    %87 = arith.mulf %85, %86 : vector<16x128xf32>
    %88 = arith.mulf %87, %87 : vector<16x128xf32>
    %cst_89 = arith.constant dense<0.000000e+00> : vector<16xf32>
    %89 = vector.multi_reduction <add>, %88, %cst_89 [1] : vector<16x128xf32> to vector<16xf32>
    %90 = vector.shape_cast %89 : vector<16xf32> to vector<16x1xf32>
    %cst_90 = arith.constant 6.250000e-02 : f32
    %91 = vector.broadcast %cst_90 : f32 to vector<16x1xf32>
    %92 = arith.mulf %90, %91 : vector<16x1xf32>
    %cst_91 = arith.constant 9.99999974E-6 : f32
    %93 = vector.broadcast %cst_91 : f32 to vector<16x1xf32>
    %94 = arith.addf %92, %93 : vector<16x1xf32>
    %95 = math.rsqrt %94 : vector<16x1xf32>
    %96 = vector.broadcast %95 : vector<16x1xf32> to vector<16x128xf32>
    %97 = arith.mulf %87, %96 : vector<16x128xf32>
    %c0_92 = arith.constant 0 : index
    %c3_93 = arith.constant 3 : index
    %c0_94 = arith.constant 0 : index
    %c0_95 = arith.constant 0 : index
    %98 = vector.load %arg1[%c0_92, %c3_93, %c0_94, %c0_95] : memref<1x4x8x256xbf16, #tpu.memory_space<vmem>>, vector<1x1x8x128xbf16>
    %99 = vector.shape_cast %98 : vector<1x1x8x128xbf16> to vector<8x128xbf16>
    %c0_96 = arith.constant 0 : index
    %c0_97 = arith.constant 0 : index
    %100 = vector.load %arg4[%c0_96, %c0_97] : memref<16x8xbf16, #tpu.memory_space<vmem>>, vector<16x8xbf16>
    %cst_98 = arith.constant dense<0.000000e+00> : vector<16x128xf32>
    %101 = tpu.matmul %100, %99, %cst_98 {dimension_numbers = #tpu.dot_dimension_numbers<[1], [0], [0], [1], [0, 0, 1, 1], [], []>} : vector<16x8xbf16>, vector<8x128xbf16>, vector<16x128xf32> -> vector<16x128xf32>
    %102 = vector.broadcast %0 : vector<1x128xf32> to vector<16x128xf32>
    %103 = arith.mulf %101, %102 : vector<16x128xf32>
    %cst_99 = arith.constant dense<0.000000e+00> : vector<16xf32>
    %104 = vector.multi_reduction <add>, %103, %cst_99 [1] : vector<16x128xf32> to vector<16xf32>
    %105 = vector.shape_cast %104 : vector<16xf32> to vector<16x1xf32>
    %cst_100 = arith.constant 6.250000e-02 : f32
    %106 = vector.broadcast %cst_100 : f32 to vector<16x1xf32>
    %107 = arith.mulf %105, %106 : vector<16x1xf32>
    %108 = vector.broadcast %107 : vector<16x1xf32> to vector<16x128xf32>
    %109 = arith.subf %101, %108 : vector<16x128xf32>
    %110 = vector.broadcast %0 : vector<1x128xf32> to vector<16x128xf32>
    %111 = arith.mulf %109, %110 : vector<16x128xf32>
    %112 = arith.mulf %111, %111 : vector<16x128xf32>
    %cst_101 = arith.constant dense<0.000000e+00> : vector<16xf32>
    %113 = vector.multi_reduction <add>, %112, %cst_101 [1] : vector<16x128xf32> to vector<16xf32>
    %114 = vector.shape_cast %113 : vector<16xf32> to vector<16x1xf32>
    %cst_102 = arith.constant 6.250000e-02 : f32
    %115 = vector.broadcast %cst_102 : f32 to vector<16x1xf32>
    %116 = arith.mulf %114, %115 : vector<16x1xf32>
    %cst_103 = arith.constant 9.99999974E-6 : f32
    %117 = vector.broadcast %cst_103 : f32 to vector<16x1xf32>
    %118 = arith.addf %116, %117 : vector<16x1xf32>
    %119 = math.rsqrt %118 : vector<16x1xf32>
    %120 = vector.broadcast %119 : vector<16x1xf32> to vector<16x128xf32>
    %121 = arith.mulf %111, %120 : vector<16x128xf32>
    %122 = arith.addf %97, %121 : vector<16x128xf32>
    %cst_104 = arith.constant 0.000000e+00 : f32
    %123 = vector.broadcast %cst_104 : f32 to vector<16x128xf32>
    %124 = arith.maximumf %122, %123 : vector<16x128xf32>
    %125 = vector.broadcast %0 : vector<1x128xf32> to vector<16x128xf32>
    %126 = arith.mulf %124, %125 : vector<16x128xf32>
    %127 = arith.truncf %126 : vector<16x128xf32> to vector<16x128xbf16>
    %c0_105 = arith.constant 0 : index
    %c0_106 = arith.constant 0 : index
    %c0_107 = arith.constant 0 : index
    %128 = vector.load %arg6[%c0_105, %c0_106, %c0_107] : memref<1x16x128xbf16, #tpu.memory_space<vmem>>, vector<1x16x128xbf16>
    %129 = vector.shape_cast %128 : vector<1x16x128xbf16> to vector<16x128xbf16>
    %130 = vector.shape_cast %127 : vector<16x128xbf16> to vector<1x16x128xbf16>
    tpu.vector_store %arg6[%c0_105, %c0_106, %c0_107], %130 {strides = array<i32>} : memref<1x16x128xbf16, #tpu.memory_space<vmem>>, vector<1x16x128xbf16>,
    return
  }
  func.func @transform_0(%arg0: i32) -> (i32, i32, i32, i32) {
    %c0_i32 = arith.constant 0 : i32
    %c0_i32_0 = arith.constant 0 : i32
    %c0_i32_1 = arith.constant 0 : i32
    %c0_i32_2 = arith.constant 0 : i32
    return %arg0, %c0_i32, %c0_i32_0, %c0_i32_1 : i32, i32, i32, i32
  }
  func.func @transform_1(%arg0: i32) -> (i32, i32) {
    %c0_i32 = arith.constant 0 : i32
    %c0_i32_0 = arith.constant 0 : i32
    %c0_i32_1 = arith.constant 0 : i32
    return %c0_i32, %c0_i32_0 : i32, i32
  }
  func.func @transform_2(%arg0: i32) -> (i32, i32) {
    %c0_i32 = arith.constant 0 : i32
    %c0_i32_0 = arith.constant 0 : i32
    %c0_i32_1 = arith.constant 0 : i32
    return %c0_i32, %c0_i32_0 : i32, i32
  }
  func.func @transform_3(%arg0: i32) -> (i32, i32) {
    %c0_i32 = arith.constant 0 : i32
    %c0_i32_0 = arith.constant 0 : i32
    %c0_i32_1 = arith.constant 0 : i32
    return %c0_i32, %c0_i32_0 : i32, i32
  }
  func.func @transform_4(%arg0: i32) -> (i32, i32) {
    %c0_i32 = arith.constant 0 : i32
    %c0_i32_0 = arith.constant 0 : i32
    %c0_i32_1 = arith.constant 0 : i32
    return %c0_i32, %c0_i32_0 : i32, i32
  }
  func.func @transform_5(%arg0: i32) -> (i32, i32, i32) {
    %c0_i32 = arith.constant 0 : i32
    %c0_i32_0 = arith.constant 0 : i32
    %c0_i32_1 = arith.constant 0 : i32
    return %arg0, %c0_i32, %c0_i32_0 : i32, i32, i32
  }
}

module attributes {stable_mosaic.version = 11 : i64} {
  func.func @_block_kernel(%arg0: i32, %arg1: memref<1x1x16x256xbf16, #tpu.memory_space<vmem>>, %arg2: memref<16x144xbf16, #tpu.memory_space<vmem>>, %arg3: memref<16x144xbf16, #tpu.memory_space<vmem>>, %arg4: memref<1x128xf32, #tpu.memory_space<vmem>>, %arg5: memref<1x16x128xbf16, #tpu.memory_space<vmem>>, %arg6: memref<144x128xbf16, #tpu.memory_space<vmem>>, %arg7: memref<16x384xbf16, #tpu.memory_space<vmem>>, %arg8: memref<144x128xbf16, #tpu.memory_space<vmem>>) attributes {dimension_semantics = [#tpu.dimension_semantics<parallel>], iteration_bounds = array<i64: 2>, scalar_prefetch = 0 : i64, scratch_operands = 3 : i64, tpu.core_type = #tpu.core_type<tc>, window_params = [{transform_indices = @transform_0, window_bounds = array<i64: 1, 1, 16, 256>}, {pipeline_mode = #tpu.pipeline_mode<synchronous>, transform_indices = @transform_1, window_bounds = array<i64: 16, 144>}, {pipeline_mode = #tpu.pipeline_mode<synchronous>, transform_indices = @transform_2, window_bounds = array<i64: 16, 144>}, {pipeline_mode = #tpu.pipeline_mode<synchronous>, transform_indices = @transform_3, window_bounds = array<i64: 1, 128>}, {transform_indices = @transform_4, window_bounds = array<i64: 1, 16, 128>}]} {
    %c0 = arith.constant 0 : index
    %c0_0 = arith.constant 0 : index
    %0 = vector.load %arg4[%c0, %c0_0] : memref<1x128xf32, #tpu.memory_space<vmem>>, vector<1x128xf32>
    %c0_1 = arith.constant 0 : index
    %c0_2 = arith.constant 0 : index
    %c0_3 = arith.constant 0 : index
    %c0_4 = arith.constant 0 : index
    %1 = vector.load %arg1[%c0_1, %c0_2, %c0_3, %c0_4] : memref<1x1x16x256xbf16, #tpu.memory_space<vmem>>, vector<1x1x16x128xbf16>
    %2 = vector.shape_cast %1 : vector<1x1x16x128xbf16> to vector<16x128xbf16>
    %c0_5 = arith.constant 0 : index
    %c0_6 = arith.constant 0 : index
    %3 = vector.load %arg6[%c0_5, %c0_6] : memref<144x128xbf16, #tpu.memory_space<vmem>>, vector<16x128xbf16>
    tpu.vector_store %arg6[%c0_5, %c0_6], %2 {strides = array<i32>} : memref<144x128xbf16, #tpu.memory_space<vmem>>, vector<16x128xbf16>,
    %c0_7 = arith.constant 0 : index
    %c0_8 = arith.constant 0 : index
    %c0_9 = arith.constant 0 : index
    %c1 = arith.constant 1 : index
    %4 = vector.load %arg1[%c0_7, %c0_8, %c0_9, %c1] : memref<1x1x16x256xbf16, #tpu.memory_space<vmem>>, vector<1x1x16x128xbf16>
    %5 = vector.shape_cast %4 : vector<1x1x16x128xbf16> to vector<16x128xbf16>
    %c16 = arith.constant 16 : index
    %c0_10 = arith.constant 0 : index
    %6 = vector.load %arg6[%c16, %c0_10] : memref<144x128xbf16, #tpu.memory_space<vmem>>, vector<16x128xbf16>
    tpu.vector_store %arg6[%c16, %c0_10], %5 {strides = array<i32>} : memref<144x128xbf16, #tpu.memory_space<vmem>>, vector<16x128xbf16>,
    %c0_11 = arith.constant 0 : index
    %c0_12 = arith.constant 0 : index
    %c0_13 = arith.constant 0 : index
    %c2 = arith.constant 2 : index
    %7 = vector.load %arg1[%c0_11, %c0_12, %c0_13, %c2] : memref<1x1x16x256xbf16, #tpu.memory_space<vmem>>, vector<1x1x16x128xbf16>
    %8 = vector.shape_cast %7 : vector<1x1x16x128xbf16> to vector<16x128xbf16>
    %c32 = arith.constant 32 : index
    %c0_14 = arith.constant 0 : index
    %9 = vector.load %arg6[%c32, %c0_14] : memref<144x128xbf16, #tpu.memory_space<vmem>>, vector<16x128xbf16>
    tpu.vector_store %arg6[%c32, %c0_14], %8 {strides = array<i32>} : memref<144x128xbf16, #tpu.memory_space<vmem>>, vector<16x128xbf16>,
    %c0_15 = arith.constant 0 : index
    %c0_16 = arith.constant 0 : index
    %c0_17 = arith.constant 0 : index
    %c7 = arith.constant 7 : index
    %10 = vector.load %arg1[%c0_15, %c0_16, %c0_17, %c7] : memref<1x1x16x256xbf16, #tpu.memory_space<vmem>>, vector<1x1x16x128xbf16>
    %11 = vector.shape_cast %10 : vector<1x1x16x128xbf16> to vector<16x128xbf16>
    %c48 = arith.constant 48 : index
    %c0_18 = arith.constant 0 : index
    %12 = vector.load %arg6[%c48, %c0_18] : memref<144x128xbf16, #tpu.memory_space<vmem>>, vector<16x128xbf16>
    tpu.vector_store %arg6[%c48, %c0_18], %11 {strides = array<i32>} : memref<144x128xbf16, #tpu.memory_space<vmem>>, vector<16x128xbf16>,
    %c0_19 = arith.constant 0 : index
    %c0_20 = arith.constant 0 : index
    %c0_21 = arith.constant 0 : index
    %c8 = arith.constant 8 : index
    %13 = vector.load %arg1[%c0_19, %c0_20, %c0_21, %c8] : memref<1x1x16x256xbf16, #tpu.memory_space<vmem>>, vector<1x1x16x128xbf16>
    %14 = vector.shape_cast %13 : vector<1x1x16x128xbf16> to vector<16x128xbf16>
    %c64 = arith.constant 64 : index
    %c0_22 = arith.constant 0 : index
    %15 = vector.load %arg6[%c64, %c0_22] : memref<144x128xbf16, #tpu.memory_space<vmem>>, vector<16x128xbf16>
    tpu.vector_store %arg6[%c64, %c0_22], %14 {strides = array<i32>} : memref<144x128xbf16, #tpu.memory_space<vmem>>, vector<16x128xbf16>,
    %c0_23 = arith.constant 0 : index
    %c0_24 = arith.constant 0 : index
    %c0_25 = arith.constant 0 : index
    %c9 = arith.constant 9 : index
    %16 = vector.load %arg1[%c0_23, %c0_24, %c0_25, %c9] : memref<1x1x16x256xbf16, #tpu.memory_space<vmem>>, vector<1x1x16x128xbf16>
    %17 = vector.shape_cast %16 : vector<1x1x16x128xbf16> to vector<16x128xbf16>
    %c80 = arith.constant 80 : index
    %c0_26 = arith.constant 0 : index
    %18 = vector.load %arg6[%c80, %c0_26] : memref<144x128xbf16, #tpu.memory_space<vmem>>, vector<16x128xbf16>
    tpu.vector_store %arg6[%c80, %c0_26], %17 {strides = array<i32>} : memref<144x128xbf16, #tpu.memory_space<vmem>>, vector<16x128xbf16>,
    %c0_27 = arith.constant 0 : index
    %c0_28 = arith.constant 0 : index
    %c0_29 = arith.constant 0 : index
    %c14 = arith.constant 14 : index
    %19 = vector.load %arg1[%c0_27, %c0_28, %c0_29, %c14] : memref<1x1x16x256xbf16, #tpu.memory_space<vmem>>, vector<1x1x16x128xbf16>
    %20 = vector.shape_cast %19 : vector<1x1x16x128xbf16> to vector<16x128xbf16>
    %c96 = arith.constant 96 : index
    %c0_30 = arith.constant 0 : index
    %21 = vector.load %arg6[%c96, %c0_30] : memref<144x128xbf16, #tpu.memory_space<vmem>>, vector<16x128xbf16>
    tpu.vector_store %arg6[%c96, %c0_30], %20 {strides = array<i32>} : memref<144x128xbf16, #tpu.memory_space<vmem>>, vector<16x128xbf16>,
    %c0_31 = arith.constant 0 : index
    %c0_32 = arith.constant 0 : index
    %c0_33 = arith.constant 0 : index
    %c15 = arith.constant 15 : index
    %22 = vector.load %arg1[%c0_31, %c0_32, %c0_33, %c15] : memref<1x1x16x256xbf16, #tpu.memory_space<vmem>>, vector<1x1x16x128xbf16>
    %23 = vector.shape_cast %22 : vector<1x1x16x128xbf16> to vector<16x128xbf16>
    %c112 = arith.constant 112 : index
    %c0_34 = arith.constant 0 : index
    %24 = vector.load %arg6[%c112, %c0_34] : memref<144x128xbf16, #tpu.memory_space<vmem>>, vector<16x128xbf16>
    tpu.vector_store %arg6[%c112, %c0_34], %23 {strides = array<i32>} : memref<144x128xbf16, #tpu.memory_space<vmem>>, vector<16x128xbf16>,
    %c0_35 = arith.constant 0 : index
    %c0_36 = arith.constant 0 : index
    %c0_37 = arith.constant 0 : index
    %c16_38 = arith.constant 16 : index
    %25 = vector.load %arg1[%c0_35, %c0_36, %c0_37, %c16_38] : memref<1x1x16x256xbf16, #tpu.memory_space<vmem>>, vector<1x1x16x128xbf16>
    %26 = vector.shape_cast %25 : vector<1x1x16x128xbf16> to vector<16x128xbf16>
    %c128 = arith.constant 128 : index
    %c0_39 = arith.constant 0 : index
    %27 = vector.load %arg6[%c128, %c0_39] : memref<144x128xbf16, #tpu.memory_space<vmem>>, vector<16x128xbf16>
    tpu.vector_store %arg6[%c128, %c0_39], %26 {strides = array<i32>} : memref<144x128xbf16, #tpu.memory_space<vmem>>, vector<16x128xbf16>,
    %c0_40 = arith.constant 0 : index
    %c0_41 = arith.constant 0 : index
    %28 = vector.load %arg2[%c0_40, %c0_41] : memref<16x144xbf16, #tpu.memory_space<vmem>>, vector<16x144xbf16>
    %c0_42 = arith.constant 0 : index
    %c0_43 = arith.constant 0 : index
    %29 = vector.load %arg6[%c0_42, %c0_43] : memref<144x128xbf16, #tpu.memory_space<vmem>>, vector<144x128xbf16>
    %cst = arith.constant dense<0.000000e+00> : vector<16x128xf32>
    %30 = tpu.matmul %28, %29, %cst {dimension_numbers = #tpu.dot_dimension_numbers<[1], [0], [0], [1], [0, 0, 1, 1], [], []>} : vector<16x144xbf16>, vector<144x128xbf16>, vector<16x128xf32> -> vector<16x128xf32>
    %31 = vector.broadcast %0 : vector<1x128xf32> to vector<16x128xf32>
    %32 = arith.mulf %30, %31 : vector<16x128xf32>
    %cst_44 = arith.constant dense<0.000000e+00> : vector<16xf32>
    %33 = vector.multi_reduction <add>, %32, %cst_44 [1] : vector<16x128xf32> to vector<16xf32>
    %34 = vector.shape_cast %33 : vector<16xf32> to vector<16x1xf32>
    %cst_45 = arith.constant 6.250000e-02 : f32
    %35 = vector.broadcast %cst_45 : f32 to vector<16x1xf32>
    %36 = arith.mulf %34, %35 : vector<16x1xf32>
    %37 = vector.broadcast %36 : vector<16x1xf32> to vector<16x128xf32>
    %38 = arith.subf %30, %37 : vector<16x128xf32>
    %39 = vector.broadcast %0 : vector<1x128xf32> to vector<16x128xf32>
    %40 = arith.mulf %38, %39 : vector<16x128xf32>
    %41 = arith.mulf %40, %40 : vector<16x128xf32>
    %cst_46 = arith.constant dense<0.000000e+00> : vector<16xf32>
    %42 = vector.multi_reduction <add>, %41, %cst_46 [1] : vector<16x128xf32> to vector<16xf32>
    %43 = vector.shape_cast %42 : vector<16xf32> to vector<16x1xf32>
    %cst_47 = arith.constant 6.250000e-02 : f32
    %44 = vector.broadcast %cst_47 : f32 to vector<16x1xf32>
    %45 = arith.mulf %43, %44 : vector<16x1xf32>
    %cst_48 = arith.constant 9.99999974E-6 : f32
    %46 = vector.broadcast %cst_48 : f32 to vector<16x1xf32>
    %47 = arith.addf %45, %46 : vector<16x1xf32>
    %48 = math.rsqrt %47 : vector<16x1xf32>
    %49 = vector.broadcast %48 : vector<16x1xf32> to vector<16x128xf32>
    %50 = arith.mulf %40, %49 : vector<16x128xf32>
    %cst_49 = arith.constant 0.000000e+00 : f32
    %51 = vector.broadcast %cst_49 : f32 to vector<16x128xf32>
    %52 = arith.maximumf %50, %51 : vector<16x128xf32>
    %cst_50 = arith.constant 0.000000e+00 : bf16
    %53 = vector.broadcast %cst_50 : bf16 to vector<16x384xbf16>
    %c0_51 = arith.constant 0 : index
    %c0_52 = arith.constant 0 : index
    %54 = vector.load %arg7[%c0_51, %c0_52] : memref<16x384xbf16, #tpu.memory_space<vmem>>, vector<16x384xbf16>
    tpu.vector_store %arg7[%c0_51, %c0_52], %53 {strides = array<i32>} : memref<16x384xbf16, #tpu.memory_space<vmem>>, vector<16x384xbf16>,
    %55 = arith.truncf %52 : vector<16x128xf32> to vector<16x128xbf16>
    %c0_53 = arith.constant 0 : index
    %c128_54 = arith.constant 128 : index
    %56 = vector.load %arg7[%c0_53, %c128_54] : memref<16x384xbf16, #tpu.memory_space<vmem>>, vector<16x128xbf16>
    tpu.vector_store %arg7[%c0_53, %c128_54], %55 {strides = array<i32>} : memref<16x384xbf16, #tpu.memory_space<vmem>>, vector<16x128xbf16>,
    %c0_55 = arith.constant 0 : index
    %c120 = arith.constant 120 : index
    %57 = vector.load %arg7[%c0_55, %c120] : memref<16x384xbf16, #tpu.memory_space<vmem>>, vector<16x128xbf16>
    %c0_56 = arith.constant 0 : index
    %c0_57 = arith.constant 0 : index
    %58 = vector.load %arg8[%c0_56, %c0_57] : memref<144x128xbf16, #tpu.memory_space<vmem>>, vector<16x128xbf16>
    tpu.vector_store %arg8[%c0_56, %c0_57], %57 {strides = array<i32>} : memref<144x128xbf16, #tpu.memory_space<vmem>>, vector<16x128xbf16>,
    %c0_58 = arith.constant 0 : index
    %c121 = arith.constant 121 : index
    %59 = vector.load %arg7[%c0_58, %c121] : memref<16x384xbf16, #tpu.memory_space<vmem>>, vector<16x128xbf16>
    %c16_59 = arith.constant 16 : index
    %c0_60 = arith.constant 0 : index
    %60 = vector.load %arg8[%c16_59, %c0_60] : memref<144x128xbf16, #tpu.memory_space<vmem>>, vector<16x128xbf16>
    tpu.vector_store %arg8[%c16_59, %c0_60], %59 {strides = array<i32>} : memref<144x128xbf16, #tpu.memory_space<vmem>>, vector<16x128xbf16>,
    %c0_61 = arith.constant 0 : index
    %c122 = arith.constant 122 : index
    %61 = vector.load %arg7[%c0_61, %c122] : memref<16x384xbf16, #tpu.memory_space<vmem>>, vector<16x128xbf16>
    %c32_62 = arith.constant 32 : index
    %c0_63 = arith.constant 0 : index
    %62 = vector.load %arg8[%c32_62, %c0_63] : memref<144x128xbf16, #tpu.memory_space<vmem>>, vector<16x128xbf16>
    tpu.vector_store %arg8[%c32_62, %c0_63], %61 {strides = array<i32>} : memref<144x128xbf16, #tpu.memory_space<vmem>>, vector<16x128xbf16>,
    %c0_64 = arith.constant 0 : index
    %c127 = arith.constant 127 : index
    %63 = vector.load %arg7[%c0_64, %c127] : memref<16x384xbf16, #tpu.memory_space<vmem>>, vector<16x128xbf16>
    %c48_65 = arith.constant 48 : index
    %c0_66 = arith.constant 0 : index
    %64 = vector.load %arg8[%c48_65, %c0_66] : memref<144x128xbf16, #tpu.memory_space<vmem>>, vector<16x128xbf16>
    tpu.vector_store %arg8[%c48_65, %c0_66], %63 {strides = array<i32>} : memref<144x128xbf16, #tpu.memory_space<vmem>>, vector<16x128xbf16>,
    %c0_67 = arith.constant 0 : index
    %c128_68 = arith.constant 128 : index
    %65 = vector.load %arg7[%c0_67, %c128_68] : memref<16x384xbf16, #tpu.memory_space<vmem>>, vector<16x128xbf16>
    %c64_69 = arith.constant 64 : index
    %c0_70 = arith.constant 0 : index
    %66 = vector.load %arg8[%c64_69, %c0_70] : memref<144x128xbf16, #tpu.memory_space<vmem>>, vector<16x128xbf16>
    tpu.vector_store %arg8[%c64_69, %c0_70], %65 {strides = array<i32>} : memref<144x128xbf16, #tpu.memory_space<vmem>>, vector<16x128xbf16>,
    %c0_71 = arith.constant 0 : index
    %c129 = arith.constant 129 : index
    %67 = vector.load %arg7[%c0_71, %c129] : memref<16x384xbf16, #tpu.memory_space<vmem>>, vector<16x128xbf16>
    %c80_72 = arith.constant 80 : index
    %c0_73 = arith.constant 0 : index
    %68 = vector.load %arg8[%c80_72, %c0_73] : memref<144x128xbf16, #tpu.memory_space<vmem>>, vector<16x128xbf16>
    tpu.vector_store %arg8[%c80_72, %c0_73], %67 {strides = array<i32>} : memref<144x128xbf16, #tpu.memory_space<vmem>>, vector<16x128xbf16>,
    %c0_74 = arith.constant 0 : index
    %c134 = arith.constant 134 : index
    %69 = vector.load %arg7[%c0_74, %c134] : memref<16x384xbf16, #tpu.memory_space<vmem>>, vector<16x128xbf16>
    %c96_75 = arith.constant 96 : index
    %c0_76 = arith.constant 0 : index
    %70 = vector.load %arg8[%c96_75, %c0_76] : memref<144x128xbf16, #tpu.memory_space<vmem>>, vector<16x128xbf16>
    tpu.vector_store %arg8[%c96_75, %c0_76], %69 {strides = array<i32>} : memref<144x128xbf16, #tpu.memory_space<vmem>>, vector<16x128xbf16>,
    %c0_77 = arith.constant 0 : index
    %c135 = arith.constant 135 : index
    %71 = vector.load %arg7[%c0_77, %c135] : memref<16x384xbf16, #tpu.memory_space<vmem>>, vector<16x128xbf16>
    %c112_78 = arith.constant 112 : index
    %c0_79 = arith.constant 0 : index
    %72 = vector.load %arg8[%c112_78, %c0_79] : memref<144x128xbf16, #tpu.memory_space<vmem>>, vector<16x128xbf16>
    tpu.vector_store %arg8[%c112_78, %c0_79], %71 {strides = array<i32>} : memref<144x128xbf16, #tpu.memory_space<vmem>>, vector<16x128xbf16>,
    %c0_80 = arith.constant 0 : index
    %c136 = arith.constant 136 : index
    %73 = vector.load %arg7[%c0_80, %c136] : memref<16x384xbf16, #tpu.memory_space<vmem>>, vector<16x128xbf16>
    %c128_81 = arith.constant 128 : index
    %c0_82 = arith.constant 0 : index
    %74 = vector.load %arg8[%c128_81, %c0_82] : memref<144x128xbf16, #tpu.memory_space<vmem>>, vector<16x128xbf16>
    tpu.vector_store %arg8[%c128_81, %c0_82], %73 {strides = array<i32>} : memref<144x128xbf16, #tpu.memory_space<vmem>>, vector<16x128xbf16>,
    %c0_83 = arith.constant 0 : index
    %c0_84 = arith.constant 0 : index
    %75 = vector.load %arg3[%c0_83, %c0_84] : memref<16x144xbf16, #tpu.memory_space<vmem>>, vector<16x144xbf16>
    %c0_85 = arith.constant 0 : index
    %c0_86 = arith.constant 0 : index
    %76 = vector.load %arg8[%c0_85, %c0_86] : memref<144x128xbf16, #tpu.memory_space<vmem>>, vector<144x128xbf16>
    %cst_87 = arith.constant dense<0.000000e+00> : vector<16x128xf32>
    %77 = tpu.matmul %75, %76, %cst_87 {dimension_numbers = #tpu.dot_dimension_numbers<[1], [0], [0], [1], [0, 0, 1, 1], [], []>} : vector<16x144xbf16>, vector<144x128xbf16>, vector<16x128xf32> -> vector<16x128xf32>
    %78 = vector.broadcast %0 : vector<1x128xf32> to vector<16x128xf32>
    %79 = arith.mulf %77, %78 : vector<16x128xf32>
    %cst_88 = arith.constant dense<0.000000e+00> : vector<16xf32>
    %80 = vector.multi_reduction <add>, %79, %cst_88 [1] : vector<16x128xf32> to vector<16xf32>
    %81 = vector.shape_cast %80 : vector<16xf32> to vector<16x1xf32>
    %cst_89 = arith.constant 6.250000e-02 : f32
    %82 = vector.broadcast %cst_89 : f32 to vector<16x1xf32>
    %83 = arith.mulf %81, %82 : vector<16x1xf32>
    %84 = vector.broadcast %83 : vector<16x1xf32> to vector<16x128xf32>
    %85 = arith.subf %77, %84 : vector<16x128xf32>
    %86 = vector.broadcast %0 : vector<1x128xf32> to vector<16x128xf32>
    %87 = arith.mulf %85, %86 : vector<16x128xf32>
    %88 = arith.mulf %87, %87 : vector<16x128xf32>
    %cst_90 = arith.constant dense<0.000000e+00> : vector<16xf32>
    %89 = vector.multi_reduction <add>, %88, %cst_90 [1] : vector<16x128xf32> to vector<16xf32>
    %90 = vector.shape_cast %89 : vector<16xf32> to vector<16x1xf32>
    %cst_91 = arith.constant 6.250000e-02 : f32
    %91 = vector.broadcast %cst_91 : f32 to vector<16x1xf32>
    %92 = arith.mulf %90, %91 : vector<16x1xf32>
    %cst_92 = arith.constant 9.99999974E-6 : f32
    %93 = vector.broadcast %cst_92 : f32 to vector<16x1xf32>
    %94 = arith.addf %92, %93 : vector<16x1xf32>
    %95 = math.rsqrt %94 : vector<16x1xf32>
    %96 = vector.broadcast %95 : vector<16x1xf32> to vector<16x128xf32>
    %97 = arith.mulf %87, %96 : vector<16x128xf32>
    %c0_93 = arith.constant 0 : index
    %c0_94 = arith.constant 0 : index
    %c0_95 = arith.constant 0 : index
    %c8_96 = arith.constant 8 : index
    %98 = vector.load %arg1[%c0_93, %c0_94, %c0_95, %c8_96] : memref<1x1x16x256xbf16, #tpu.memory_space<vmem>>, vector<1x1x16x128xbf16>
    %99 = vector.shape_cast %98 : vector<1x1x16x128xbf16> to vector<16x128xbf16>
    %100 = arith.extf %99 : vector<16x128xbf16> to vector<16x128xf32>
    %101 = arith.addf %97, %100 : vector<16x128xf32>
    %cst_97 = arith.constant 0.000000e+00 : f32
    %102 = vector.broadcast %cst_97 : f32 to vector<16x128xf32>
    %103 = arith.maximumf %101, %102 : vector<16x128xf32>
    %104 = vector.broadcast %0 : vector<1x128xf32> to vector<16x128xf32>
    %105 = arith.mulf %103, %104 : vector<16x128xf32>
    %106 = arith.truncf %105 : vector<16x128xf32> to vector<16x128xbf16>
    %c0_98 = arith.constant 0 : index
    %c0_99 = arith.constant 0 : index
    %c0_100 = arith.constant 0 : index
    %107 = vector.load %arg5[%c0_98, %c0_99, %c0_100] : memref<1x16x128xbf16, #tpu.memory_space<vmem>>, vector<1x16x128xbf16>
    %108 = vector.shape_cast %107 : vector<1x16x128xbf16> to vector<16x128xbf16>
    %109 = vector.shape_cast %106 : vector<16x128xbf16> to vector<1x16x128xbf16>
    tpu.vector_store %arg5[%c0_98, %c0_99, %c0_100], %109 {strides = array<i32>} : memref<1x16x128xbf16, #tpu.memory_space<vmem>>, vector<1x16x128xbf16>,
    return
  }
  func.func @transform_0(%arg0: i32) -> (i32, i32, i32, i32) {
    %c0_i32 = arith.constant 0 : i32
    %c0_i32_0 = arith.constant 0 : i32
    %c0_i32_1 = arith.constant 0 : i32
    %c0_i32_2 = arith.constant 0 : i32
    return %arg0, %c0_i32, %c0_i32_0, %c0_i32_1 : i32, i32, i32, i32
  }
  func.func @transform_1(%arg0: i32) -> (i32, i32) {
    %c0_i32 = arith.constant 0 : i32
    %c0_i32_0 = arith.constant 0 : i32
    %c0_i32_1 = arith.constant 0 : i32
    return %c0_i32, %c0_i32_0 : i32, i32
  }
  func.func @transform_2(%arg0: i32) -> (i32, i32) {
    %c0_i32 = arith.constant 0 : i32
    %c0_i32_0 = arith.constant 0 : i32
    %c0_i32_1 = arith.constant 0 : i32
    return %c0_i32, %c0_i32_0 : i32, i32
  }
  func.func @transform_3(%arg0: i32) -> (i32, i32) {
    %c0_i32 = arith.constant 0 : i32
    %c0_i32_0 = arith.constant 0 : i32
    %c0_i32_1 = arith.constant 0 : i32
    return %c0_i32, %c0_i32_0 : i32, i32
  }
  func.func @transform_4(%arg0: i32) -> (i32, i32, i32) {
    %c0_i32 = arith.constant 0 : i32
    %c0_i32_0 = arith.constant 0 : i32
    %c0_i32_1 = arith.constant 0 : i32
    return %arg0, %c0_i32, %c0_i32_0 : i32, i32, i32
  }
}

</mosaic_0001>

<bundles_post_ra>
// kernel: resnet_backbone_forward.6
= control target key start
LH: loop header
LB: loop body
LE: loop exit
PB: predicated region body
PF: predicated region fallthrough
CT: control target
= control target key end

     0   :  { %s711_s15 = smov 0   ;;  %s778_s0 = inlined_call_operand.vmem [shape: bf16[2,1,8,256], index: 0, kind: input, shape index: {}]   ;;  %s779_s1 = inlined_call_operand.vmem [shape: bf16[8,72], index: 1, kind: input, shape index: {}]   ;;  %s780_s2 = inlined_call_operand.vmem [shape: bf16[8,72], index: 2, kind: input, shape index: {}]   ;;  %s781_s3 = inlined_call_operand.vmem [shape: f32[1,128], index: 3, kind: input, shape index: {}]   ;;  %s782_s4 = inlined_call_operand.vmem [shape: bf16[2,8,128], index: 4, kind: output, shape index: {}]  }
   0x1 LB: > { %s579_s16 = sadd.s32 4294967295, %s670_s15   ;;  %p583_p0 = scmp.ge.s32.totalorder %s670_s15, 1  ;;  %s670_s15 = sphi %s711_s15, %s14_s15  }
   0x2   : > { %p162_p1 = scmp.lt.s32.totalorder %s670_s15, 3 }
   0x4   : > { %p163_p2 = pnand %p583_p0, %p162_p1 }
   0x5   : > { %p187_p3 = scmp.lt.s32.totalorder (!%p163_p2), %s579_s16, 1  ;;  %s672_s21 = smov (!%p163_p2), 104  }
   0x6   : > { %166 = sbr.rel (%p163_p2) target bundleno = 1139 (0x473), region = 36  ;;  %s673_s22 = smov (!%p163_p2), 105  }
   0x7   : > { %s674_s23 = smov (!%p163_p2), 115   ;;  %s675_s24 = smov (!%p163_p2), 106  }
   0x8   : > { %s676_s25 = smov (!%p163_p2), 116   ;;  %s677_s26 = smov (!%p163_p2), 126  }
   0x9   : > { %s678_s27 = smov (!%p163_p2), 117   ;;  %s679_s28 = smov (!%p163_p2), 127  }
   0xa   : > { %s681_s7 = smov (!%p163_p2), 1   ;;  %s682_s8 = smov (!%p163_p2), 11  }
   0xb   : > { %s784_s16 = smov (!%p187_p3, %s579_s16), 1  ;;  %vm241_vm0 = vcmask 941056   ;;  %vm214_vm1 = vcmask 1031168   ;;  %vm268_vm2 = vcmask 850944   ;;  %vm259_vm3 = vcmask 859136   ;;  %s683_s9 = smov 118  }
   0xc   : > { %s623_s17 = sshll.u32 %s784_s16, 3  ;;  %vm250_vm4 = vcmask 867328   ;;  %vm232_vm5 = vcmask 949248   ;;  %vm313_vm6 = vcmask 1043456   ;;  %vm223_vm7 = vcmask 957440   ;;  %s684_s10 = smov 10  }
   0xd   : > { %s191_s20 = scalar_lea.vmem %s778_s0, %s623_s17  ;;  %vm205_vm8 = vcmask 1039360   ;;  %v272_v34 = vld [vmem:[%s779_s1] sm:$0xf]  ;;  %vm309_vm9 = vcmask 588800   ;;  %v680_v39 = vmov 0   ;;  %s685_s11 = smov 12  }
   0xe   : > { %v725_v0 = vld [vmem:[%s191_s20] sm:$0xff]  ;;  %356 = vst [vmem:[#allocation3] sm:$0xff] %v680_v39  ;;  %vm392_vm13 = vcmask 7168   ;;  %vm374_vm14 = vcmask 89088   ;;  %vm411_vm15 = vcmask 965632   ;;  %s586_s14 = sshll.u32 %s784_s16, 2 }
   0xf   : > { %265 = vrot.lane.b32.xlu0 %v725_v0, %s672_s21  ;;  %256 = vrot.lane.b32.xlu1 %v725_v0, %s673_s22  ;;  %v198_v7 = vld [vmem:[%s191_s20] sm:$0xf]  ;;  %357 = vst [vmem:[#allocation3 + $0x8] sm:$0xf] %v680_v39  ;;  %s195_s19 = scalar_lea.vmem %s782_s4, %s586_s14 }
  0x10   : > { %238 = vrot.lane.b32.xlu2 %v725_v0, %s674_s23  ;;  %199 = vst [vmem:[#allocation2] sm:$0xf] %v198_v7  ;;  %v749_v35 = vld [vmem:[%s781_s3] ss:$0 sm:$0xff] }
  0x17   : > { %247 = vrot.lane.b32.xlu0 %v725_v0, %s675_s24  ;;  %229 = vrot.lane.b32.xlu1 %v725_v0, %s676_s25 }
  0x18   : > { %211 = vrot.lane.b32.xlu2 %v725_v0, %s677_s26 }
  0x1f   : > { %220 = vrot.lane.b32.xlu0 %v725_v0, %s678_s27  ;;  %202 = vrot.lane.b32.xlu1 %v725_v0, %s679_s28 }
  0x6a   : > { %v239_v1 = vpop.permute.xlu2 %238 }
  0x6b   : > { %v240_v2 = vrot.slane %v239_v1, 4 }
  0x6d   : > { %v242_v3 = vsel %vm241_vm0, %v239_v1, %v240_v2  ;;  %vm383_vm0 = vcmask 80896  }
  0x6e   : > { %244 = vst [vmem:[#allocation2 + $0x14] sm:$0xf] %v242_v3 }
  0x72   : > { %v212_v4 = vpop.permute.xlu2 %211 }
  0x73   : > { %v213_v5 = vrot.slane %v212_v4, 4 }
  0x75   : > { %v215_v6 = vsel %vm214_vm1, %v212_v4, %v213_v5  ;;  %vm365_vm1 = vcmask 97280  }
  0x76   : > { %217 = vst [vmem:[#allocation2 + $0x8] sm:$0xf] %v215_v6 }
  0x81   : > { %v266_v8 = vpop.permute.xlu0 %265  ;;  %v257_v9 = vpop.permute.xlu1 %256 }
  0x82   : > { %v267_v10 = vrot.slane %v266_v8, 4  ;;  %v258_v11 = vrot.slane %v257_v9, 4 }
  0x84   : > { %v269_v12 = vsel %vm268_vm2, %v266_v8, %v267_v10  ;;  %v260_v13 = vsel %vm259_vm3, %v257_v9, %v258_v11 }
  0x85   : > { %271 = vst [vmem:[#allocation2 + $0x20] sm:$0xf] %v269_v12 }
  0x86   : > { %262 = vst [vmem:[#allocation2 + $0x1c] sm:$0xf] %v260_v13 }
  0x89   : > { %v248_v14 = vpop.permute.xlu0 %247  ;;  %v230_v15 = vpop.permute.xlu1 %229 }
  0x8a   : > { %v249_v16 = vrot.slane %v248_v14, 4  ;;  %v231_v17 = vrot.slane %v230_v15, 4 }
  0x8c   : > { %v251_v18 = vsel %vm250_vm4, %v248_v14, %v249_v16  ;;  %v233_v19 = vsel %vm232_vm5, %v230_v15, %v231_v17  ;;  %v281_v20 = vld [vmem:[#allocation2 + $0x20] sm:$0xf] }
  0x8d   : > { %253 = vst [vmem:[#allocation2 + $0x18] sm:$0xf] %v251_v18  ;;  %v299_v21 = vunpack.c.l.b16 %v281_v20 }
  0x8e   : > { %235 = vst [vmem:[#allocation2 + $0x10] sm:$0xf] %v233_v19 }
  0x8f   : > { %v304_v22 = vpack.c.b16 %v299_v21, %v299_v21 }
  0x91   : > { %v221_v23 = vpop.permute.xlu0 %220  ;;  %v315_v24 = vsel %vm313_vm6, %v304_v22, 0  ;;  %v203_v25 = vpop.permute.xlu1 %202 }
  0x92   : > { %v222_v26 = vrot.slane %v221_v23, 4  ;;  %320 = vmatpush.bf16.msra.mxu0 %v315_v24  ;;  %v204_v27 = vrot.slane %v203_v25, 4 }
  0x94   : > { %v224_v28 = vsel %vm223_vm7, %v221_v23, %v222_v26  ;;  %v206_v29 = vsel %vm205_vm8, %v203_v25, %v204_v27  ;;  %v627_v30 = vld [vmem:[#allocation2 + $0x18] sm:$0xff] }
  0x95   : > { %226 = vst [vmem:[#allocation2 + $0xc] sm:$0xf] %v224_v28  ;;  %v626_v31 = vld [vmem:[#allocation2 + $0x10] sm:$0xff] }
  0x96   : > { %208 = vst [vmem:[#allocation2 + $0x4] sm:$0xf] %v206_v29  ;;  %321 = vmatpush.bf16.msra.mxu0 %v627_v30  ;;  %v431_v30 = vld [vmem:[%s780_s2] sm:$0xf] }
  0x9a   : > { %322 = vmatpush.bf16.msra.mxu0 %v626_v31 }
  0x9c   : > { %v625_v32 = vld [vmem:[#allocation2 + $0x8] sm:$0xff] }
  0x9d   : > { %v624_v33 = vld [vmem:[#allocation2] sm:$0xff] }
  0x9e   : > { %323 = vmatpush.bf16.msra.mxu0 %v625_v32 }
  0xa2   : > { %324 = vmatpush.bf16.msra.mxu0 %v624_v33 }
  0xa5   : > { %603 = vmatmul.msk.bf16.vlgmr.msra.gmra.mxu0 %vm309_vm9, %v272_v34  ;;  %v510_v34 = vunpack.c.l.bf16 %v725_v0 }
 0x122   : > { %v326_v36 = vpop.f32.mrf.mxu0 }
 0x123   : > { %v333_v37 = vmul.f32 %v749_v35, %v326_v36 }
 0x125   : > { %334 = vadd.xlane.f32.xlu2 %v333_v37 }
 0x12a   : > { %v328_v38 = vpop.f32.mrf.mxu0 }
 0x198   : > { %v335_v40 = vpop.xlane.xlu2 %334 }
 0x199   : > { %v336_v41 = vmul.f32 0.015625, %v335_v40 }
 0x19b   : > { %v337_v42 = vsub.f32 %v326_v36, %v336_v41  ;;  %v511_v36 = vunpack.c.h.bf16 %v725_v0 }
 0x19d   : > { %v338_v43 = vmul.f32 %v749_v35, %v337_v42  ;;  %v654_v37 = vpack.i.bf16 %v511_v36, %v510_v34 }
 0x19f   : > { %v339_v44 = vmul.f32 %v338_v43, %v338_v43 }
 0x1a1   : > { %340 = vadd.xlane.f32.xlu0 %v339_v44 }
 0x214   : > { %v341_v45 = vpop.xlane.xlu0 %340 }
 0x215   : > { %v342_v46 = vmul.f32 0.015625, %v341_v45 }
 0x217   : > { %v343_v47 = vadd.f32 1e-05, %v342_v46 }
 0x219   : > { %660 = vrsqrt.f32 %v343_v47  ;;  %vm350_vm11 = vweird.f32 %v343_v47 }
 0x21f   : > { %v661_v48 = vpop.eup %660 }
 0x220   : > { %v345_v49 = vmul.f32 %v661_v48, %v343_v47  ;;  %vm351_vm10 = vweird.f32 %v661_v48 }
 0x221   : > { %vm352_vm12 = vmor %vm350_vm11, %vm351_vm10 }
 0x222   : > { %v346_v50 = vmul.f32 %v661_v48, %v345_v49 }
 0x224   : > { %v347_v51 = vmul.f32 0.5, %v346_v50 }
 0x226   : > { %v348_v52 = vsub.f32 1.5, %v347_v51 }
 0x228   : > { %v349_v53 = vmul.f32 %v661_v48, %v348_v52 }
 0x22a   : > { %v353_v54 = vsel %vm352_vm12, %v661_v48, %v349_v53 }
 0x22b   : > { %v354_v55 = vmul.f32 %v353_v54, %v338_v43 }
 0x22d   : > { %v355_v56 = vmax.f32 %v354_v55, 0.0 }
 0x22f   : > { %v358_v57 = vpack.c.bf16 %v355_v56, %v355_v56 }
 0x231   : > { %359 = vst [vmem:[#allocation3 + $0x4] sm:$0xf] %v358_v57 }
 0x238   : > { %v423_v58 = vld [vmem:[#allocation3 + $0x4] sm:$0xff] }
 0x239   : > { %v387_v59 = vld [vmem:[#allocation3] sm:$0xff]  ;;  %425 = vrot.lane.b32.xlu1 %v423_v58, %s676_s25 }
 0x23a   : > { %v396_v60 = vld [vmem:[#allocation3 + $0x4] sm:$0xf]  ;;  %389 = vrot.lane.b32.xlu2 %v387_v59, %s681_s7  ;;  %371 = vrot.lane.b32.xlu0 %v387_v59, %s682_s8 }
 0x23b   : > { %397 = vst [vmem:[#allocation4 + $0x10] sm:$0xf] %v396_v60 }
 0x241   : > { %408 = vrot.lane.b32.xlu1 %v423_v58, %s683_s9 }
 0x242   : > { %655 = vrot.lane.b32.xlu0 %v654_v37, %s676_s25 }
 0x249   : > { %417 = vrot.lane.b32.xlu1 %v423_v58, %s678_s27 }
 0x251   : > { %400 = vrot.lane.b32.xlu1 %v423_v58, %s679_s28 }
 0x259   : > { %380 = vrot.lane.b32.xlu1 %v387_v59, %s684_s10 }
 0x261   : > { %362 = vrot.lane.b32.xlu1 %v387_v59, %s685_s11 }
 0x294   : > { %v390_v61 = vpop.permute.xlu2 %389 }
 0x295   : > { %v391_v62 = vrot.slane %v390_v61, 4 }
 0x297   : > { %v393_v63 = vsel %vm392_vm13, %v390_v61, %v391_v62 }
 0x298   : > { %395 = vst [vmem:[#allocation4 + $0xc] sm:$0xf] %v393_v63 }
 0x2ab   : > { %v426_v1 = vpop.permute.xlu1 %425 }
 0x2ac   : > { %v427_v2 = vrot.slane %v426_v1, 4  ;;  %v372_v3 = vpop.permute.xlu0 %371 }
 0x2ad   : > { %v373_v4 = vrot.slane %v372_v3, 4 }
 0x2ae   : > { %v428_v5 = vsel %vm232_vm5, %v426_v1, %v427_v2 }
 0x2af   : > { %430 = vst [vmem:[#allocation4 + $0x20] sm:$0xf] %v428_v5  ;;  %v375_v6 = vsel %vm374_vm14, %v372_v3, %v373_v4 }
 0x2b0   : > { %377 = vst [vmem:[#allocation4 + $0x4] sm:$0xf] %v375_v6 }
 0x2b3   : > { %v409_v7 = vpop.permute.xlu1 %408 }
 0x2b4   : > { %v410_v8 = vrot.slane %v409_v7, 4  ;;  %v656_v49 = vpop.permute.xlu0 %655 }
 0x2b5   : > { %v658_v51 = vunpack.i.h.bf16 %v656_v49  ;;  %v657_v52 = vunpack.i.l.bf16 %v656_v49 }
 0x2b6   : > { %v412_v9 = vsel %vm411_vm15, %v409_v7, %v410_v8  ;;  %v440_v10 = vld [vmem:[#allocation4 + $0x20] sm:$0xf] }
 0x2b7   : > { %414 = vst [vmem:[#allocation4 + $0x18] sm:$0xf] %v412_v9  ;;  %v458_v11 = vunpack.c.l.b16 %v440_v10  ;;  %v519_v55 = vsel %vm232_vm5, %v657_v52, %v658_v51 }
 0x2b9   : > { %v463_v12 = vpack.c.b16 %v458_v11, %v458_v11 }
 0x2bb   : > { %v418_v13 = vpop.permute.xlu1 %417  ;;  %v472_v14 = vsel %vm313_vm6, %v463_v12, 0 }
 0x2bc   : > { %v419_v15 = vrot.slane %v418_v13, 4  ;;  %477 = vmatpush.bf16.msra.mxu1 %v472_v14 }
 0x2be   : > { %v420_v16 = vsel %vm223_vm7, %v418_v13, %v419_v15 }
 0x2bf   : > { %422 = vst [vmem:[#allocation4 + $0x1c] sm:$0xf] %v420_v16 }
 0x2c3   : > { %v401_v17 = vpop.permute.xlu1 %400 }
 0x2c4   : > { %v402_v18 = vrot.slane %v401_v17, 4 }
 0x2c6   : > { %v403_v19 = vsel %vm205_vm8, %v401_v17, %v402_v18  ;;  %v631_v20 = vld [vmem:[#allocation4 + $0x18] sm:$0xff] }
 0x2c7   : > { %405 = vst [vmem:[#allocation4 + $0x14] sm:$0xf] %v403_v19  ;;  %478 = vmatpush.bf16.msra.mxu1 %v631_v20 }
 0x2cb   : > { %v381_v21 = vpop.permute.xlu1 %380 }
 0x2cc   : > { %v382_v22 = vrot.slane %v381_v21, 4 }
 0x2ce   : > { %v384_v23 = vsel %vm383_vm0, %v381_v21, %v382_v22  ;;  %v630_v24 = vld [vmem:[#allocation4 + $0x10] sm:$0xff] }
 0x2cf   : > { %386 = vst [vmem:[#allocation4 + $0x8] sm:$0xf] %v384_v23  ;;  %479 = vmatpush.bf16.msra.mxu1 %v630_v24 }
 0x2d3   : > { %v363_v25 = vpop.permute.xlu1 %362 }
 0x2d4   : > { %v364_v26 = vrot.slane %v363_v25, 4 }
 0x2d6   : > { %v366_v27 = vsel %vm365_vm1, %v363_v25, %v364_v26  ;;  %v629_v28 = vld [vmem:[#allocation4 + $0x8] sm:$0xff] }
 0x2d7   : > { %368 = vst [vmem:[#allocation4] sm:$0xf] %v366_v27  ;;  %480 = vmatpush.bf16.msra.mxu1 %v629_v28 }
 0x2de   : > { %v628_v29 = vld [vmem:[#allocation4] sm:$0xff] }
 0x2df   : > { %481 = vmatpush.bf16.msra.mxu1 %v628_v29 }
 0x2e2   : > { %620 = vmatmul.msk.bf16.vlgmr.msra.gmra.mxu1 %vm309_vm9, %v431_v30 }
 0x35f   : > { %v483_v31 = vpop.f32.mrf.mxu1 }
 0x360   : > { %v487_v32 = vmul.f32 %v749_v35, %v483_v31 }
 0x362   : > { %488 = vadd.xlane.f32.xlu1 %v487_v32 }
 0x367   : > { %v485_v33 = vpop.f32.mrf.mxu1 }
 0x3d5   : > { %v489_v38 = vpop.xlane.xlu1 %488 }
 0x3d6   : > { %v490_v39 = vmul.f32 0.015625, %v489_v38 }
 0x3d8   : > { %v491_v40 = vsub.f32 %v483_v31, %v490_v39 }
 0x3da   : > { %v492_v41 = vmul.f32 %v749_v35, %v491_v40 }
 0x3dc   : > { %v493_v42 = vmul.f32 %v492_v41, %v492_v41 }
 0x3de   : > { %494 = vadd.xlane.f32.xlu2 %v493_v42 }
 0x451   : > { %v495_v43 = vpop.xlane.xlu2 %494 }
 0x452   : > { %v496_v44 = vmul.f32 0.015625, %v495_v43 }
 0x454   : > { %v497_v45 = vadd.f32 1e-05, %v496_v44 }
 0x456   : > { %662 = vrsqrt.f32 %v497_v45  ;;  %vm504_vm3 = vweird.f32 %v497_v45 }
 0x45c   : > { %v663_v46 = vpop.eup %662 }
 0x45d   : > { %v499_v47 = vmul.f32 %v663_v46, %v497_v45  ;;  %vm505_vm2 = vweird.f32 %v663_v46 }
 0x45e   : > { %vm506_vm4 = vmor %vm504_vm3, %vm505_vm2 }
 0x45f   : > { %v500_v48 = vmul.f32 %v663_v46, %v499_v47 }
 0x461   : > { %v501_v0 = vmul.f32 0.5, %v500_v48 }
 0x463   : > { %v502_v50 = vsub.f32 1.5, %v501_v0 }
 0x465   : > { %v503_v53 = vmul.f32 %v663_v46, %v502_v50 }
 0x467   : > { %v507_v54 = vsel %vm506_vm4, %v663_v46, %v503_v53 }
 0x468   : > { %v508_v56 = vmul.f32 %v507_v54, %v492_v41 }
 0x46a   : > { %v521_v57 = vadd.f32 %v519_v55, %v508_v56 }
 0x46c   : > { %v522_v58 = vmax.f32 %v521_v57, 0.0 }
 0x46e   : > { %v523_v59 = vmul.f32 %v749_v35, %v522_v58 }
 0x470   : > { %v524_v60 = vpack.c.bf16 %v523_v59, %v523_v59 }
 0x472   : > { %525 = vst [vmem:[%s195_s19] sm:$0xf] %v524_v60 }
 0x473 PF: > { %s14_s15 = sadd.s32 1, %s670_s15  }
 0x474   : > { %p11_p4 = scmp.ge.s32.totalorder %s14_s15, 4  }
 0x476   :  { %13 = sbr.rel (!%p11_p4) target bundleno = 1 (0x1), region = 66 }

// kernel: resnet_backbone_forward.8
= control target key start
LH: loop header
LB: loop body
LE: loop exit
PB: predicated region body
PF: predicated region fallthrough
CT: control target
= control target key end

     0   :  { %s1026_s18 = smov 0   ;;  %s1142_s0 = inlined_call_operand.vmem [shape: bf16[2,4,8,256], index: 0, kind: input, shape index: {}]   ;;  %s1143_s1 = inlined_call_operand.vmem [shape: bf16[16,72], index: 1, kind: input, shape index: {}]   ;;  %s1144_s2 = inlined_call_operand.vmem [shape: bf16[16,144], index: 2, kind: input, shape index: {}]   ;;  %s1145_s3 = inlined_call_operand.vmem [shape: bf16[16,8], index: 3, kind: input, shape index: {}]   ;;  %s1146_s4 = inlined_call_operand.vmem [shape: f32[1,128], index: 4, kind: input, shape index: {}]   ;;  %s1147_s5 = inlined_call_operand.vmem [shape: bf16[2,16,128], index: 5, kind: output, shape index: {}]  }
   0x1 LB: > { %s837_s19 = sadd.s32 4294967295, %s985_s18   ;;  %p841_p0 = scmp.ge.s32.totalorder %s985_s18, 1  ;;  %s985_s18 = sphi %s1026_s18, %s15_s18  }
   0x2   : > { %p187_p1 = scmp.lt.s32.totalorder %s985_s18, 3 }
   0x4   : > { %p188_p2 = pnand %p841_p0, %p187_p1 }
   0x5   : > { %p215_p3 = scmp.lt.s32.totalorder (!%p188_p2), %s837_s19, 1  ;;  %s987_s24 = smov (!%p188_p2), 120  }
   0x6   : > { %191 = sbr.rel (%p188_p2) target bundleno = 1151 (0x47f), region = 40  ;;  %s988_s25 = smov (!%p188_p2), 121  }
   0x7   : > { %s989_s26 = smov (!%p188_p2), 127   ;;  %s991_s6 = smov (!%p188_p2), 122  }
   0x8   : > { %s992_s7 = smov (!%p188_p2), 1   ;;  %s993_s10 = smov (!%p188_p2), 6  }
   0x9   : > { %s994_s11 = smov (!%p188_p2), 7   ;;  %s995_s12 = smov (!%p188_p2), 8  }
   0xb   : > { %s1149_s19 = smov (!%p215_p3, %s837_s19), 1  ;;  %vm237_vm0 = vcmask 1039360   ;;  %vm277_vm1 = vcmask 982016   ;;  %vm260_vm2 = vcmask 990208   ;;  %vm328_vm3 = vcmask 1043456   ;;  %v927_v30 = vld [vmem:[%s1143_s1] sm:$0xff] }
   0xc   : > { %s925_s20 = sshll.u32 %s1149_s19, 5  ;;  %vm324_vm4 = vcmask 588800   ;;  %v1066_v31 = vld [vmem:[%s1146_s4] ss:$0 sm:$0xff]  ;;  %v990_v36 = vmov 0   ;;  %vm413_vm11 = vcmask 64512  }
   0xd   : > { %s1040_s23 = scalar_lea.vmem %s1142_s0, %s925_s20  ;;  %395 = vst [vmem:[#allocation3] sm:$0xff] %v990_v36  ;;  %vm501_vm12 = vcmask 998400   ;;  %vm464_vm13 = vcmask 7168   ;;  %vm430_vm14 = vcmask 56320   ;;  %vm447_vm15 = vcmask 48128  }
   0xe   : > { %v272_v0 = vld [vmem:[%s1040_s23] sm:$0xff]  ;;  %v850_v1 = vld [vmem:[%s1040_s23 + $0x8] sm:$0xff]  ;;  %v849_v2 = vld [vmem:[%s1040_s23 + $0x10] sm:$0xff]  ;;  %396 = vst [vmem:[#allocation3 + $0x8] sm:$0xf] %v990_v36 }
   0xf   : > { %274 = vrot.lane.b32.xlu0 %v272_v0, %s987_s24  ;;  %266 = vrot.lane.b32.xlu1 %v850_v1, %s988_s25  ;;  %v848_v4 = vld [vmem:[%s1040_s23 + $0x18] sm:$0xf]  ;;  %v847_v7 = vld [vmem:[%s1040_s23 + $0x10] sm:$0xf]  ;;  %398 = vst [vmem:[#allocation3 + $0x14] sm:$0xf] %v990_v36 }
  0x10   : > { %234 = vrot.lane.b32.xlu2 %v272_v0, %s989_s26  ;;  %246 = vst [vmem:[#allocation2 + $0x10] sm:$0xf] %v848_v4  ;;  %v227_v8 = vld [vmem:[%s1040_s23] sm:$0xf]  ;;  %v846_v9 = vld [vmem:[%s1040_s23 + $0x8] sm:$0xf] }
  0x11   : > { %243 = vst [vmem:[#allocation2 + $0xc] sm:$0xf] %v847_v7 }
  0x12   : > { %228 = vst [vmem:[#allocation2] sm:$0xf] %v227_v8 }
  0x13   : > { %231 = vst [vmem:[#allocation2 + $0x4] sm:$0xf] %v846_v9 }
  0x14   : > { %397 = vst [vmem:[#allocation3 + $0xc] sm:$0xff] %v990_v36 }
  0x17   : > { %257 = vrot.lane.b32.xlu0 %v272_v0, %s988_s25  ;;  %249 = vrot.lane.b32.xlu1 %v849_v2, %s989_s26 }
  0x1a   : > { %v928_v29 = vld [vmem:[#allocation2] sm:$0xff] }
  0x6a   : > { %v235_v3 = vpop.permute.xlu2 %234 }
  0x6b   : > { %v236_v5 = vrot.slane %v235_v3, 4 }
  0x6d   : > { %v238_v6 = vsel %vm237_vm0, %v235_v3, %v236_v5 }
  0x6e   : > { %240 = vst [vmem:[#allocation2 + $0x8] sm:$0xf] %v238_v6 }
  0x75   : > { %v929_v28 = vld [vmem:[#allocation2 + $0x8] sm:$0xff] }
  0x81   : > { %v275_v10 = vpop.permute.xlu0 %274  ;;  %v267_v11 = vpop.permute.xlu1 %266 }
  0x82   : > { %v276_v12 = vrot.slane %v275_v10, 4  ;;  %v268_v13 = vrot.slane %v267_v11, 4 }
  0x84   : > { %v278_v14 = vsel %vm277_vm1, %v275_v10, %v276_v12  ;;  %v269_v15 = vsel %vm260_vm2, %v267_v11, %v268_v13 }
  0x85   : > { %280 = vst [vmem:[#allocation2 + $0x20] sm:$0xf] %v278_v14  ;;  %v917_v14 = vld [vmem:[%s1040_s23 + $0x18] sm:$0xf]  ;;  %s926_s23 = sshll.u32 %s1149_s19, 3 }
  0x86   : > { %271 = vst [vmem:[#allocation2 + $0x1c] sm:$0xf] %v269_v15  ;;  %v712_v15 = vsel %vm328_vm3, %v917_v14, 0 }
  0x87   : > { %721 = vmatpush.bf16.msra.mxu3 %v712_v15 }
  0x89   : > { %v258_v16 = vpop.permute.xlu0 %257  ;;  %v250_v17 = vpop.permute.xlu1 %249 }
  0x8a   : > { %v259_v18 = vrot.slane %v258_v16, 4  ;;  %v251_v19 = vrot.slane %v250_v17, 4 }
  0x8c   : > { %v261_v20 = vsel %vm260_vm2, %v258_v16, %v259_v18  ;;  %v252_v21 = vsel %vm237_vm0, %v250_v17, %v251_v19  ;;  %v291_v22 = vld [vmem:[#allocation2 + $0x20] sm:$0xf] }
  0x8d   : > { %263 = vst [vmem:[#allocation2 + $0x18] sm:$0xf] %v261_v20  ;;  %v314_v23 = vunpack.c.l.b16 %v291_v22  ;;  %v943_v16 = vld [vmem:[%s1145_s3] sm:$0xff] }
  0x8e   : > { %254 = vst [vmem:[#allocation2 + $0x14] sm:$0xf] %v252_v21  ;;  %922 = vmatmul.msk.bf16.vlgmr.msra.gmra.mxu3 %vm413_vm11, %v943_v16  ;;  %v874_v16 = vld [vmem:[%s1144_s2] sm:$0xf] }
  0x8f   : > { %v319_v24 = vpack.c.b16 %v314_v23, %v314_v23 }
  0x91   : > { %v330_v25 = vsel %vm328_vm3, %v319_v24, 0 }
  0x92   : > { %335 = vmatpush.bf16.msra.mxu0 %v330_v25 }
  0x94   : > { %v931_v26 = vld [vmem:[#allocation2 + $0x18] sm:$0xff] }
  0x95   : > { %v930_v27 = vld [vmem:[#allocation2 + $0x10] sm:$0xff] }
  0x96   : > { %336 = vmatpush.bf16.msra.mxu0 %v931_v26 }
  0x9a   : > { %337 = vmatpush.bf16.msra.mxu0 %v930_v27 }
  0x9e   : > { %338 = vmatpush.bf16.msra.mxu0 %v929_v28 }
  0xa2   : > { %339 = vmatpush.bf16.msra.mxu0 %v928_v29 }
  0xa5   : > { %871 = vmatmul.msk.bf16.vlgmr.msra.gmra.mxu0 %vm324_vm4, %v927_v30 }
 0x122   : > { %v341_v32 = vpop.f32.mrf.mxu0 }
 0x123   : > { %v349_v33 = vmul.f32 %v1066_v31, %v341_v32 }
 0x125   : > { %351 = vadd.xlane.f32.xlu2 %v349_v33 }
 0x12a   : > { %v343_v34 = vpop.f32.mrf.mxu0 }
 0x12b   : > { %v350_v35 = vmul.f32 %v1066_v31, %v343_v34 }
 0x12d   : > { %353 = vadd.xlane.f32.xlu0 %v350_v35 }
 0x198   : > { %v352_v37 = vpop.xlane.xlu2 %351 }
 0x199   : > { %v355_v38 = vmul.f32 0.0625, %v352_v37 }
 0x19b   : > { %v357_v39 = vsub.f32 %v341_v32, %v355_v38 }
 0x19d   : > { %v359_v40 = vmul.f32 %v1066_v31, %v357_v39 }
 0x19f   : > { %v361_v41 = vmul.f32 %v359_v40, %v359_v40 }
 0x1a0   : > { %v354_v42 = vpop.xlane.xlu0 %353 }
 0x1a1   : > { %v356_v43 = vmul.f32 0.0625, %v354_v42  ;;  %363 = vadd.xlane.f32.xlu1 %v361_v41 }
 0x1a3   : > { %v358_v44 = vsub.f32 %v343_v34, %v356_v43 }
 0x1a5   : > { %v360_v45 = vmul.f32 %v1066_v31, %v358_v44 }
 0x1a7   : > { %v362_v46 = vmul.f32 %v360_v45, %v360_v45 }
 0x1a9   : > { %365 = vadd.xlane.f32.xlu2 %v362_v46 }
 0x214   : > { %v364_v47 = vpop.xlane.xlu1 %363 }
 0x215   : > { %v367_v48 = vmul.f32 0.0625, %v364_v47 }
 0x217   : > { %v369_v49 = vadd.f32 1e-05, %v367_v48 }
 0x219   : > { %967 = vrsqrt.f32 %v369_v49  ;;  %vm377_vm6 = vweird.f32 %v369_v49 }
 0x21c   : > { %v366_v50 = vpop.xlane.xlu2 %365 }
 0x21d   : > { %v368_v51 = vmul.f32 0.0625, %v366_v50 }
 0x21f   : > { %v968_v52 = vpop.eup %967  ;;  %v370_v53 = vadd.f32 1e-05, %v368_v51 }
 0x220   : > { %v372_v54 = vmul.f32 %v968_v52, %v369_v49  ;;  %vm378_vm5 = vweird.f32 %v968_v52 }
 0x221   : > { %969 = vrsqrt.f32 %v370_v53  ;;  %vm379_vm7 = vmor %vm377_vm6, %vm378_vm5  ;;  %vm387_vm9 = vweird.f32 %v370_v53 }
 0x222   : > { %v373_v55 = vmul.f32 %v968_v52, %v372_v54 }
 0x224   : > { %v374_v56 = vmul.f32 0.5, %v373_v55 }
 0x226   : > { %v375_v57 = vsub.f32 1.5, %v374_v56 }
 0x227   : > { %v970_v58 = vpop.eup %969 }
 0x228   : > { %v376_v59 = vmul.f32 %v968_v52, %v375_v57  ;;  %v382_v60 = vmul.f32 %v970_v58, %v370_v53  ;;  %vm388_vm8 = vweird.f32 %v970_v58 }
 0x229   : > { %vm389_vm10 = vmor %vm387_vm9, %vm388_vm8 }
 0x22a   : > { %v380_v61 = vsel %vm379_vm7, %v968_v52, %v376_v59  ;;  %v383_v62 = vmul.f32 %v970_v58, %v382_v60  ;;  %v723_v60 = vpop.f32.mrf.mxu3 }
 0x22b   : > { %v391_v63 = vmul.f32 %v380_v61, %v359_v40  ;;  %v728_v61 = vmul.f32 %v1066_v31, %v723_v60 }
 0x22c   : > { %v384_v0 = vmul.f32 0.5, %v383_v62 }
 0x22d   : > { %v393_v1 = vmax.f32 %v391_v63, 0.0 }
 0x22e   : > { %v385_v2 = vsub.f32 1.5, %v384_v0 }
 0x22f   : > { %v399_v3 = vpack.c.bf16 %v393_v1, %v393_v1 }
 0x230   : > { %v386_v4 = vmul.f32 %v970_v58, %v385_v2 }
 0x231   : > { %401 = vst [vmem:[#allocation3 + $0x4] sm:$0xf] %v399_v3  ;;  %v932_v3 = vld [vmem:[%s1144_s2 + $0x4] sm:$0xf] }
 0x232   : > { %v390_v5 = vsel %vm389_vm10, %v970_v58, %v386_v4  ;;  %v876_v4 = vld [vmem:[%s1144_s2 + $0x8] sm:$0xf0] }
 0x233   : > { %v392_v6 = vmul.f32 %v390_v5, %v360_v45 }
 0x235   : > { %v394_v7 = vmax.f32 %v392_v6, 0.0 }
 0x237   : > { %v400_v8 = vpack.c.bf16 %v394_v7, %v394_v7 }
 0x238   : > { %v491_v9 = vld [vmem:[#allocation3 + $0x4] sm:$0xff] }
 0x239   : > { %v454_v10 = vld [vmem:[#allocation3] sm:$0xff]  ;;  %402 = vst [vmem:[#allocation3 + $0x10] sm:$0xf] %v400_v8  ;;  %495 = vrot.lane.b32.xlu1 %v491_v9, %s991_s6  ;;  %512 = vrot.lane.b32.xlu2 %v491_v9, %s988_s25 }
 0x23a   : > { %v471_v11 = vld [vmem:[#allocation3 + $0x4] sm:$0xf]  ;;  %458 = vrot.lane.b32.xlu0 %v454_v10, %s992_s7 }
 0x23b   : > { %473 = vst [vmem:[#allocation4 + $0x20] sm:$0xf] %v471_v11 }
 0x240   : > { %v509_v12 = vld [vmem:[#allocation3 + $0x10] sm:$0xff] }
 0x241   : > { %v472_v13 = vld [vmem:[#allocation3 + $0x10] sm:$0xf]  ;;  %481 = vrot.lane.b32.xlu1 %v509_v12, %s989_s26  ;;  %479 = vrot.lane.b32.xlu2 %v491_v9, %s989_s26  ;;  %s224_s26 = scalar_lea.vmem %s1147_s5, %s926_s23 }
 0x242   : > { %514 = vrot.lane.b32.xlu0 %v509_v12, %s988_s25  ;;  %474 = vst [vmem:[#allocation4 + $0x24] sm:$0xf] %v472_v13  ;;  %v455_v17 = vld [vmem:[#allocation3 + $0xc] sm:$0xff] }
 0x249   : > { %441 = vrot.lane.b32.xlu1 %v454_v10, %s993_s10  ;;  %528 = vrot.lane.b32.xlu2 %v491_v9, %s987_s24  ;;  %v938_v8 = vld [vmem:[#allocation4 + $0x20] sm:$0xff]  ;;  %v879_v9 = vor.u32 %v932_v3, %v876_v4 }
 0x24a   : > { %497 = vrot.lane.b32.xlu0 %v509_v12, %s991_s6 }
 0x251   : > { %530 = vrot.lane.b32.xlu1 %v509_v12, %s987_s24  ;;  %460 = vrot.lane.b32.xlu2 %v455_v17, %s992_s7 }
 0x252   : > { %424 = vrot.lane.b32.xlu0 %v454_v10, %s994_s11 }
 0x259   : > { %407 = vrot.lane.b32.xlu1 %v454_v10, %s995_s12  ;;  %426 = vrot.lane.b32.xlu2 %v455_v17, %s994_s11 }
 0x25a   : > { %443 = vrot.lane.b32.xlu0 %v455_v17, %s993_s10 }
 0x262   : > { %409 = vrot.lane.b32.xlu0 %v455_v17, %s995_s12  ;;  %v933_v17 = vld [vmem:[%s1144_s2 + $0x4] sm:$0xf0] }
 0x28c   : > { %730 = vadd.xlane.f32.xlu0 %v728_v61 }
 0x293   : > { %v513_v18 = vpop.permute.xlu2 %512 }
 0x294   : > { %v516_v19 = vrot.slane %v513_v18, 4 }
 0x296   : > { %v518_v20 = vsel %vm260_vm2, %v513_v18, %v516_v19  ;;  %v875_v19 = vor.u32 %v933_v17, %v874_v16 }
 0x297   : > { %522 = vst [vmem:[#allocation4 + $0x38] sm:$0xf] %v518_v20 }
 0x29b   : > { %v480_v21 = vpop.permute.xlu2 %479 }
 0x29c   : > { %v483_v22 = vrot.slane %v480_v21, 4 }
 0x29e   : > { %v485_v23 = vsel %vm237_vm0, %v480_v21, %v483_v22 }
 0x29f   : > { %489 = vst [vmem:[#allocation4 + $0x28] sm:$0xf] %v485_v23 }
 0x2a3   : > { %v529_v24 = vpop.permute.xlu2 %528 }
 0x2a4   : > { %v532_v25 = vrot.slane %v529_v24, 4 }
 0x2a6   : > { %v534_v26 = vsel %vm277_vm1, %v529_v24, %v532_v25 }
 0x2a7   : > { %538 = vst [vmem:[#allocation4 + $0x40] sm:$0xf] %v534_v26  ;;  %v725_v26 = vpop.f32.mrf.mxu3 }
 0x2ab   : > { %v496_v27 = vpop.permute.xlu1 %495  ;;  %v461_v30 = vpop.permute.xlu2 %460 }
 0x2ac   : > { %v459_v28 = vpop.permute.xlu0 %458  ;;  %v499_v29 = vrot.slane %v496_v27, 4  ;;  %v463_v33 = vrot.slane %v461_v30, 4 }
 0x2ad   : > { %v462_v32 = vrot.slane %v459_v28, 4 }
 0x2ae   : > { %v502_v34 = vsel %vm501_vm12, %v496_v27, %v499_v29  ;;  %v466_v36 = vsel %vm464_vm13, %v461_v30, %v463_v33 }
 0x2af   : > { %v465_v35 = vsel %vm464_vm13, %v459_v28, %v462_v32  ;;  %506 = vst [vmem:[#allocation4 + $0x30] sm:$0xf] %v502_v34  ;;  %v729_v32 = vmul.f32 %v1066_v31, %v725_v26 }
 0x2b0   : > { %470 = vst [vmem:[#allocation4 + $0x1c] sm:$0xf] %v466_v36 }
 0x2b1   : > { %469 = vst [vmem:[#allocation4 + $0x18] sm:$0xf] %v465_v35 }
 0x2b3   : > { %v482_v37 = vpop.permute.xlu1 %481  ;;  %v427_v40 = vpop.permute.xlu2 %426 }
 0x2b4   : > { %v515_v38 = vpop.permute.xlu0 %514  ;;  %v484_v39 = vrot.slane %v482_v37, 4  ;;  %v429_v42 = vrot.slane %v427_v40, 4 }
 0x2b5   : > { %v517_v41 = vrot.slane %v515_v38, 4 }
 0x2b6   : > { %v486_v43 = vsel %vm237_vm0, %v482_v37, %v484_v39  ;;  %v432_v45 = vsel %vm430_vm14, %v427_v40, %v429_v42  ;;  %vm623_vm0 = vcmask 130048  }
 0x2b7   : > { %v519_v44 = vsel %vm260_vm2, %v515_v38, %v517_v41  ;;  %490 = vst [vmem:[#allocation4 + $0x2c] sm:$0xf] %v486_v43 }
 0x2b8   : > { %436 = vst [vmem:[#allocation4 + $0xc] sm:$0xf] %v432_v45  ;;  %v937_v11 = vld [vmem:[#allocation4 + $0x18] sm:$0xff] }
 0x2b9   : > { %523 = vst [vmem:[#allocation4 + $0x3c] sm:$0xf] %v519_v44 }
 0x2bb   : > { %v442_v46 = vpop.permute.xlu1 %441 }
 0x2bc   : > { %v498_v47 = vpop.permute.xlu0 %497  ;;  %v445_v48 = vrot.slane %v442_v46, 4 }
 0x2bd   : > { %v500_v49 = vrot.slane %v498_v47, 4 }
 0x2be   : > { %v448_v50 = vsel %vm447_vm15, %v442_v46, %v445_v48  ;;  %v939_v0 = vld [vmem:[#allocation4 + $0x28] sm:$0xff] }
 0x2bf   : > { %v503_v51 = vsel %vm501_vm12, %v498_v47, %v500_v49  ;;  %452 = vst [vmem:[#allocation4 + $0x10] sm:$0xf] %v448_v50 }
 0x2c0   : > { %507 = vst [vmem:[#allocation4 + $0x34] sm:$0xf] %v503_v51  ;;  %v941_v52 = vld [vmem:[#allocation4 + $0x38] sm:$0xff] }
 0x2c1   : > { %627 = vmatpush.bf16.msra.mxu1 %v941_v52 }
 0x2c3   : > { %v531_v53 = vpop.permute.xlu1 %530 }
 0x2c4   : > { %v425_v54 = vpop.permute.xlu0 %424  ;;  %v533_v55 = vrot.slane %v531_v53, 4 }
 0x2c5   : > { %v428_v56 = vrot.slane %v425_v54, 4 }
 0x2c6   : > { %v535_v57 = vsel %vm277_vm1, %v531_v53, %v533_v55 }
 0x2c7   : > { %v431_v58 = vsel %vm430_vm14, %v425_v54, %v428_v56  ;;  %539 = vst [vmem:[#allocation4 + $0x44] sm:$0xf] %v535_v57  ;;  %v940_v59 = vld [vmem:[#allocation4 + $0x30] sm:$0xff] }
 0x2c8   : > { %435 = vst [vmem:[#allocation4 + $0x8] sm:$0xf] %v431_v58  ;;  %628 = vmatpush.bf16.msra.mxu1 %v940_v59 }
 0x2cb   : > { %v408_v62 = vpop.permute.xlu1 %407 }
 0x2cc   : > { %v444_v63 = vpop.permute.xlu0 %443  ;;  %v411_v1 = vrot.slane %v408_v62, 4  ;;  %629 = vmatpush.bf16.msra.mxu1 %v939_v0 }
 0x2cd   : > { %v446_v2 = vrot.slane %v444_v63, 4 }
 0x2ce   : > { %v414_v5 = vsel %vm413_vm11, %v408_v62, %v411_v1  ;;  %v942_v7 = vld [vmem:[#allocation4 + $0x40] sm:$0xff] }
 0x2cf   : > { %v449_v6 = vsel %vm447_vm15, %v444_v63, %v446_v2  ;;  %418 = vst [vmem:[#allocation4] sm:$0xf] %v414_v5  ;;  %648 = vmatpush.bf16.msra.mxu2 %v942_v7  ;;  %v935_v15 = vld [vmem:[#allocation4 + $0x8] sm:$0xff] }
 0x2d0   : > { %453 = vst [vmem:[#allocation4 + $0x14] sm:$0xf] %v449_v6  ;;  %630 = vmatpush.bf16.msra.mxu1 %v938_v8 }
 0x2d2   : > { %916 = vmatmul.msk.bf16.vlgmr.msra.gmra.mxu2 %vm623_vm0, %v879_v9 }
 0x2d4   : > { %v410_v10 = vpop.permute.xlu0 %409  ;;  %631 = vmatpush.bf16.msra.mxu1 %v937_v11 }
 0x2d5   : > { %v412_v12 = vrot.slane %v410_v10, 4 }
 0x2d7   : > { %v415_v13 = vsel %vm413_vm11, %v410_v10, %v412_v12  ;;  %v936_v14 = vld [vmem:[#allocation4 + $0x10] sm:$0xff] }
 0x2d8   : > { %419 = vst [vmem:[#allocation4 + $0x4] sm:$0xf] %v415_v13  ;;  %632 = vmatpush.bf16.msra.mxu1 %v936_v14 }
 0x2dc   : > { %633 = vmatpush.bf16.msra.mxu1 %v935_v15 }
 0x2df   : > { %v934_v18 = vld [vmem:[#allocation4] sm:$0xff] }
 0x2e0   : > { %634 = vmatpush.bf16.msra.mxu1 %v934_v18 }
 0x2e3   : > { %635 = vmatmul.bf16.vlgmr.msra.gmra.mxu1 %v875_v19 }
 0x2ff   : > { %v731_v24 = vpop.xlane.xlu0 %730 }
 0x300   : > { %v734_v25 = vmul.f32 0.0625, %v731_v24 }
 0x302   : > { %v736_v30 = vsub.f32 %v723_v60, %v734_v25 }
 0x304   : > { %v1115_v34 = vmul.f32 %v1066_v31, %v736_v30 }
 0x306   : > { %v740_v35 = vmul.f32 %v1115_v34, %v1115_v34 }
 0x355   : > { %v650_v20 = vpop.f32.mrf.mxu2 }
 0x35d   : > { %v652_v27 = vpop.f32.mrf.mxu2 }
 0x360   : > { %v636_v21 = vpop.f32.mrf.mxu1 }
 0x361   : > { %v651_v22 = vadd.f32 %v650_v20, %v636_v21 }
 0x363   : > { %v655_v23 = vmul.f32 %v1066_v31, %v651_v22 }
 0x365   : > { %657 = vadd.xlane.f32.xlu2 %v655_v23 }
 0x368   : > { %v638_v28 = vpop.f32.mrf.mxu1 }
 0x369   : > { %v653_v29 = vadd.f32 %v652_v27, %v638_v28 }
 0x36b   : > { %v656_v33 = vmul.f32 %v1066_v31, %v653_v29 }
 0x36d   : > { %732 = vadd.xlane.f32.xlu2 %v729_v32  ;;  %659 = vadd.xlane.f32.xlu1 %v656_v33 }
 0x375   : > { %742 = vadd.xlane.f32.xlu2 %v740_v35 }
 0x3d8   : > { %v658_v36 = vpop.xlane.xlu2 %657 }
 0x3d9   : > { %v661_v37 = vmul.f32 0.0625, %v658_v36 }
 0x3db   : > { %v663_v38 = vsub.f32 %v651_v22, %v661_v37 }
 0x3dd   : > { %v665_v39 = vmul.f32 %v1066_v31, %v663_v38 }
 0x3df   : > { %v667_v40 = vmul.f32 %v665_v39, %v665_v39 }
 0x3e0   : > { %v733_v41 = vpop.xlane.xlu2 %732  ;;  %v660_v42 = vpop.xlane.xlu1 %659 }
 0x3e1   : > { %v735_v43 = vmul.f32 0.0625, %v733_v41  ;;  %v662_v44 = vmul.f32 0.0625, %v660_v42  ;;  %669 = vadd.xlane.f32.xlu1 %v667_v40 }
 0x3e3   : > { %v737_v45 = vsub.f32 %v725_v26, %v735_v43  ;;  %v664_v46 = vsub.f32 %v653_v29, %v662_v44 }
 0x3e5   : > { %v1121_v47 = vmul.f32 %v1066_v31, %v737_v45  ;;  %v1124_v48 = vmul.f32 %v1066_v31, %v664_v46 }
 0x3e7   : > { %v741_v49 = vmul.f32 %v1121_v47, %v1121_v47  ;;  %v668_v50 = vmul.f32 %v1124_v48, %v1124_v48 }
 0x3e8   : > { %v743_v51 = vpop.xlane.xlu2 %742 }
 0x3e9   : > { %744 = vadd.xlane.f32.xlu1 %v741_v49  ;;  %671 = vadd.xlane.f32.xlu0 %v668_v50  ;;  %v746_v52 = vmul.f32 0.0625, %v743_v51 }
 0x3eb   : > { %v748_v53 = vadd.f32 1e-05, %v746_v52 }
 0x3ed   : > { %971 = vrsqrt.f32 %v748_v53  ;;  %vm756_vm5 = vweird.f32 %v748_v53 }
 0x3f3   : > { %v972_v56 = vpop.eup %971 }
 0x3f4   : > { %v751_v58 = vmul.f32 %v972_v56, %v748_v53  ;;  %vm757_vm2 = vweird.f32 %v972_v56 }
 0x3f5   : > { %vm758_vm6 = vmor %vm756_vm5, %vm757_vm2 }
 0x3f6   : > { %v752_v61 = vmul.f32 %v972_v56, %v751_v58 }
 0x3f8   : > { %v753_v4 = vmul.f32 0.5, %v752_v61 }
 0x3fa   : > { %v754_v7 = vsub.f32 1.5, %v753_v4 }
 0x3fc   : > { %v755_v13 = vmul.f32 %v972_v56, %v754_v7 }
 0x3fe   : > { %v759_v19 = vsel %vm758_vm6, %v972_v56, %v755_v13 }
 0x3ff   : > { %v770_v24 = vmul.f32 %v759_v19, %v1115_v34 }
 0x454   : > { %v670_v54 = vpop.xlane.xlu1 %669 }
 0x455   : > { %v673_v55 = vmul.f32 0.0625, %v670_v54 }
 0x457   : > { %v675_v57 = vadd.f32 1e-05, %v673_v55 }
 0x459   : > { %973 = vrsqrt.f32 %v675_v57  ;;  %vm683_vm3 = vweird.f32 %v675_v57 }
 0x45c   : > { %v745_v59 = vpop.xlane.xlu1 %744  ;;  %v672_v60 = vpop.xlane.xlu0 %671 }
 0x45d   : > { %v747_v62 = vmul.f32 0.0625, %v745_v59  ;;  %v674_v63 = vmul.f32 0.0625, %v672_v60 }
 0x45f   : > { %v974_v0 = vpop.eup %973  ;;  %v749_v1 = vadd.f32 1e-05, %v747_v62  ;;  %v676_v2 = vadd.f32 1e-05, %v674_v63 }
 0x460   : > { %v678_v3 = vmul.f32 %v974_v0, %v675_v57  ;;  %vm684_vm1 = vweird.f32 %v974_v0 }
 0x461   : > { %975 = vrsqrt.f32 %v749_v1  ;;  %vm685_vm4 = vmor %vm683_vm3, %vm684_vm1  ;;  %vm766_vm9 = vweird.f32 %v749_v1  ;;  %vm693_vm11 = vweird.f32 %v676_v2 }
 0x462   : > { %v679_v5 = vmul.f32 %v974_v0, %v678_v3  ;;  %977 = vrsqrt.f32 %v676_v2 }
 0x464   : > { %v680_v6 = vmul.f32 0.5, %v679_v5 }
 0x466   : > { %v681_v8 = vsub.f32 1.5, %v680_v6 }
 0x467   : > { %v976_v9 = vpop.eup %975 }
 0x468   : > { %v978_v10 = vpop.eup %977  ;;  %v682_v11 = vmul.f32 %v974_v0, %v681_v8  ;;  %v761_v12 = vmul.f32 %v976_v9, %v749_v1  ;;  %vm767_vm7 = vweird.f32 %v976_v9 }
 0x469   : > { %v688_v14 = vmul.f32 %v978_v10, %v676_v2  ;;  %vm694_vm8 = vweird.f32 %v978_v10  ;;  %vm768_vm10 = vmor %vm766_vm9, %vm767_vm7 }
 0x46a   : > { %v762_v15 = vmul.f32 %v976_v9, %v761_v12  ;;  %v686_v16 = vsel %vm685_vm4, %v974_v0, %v682_v11  ;;  %vm695_vm12 = vmor %vm693_vm11, %vm694_vm8 }
 0x46b   : > { %v689_v17 = vmul.f32 %v978_v10, %v688_v14  ;;  %v697_v21 = vmul.f32 %v686_v16, %v665_v39 }
 0x46c   : > { %v763_v18 = vmul.f32 0.5, %v762_v15 }
 0x46d   : > { %v690_v20 = vmul.f32 0.5, %v689_v17  ;;  %v772_v27 = vadd.f32 %v770_v24, %v697_v21 }
 0x46e   : > { %v764_v22 = vsub.f32 1.5, %v763_v18 }
 0x46f   : > { %v691_v23 = vsub.f32 1.5, %v690_v20  ;;  %v774_v33 = vmax.f32 %v772_v27, 0.0 }
 0x470   : > { %v765_v25 = vmul.f32 %v976_v9, %v764_v22 }
 0x471   : > { %v692_v26 = vmul.f32 %v978_v10, %v691_v23  ;;  %v776_v37 = vmul.f32 %v1066_v31, %v774_v33 }
 0x472   : > { %v769_v28 = vsel %vm768_vm10, %v976_v9, %v765_v25 }
 0x473   : > { %v771_v29 = vmul.f32 %v769_v28, %v1121_v47  ;;  %v696_v30 = vsel %vm695_vm12, %v978_v10, %v692_v26 }
 0x474   : > { %v698_v32 = vmul.f32 %v696_v30, %v1124_v48 }
 0x476   : > { %v773_v35 = vadd.f32 %v771_v29, %v698_v32 }
 0x478   : > { %v775_v36 = vmax.f32 %v773_v35, 0.0 }
 0x47a   : > { %v777_v34 = vmul.f32 %v1066_v31, %v775_v36 }
 0x47c   : > { %v947_v38 = vpack.c.bf16 %v777_v34, %v776_v37 }
 0x47e   : > { %948 = vst [vmem:[%s224_s26] sm:$0xff] %v947_v38  }
 0x47f PF: > { %s15_s18 = sadd.s32 1, %s985_s18  }
 0x480   : > { %p12_p4 = scmp.ge.s32.totalorder %s15_s18, 4  }
 0x482   :  { %14 = sbr.rel (!%p12_p4) target bundleno = 1 (0x1), region = 73 }

// kernel: resnet_backbone_forward.5
= control target key start
LH: loop header
LB: loop body
LE: loop exit
PB: predicated region body
PF: predicated region fallthrough
CT: control target
= control target key end

     0   :  { %s3472_s12 = smov 0   ;;  %s4204_s0 = inlined_call_operand.vmem [shape: bf16[2,16,8,256], index: 0, kind: input, shape index: {}]   ;;  %s4205_s1 = inlined_call_operand.vmem [shape: bf16[8,392], index: 1, kind: input, shape index: {}]   ;;  %s4206_s2 = inlined_call_operand.vmem [shape: f32[1,128], index: 2, kind: input, shape index: {}]   ;;  %s4207_s3 = inlined_call_operand.vmem [shape: bf16[2,8,128], index: 3, kind: output, shape index: {}]  }
   0x1 LB: > { %s2742_s13 = sadd.s32 4294967295, %s3442_s12   ;;  %p2746_p0 = scmp.ge.s32.totalorder %s3442_s12, 1  ;;  %s3442_s12 = sphi %s3472_s12, %s13_s12  }
   0x2   : > { %p137_p1 = scmp.lt.s32.totalorder %s3442_s12, 3 }
   0x4   : > { %p138_p2 = pnand %p2746_p0, %p137_p1 }
   0x5   : > { %p160_p3 = scmp.lt.s32.totalorder (!%p138_p2), %s2742_s13, 1  ;;  %s3444_s18 = smov (!%p138_p2), 127  }
   0x6   : > { %141 = sbr.rel (%p138_p2) target bundleno = 988 (0x3dc), region = 32  ;;  %s3445_s19 = smov (!%p138_p2), 117  }
   0x7   : > { %s3446_s20 = smov (!%p138_p2), 116   ;;  %s3447_s21 = smov (!%p138_p2), 126  }
   0x8   : > { %s3448_s22 = smov (!%p138_p2), 115   ;;  %s3449_s23 = smov (!%p138_p2), 105  }
   0x9   : > { %s3450_s24 = smov (!%p138_p2), 106   ;;  %s3451_s4 = smov (!%p138_p2), 104  }
   0xb   : > { %s4209_s13 = smov (!%p160_p3, %s2742_s13), 1  ;;  %vm187_vm0 = vcmask 1039360   ;;  %vm320_vm1 = vcmask 957440   ;;  %vm353_vm2 = vcmask 949248   ;;  %vm700_vm3 = vcmask 1043456  }
   0xc   : > { %s3320_s14 = sshll.u32 %s4209_s13, 7  ;;  %vm797_vm4 = vcmask 1031168   ;;  %vm696_vm5 = vcmask 64512   ;;  %vm986_vm6 = vcmask 941056   ;;  %vm1697_vm7 = vcmask 859136   ;;  %s2749_s9 = sshll.u32 %s4209_s13, 2 }
   0xd   : > { %s3486_s17 = scalar_lea.vmem %s4204_s0, %s3320_s14  ;;  %vm1664_vm8 = vcmask 867328   ;;  %vm2351_vm9 = vcmask 850944   ;;  %s168_s14 = scalar_lea.vmem %s4207_s3, %s2749_s9 }
   0xe   : > { %v3489_v0 = vld [vmem:[%s3486_s17 + $0x28] sm:$0xff]  ;;  %v3492_v1 = vld [vmem:[%s3486_s17 + $0x10] sm:$0xff]  ;;  %v3495_v2 = vld [vmem:[%s3486_s17] sm:$0xff] }
   0xf   : > { %229 = vrot.lane.b32.xlu2 %v3489_v0, %s3444_s18  ;;  %201 = vrot.lane.b32.xlu1 %v3492_v1, %s3444_s18  ;;  %v3504_v3 = vld [vmem:[%s3486_s17 + $0x30] sm:$0xff]  ;;  %v3507_v4 = vld [vmem:[%s3486_s17 + $0x20] sm:$0xff] }
  0x10   : > { %184 = vrot.lane.b32.xlu0 %v3495_v2, %s3444_s18  ;;  %v3510_v5 = vld [vmem:[%s3486_s17 + $0x8] sm:$0xff]  ;;  %v3519_v6 = vld [vmem:[%s3486_s17 + $0x50] sm:$0xff]  ;;  %v3525_v8 = vld [vmem:[%s3486_s17 + $0x40] sm:$0xff] }
  0x11   : > { %v3522_v7 = vld [vmem:[%s3486_s17 + $0x48] sm:$0xff]  ;;  %v3534_v9 = vld [vmem:[%s3486_s17 + $0x70] sm:$0xff]  ;;  %v3540_v11 = vld [vmem:[%s3486_s17 + $0x60] sm:$0xff] }
  0x12   : > { %v3537_v10 = vld [vmem:[%s3486_s17 + $0x68] sm:$0xff]  ;;  %v3555_v12 = vld [vmem:[%s3486_s17 + $0x18] sm:$0xff]  ;;  %v2762_v15 = vld [vmem:[%s3486_s17 + $0x40] sm:$0xf] }
  0x13   : > { %v3570_v13 = vld [vmem:[%s3486_s17 + $0x38] sm:$0xff]  ;;  %v2763_v16 = vld [vmem:[%s3486_s17 + $0x48] sm:$0xf]  ;;  %245 = vst [vmem:[#allocation2 + $0x38] sm:$0xf] %v2762_v15 }
  0x14   : > { %v3585_v14 = vld [vmem:[%s3486_s17 + $0x58] sm:$0xff]  ;;  %248 = vst [vmem:[#allocation2 + $0x3c] sm:$0xf] %v2763_v16  ;;  %v2755_v20 = vld [vmem:[%s3486_s17 + $0x20] sm:$0xf] }
  0x15   : > { %v2758_v21 = vld [vmem:[%s3486_s17 + $0x38] sm:$0xf]  ;;  %209 = vst [vmem:[#allocation2 + $0x1c] sm:$0xf] %v2755_v20  ;;  %v2904_v23 = vld [vmem:[%s3486_s17 + $0x50] sm:$0xf] }
  0x16   : > { %v2905_v24 = vld [vmem:[%s3486_s17 + $0x58] sm:$0xf]  ;;  %218 = vst [vmem:[#allocation2 + $0x28] sm:$0xf] %v2758_v21  ;;  %v2756_v27 = vld [vmem:[%s3486_s17 + $0x28] sm:$0xf] }
  0x17   : > { %237 = vrot.lane.b32.xlu2 %v3504_v3, %s3444_s18  ;;  %221 = vrot.lane.b32.xlu1 %v3507_v4, %s3444_s18  ;;  %212 = vst [vmem:[#allocation2 + $0x20] sm:$0xf] %v2756_v27  ;;  %v2757_v28 = vld [vmem:[%s3486_s17 + $0x30] sm:$0xf]  ;;  %v2769_v34 = vld [vmem:[%s3486_s17 + $0x60] sm:$0xf] }
  0x18   : > { %193 = vrot.lane.b32.xlu0 %v3510_v5, %s3444_s18  ;;  %215 = vst [vmem:[#allocation2 + $0x24] sm:$0xf] %v2757_v28  ;;  %v2772_v35 = vld [vmem:[%s3486_s17 + $0x78] sm:$0xf]  ;;  %v2897_v55 = vld [vmem:[%s3486_s17 + $0x30] sm:$0xf] }
  0x19   : > { %281 = vst [vmem:[#allocation2 + $0x54] sm:$0xf] %v2769_v34  ;;  %v2898_v36 = vld [vmem:[%s3486_s17 + $0x38] sm:$0xf]  ;;  %v2770_v28 = vld [vmem:[%s3486_s17 + $0x68] sm:$0xf] }
  0x1a   : > { %290 = vst [vmem:[#allocation2 + $0x60] sm:$0xf] %v2772_v35 }
  0x1b   : > { %v3328_v22 = vld [vmem:[#allocation2 + $0x38] sm:$0xff]  ;;  %804 = vst [vmem:[#allocation2 + $0x20] sm:$0xf] %v2898_v36 }
  0x1c   : > { %846 = vst [vmem:[#allocation2 + $0x38] sm:$0xf] %v2904_v23  ;;  %704 = vmatpush.bf16.msra.mxu0 %v3328_v22 }
  0x1d   : > { %848 = vst [vmem:[#allocation2 + $0x3c] sm:$0xf] %v2905_v24 }
  0x1e   : > { %284 = vst [vmem:[#allocation2 + $0x58] sm:$0xf] %v2770_v28 }
  0x1f   : > { %273 = vrot.lane.b32.xlu2 %v3519_v6, %s3444_s18  ;;  %265 = vrot.lane.b32.xlu1 %v3522_v7, %s3444_s18 }
  0x20   : > { %257 = vrot.lane.b32.xlu0 %v3525_v8, %s3444_s18 }
  0x27   : > { %309 = vrot.lane.b32.xlu2 %v3534_v9, %s3444_s18  ;;  %301 = vrot.lane.b32.xlu1 %v3537_v10, %s3444_s18 }
  0x28   : > { %293 = vrot.lane.b32.xlu0 %v3540_v11, %s3444_s18 }
  0x2f   : > { %334 = vrot.lane.b32.xlu2 %v3492_v1, %s3445_s19  ;;  %326 = vrot.lane.b32.xlu1 %v3510_v5, %s3445_s19 }
  0x30   : > { %317 = vrot.lane.b32.xlu0 %v3495_v2, %s3445_s19 }
  0x37   : > { %359 = vrot.lane.b32.xlu2 %v3510_v5, %s3446_s20  ;;  %350 = vrot.lane.b32.xlu1 %v3495_v2, %s3446_s20 }
  0x38   : > { %342 = vrot.lane.b32.xlu0 %v3555_v12, %s3445_s19 }
  0x3f   : > { %383 = vrot.lane.b32.xlu2 %v3489_v0, %s3445_s19  ;;  %375 = vrot.lane.b32.xlu1 %v3507_v4, %s3445_s19 }
  0x40   : > { %367 = vrot.lane.b32.xlu0 %v3492_v1, %s3446_s20 }
  0x47   : > { %407 = vrot.lane.b32.xlu2 %v3507_v4, %s3446_s20  ;;  %399 = vrot.lane.b32.xlu1 %v3570_v13, %s3445_s19 }
  0x48   : > { %391 = vrot.lane.b32.xlu0 %v3504_v3, %s3445_s19 }
  0x4f   : > { %431 = vrot.lane.b32.xlu2 %v3525_v8, %s3445_s19  ;;  %423 = vrot.lane.b32.xlu1 %v3504_v3, %s3446_s20 }
  0x50   : > { %415 = vrot.lane.b32.xlu0 %v3489_v0, %s3446_s20 }
  0x57   : > { %455 = vrot.lane.b32.xlu2 %v3585_v14, %s3445_s19  ;;  %447 = vrot.lane.b32.xlu1 %v3519_v6, %s3445_s19 }
  0x58   : > { %439 = vrot.lane.b32.xlu0 %v3522_v7, %s3445_s19 }
  0x5f   : > { %479 = vrot.lane.b32.xlu2 %v3519_v6, %s3446_s20  ;;  %471 = vrot.lane.b32.xlu1 %v3522_v7, %s3446_s20 }
  0x60   : > { %463 = vrot.lane.b32.xlu0 %v3525_v8, %s3446_s20 }
  0x67   : > { %778 = vrot.lane.b32.xlu2 %v3492_v1, %s3444_s18  ;;  %770 = vrot.lane.b32.xlu1 %v3510_v5, %s3444_s18 }
  0x68   : > { %762 = vrot.lane.b32.xlu0 %v3495_v2, %s3444_s18 }
  0x69   : > { %v230_v17 = vpop.permute.xlu2 %229 }
  0x6a   : > { %v231_v18 = vrot.slane %v230_v17, 4 }
  0x6c   : > { %v232_v19 = vsel %vm187_vm0, %v230_v17, %v231_v18  ;;  %v3325_v18 = vld [vmem:[#allocation2 + $0x20] sm:$0xff] }
  0x6d   : > { %234 = vst [vmem:[#allocation2 + $0x30] sm:$0xf] %v232_v19 }
  0x6f   : > { %807 = vrot.lane.b32.xlu2 %v3507_v4, %s3444_s18  ;;  %794 = vrot.lane.b32.xlu1 %v3495_v2, %s3447_s21 }
  0x70   : > { %786 = vrot.lane.b32.xlu0 %v3555_v12, %s3444_s18 }
  0x71   : > { %v238_v25 = vpop.permute.xlu2 %237 }
  0x72   : > { %v239_v26 = vrot.slane %v238_v25, 4 }
  0x74   : > { %v240_v29 = vsel %vm187_vm0, %v238_v25, %v239_v26 }
  0x75   : > { %242 = vst [vmem:[#allocation2 + $0x34] sm:$0xf] %v240_v29  ;;  %v2771_v29 = vld [vmem:[%s3486_s17 + $0x70] sm:$0xf] }
  0x76   : > { %287 = vst [vmem:[#allocation2 + $0x5c] sm:$0xf] %v2771_v29 }
  0x77   : > { %831 = vrot.lane.b32.xlu2 %v3570_v13, %s3444_s18  ;;  %823 = vrot.lane.b32.xlu1 %v3504_v3, %s3444_s18 }
  0x78   : > { %815 = vrot.lane.b32.xlu0 %v3489_v0, %s3444_s18 }
  0x79   : > { %v274_v30 = vpop.permute.xlu2 %273 }
  0x7a   : > { %v275_v31 = vrot.slane %v274_v30, 4 }
  0x7c   : > { %v276_v32 = vsel %vm187_vm0, %v274_v30, %v275_v31  ;;  %v3327_v33 = vld [vmem:[#allocation2 + $0x30] sm:$0xff] }
  0x7d   : > { %278 = vst [vmem:[#allocation2 + $0x50] sm:$0xf] %v276_v32  ;;  %705 = vmatpush.bf16.msra.mxu0 %v3327_v33 }
  0x7f   : > { %859 = vrot.lane.b32.xlu2 %v3522_v7, %s3444_s18  ;;  %851 = vrot.lane.b32.xlu1 %v3525_v8, %s3444_s18 }
  0x80   : > { %839 = vrot.lane.b32.xlu0 %v3507_v4, %s3447_s21 }
  0x81   : > { %v310_v37 = vpop.permute.xlu2 %309  ;;  %v202_v38 = vpop.permute.xlu1 %201 }
  0x82   : > { %v311_v39 = vrot.slane %v310_v37, 4  ;;  %v203_v40 = vrot.slane %v202_v38, 4  ;;  %v185_v41 = vpop.permute.xlu0 %184 }
  0x83   : > { %v186_v42 = vrot.slane %v185_v41, 4 }
  0x84   : > { %v312_v43 = vsel %vm187_vm0, %v310_v37, %v311_v39  ;;  %v204_v44 = vsel %vm187_vm0, %v202_v38, %v203_v40  ;;  %v3679_v39 = vld [vmem:[%s3486_s17 + $0x78] sm:$0xff] }
  0x85   : > { %314 = vst [vmem:[#allocation2 + $0x6c] sm:$0xf] %v312_v43  ;;  %v188_v45 = vsel %vm187_vm0, %v185_v41, %v186_v42  ;;  %v2912_v41 = vld [vmem:[%s3486_s17 + $0x78] sm:$0xf] }
  0x86   : > { %206 = vst [vmem:[#allocation2 + $0x18] sm:$0xf] %v204_v44 }
  0x87   : > { %190 = vst [vmem:[#allocation2 + $0x10] sm:$0xf] %v188_v45  ;;  %1080 = vrot.lane.b32.xlu2 %v3519_v6, %s3446_s20  ;;  %875 = vrot.lane.b32.xlu1 %v3585_v14, %s3444_s18 }
  0x88   : > { %867 = vrot.lane.b32.xlu0 %v3519_v6, %s3444_s18  ;;  %892 = vst [vmem:[#allocation2 + $0x58] sm:$0xf] %v2912_v41 }
  0x89   : > { %v335_v46 = vpop.permute.xlu2 %334  ;;  %v222_v47 = vpop.permute.xlu1 %221 }
  0x8a   : > { %v336_v48 = vrot.slane %v335_v46, 4  ;;  %v223_v49 = vrot.slane %v222_v47, 4  ;;  %v194_v50 = vpop.permute.xlu0 %193 }
  0x8b   : > { %v195_v51 = vrot.slane %v194_v50, 4 }
  0x8c   : > { %v337_v52 = vsel %vm320_vm1, %v335_v46, %v336_v48  ;;  %v224_v53 = vsel %vm187_vm0, %v222_v47, %v223_v49 }
  0x8d   : > { %339 = vst [vmem:[#allocation2 + $0x78] sm:$0xf] %v337_v52  ;;  %v196_v54 = vsel %vm187_vm0, %v194_v50, %v195_v51  ;;  %v3324_v56 = vld [vmem:[#allocation2 + $0x18] sm:$0xff]  ;;  %v3696_v51 = vld [vmem:[#allocation2 + $0x50] sm:$0xff] }
  0x8e   : > { %226 = vst [vmem:[#allocation2 + $0x2c] sm:$0xf] %v224_v53  ;;  %v2911_v52 = vld [vmem:[%s3486_s17 + $0x70] sm:$0xf] }
  0x8f   : > { %198 = vst [vmem:[#allocation2 + $0x14] sm:$0xf] %v196_v54  ;;  %959 = vrot.lane.b32.xlu2 %v3510_v5, %s3446_s20  ;;  %951 = vrot.lane.b32.xlu1 %v3495_v2, %s3446_s20 }
  0x90   : > { %1088 = vrot.lane.b32.xlu0 %v3585_v14, %s3446_s20  ;;  %802 = vst [vmem:[#allocation2 + $0x1c] sm:$0xf] %v2897_v55 }
  0x91   : > { %v360_v57 = vpop.permute.xlu2 %359  ;;  %v266_v58 = vpop.permute.xlu1 %265  ;;  %890 = vst [vmem:[#allocation2 + $0x54] sm:$0xf] %v2911_v52 }
  0x92   : > { %v361_v59 = vrot.slane %v360_v57, 4  ;;  %v267_v60 = vrot.slane %v266_v58, 4  ;;  %v258_v61 = vpop.permute.xlu0 %257 }
  0x93   : > { %v259_v62 = vrot.slane %v258_v61, 4 }
  0x94   : > { %v362_v63 = vsel %vm353_vm2, %v360_v57, %v361_v59  ;;  %v268_v15 = vsel %vm187_vm0, %v266_v58, %v267_v60 }
  0x95   : > { %364 = vst [vmem:[#allocation2 + $0x84] sm:$0xf] %v362_v63  ;;  %v260_v16 = vsel %vm187_vm0, %v258_v61, %v259_v62  ;;  %v3326_v17 = vld [vmem:[#allocation2 + $0x28] sm:$0xff]  ;;  %v2752_v63 = vld [vmem:[%s3486_s17 + $0x18] sm:$0xf] }
  0x96   : > { %270 = vst [vmem:[#allocation2 + $0x4c] sm:$0xf] %v268_v15  ;;  %706 = vmatpush.bf16.msra.mxu0 %v3326_v17  ;;  %v3323_v35 = vld [vmem:[#allocation2 + $0x10] sm:$0xff] }
  0x97   : > { %262 = vst [vmem:[#allocation2 + $0x48] sm:$0xf] %v260_v16  ;;  %935 = vrot.lane.b32.xlu2 %v3492_v1, %s3445_s19  ;;  %1072 = vrot.lane.b32.xlu1 %v3522_v7, %s3446_s20  ;;  %v2751_v15 = vld [vmem:[%s3486_s17 + $0x10] sm:$0xf]  ;;  %v2765_v16 = vld [vmem:[%s3486_s17 + $0x58] sm:$0xf] }
  0x98   : > { %1064 = vrot.lane.b32.xlu0 %v3525_v8, %s3446_s20  ;;  %181 = vst [vmem:[#allocation2 + $0xc] sm:$0xf] %v2752_v63 }
  0x99   : > { %v384_v19 = vpop.permute.xlu2 %383  ;;  %v302_v20 = vpop.permute.xlu1 %301  ;;  %254 = vst [vmem:[#allocation2 + $0x44] sm:$0xf] %v2765_v16 }
  0x9a   : > { %v385_v21 = vrot.slane %v384_v19, 4  ;;  %v303_v22 = vrot.slane %v302_v20, 4  ;;  %v294_v23 = vpop.permute.xlu0 %293  ;;  %707 = vmatpush.bf16.msra.mxu0 %v3325_v18  ;;  %178 = vst [vmem:[#allocation2 + $0x8] sm:$0xf] %v2751_v15 }
  0x9b   : > { %v295_v24 = vrot.slane %v294_v23, 4 }
  0x9c   : > { %v386_v25 = vsel %vm320_vm1, %v384_v19, %v385_v21  ;;  %v304_v26 = vsel %vm187_vm0, %v302_v20, %v303_v22 }
  0x9d   : > { %388 = vst [vmem:[#allocation2 + $0x90] sm:$0xf] %v386_v25  ;;  %v296_v27 = vsel %vm187_vm0, %v294_v23, %v295_v24 }
  0x9e   : > { %306 = vst [vmem:[#allocation2 + $0x68] sm:$0xf] %v304_v26  ;;  %708 = vmatpush.bf16.msra.mxu0 %v3324_v56 }
  0x9f   : > { %298 = vst [vmem:[#allocation2 + $0x64] sm:$0xf] %v296_v27  ;;  %1056 = vrot.lane.b32.xlu2 %v3585_v14, %s3445_s19  ;;  %1048 = vrot.lane.b32.xlu1 %v3519_v6, %s3445_s19  ;;  %v3754_v16 = vld [vmem:[#allocation2 + $0x8] sm:$0xf0] }
  0xa0   : > { %943 = vrot.lane.b32.xlu0 %v3555_v12, %s3445_s19 }
  0xa1   : > { %v408_v30 = vpop.permute.xlu2 %407  ;;  %v327_v31 = vpop.permute.xlu1 %326 }
  0xa2   : > { %v409_v32 = vrot.slane %v408_v30, 4  ;;  %v328_v33 = vrot.slane %v327_v31, 4  ;;  %v318_v34 = vpop.permute.xlu0 %317  ;;  %709 = vmatpush.bf16.msra.mxu0 %v3323_v35 }
  0xa3   : > { %v319_v36 = vrot.slane %v318_v34, 4 }
  0xa4   : > { %v410_v37 = vsel %vm353_vm2, %v408_v30, %v409_v32  ;;  %v329_v38 = vsel %vm320_vm1, %v327_v31, %v328_v33 }
  0xa5   : > { %412 = vst [vmem:[#allocation2 + $0x9c] sm:$0xf] %v410_v37  ;;  %v321_v40 = vsel %vm320_vm1, %v318_v34, %v319_v36  ;;  %v3334_v26 = vld [vmem:[#allocation2 + $0x68] sm:$0xff]  ;;  %v3332_v36 = vld [vmem:[#allocation2 + $0x58] sm:$0xff] }
  0xa6   : > { %331 = vst [vmem:[#allocation2 + $0x74] sm:$0xf] %v329_v38  ;;  %v3333_v32 = vld [vmem:[#allocation2 + $0x60] sm:$0xff] }
  0xa7   : > { %323 = vst [vmem:[#allocation2 + $0x70] sm:$0xf] %v321_v40  ;;  %919 = vrot.lane.b32.xlu2 %v3679_v39, %s3444_s18  ;;  %1445 = vrot.lane.b32.xlu1 %v3510_v5, %s3445_s19 }
  0xa8   : > { %1437 = vrot.lane.b32.xlu0 %v3495_v2, %s3445_s19 }
  0xa9   : > { %v432_v42 = vpop.permute.xlu2 %431  ;;  %v351_v43 = vpop.permute.xlu1 %350 }
  0xaa   : > { %v433_v44 = vrot.slane %v432_v42, 4  ;;  %v352_v45 = vrot.slane %v351_v43, 4  ;;  %v343_v46 = vpop.permute.xlu0 %342 }
  0xab   : > { %v344_v47 = vrot.slane %v343_v46, 4 }
  0xac   : > { %v434_v48 = vsel %vm320_vm1, %v432_v42, %v433_v44  ;;  %v354_v49 = vsel %vm353_vm2, %v351_v43, %v352_v45 }
  0xad   : > { %436 = vst [vmem:[#allocation2 + $0xa8] sm:$0xf] %v434_v48  ;;  %v345_v50 = vsel %vm320_vm1, %v343_v46, %v344_v47 }
  0xae   : > { %356 = vst [vmem:[#allocation2 + $0x80] sm:$0xf] %v354_v49  ;;  %v3335_v22 = vld [vmem:[#allocation2 + $0x70] sm:$0xff] }
  0xaf   : > { %347 = vst [vmem:[#allocation2 + $0x7c] sm:$0xf] %v345_v50  ;;  %1040 = vrot.lane.b32.xlu2 %v3507_v4, %s3448_s22  ;;  %1032 = vrot.lane.b32.xlu1 %v3570_v13, %s3446_s20  ;;  %v3330_v50 = vld [vmem:[#allocation2 + $0x48] sm:$0xff] }
  0xb0   : > { %927 = vrot.lane.b32.xlu0 %v3540_v11, %s3447_s21 }
  0xb1   : > { %v456_v53 = vpop.permute.xlu2 %455  ;;  %v376_v54 = vpop.permute.xlu1 %375 }
  0xb2   : > { %v457_v55 = vrot.slane %v456_v53, 4  ;;  %v377_v56 = vrot.slane %v376_v54, 4  ;;  %v368_v57 = vpop.permute.xlu0 %367 }
  0xb3   : > { %v369_v58 = vrot.slane %v368_v57, 4 }
  0xb4   : > { %v458_v59 = vsel %vm320_vm1, %v456_v53, %v457_v55  ;;  %v378_v60 = vsel %vm320_vm1, %v376_v54, %v377_v56 }
  0xb5   : > { %460 = vst [vmem:[#allocation2 + $0xb4] sm:$0xf] %v458_v59  ;;  %v370_v61 = vsel %vm353_vm2, %v368_v57, %v369_v58 }
  0xb6   : > { %380 = vst [vmem:[#allocation2 + $0x8c] sm:$0xf] %v378_v60  ;;  %v3336_v62 = vld [vmem:[#allocation2 + $0x78] sm:$0xff]  ;;  %v2764_v60 = vld [vmem:[%s3486_s17 + $0x50] sm:$0xf] }
  0xb7   : > { %372 = vst [vmem:[#allocation2 + $0x88] sm:$0xf] %v370_v61  ;;  %1421 = vrot.lane.b32.xlu2 %v3537_v10, %s3444_s18  ;;  %1573 = vrot.lane.b32.xlu1 %v3585_v14, %s3445_s19  ;;  %v3752_v61 = vld [vmem:[#allocation2 + $0x40] sm:$0xf0] }
  0xb8   : > { %1565 = vrot.lane.b32.xlu0 %v3519_v6, %s3445_s19  ;;  %717 = vmatpush.bf16.msra.mxu1 %v3336_v62  ;;  %251 = vst [vmem:[#allocation2 + $0x40] sm:$0xf] %v2764_v60  ;;  %v3037_v60 = vld [vmem:[%s3486_s17 + $0x58] sm:$0xf] }
  0xb9   : > { %v480_v17 = vpop.permute.xlu2 %479  ;;  %v400_v18 = vpop.permute.xlu1 %399 }
  0xba   : > { %v481_v19 = vrot.slane %v480_v17, 4  ;;  %v401_v20 = vrot.slane %v400_v18, 4  ;;  %v392_v21 = vpop.permute.xlu0 %391 }
  0xbb   : > { %v393_v23 = vrot.slane %v392_v21, 4 }
  0xbc   : > { %v482_v24 = vsel %vm353_vm2, %v480_v17, %v481_v19  ;;  %v402_v14 = vsel %vm320_vm1, %v400_v18, %v401_v20  ;;  %718 = vmatpush.bf16.msra.mxu1 %v3335_v22  ;;  %v3352_v18 = vld [vmem:[#allocation2 + $0x38] sm:$0xff]  ;;  %v3758_v20 = vld [vmem:[#allocation2 + $0x8] sm:$0xf] }
  0xbd   : > { %484 = vst [vmem:[#allocation2 + $0xc0] sm:$0xf] %v482_v24  ;;  %v394_v25 = vsel %vm320_vm1, %v392_v21, %v393_v23 }
  0xbe   : > { %404 = vst [vmem:[#allocation2 + $0x98] sm:$0xf] %v402_v14 }
  0xbf   : > { %396 = vst [vmem:[#allocation2 + $0x94] sm:$0xf] %v394_v25  ;;  %911 = vrot.lane.b32.xlu2 %v3534_v9, %s3444_s18  ;;  %903 = vrot.lane.b32.xlu1 %v3537_v10, %s3444_s18 }
  0xc0   : > { %1429 = vrot.lane.b32.xlu0 %v3534_v9, %s3444_s18  ;;  %719 = vmatpush.bf16.msra.mxu1 %v3334_v26 }
  0xc1   : > { %v779_v27 = vpop.permute.xlu2 %778  ;;  %v424_v28 = vpop.permute.xlu1 %423 }
  0xc2   : > { %v780_v29 = vrot.slane %v779_v27, 4  ;;  %v425_v30 = vrot.slane %v424_v28, 4  ;;  %v416_v31 = vpop.permute.xlu0 %415 }
  0xc3   : > { %v417_v33 = vrot.slane %v416_v31, 4 }
  0xc4   : > { %v781_v34 = vsel %vm187_vm0, %v779_v27, %v780_v29  ;;  %v426_v35 = vsel %vm353_vm2, %v424_v28, %v425_v30  ;;  %720 = vmatpush.bf16.msra.mxu1 %v3333_v32  ;;  %v535_v37 = vld [vmem:[#allocation2 + $0xc0] sm:$0xf]  ;;  %v3042_v32 = vld [vmem:[%s3486_s17 + $0x68] sm:$0xf] }
  0xc5   : > { %783 = vst [vmem:[#allocation2 + $0x10] sm:$0xf] %v781_v34  ;;  %v418_v10 = vsel %vm353_vm2, %v416_v31, %v417_v33  ;;  %v646_v9 = vunpack.c.l.b16 %v535_v37 }
  0xc6   : > { %428 = vst [vmem:[#allocation2 + $0xa4] sm:$0xf] %v426_v35 }
  0xc7   : > { %420 = vst [vmem:[#allocation2 + $0xa0] sm:$0xf] %v418_v10  ;;  %1549 = vrot.lane.b32.xlu2 %v3525_v8, %s3445_s19  ;;  %1024 = vrot.lane.b32.xlu1 %v3504_v3, %s3446_s20  ;;  %v671_v38 = vpack.c.b16 %v646_v9, %v646_v9 }
  0xc8   : > { %1016 = vrot.lane.b32.xlu0 %v3489_v0, %s3446_s20  ;;  %721 = vmatpush.bf16.msra.mxu1 %v3332_v36  ;;  %v3043_v36 = vld [vmem:[%s3486_s17 + $0x70] sm:$0xf] }
  0xc9   : > { %v808_v40 = vpop.permute.xlu2 %807  ;;  %v448_v41 = vpop.permute.xlu1 %447  ;;  %v702_v45 = vsel %vm700_vm3, %v671_v38, 0 }
  0xca   : > { %v809_v42 = vrot.slane %v808_v40, 4  ;;  %v449_v43 = vrot.slane %v448_v41, 4  ;;  %v440_v44 = vpop.permute.xlu0 %439  ;;  %750 = vmatpush.bf16.msra.mxu3 %v702_v45 }
  0xcb   : > { %v441_v46 = vrot.slane %v440_v44, 4 }
  0xcc   : > { %v810_v47 = vsel %vm187_vm0, %v808_v40, %v809_v42  ;;  %v450_v48 = vsel %vm320_vm1, %v448_v41, %v449_v43  ;;  %722 = vmatpush.bf16.msra.mxu1 %v3696_v51  ;;  %v2829_v42 = vld [vmem:[#allocation2 + $0x40] sm:$0xf]  ;;  %v3044_v43 = vld [vmem:[%s3486_s17 + $0x78] sm:$0xf] }
  0xcd   : > { %812 = vst [vmem:[#allocation2 + $0x24] sm:$0xf] %v810_v47  ;;  %v442_v49 = vsel %vm320_vm1, %v440_v44, %v441_v46  ;;  %v3340_v44 = vld [vmem:[#allocation2 + $0x98] sm:$0xff]  ;;  %v2830_v45 = vor.u32 %v3752_v61, %v2829_v42  ;;  %v3041_v46 = vld [vmem:[%s3486_s17 + $0x60] sm:$0xf] }
  0xce   : > { %452 = vst [vmem:[#allocation2 + $0xb0] sm:$0xf] %v450_v48  ;;  %1319 = vmatpush.bf16.msrb.mxu3 %v3352_v18  ;;  %v3341_v38 = vld [vmem:[#allocation2 + $0xa0] sm:$0xff] }
  0xcf   : > { %444 = vst [vmem:[#allocation2 + $0xac] sm:$0xf] %v442_v49  ;;  %895 = vrot.lane.b32.xlu2 %v3540_v11, %s3444_s18  ;;  %1413 = vrot.lane.b32.xlu1 %v3540_v11, %s3444_s18  ;;  %v171_v47 = vld [vmem:[%s3486_s17] sm:$0xf]  ;;  %v2802_v49 = vor.u32 %v3754_v16, %v3758_v20 }
  0xd0   : > { %1557 = vrot.lane.b32.xlu0 %v3522_v7, %s3445_s19  ;;  %723 = vmatpush.bf16.msra.mxu1 %v3330_v50  ;;  %v2750_v50 = vld [vmem:[%s3486_s17 + $0x8] sm:$0xf]  ;;  %172 = vst [vmem:[#allocation2] sm:$0xf] %v171_v47 }
  0xd1   : > { %v832_v52 = vpop.permute.xlu2 %831  ;;  %v472_v53 = vpop.permute.xlu1 %471  ;;  %710 = vmatpush.bf16.msra.mxu0 %v2802_v49  ;;  %175 = vst [vmem:[#allocation2 + $0x4] sm:$0xf] %v2750_v50 }
  0xd2   : > { %v833_v51 = vrot.slane %v832_v52, 4  ;;  %v473_v54 = vrot.slane %v472_v53, 4  ;;  %v464_v55 = vpop.permute.xlu0 %463 }
  0xd3   : > { %v465_v56 = vrot.slane %v464_v55, 4 }
  0xd4   : > { %v834_v57 = vsel %vm187_vm0, %v832_v52, %v833_v51  ;;  %v474_v58 = vsel %vm353_vm2, %v472_v53, %v473_v54  ;;  %v3777_v35 = vld [vmem:[#allocation2 + $0x20] sm:$0xff]  ;;  %724 = vmatpush.bf16.msra.mxu1 %v2830_v45  ;;  %v3339_v54 = vld [vmem:[#allocation2 + $0x90] sm:$0xff] }
  0xd5   : > { %836 = vst [vmem:[#allocation2 + $0x30] sm:$0xf] %v834_v57  ;;  %v466_v59 = vsel %vm353_vm2, %v464_v55, %v465_v56  ;;  %v3343_v27 = vld [vmem:[#allocation2 + $0xb0] sm:$0xff] }
  0xd6   : > { %476 = vst [vmem:[#allocation2 + $0xbc] sm:$0xf] %v474_v58  ;;  %v3342_v31 = vld [vmem:[#allocation2 + $0xa8] sm:$0xff] }
  0xd7   : > { %468 = vst [vmem:[#allocation2 + $0xb8] sm:$0xf] %v466_v59  ;;  %1533 = vrot.lane.b32.xlu2 %v3489_v0, %s3446_s20  ;;  %1008 = vrot.lane.b32.xlu1 %v3507_v4, %s3446_s20  ;;  %v3338_v58 = vld [vmem:[#allocation2 + $0x88] sm:$0xff]  ;;  %v3036_v59 = vld [vmem:[%s3486_s17 + $0x50] sm:$0xf] }
  0xd8   : > { %1000 = vrot.lane.b32.xlu0 %v3570_v13, %s3445_s19  ;;  %1406 = vst [vmem:[#allocation2 + $0x20] sm:$0xf] %v3042_v32  ;;  %v3321_v16 = vld [vmem:[#allocation2] sm:$0xff] }
  0xd9   : > { %v860_v7 = vpop.permute.xlu2 %859  ;;  %v771_v11 = vpop.permute.xlu1 %770  ;;  %1408 = vst [vmem:[#allocation2 + $0x24] sm:$0xf] %v3043_v36  ;;  %711 = vmatpush.bf16.msra.mxu0 %v3321_v16  ;;  %v3034_v36 = vld [vmem:[%s3486_s17 + $0x40] sm:$0xf] }
  0xda   : > { %v861_v62 = vrot.slane %v860_v7, 4  ;;  %v772_v63 = vrot.slane %v771_v11, 4  ;;  %v763_v15 = vpop.permute.xlu0 %762 }
  0xdb   : > { %v764_v17 = vrot.slane %v763_v15, 4 }
  0xdc   : > { %v862_v0 = vsel %vm187_vm0, %v860_v7, %v861_v62  ;;  %v773_v19 = vsel %vm187_vm0, %v771_v11, %v772_v63 }
  0xdd   : > { %864 = vst [vmem:[#allocation2 + $0x44] sm:$0xf] %v862_v0  ;;  %v765_v21 = vsel %vm187_vm0, %v763_v15, %v764_v17  ;;  %v3337_v15 = vld [vmem:[#allocation2 + $0x80] sm:$0xff]  ;;  %v3814_v0 = vld [vmem:[%s3486_s17 + $0x10] sm:$0xff] }
  0xde   : > { %775 = vst [vmem:[#allocation2 + $0xc] sm:$0xf] %v773_v19  ;;  %v3344_v22 = vld [vmem:[#allocation2 + $0xb8] sm:$0xff] }
  0xdf   : > { %767 = vst [vmem:[#allocation2 + $0x8] sm:$0xf] %v765_v21  ;;  %1703 = vrot.lane.b32.xlu2 %v3510_v5, %s3449_s23  ;;  %1694 = vrot.lane.b32.xlu1 %v3495_v2, %s3449_s23  ;;  %v2892_v21 = vld [vmem:[%s3486_s17 + $0x10] sm:$0xf] }
  0xe0   : > { %1541 = vrot.lane.b32.xlu0 %v3504_v3, %s3446_s20  ;;  %730 = vmatpush.bf16.msra.mxu2 %v3344_v22  ;;  %v2893_v22 = vld [vmem:[%s3486_s17 + $0x18] sm:$0xf]  ;;  %757 = vst [vmem:[#allocation2] sm:$0xf] %v2892_v21 }
  0xe1   : > { %v1081_v23 = vpop.permute.xlu2 %1080  ;;  %v795_v24 = vpop.permute.xlu1 %794  ;;  %759 = vst [vmem:[#allocation2 + $0x4] sm:$0xf] %v2893_v22 }
  0xe2   : > { %v1082_v14 = vrot.slane %v1081_v23, 4  ;;  %v796_v25 = vrot.slane %v795_v24, 4  ;;  %v787_v26 = vpop.permute.xlu0 %786 }
  0xe3   : > { %v788_v28 = vrot.slane %v787_v26, 4 }
  0xe4   : > { %v1083_v29 = vsel %vm353_vm2, %v1081_v23, %v1082_v14  ;;  %v798_v5 = vsel %vm797_vm4, %v795_v24, %v796_v25  ;;  %731 = vmatpush.bf16.msra.mxu2 %v3343_v27 }
  0xe5   : > { %1085 = vst [vmem:[#allocation2 + $0xb8] sm:$0xf] %v1083_v29  ;;  %v789_v30 = vsel %vm187_vm0, %v787_v26, %v788_v28 }
  0xe6   : > { %800 = vst [vmem:[#allocation2 + $0x18] sm:$0xf] %v798_v5  ;;  %v3809_v7 = vld [vmem:[#allocation2 + $0x8] sm:$0xff]  ;;  %v3828_v5 = vld [vmem:[%s3486_s17 + $0x30] sm:$0xff] }
  0xe7   : > { %791 = vst [vmem:[#allocation2 + $0x14] sm:$0xf] %v789_v30  ;;  %983 = vrot.lane.b32.xlu2 %v3495_v2, %s3448_s22  ;;  %883 = vrot.lane.b32.xlu1 %v3525_v8, %s3447_s21  ;;  %v3831_v30 = vld [vmem:[%s3486_s17 + $0x28] sm:$0xff] }
  0xe8   : > { %1096 = vrot.lane.b32.xlu0 %v3525_v8, %s3448_s22  ;;  %732 = vmatpush.bf16.msra.mxu2 %v3342_v31  ;;  %1376 = vst [vmem:[#allocation2 + $0x8] sm:$0xf] %v3036_v59  ;;  %v3836_v31 = vld [vmem:[%s4205_s1 + $0x8] sm:$0xff] }
  0xe9   : > { %v960_v33 = vpop.permute.xlu2 %959  ;;  %v824_v34 = vpop.permute.xlu1 %823  ;;  %1378 = vst [vmem:[#allocation2 + $0xc] sm:$0xf] %v3037_v60 }
  0xea   : > { %v961_v10 = vrot.slane %v960_v33, 4  ;;  %v825_v37 = vrot.slane %v824_v34, 4  ;;  %v816_v9 = vpop.permute.xlu0 %815 }
  0xeb   : > { %v817_v2 = vrot.slane %v816_v9, 4 }
  0xec   : > { %v962_v40 = vsel %vm353_vm2, %v960_v33, %v961_v10  ;;  %v826_v8 = vsel %vm187_vm0, %v824_v34, %v825_v37  ;;  %733 = vmatpush.bf16.msra.mxu2 %v3341_v38  ;;  %v3840_v33 = vld [vmem:[%s3486_s17 + $0x18] sm:$0xff]  ;;  %v541_v34 = vunpack.c.h.b16 %v3836_v31  ;;  %v3035_v10 = vld [vmem:[%s3486_s17 + $0x48] sm:$0xf] }
  0xed   : > { %964 = vst [vmem:[#allocation2 + $0x7c] sm:$0xf] %v962_v40  ;;  %v818_v41 = vsel %vm187_vm0, %v816_v9, %v817_v2  ;;  %v3793_v48 = vld [vmem:[#allocation2 + $0x18] sm:$0xff]  ;;  %v3345_v9 = vld [vmem:[#allocation2] sm:$0xff] }
  0xee   : > { %828 = vst [vmem:[#allocation2 + $0x2c] sm:$0xf] %v826_v8  ;;  %v545_v37 = vpack.c.b16 %v541_v34, %v541_v34  ;;  %v3347_v49 = vld [vmem:[#allocation2 + $0x10] sm:$0xff] }
  0xef   : > { %820 = vst [vmem:[#allocation2 + $0x28] sm:$0xf] %v818_v41  ;;  %1525 = vrot.lane.b32.xlu2 %v3507_v4, %s3446_s20  ;;  %1517 = vrot.lane.b32.xlu1 %v3570_v13, %s3445_s19 }
  0xf0   : > { %992 = vrot.lane.b32.xlu0 %v3504_v3, %s3445_s19  ;;  %734 = vmatpush.bf16.msra.mxu2 %v3340_v44  ;;  %1410 = vst [vmem:[#allocation2 + $0x28] sm:$0xf] %v3044_v43 }
  0xf1   : > { %v936_v52 = vpop.permute.xlu2 %935  ;;  %v852_v53 = vpop.permute.xlu1 %851  ;;  %1404 = vst [vmem:[#allocation2 + $0x1c] sm:$0xf] %v3041_v46  ;;  %2891 = vmatmul.msk.bf16.vlgmr.msra.gmra.mxu3 %vm696_vm5, %v545_v37  ;;  %v3861_v46 = vld [vmem:[%s3486_s17] sm:$0xff] }
  0xf2   : > { %v937_v4 = vrot.slane %v936_v52, 4  ;;  %v853_v51 = vrot.slane %v852_v53, 4  ;;  %v840_v13 = vpop.permute.xlu0 %839  ;;  %1372 = vst [vmem:[#allocation2] sm:$0xf] %v3034_v36 }
  0xf3   : > { %v841_v3 = vrot.slane %v840_v13, 4  ;;  %1374 = vst [vmem:[#allocation2 + $0x4] sm:$0xf] %v3035_v10 }
  0xf4   : > { %v938_v55 = vsel %vm320_vm1, %v936_v52, %v937_v4  ;;  %v854_v56 = vsel %vm187_vm0, %v852_v53, %v853_v51  ;;  %735 = vmatpush.bf16.msra.mxu2 %v3339_v54 }
  0xf5   : > { %940 = vst [vmem:[#allocation2 + $0x70] sm:$0xf] %v938_v55  ;;  %v842_v57 = vsel %vm797_vm4, %v840_v13, %v841_v3  ;;  %v3873_v55 = vld [vmem:[%s3486_s17 + $0x48] sm:$0xff] }
  0xf6   : > { %856 = vst [vmem:[#allocation2 + $0x40] sm:$0xf] %v854_v56  ;;  %v3876_v56 = vld [vmem:[%s3486_s17 + $0x40] sm:$0xff] }
  0xf7   : > { %844 = vst [vmem:[#allocation2 + $0x34] sm:$0xf] %v842_v57  ;;  %1397 = vrot.lane.b32.xlu2 %v3519_v6, %s3444_s18  ;;  %1686 = vrot.lane.b32.xlu1 %v3555_v12, %s3450_s24  ;;  %v3350_v27 = vld [vmem:[#allocation2 + $0x28] sm:$0xff] }
  0xf8   : > { %1678 = vrot.lane.b32.xlu0 %v3492_v1, %s3450_s24  ;;  %736 = vmatpush.bf16.msra.mxu2 %v3338_v58 }
  0xf9   : > { %v1057_v11 = vpop.permute.xlu2 %1056  ;;  %v876_v61 = vpop.permute.xlu1 %875 }
  0xfa   : > { %v1058_v62 = vrot.slane %v1057_v11, 4  ;;  %v877_v6 = vrot.slane %v876_v61, 4  ;;  %v868_v63 = vpop.permute.xlu0 %867 }
  0xfb   : > { %v869_v17 = vrot.slane %v868_v63, 4 }
  0xfc   : > { %v1059_v18 = vsel %vm320_vm1, %v1057_v11, %v1058_v62  ;;  %v878_v1 = vsel %vm187_vm0, %v876_v61, %v877_v6  ;;  %737 = vmatpush.bf16.msra.mxu2 %v3337_v15  ;;  %v3888_v15 = vld [vmem:[%s3486_s17 + $0x60] sm:$0xff] }
  0xfd   : > { %1061 = vst [vmem:[#allocation2 + $0xac] sm:$0xf] %v1059_v18  ;;  %v870_v19 = vsel %vm187_vm0, %v868_v63, %v869_v17 }
  0xfe   : > { %880 = vst [vmem:[#allocation2 + $0x4c] sm:$0xf] %v878_v1  ;;  %v3351_v20 = vld [vmem:[#allocation2 + $0x30] sm:$0xff] }
  0xff   : > { %872 = vst [vmem:[#allocation2 + $0x48] sm:$0xf] %v870_v19  ;;  %967 = vrot.lane.b32.xlu2 %v3814_v0, %s3446_s20  ;;  %2084 = vrot.lane.b32.xlu1 %v3555_v12, %s3445_s19 }
 0x100   : > { %2076 = vrot.lane.b32.xlu0 %v3814_v0, %s3445_s19  ;;  %1320 = vmatpush.bf16.msrb.mxu3 %v3351_v20 }
 0x101   : > { %v920_v23 = vpop.permute.xlu2 %919  ;;  %v952_v24 = vpop.permute.xlu1 %951 }
 0x102   : > { %v921_v14 = vrot.slane %v920_v23, 4  ;;  %v953_v25 = vrot.slane %v952_v24, 4  ;;  %v1089_v26 = vpop.permute.xlu0 %1088 }
 0x103   : > { %v1090_v28 = vrot.slane %v1089_v26, 4 }
 0x104   : > { %v922_v12 = vsel %vm187_vm0, %v920_v23, %v921_v14  ;;  %v954_v29 = vsel %vm353_vm2, %v952_v24, %v953_v25  ;;  %1321 = vmatpush.bf16.msrb.mxu3 %v3350_v27  ;;  %v3900_v25 = vld [vmem:[%s3486_s17 + $0x70] sm:$0xff] }
 0x105   : > { %924 = vst [vmem:[#allocation2 + $0x68] sm:$0xf] %v922_v12  ;;  %v1091_v32 = vsel %vm353_vm2, %v1089_v26, %v1090_v28  ;;  %v3903_v26 = vld [vmem:[%s3486_s17 + $0x68] sm:$0xff] }
 0x106   : > { %956 = vst [vmem:[#allocation2 + $0x78] sm:$0xf] %v954_v29 }
 0x107   : > { %1093 = vst [vmem:[#allocation2 + $0xbc] sm:$0xf] %v1091_v32  ;;  %1509 = vrot.lane.b32.xlu2 %v3828_v5, %s3445_s19  ;;  %1501 = vrot.lane.b32.xlu1 %v3831_v30, %s3445_s19 }
 0x108   : > { %975 = vrot.lane.b32.xlu0 %v3840_v33, %s3446_s20  ;;  %1322 = vmatpush.bf16.msrb.mxu3 %v3777_v35  ;;  %v3857_v35 = vld [vmem:[%s3486_s17 + $0x8] sm:$0xff] }
 0x109   : > { %v1041_v38 = vpop.permute.xlu2 %1040  ;;  %v1073_v2 = vpop.permute.xlu1 %1072 }
 0x10a   : > { %v1042_v40 = vrot.slane %v1041_v38, 4  ;;  %v1074_v8 = vrot.slane %v1073_v2, 4  ;;  %v1065_v41 = vpop.permute.xlu0 %1064 }
 0x10b   : > { %v1066_v42 = vrot.slane %v1065_v41, 4 }
 0x10c   : > { %v1043_v43 = vsel %vm986_vm6, %v1041_v38, %v1042_v40  ;;  %v1075_v44 = vsel %vm353_vm2, %v1073_v2, %v1074_v8  ;;  %1323 = vmatpush.bf16.msrb.mxu3 %v3793_v48 }
 0x10d   : > { %1045 = vst [vmem:[#allocation2 + $0xa4] sm:$0xf] %v1043_v43  ;;  %v1067_v45 = vsel %vm353_vm2, %v1065_v41, %v1066_v42  ;;  %v3360_v47 = vld [vmem:[#allocation2 + $0x78] sm:$0xff] }
 0x10e   : > { %1077 = vst [vmem:[#allocation2 + $0xb4] sm:$0xf] %v1075_v44  ;;  %v3368_v50 = vld [vmem:[#allocation2 + $0xb8] sm:$0xff]  ;;  %1332 = vmatpush.bf16.msrb.mxu0 %v3360_v47 }
 0x10f   : > { %1069 = vst [vmem:[#allocation2 + $0xb0] sm:$0xf] %v1067_v45  ;;  %2332 = vrot.lane.b32.xlu2 %v3814_v0, %s3449_s23  ;;  %1670 = vrot.lane.b32.xlu1 %v3857_v35, %s3450_s24 }
 0x110   : > { %1661 = vrot.lane.b32.xlu0 %v3861_v46, %s3450_s24  ;;  %1324 = vmatpush.bf16.msrb.mxu3 %v3347_v49 }
 0x111   : > { %1345 = vmatpush.bf16.msrb.mxu1 %v3368_v50  ;;  %v1422_v48 = vpop.permute.xlu2 %1421  ;;  %v1049_v52 = vpop.permute.xlu1 %1048 }
 0x112   : > { %v1423_v53 = vrot.slane %v1422_v48, 4  ;;  %v1050_v4 = vrot.slane %v1049_v52, 4  ;;  %v944_v51 = vpop.permute.xlu0 %943 }
 0x113   : > { %v945_v13 = vrot.slane %v944_v51, 4 }
 0x114   : > { %v1424_v54 = vsel %vm187_vm0, %v1422_v48, %v1423_v53  ;;  %v1051_v3 = vsel %vm320_vm1, %v1049_v52, %v1050_v4  ;;  %1325 = vmatpush.bf16.msrb.mxu3 %v3809_v7 }
 0x115   : > { %1426 = vst [vmem:[#allocation2 + $0x30] sm:$0xf] %v1424_v54  ;;  %v946_v57 = vsel %vm320_vm1, %v944_v51, %v945_v13 }
 0x116   : > { %1053 = vst [vmem:[#allocation2 + $0xa8] sm:$0xf] %v1051_v3  ;;  %v3367_v58 = vld [vmem:[#allocation2 + $0xb0] sm:$0xff] }
 0x117   : > { %948 = vst [vmem:[#allocation2 + $0x74] sm:$0xf] %v946_v57  ;;  %1389 = vrot.lane.b32.xlu2 %v3873_v55, %s3444_s18  ;;  %1381 = vrot.lane.b32.xlu1 %v3876_v56, %s3444_s18  ;;  %v3936_v57 = vld [vmem:[%s3486_s17 + $0x78] sm:$0xff] }
 0x118   : > { %2340 = vrot.lane.b32.xlu0 %v3840_v33, %s3449_s23  ;;  %1346 = vmatpush.bf16.msrb.mxu1 %v3367_v58 }
 0x119   : > { %v912_v59 = vpop.permute.xlu2 %911  ;;  %v1446_v60 = vpop.permute.xlu1 %1445  ;;  %1326 = vmatpush.bf16.msrb.mxu3 %v3345_v9 }
 0x11a   : > { %v913_v7 = vrot.slane %v912_v59, 4  ;;  %v1447_v11 = vrot.slane %v1446_v60, 4  ;;  %v1438_v61 = vpop.permute.xlu0 %1437 }
 0x11b   : > { %v1439_v62 = vrot.slane %v1438_v61, 4 }
 0x11c   : > { %v914_v6 = vsel %vm187_vm0, %v912_v59, %v913_v7  ;;  %v1448_v63 = vsel %vm320_vm1, %v1446_v60, %v1447_v11 }
 0x11d   : > { %916 = vst [vmem:[#allocation2 + $0x64] sm:$0xf] %v914_v6  ;;  %v1440_v16 = vsel %vm320_vm1, %v1438_v61, %v1439_v62  ;;  %v3366_v17 = vld [vmem:[#allocation2 + $0xa8] sm:$0xff] }
 0x11e   : > { %1450 = vst [vmem:[#allocation2 + $0x3c] sm:$0xf] %v1448_v63  ;;  %v3359_v18 = vld [vmem:[#allocation2 + $0x70] sm:$0xff]  ;;  %1347 = vmatpush.bf16.msrb.mxu1 %v3366_v17 }
 0x11f   : > { %1442 = vst [vmem:[#allocation2 + $0x38] sm:$0xf] %v1440_v16  ;;  %1485 = vrot.lane.b32.xlu2 %v3814_v0, %s3446_s20  ;;  %2068 = vrot.lane.b32.xlu1 %v3888_v15, %s3447_s21 }
 0x120   : > { %2060 = vrot.lane.b32.xlu0 %v3679_v39, %s3444_s18  ;;  %1333 = vmatpush.bf16.msrb.mxu0 %v3359_v18  ;;  %v3907_v39 = vld [vmem:[%s3486_s17 + $0x20] sm:$0xff] }
 0x121   : > { %v1550_v1 = vpop.permute.xlu2 %1549  ;;  %v1033_v19 = vpop.permute.xlu1 %1032 }
 0x122   : > { %v1551_v20 = vrot.slane %v1550_v1, 4  ;;  %v1034_v21 = vrot.slane %v1033_v19, 4  ;;  %v928_v22 = vpop.permute.xlu0 %927 }
 0x123   : > { %v929_v23 = vrot.slane %v928_v22, 4 }
 0x124   : > { %v1552_v24 = vsel %vm320_vm1, %v1550_v1, %v1551_v20  ;;  %v1035_v14 = vsel %vm353_vm2, %v1033_v19, %v1034_v21  ;;  %v3948_v1 = vld [vmem:[%s3486_s17 + $0x58] sm:$0xff]  ;;  %v3951_v19 = vld [vmem:[%s3486_s17 + $0x50] sm:$0xff] }
 0x125   : > { %1554 = vst [vmem:[#allocation2 + $0x70] sm:$0xf] %v1552_v24  ;;  %v930_v27 = vsel %vm797_vm4, %v928_v22, %v929_v23 }
 0x126   : > { %1037 = vst [vmem:[#allocation2 + $0xa0] sm:$0xf] %v1035_v14  ;;  %v3376_v28 = vld [vmem:[#allocation2 + $0x38] sm:$0xff]  ;;  %v540_v14 = vunpack.c.l.b16 %v3836_v31 }
 0x127   : > { %932 = vst [vmem:[#allocation2 + $0x6c] sm:$0xf] %v930_v27  ;;  %1653 = vrot.lane.b32.xlu2 %v3900_v25, %s3446_s20  ;;  %1645 = vrot.lane.b32.xlu1 %v3903_v26, %s3446_s20 }
 0x128   : > { %1493 = vrot.lane.b32.xlu0 %v3907_v39, %s3445_s19  ;;  %1934 = vmatpush.bf16.msra.mxu3 %v3376_v28 }
 0x129   : > { %v896_v12 = vpop.permute.xlu2 %895  ;;  %v1574_v29 = vpop.permute.xlu1 %1573 }
 0x12a   : > { %v897_v32 = vrot.slane %v896_v12, 4  ;;  %v1575_v34 = vrot.slane %v1574_v29, 4  ;;  %v1566_v36 = vpop.permute.xlu0 %1565 }
 0x12b   : > { %v1567_v10 = vrot.slane %v1566_v36, 4 }
 0x12c   : > { %v898_v37 = vsel %vm187_vm0, %v896_v12, %v897_v32  ;;  %v1576_v9 = vsel %vm320_vm1, %v1574_v29, %v1575_v34  ;;  %v544_v29 = vpack.c.b16 %v540_v14, %v540_v14 }
 0x12d   : > { %900 = vst [vmem:[#allocation2 + $0x5c] sm:$0xf] %v898_v37  ;;  %v1568_v38 = vsel %vm320_vm1, %v1566_v36, %v1567_v10  ;;  %v3365_v2 = vld [vmem:[#allocation2 + $0xa0] sm:$0xff] }
 0x12e   : > { %1578 = vst [vmem:[#allocation2 + $0x7c] sm:$0xf] %v1576_v9  ;;  %v3358_v40 = vld [vmem:[#allocation2 + $0x68] sm:$0xff]  ;;  %1348 = vmatpush.bf16.msrb.mxu1 %v3365_v2  ;;  %v3967_v36 = vld [vmem:[%s4205_s1] sm:$0xff]  ;;  %738 = vmatmul.bf16.vlgmr.msra.gmra.mxu2 %v544_v29 }
 0x12f   : > { %1570 = vst [vmem:[#allocation2 + $0x78] sm:$0xf] %v1568_v38  ;;  %2316 = vrot.lane.b32.xlu2 %v3861_v46, %s3449_s23  ;;  %2212 = vrot.lane.b32.xlu1 %v3873_v55, %s3446_s20  ;;  %v538_v10 = vunpack.c.l.b16 %v3967_v36 }
 0x130   : > { %2204 = vrot.lane.b32.xlu0 %v3876_v56, %s3446_s20  ;;  %1334 = vmatpush.bf16.msrb.mxu0 %v3358_v40 }
 0x131   : > { %v1534_v8 = vpop.permute.xlu2 %1533  ;;  %v904_v41 = vpop.permute.xlu1 %903  ;;  %v3976_v31 = vpack.c.b16 %v538_v10, %v538_v10 }
 0x132   : > { %v1535_v42 = vrot.slane %v1534_v8, 4  ;;  %v905_v43 = vrot.slane %v904_v41, 4  ;;  %v1430_v44 = vpop.permute.xlu0 %1429 }
 0x133   : > { %v1431_v45 = vrot.slane %v1430_v44, 4  ;;  %712 = vmatmul.bf16.vlgmr.msra.gmra.mxu0 %v3976_v31  ;;  %1327 = vmatmul.bf16.vlgmr.msrb.gmra.mxu3 %v3976_v31 }
 0x134   : > { %v1536_v47 = vsel %vm353_vm2, %v1534_v8, %v1535_v42  ;;  %v906_v49 = vsel %vm187_vm0, %v904_v41, %v905_v43  ;;  %v3356_v61 = vld [vmem:[#allocation2 + $0x58] sm:$0xff] }
 0x135   : > { %1538 = vst [vmem:[#allocation2 + $0x68] sm:$0xf] %v1536_v47  ;;  %v1432_v50 = vsel %vm187_vm0, %v1430_v44, %v1431_v45 }
 0x136   : > { %908 = vst [vmem:[#allocation2 + $0x60] sm:$0xf] %v906_v49  ;;  %v3373_v49 = vld [vmem:[#allocation2 + $0x20] sm:$0xff] }
 0x137   : > { %1434 = vst [vmem:[#allocation2 + $0x34] sm:$0xf] %v1432_v50  ;;  %2052 = vrot.lane.b32.xlu2 %v3900_v25, %s3444_s18  ;;  %2044 = vrot.lane.b32.xlu1 %v3903_v26, %s3444_s18 }
 0x138   : > { %2324 = vrot.lane.b32.xlu0 %v3857_v35, %s3449_s23 }
 0x139   : > { %v1704_v48 = vpop.permute.xlu2 %1703  ;;  %v1025_v52 = vpop.permute.xlu1 %1024 }
 0x13a   : > { %v1705_v53 = vrot.slane %v1704_v48, 4  ;;  %v1026_v4 = vrot.slane %v1025_v52, 4  ;;  %v1017_v51 = vpop.permute.xlu0 %1016 }
 0x13b   : > { %v1018_v13 = vrot.slane %v1017_v51, 4 }
 0x13c   : > { %v1706_v54 = vsel %vm1697_vm7, %v1704_v48, %v1705_v53  ;;  %v1027_v3 = vsel %vm353_vm2, %v1025_v52, %v1026_v4 }
 0x13d   : > { %1708 = vst [vmem:[#allocation2 + $0xbc] sm:$0xf] %v1706_v54  ;;  %v1019_v58 = vsel %vm353_vm2, %v1017_v51, %v1018_v13  ;;  %v3357_v59 = vld [vmem:[#allocation2 + $0x60] sm:$0xff]  ;;  %v3992_v13 = vld [vmem:[%s3486_s17 + $0x38] sm:$0xff] }
 0x13e   : > { %1029 = vst [vmem:[#allocation2 + $0x9c] sm:$0xf] %v1027_v3  ;;  %v3375_v60 = vld [vmem:[#allocation2 + $0x30] sm:$0xff]  ;;  %1335 = vmatpush.bf16.msrb.mxu0 %v3357_v59 }
 0x13f   : > { %1021 = vst [vmem:[#allocation2 + $0x98] sm:$0xf] %v1019_v58  ;;  %1629 = vrot.lane.b32.xlu2 %v3936_v57, %s3445_s19  ;;  %1477 = vrot.lane.b32.xlu1 %v3857_v35, %s3446_s20 }
 0x140   : > { %1469 = vrot.lane.b32.xlu0 %v3861_v46, %s3446_s20  ;;  %1935 = vmatpush.bf16.msra.mxu3 %v3375_v60 }
 0x141   : > { %v984_v7 = vpop.permute.xlu2 %983  ;;  %v1414_v11 = vpop.permute.xlu1 %1413 }
 0x142   : > { %v985_v62 = vrot.slane %v984_v7, 4  ;;  %v1415_v6 = vrot.slane %v1414_v11, 4  ;;  %v1558_v63 = vpop.permute.xlu0 %1557  ;;  %1336 = vmatpush.bf16.msrb.mxu0 %v3356_v61 }
 0x143   : > { %v1559_v16 = vrot.slane %v1558_v63, 4 }
 0x144   : > { %v987_v17 = vsel %vm986_vm6, %v984_v7, %v985_v62  ;;  %v1416_v18 = vsel %vm187_vm0, %v1414_v11, %v1415_v6 }
 0x145   : > { %989 = vst [vmem:[#allocation2 + $0x88] sm:$0xf] %v987_v17  ;;  %v1560_v35 = vsel %vm320_vm1, %v1558_v63, %v1559_v16 }
 0x146   : > { %1418 = vst [vmem:[#allocation2 + $0x2c] sm:$0xf] %v1416_v18  ;;  %v3364_v46 = vld [vmem:[#allocation2 + $0x98] sm:$0xff] }
 0x147   : > { %1562 = vst [vmem:[#allocation2 + $0x74] sm:$0xf] %v1560_v35  ;;  %2196 = vrot.lane.b32.xlu2 %v3948_v1, %s3445_s19  ;;  %2188 = vrot.lane.b32.xlu1 %v3951_v19, %s3445_s19  ;;  %v3184_v18 = vld [vmem:[%s3486_s17 + $0x78] sm:$0xf] }
 0x148   : > { %1637 = vrot.lane.b32.xlu0 %v3888_v15, %s3446_s20  ;;  %1349 = vmatpush.bf16.msrb.mxu1 %v3364_v46  ;;  %2033 = vst [vmem:[#allocation2 + $0x20] sm:$0xf] %v3184_v18 }
 0x149   : > { %v1526_v20 = vpop.permute.xlu2 %1525  ;;  %v1009_v21 = vpop.permute.xlu1 %1008 }
 0x14a   : > { %v1527_v22 = vrot.slane %v1526_v20, 4  ;;  %v1010_v23 = vrot.slane %v1009_v21, 4  ;;  %v1001_v24 = vpop.permute.xlu0 %1000 }
 0x14b   : > { %v1002_v27 = vrot.slane %v1001_v24, 4 }
 0x14c   : > { %v1528_v28 = vsel %vm353_vm2, %v1526_v20, %v1527_v22  ;;  %v1011_v12 = vsel %vm353_vm2, %v1009_v21, %v1010_v23 }
 0x14d   : > { %1013 = vst [vmem:[#allocation2 + $0x94] sm:$0xf] %v1011_v12  ;;  %v1003_v32 = vsel %vm320_vm1, %v1001_v24, %v1002_v27  ;;  %v3374_v34 = vld [vmem:[#allocation2 + $0x28] sm:$0xff]  ;;  %v3384_v27 = vld [vmem:[#allocation2 + $0x78] sm:$0xff] }
 0x14e   : > { %1005 = vst [vmem:[#allocation2 + $0x90] sm:$0xf] %v1003_v32  ;;  %1936 = vmatpush.bf16.msra.mxu3 %v3374_v34  ;;  %v3354_v24 = vld [vmem:[#allocation2 + $0x48] sm:$0xff]  ;;  %v3392_v32 = vld [vmem:[#allocation2 + $0xb8] sm:$0xf0] }
 0x14f   : > { %2036 = vrot.lane.b32.xlu2 %v3888_v15, %s3444_s18  ;;  %2308 = vrot.lane.b32.xlu1 %v3840_v33, %s3450_s24  ;;  %1530 = vst [vmem:[#allocation2 + $0x64] sm:$0xf] %v1528_v28 }
 0x150   : > { %2300 = vrot.lane.b32.xlu0 %v3814_v0, %s3450_s24 }
 0x151   : > { %v1398_v37 = vpop.permute.xlu2 %1397  ;;  %v1695_v9 = vpop.permute.xlu1 %1694 }
 0x152   : > { %v1399_v38 = vrot.slane %v1398_v37, 4  ;;  %v1696_v2 = vrot.slane %v1695_v9, 4  ;;  %v1542_v40 = vpop.permute.xlu0 %1541  ;;  %1937 = vmatpush.bf16.msra.mxu3 %v3373_v49 }
 0x153   : > { %v1543_v8 = vrot.slane %v1542_v40, 4 }
 0x154   : > { %v1400_v41 = vsel %vm187_vm0, %v1398_v37, %v1399_v38  ;;  %v1698_v42 = vsel %vm1697_vm7, %v1695_v9, %v1696_v2  ;;  %v3353_v37 = vld [vmem:[#allocation2 + $0x40] sm:$0xff]  ;;  %v3383_v9 = vld [vmem:[#allocation2 + $0x70] sm:$0xff] }
 0x155   : > { %1402 = vst [vmem:[#allocation2 + $0x18] sm:$0xf] %v1400_v41  ;;  %v1544_v43 = vsel %vm353_vm2, %v1542_v40, %v1543_v8  ;;  %v3363_v44 = vld [vmem:[#allocation2 + $0x90] sm:$0xff] }
 0x156   : > { %1700 = vst [vmem:[#allocation2 + $0xb8] sm:$0xf] %v1698_v42  ;;  %1350 = vmatpush.bf16.msrb.mxu1 %v3363_v44  ;;  %v3183_v2 = vld [vmem:[%s3486_s17 + $0x70] sm:$0xf] }
 0x157   : > { %1546 = vst [vmem:[#allocation2 + $0x6c] sm:$0xf] %v1544_v43  ;;  %1613 = vrot.lane.b32.xlu2 %v3903_v26, %s3445_s19  ;;  %1461 = vrot.lane.b32.xlu1 %v3840_v33, %s3445_s19 }
 0x158   : > { %1453 = vrot.lane.b32.xlu0 %v3814_v0, %s3445_s19 }
 0x159   : > { %v968_v45 = vpop.permute.xlu2 %967  ;;  %v884_v47 = vpop.permute.xlu1 %883 }
 0x15a   : > { %v969_v50 = vrot.slane %v968_v45, 4  ;;  %v885_v48 = vrot.slane %v884_v47, 4  ;;  %v1097_v52 = vpop.permute.xlu0 %1096 }
 0x15b   : > { %v1098_v53 = vrot.slane %v1097_v52, 4 }
 0x15c   : > { %v970_v4 = vsel %vm353_vm2, %v968_v45, %v969_v50  ;;  %v886_v51 = vsel %vm797_vm4, %v884_v47, %v885_v48  ;;  %v3372_v54 = vld [vmem:[#allocation2 + $0x18] sm:$0xff] }
 0x15d   : > { %972 = vst [vmem:[#allocation2 + $0x80] sm:$0xf] %v970_v4  ;;  %v1099_v33 = vsel %vm986_vm6, %v1097_v52, %v1098_v53  ;;  %1938 = vmatpush.bf16.msra.mxu3 %v3372_v54  ;;  %v3173_v28 = vld [vmem:[#allocation2 + $0xb8] sm:$0xf] }
 0x15e   : > { %888 = vst [vmem:[#allocation2 + $0x50] sm:$0xf] %v886_v51  ;;  %v3174_v38 = vor.u32 %v3392_v32, %v3173_v28  ;;  %v3382_v45 = vld [vmem:[#allocation2 + $0x68] sm:$0xff] }
 0x15f   : > { %1101 = vst [vmem:[#allocation2 + $0xc0] sm:$0xf] %v1099_v33  ;;  %2180 = vrot.lane.b32.xlu2 %v3907_v39, %s3448_s22  ;;  %2172 = vrot.lane.b32.xlu1 %v3992_v13, %s3446_s20 }
 0x160   : > { %1621 = vrot.lane.b32.xlu0 %v3900_v25, %s3445_s19  ;;  %2031 = vst [vmem:[#allocation2 + $0x1c] sm:$0xf] %v3183_v2 }
 0x161   : > { %v1510_v3 = vpop.permute.xlu2 %1509  ;;  %v1518_v58 = vpop.permute.xlu1 %1517 }
 0x162   : > { %v1511_v59 = vrot.slane %v1510_v3, 4  ;;  %v1519_v60 = vrot.slane %v1518_v58, 4  ;;  %v993_v7 = vpop.permute.xlu0 %992 }
 0x163   : > { %v994_v11 = vrot.slane %v993_v7, 4 }
 0x164   : > { %v1512_v61 = vsel %vm320_vm1, %v1510_v3, %v1511_v59  ;;  %v1520_v62 = vsel %vm320_vm1, %v1518_v58, %v1519_v60  ;;  %v3176_v59 = vld [vmem:[%s3486_s17 + $0x50] sm:$0xf]  ;;  %v3177_v60 = vld [vmem:[%s3486_s17 + $0x58] sm:$0xf] }
 0x165   : > { %1522 = vst [vmem:[#allocation2 + $0x60] sm:$0xf] %v1520_v62  ;;  %v995_v6 = vsel %vm320_vm1, %v993_v7, %v994_v11  ;;  %v3355_v63 = vld [vmem:[#allocation2 + $0x50] sm:$0xff]  ;;  %v4040_v11 = vld [vmem:[#allocation2] sm:$0xff] }
 0x166   : > { %997 = vst [vmem:[#allocation2 + $0x8c] sm:$0xf] %v995_v6  ;;  %v1152_v16 = vld [vmem:[#allocation2 + $0xc0] sm:$0xf]  ;;  %1337 = vmatpush.bf16.msrb.mxu0 %v3355_v63 }
 0x167   : > { %1514 = vst [vmem:[#allocation2 + $0x5c] sm:$0xf] %v1512_v61  ;;  %1711 = vrot.lane.b32.xlu2 %v3814_v0, %s3449_s23  ;;  %2292 = vrot.lane.b32.xlu1 %v3888_v15, %s3448_s22  ;;  %v1263_v17 = vunpack.c.l.b16 %v1152_v16 }
 0x168   : > { %2284 = vrot.lane.b32.xlu0 %v3936_v57, %s3446_s20  ;;  %1987 = vst [vmem:[#allocation2] sm:$0xf] %v3176_v59 }
 0x169   : > { %v2333_v35 = vpop.permute.xlu2 %2332  ;;  %v1687_v46 = vpop.permute.xlu1 %1686  ;;  %v1288_v20 = vpack.c.b16 %v1263_v17, %v1263_v17  ;;  %1989 = vst [vmem:[#allocation2 + $0x4] sm:$0xf] %v3177_v60  ;;  %v3193_v60 = vld [vmem:[%s3486_s17 + $0x10] sm:$0xff] }
 0x16a   : > { %v2334_v21 = vrot.slane %v2333_v35, 4  ;;  %v1688_v22 = vrot.slane %v1687_v46, 4  ;;  %v1679_v23 = vpop.permute.xlu0 %1678  ;;  %1338 = vmatpush.bf16.msrb.mxu0 %v3354_v24 }
 0x16b   : > { %v1680_v14 = vrot.slane %v1679_v23, 4  ;;  %v1317_v0 = vsel %vm700_vm3, %v1288_v20, 0 }
 0x16c   : > { %v2335_v12 = vsel %vm1697_vm7, %v2333_v35, %v2334_v21  ;;  %v1689_v29 = vsel %vm1664_vm8, %v1687_v46, %v1688_v22  ;;  %1365 = vmatpush.bf16.msrb.mxu2 %v1317_v0  ;;  %v3381_v52 = vld [vmem:[#allocation2 + $0x60] sm:$0xff] }
 0x16d   : > { %2337 = vst [vmem:[#allocation2 + $0xb8] sm:$0xf] %v2335_v12  ;;  %v1681_v34 = vsel %vm1664_vm8, %v1679_v23, %v1680_v14  ;;  %v3362_v10 = vld [vmem:[#allocation2 + $0x88] sm:$0xff] }
 0x16e   : > { %1691 = vst [vmem:[#allocation2 + $0xb4] sm:$0xf] %v1689_v29  ;;  %1351 = vmatpush.bf16.msrb.mxu1 %v3362_v10  ;;  %1339 = vmatpush.bf16.msrb.mxu0 %v3353_v37 }
 0x16f   : > { %1683 = vst [vmem:[#allocation2 + $0xb0] sm:$0xf] %v1681_v34  ;;  %1597 = vrot.lane.b32.xlu1 %v3951_v19, %s3446_s20  ;;  %1605 = vrot.lane.b32.xlu2 %v3888_v15, %s3445_s19 }
 0x170   : > { %1947 = vmatpush.bf16.msra.mxu2 %v3384_v27  ;;  %2024 = vrot.lane.b32.xlu0 %v3876_v56, %s3447_s21 }
 0x171   : > { %v1390_v40 = vpop.permute.xlu2 %1389  ;;  %v2085_v8 = vpop.permute.xlu1 %2084 }
 0x172   : > { %1960 = vmatpush.bf16.msra.mxu0 %v3174_v38  ;;  %v1391_v41 = vrot.slane %v1390_v40, 4  ;;  %v2086_v42 = vrot.slane %v2085_v8, 4  ;;  %v2077_v43 = vpop.permute.xlu0 %2076 }
 0x173   : > { %v2078_v44 = vrot.slane %v2077_v43, 4 }
 0x174   : > { %1948 = vmatpush.bf16.msra.mxu2 %v3383_v9  ;;  %v1392_v47 = vsel %vm187_vm0, %v1390_v40, %v1391_v41  ;;  %v2087_v49 = vsel %vm320_vm1, %v2085_v8, %v2086_v42  ;;  %v4068_v40 = vld [vmem:[%s3486_s17] sm:$0xff] }
 0x175   : > { %1394 = vst [vmem:[#allocation2 + $0x14] sm:$0xf] %v1392_v47  ;;  %v2079_v50 = vsel %vm320_vm1, %v2077_v43, %v2078_v44 }
 0x176   : > { %2089 = vst [vmem:[#allocation2 + $0x3c] sm:$0xf] %v2087_v49  ;;  %v3391_v48 = vld [vmem:[#allocation2 + $0xb0] sm:$0xff] }
 0x177   : > { %2081 = vst [vmem:[#allocation2 + $0x38] sm:$0xf] %v2079_v50  ;;  %2164 = vrot.lane.b32.xlu1 %v3828_v5, %s3446_s20  ;;  %1961 = vmatpush.bf16.msra.mxu0 %v3391_v48  ;;  %v3195_v49 = vld [vmem:[%s3486_s17 + $0x30] sm:$0xff] }
 0x178   : > { %1949 = vmatpush.bf16.msra.mxu2 %v3382_v45  ;;  %2156 = vrot.lane.b32.xlu0 %v3831_v30, %s3446_s20 }
 0x179   : > { %v1486_v53 = vpop.permute.xlu2 %1485  ;;  %v1502_v4 = vpop.permute.xlu1 %1501  ;;  %2268 = vrot.lane.b32.xlu2 %v3903_v26, %s3446_s20 }
 0x17a   : > { %v1487_v51 = vrot.slane %v1486_v53, 4  ;;  %v1503_v33 = vrot.slane %v1502_v4, 4  ;;  %v976_v54 = vpop.permute.xlu0 %975 }
 0x17b   : > { %v977_v3 = vrot.slane %v976_v54, 4 }
 0x17c   : > { %1950 = vmatpush.bf16.msra.mxu2 %v3381_v52  ;;  %v1488_v58 = vsel %vm353_vm2, %v1486_v53, %v1487_v51  ;;  %v1504_v5 = vsel %vm320_vm1, %v1502_v4, %v1503_v33 }
 0x17d   : > { %1490 = vst [vmem:[#allocation2 + $0x50] sm:$0xf] %v1488_v58  ;;  %v978_v30 = vsel %vm353_vm2, %v976_v54, %v977_v3  ;;  %v539_v54 = vunpack.c.h.b16 %v3967_v36 }
 0x17e   : > { %1506 = vst [vmem:[#allocation2 + $0x58] sm:$0xf] %v1504_v5  ;;  %v3400_v50 = vld [vmem:[#allocation2 + $0x38] sm:$0xff] }
 0x17f   : > { %980 = vst [vmem:[#allocation2 + $0x84] sm:$0xf] %v978_v30  ;;  %2008 = vrot.lane.b32.xlu1 %v3951_v19, %s3444_s18  ;;  %v3194_v5 = vld [vmem:[%s3486_s17 + $0x18] sm:$0xff]  ;;  %v4089_v30 = vpack.c.b16 %v539_v54, %v539_v54 }
 0x180   : > { %2276 = vrot.lane.b32.xlu0 %v3900_v25, %s3446_s20 }
 0x181   : > { %v1654_v7 = vpop.permute.xlu2 %1653  ;;  %v1671_v26 = vpop.permute.xlu1 %1670  ;;  %2016 = vrot.lane.b32.xlu2 %v3948_v1, %s3444_s18  ;;  %725 = vmatmul.bf16.vlgmr.msra.gmra.mxu1 %v4089_v30 }
 0x182   : > { %v1655_v61 = vrot.slane %v1654_v7, 4  ;;  %v1672_v62 = vrot.slane %v1671_v26, 4  ;;  %v1662_v6 = vpop.permute.xlu0 %1661  ;;  %1340 = vmatmul.bf16.vlgmr.msrb.gmra.mxu0 %v4089_v30 }
 0x183   : > { %v1663_v63 = vrot.slane %v1662_v6, 4 }
 0x184   : > { %v1656_v16 = vsel %vm353_vm2, %v1654_v7, %v1655_v61  ;;  %v1673_v17 = vsel %vm1664_vm8, %v1671_v26, %v1672_v62 }
 0x185   : > { %1658 = vst [vmem:[#allocation2 + $0xa4] sm:$0xf] %v1656_v16  ;;  %v1665_v18 = vsel %vm1664_vm8, %v1662_v6, %v1663_v63  ;;  %v3380_v35 = vld [vmem:[#allocation2 + $0x58] sm:$0xff] }
 0x186   : > { %1675 = vst [vmem:[#allocation2 + $0xac] sm:$0xf] %v1673_v17  ;;  %v3361_v46 = vld [vmem:[#allocation2 + $0x80] sm:$0xff]  ;;  %1951 = vmatpush.bf16.msra.mxu2 %v3380_v35  ;;  %v3192_v17 = vld [vmem:[%s3486_s17 + $0x8] sm:$0xff] }
 0x187   : > { %1667 = vst [vmem:[#allocation2 + $0xa8] sm:$0xf] %v1665_v18  ;;  %1589 = vrot.lane.b32.xlu1 %v3873_v55, %s3446_s20  ;;  %1352 = vmatpush.bf16.msrb.mxu1 %v3361_v46 }
 0x188   : > { %1581 = vrot.lane.b32.xlu0 %v3876_v56, %s3446_s20 }
 0x189   : > { %v2317_v20 = vpop.permute.xlu2 %2316  ;;  %v1382_v21 = vpop.permute.xlu1 %1381  ;;  %2140 = vrot.lane.b32.xlu2 %v3992_v13, %s3445_s19 }
 0x18a   : > { %v2318_v22 = vrot.slane %v2317_v20, 4  ;;  %v1383_v23 = vrot.slane %v1382_v21, 4  ;;  %v2341_v24 = vpop.permute.xlu0 %2340 }
 0x18b   : > { %v2342_v14 = vrot.slane %v2341_v24, 4 }
 0x18c   : > { %v2319_v0 = vsel %vm1697_vm7, %v2317_v20, %v2318_v22  ;;  %v1384_v27 = vsel %vm187_vm0, %v1382_v21, %v1383_v23 }
 0x18d   : > { %2321 = vst [vmem:[#allocation2 + $0xb0] sm:$0xf] %v2319_v0  ;;  %v2343_v28 = vsel %vm1697_vm7, %v2341_v24, %v2342_v14 }
 0x18e   : > { %1386 = vst [vmem:[#allocation2 + $0x10] sm:$0xf] %v1384_v27  ;;  %v3390_v12 = vld [vmem:[#allocation2 + $0xa8] sm:$0xff] }
 0x18f   : > { %2345 = vst [vmem:[#allocation2 + $0xbc] sm:$0xf] %v2343_v28  ;;  %2252 = vrot.lane.b32.xlu1 %v3936_v57, %s3445_s19  ;;  %1962 = vmatpush.bf16.msra.mxu0 %v3390_v12 }
 0x190   : > { %2148 = vrot.lane.b32.xlu0 %v3907_v39, %s3446_s20  ;;  %v3370_v39 = vld [vmem:[#allocation2 + $0x8] sm:$0xff] }
 0x191   : > { %v2053_v29 = vpop.permute.xlu2 %2052  ;;  %v2069_v13 = vpop.permute.xlu1 %2068  ;;  %2260 = vrot.lane.b32.xlu2 %v3888_v15, %s3446_s20 }
 0x192   : > { %v2054_v32 = vrot.slane %v2053_v29, 4  ;;  %v2070_v34 = vrot.slane %v2069_v13, 4  ;;  %v2061_v10 = vpop.permute.xlu0 %2060 }
 0x193   : > { %v2062_v37 = vrot.slane %v2061_v10, 4 }
 0x194   : > { %v2055_v9 = vsel %vm187_vm0, %v2053_v29, %v2054_v32  ;;  %v2071_v38 = vsel %vm797_vm4, %v2069_v13, %v2070_v34 }
 0x195   : > { %2057 = vst [vmem:[#allocation2 + $0x2c] sm:$0xf] %v2055_v9  ;;  %v2063_v57 = vsel %vm187_vm0, %v2061_v10, %v2062_v37  ;;  %v3371_v2 = vld [vmem:[#allocation2 + $0x10] sm:$0xff] }
 0x196   : > { %2073 = vst [vmem:[#allocation2 + $0x34] sm:$0xf] %v2071_v38  ;;  %1939 = vmatpush.bf16.msra.mxu3 %v3371_v2 }
 0x197   : > { %2065 = vst [vmem:[#allocation2 + $0x30] sm:$0xf] %v2063_v57  ;;  %2000 = vrot.lane.b32.xlu1 %v3873_v55, %s3444_s18 }
 0x198   : > { %1992 = vrot.lane.b32.xlu0 %v3876_v56, %s3444_s18 }
 0x199   : > { %v1630_v15 = vpop.permute.xlu2 %1629  ;;  %v1646_v8 = vpop.permute.xlu1 %1645  ;;  %2124 = vrot.lane.b32.xlu2 %v4068_v40, %s3448_s22 }
 0x19a   : > { %v1631_v41 = vrot.slane %v1630_v15, 4  ;;  %v1647_v42 = vrot.slane %v1646_v8, 4  ;;  %v1494_v43 = vpop.permute.xlu0 %1493  ;;  %1940 = vmatpush.bf16.msra.mxu3 %v3370_v39 }
 0x19b   : > { %v1495_v44 = vrot.slane %v1494_v43, 4 }
 0x19c   : > { %v1632_v55 = vsel %vm320_vm1, %v1630_v15, %v1631_v41  ;;  %v1648_v45 = vsel %vm353_vm2, %v1646_v8, %v1647_v42 }
 0x19d   : > { %1634 = vst [vmem:[#allocation2 + $0x98] sm:$0xf] %v1632_v55  ;;  %v1496_v47 = vsel %vm320_vm1, %v1494_v43, %v1495_v44 }
 0x19e   : > { %1650 = vst [vmem:[#allocation2 + $0xa0] sm:$0xf] %v1648_v45  ;;  %1941 = vmatpush.bf16.msra.mxu3 %v4040_v11  ;;  %v3399_v33 = vld [vmem:[#allocation2 + $0x30] sm:$0xff] }
 0x19f   : > { %1498 = vst [vmem:[#allocation2 + $0x54] sm:$0xf] %v1496_v47  ;;  %2236 = vrot.lane.b32.xlu1 %v3876_v56, %s3448_s22 }
 0x1a0   : > { %2132 = vrot.lane.b32.xlu0 %v3195_v49, %s3445_s19 }
 0x1a1   : > { %v2197_v48 = vpop.permute.xlu2 %2196  ;;  %v2213_v52 = vpop.permute.xlu1 %2212  ;;  %2244 = vrot.lane.b32.xlu2 %v3900_v25, %s3445_s19  ;;  %1942 = vmatmul.bf16.vlgmr.msra.gmra.mxu3 %v3976_v31 }
 0x1a2   : > { %2572 = vmatpush.bf16.msrb.mxu3 %v3400_v50  ;;  %v2198_v53 = vrot.slane %v2197_v48, 4  ;;  %v2214_v4 = vrot.slane %v2213_v52, 4  ;;  %v2205_v51 = vpop.permute.xlu0 %2204 }
 0x1a3   : > { %v2206_v56 = vrot.slane %v2205_v51, 4 }
 0x1a4   : > { %v2199_v3 = vsel %vm320_vm1, %v2197_v48, %v2198_v53  ;;  %v2215_v58 = vsel %vm353_vm2, %v2213_v52, %v2214_v4 }
 0x1a5   : > { %2201 = vst [vmem:[#allocation2 + $0x74] sm:$0xf] %v2199_v3  ;;  %v2207_v59 = vsel %vm353_vm2, %v2205_v51, %v2206_v56  ;;  %v3389_v7 = vld [vmem:[#allocation2 + $0xa0] sm:$0xff] }
 0x1a6   : > { %2573 = vmatpush.bf16.msrb.mxu3 %v3399_v33  ;;  %2217 = vst [vmem:[#allocation2 + $0x7c] sm:$0xf] %v2215_v58  ;;  %v3379_v25 = vld [vmem:[#allocation2 + $0x50] sm:$0xff]  ;;  %1963 = vmatpush.bf16.msra.mxu0 %v3389_v7 }
 0x1a7   : > { %2209 = vst [vmem:[#allocation2 + $0x78] sm:$0xf] %v2207_v59  ;;  %2116 = vrot.lane.b32.xlu1 %v3194_v5, %s3446_s20  ;;  %1952 = vmatpush.bf16.msra.mxu2 %v3379_v25 }
 0x1a8   : > { %2108 = vrot.lane.b32.xlu0 %v3193_v60, %s3446_s20 }
 0x1a9   : > { %v2037_v36 = vpop.permute.xlu2 %2036  ;;  %v2045_v31 = vpop.permute.xlu1 %2044  ;;  %2220 = vrot.lane.b32.xlu2 %v3951_v19, %s3446_s20  ;;  %v1103_v19 = vld [vmem:[%s4205_s1 + $0x8] sm:$0xff] }
 0x1aa   : > { %v2038_v26 = vrot.slane %v2037_v36, 4  ;;  %v2046_v11 = vrot.slane %v2045_v31, 4  ;;  %v2325_v61 = vpop.permute.xlu0 %2324  ;;  %v1157_v22 = vunpack.c.l.b16 %v1103_v19  ;;  %v1158_v28 = vunpack.c.h.b16 %v1103_v19 }
 0x1ab   : > { %v2326_v62 = vrot.slane %v2325_v61, 4 }
 0x1ac   : > { %v2039_v6 = vsel %vm187_vm0, %v2037_v36, %v2038_v26  ;;  %v2047_v63 = vsel %vm187_vm0, %v2045_v31, %v2046_v11  ;;  %v4113_v0 = vpack.c.b16 %v1157_v22, %v1157_v22  ;;  %v4118_v29 = vpack.c.b16 %v1158_v28, %v1158_v28 }
 0x1ad   : > { %2041 = vst [vmem:[#allocation2 + $0x24] sm:$0xf] %v2039_v6  ;;  %v2327_v16 = vsel %vm1697_vm7, %v2325_v61, %v2326_v62 }
 0x1ae   : > { %2049 = vst [vmem:[#allocation2 + $0x28] sm:$0xf] %v2047_v63  ;;  %1353 = vmatmul.bf16.vlgmr.msrb.gmra.mxu1 %v4113_v0  ;;  %3033 = vmatmul.msk.bf16.vlgmr.msrb.gmra.mxu2 %vm696_vm5, %v4118_v29  ;;  %v3408_v60 = vld [vmem:[#allocation2 + $0x78] sm:$0xff] }
 0x1af   : > { %2329 = vst [vmem:[#allocation2 + $0xb4] sm:$0xf] %v2327_v16  ;;  %2092 = vrot.lane.b32.xlu1 %v4068_v40, %s3446_s20  ;;  %v3416_v63 = vld [vmem:[#allocation2 + $0xb8] sm:$0xff] }
 0x1b0   : > { %2228 = vrot.lane.b32.xlu0 %v3948_v1, %s3446_s20 }
 0x1b1   : > { %v1614_v18 = vpop.permute.xlu2 %1613  ;;  %v1478_v35 = vpop.permute.xlu1 %1477  ;;  %2100 = vrot.lane.b32.xlu2 %v3192_v17, %s3446_s20 }
 0x1b2   : > { %v1615_v46 = vrot.slane %v1614_v18, 4  ;;  %v1479_v20 = vrot.slane %v1478_v35, 4  ;;  %v1470_v21 = vpop.permute.xlu0 %1469 }
 0x1b3   : > { %v1471_v23 = vrot.slane %v1470_v21, 4 }
 0x1b4   : > { %v1616_v24 = vsel %vm320_vm1, %v1614_v18, %v1615_v46  ;;  %v1480_v14 = vsel %vm353_vm2, %v1478_v35, %v1479_v20  ;;  %v3397_v12 = vld [vmem:[#allocation2 + $0x20] sm:$0xff] }
 0x1b5   : > { %1618 = vst [vmem:[#allocation2 + $0x90] sm:$0xf] %v1616_v24  ;;  %v1472_v1 = vsel %vm353_vm2, %v1470_v21, %v1471_v23  ;;  %v3398_v27 = vld [vmem:[#allocation2 + $0x28] sm:$0xff] }
 0x1b6   : > { %1482 = vst [vmem:[#allocation2 + $0x4c] sm:$0xf] %v1480_v14  ;;  %2574 = vmatpush.bf16.msrb.mxu3 %v3398_v27  ;;  %v3415_v19 = vld [vmem:[#allocation2 + $0xb0] sm:$0xff] }
 0x1b7   : > { %1474 = vst [vmem:[#allocation2 + $0x48] sm:$0xf] %v1472_v1 }
 0x1b8   : > { %2348 = vrot.lane.b32.xlu0 %v4068_v40, %s3451_s4 }
 0x1b9   : > { %v2181_v13 = vpop.permute.xlu2 %2180  ;;  %v2189_v32 = vpop.permute.xlu1 %2188 }
 0x1ba   : > { %v2182_v34 = vrot.slane %v2181_v13, 4  ;;  %v2190_v10 = vrot.slane %v2189_v32, 4  ;;  %v1638_v37 = vpop.permute.xlu0 %1637  ;;  %2575 = vmatpush.bf16.msrb.mxu3 %v3397_v12 }
 0x1bb   : > { %v1639_v9 = vrot.slane %v1638_v37, 4 }
 0x1bc   : > { %v2183_v38 = vsel %vm986_vm6, %v2181_v13, %v2182_v34  ;;  %v2191_v57 = vsel %vm320_vm1, %v2189_v32, %v2190_v10 }
 0x1bd   : > { %2185 = vst [vmem:[#allocation2 + $0x6c] sm:$0xf] %v2183_v38  ;;  %v1640_v2 = vsel %vm353_vm2, %v1638_v37, %v1639_v9 }
 0x1be   : > { %2193 = vst [vmem:[#allocation2 + $0x70] sm:$0xf] %v2191_v57  ;;  %v3378_v39 = vld [vmem:[#allocation2 + $0x48] sm:$0xff] }
 0x1bf   : > { %1642 = vst [vmem:[#allocation2 + $0x9c] sm:$0xf] %v1640_v2  ;;  %1953 = vmatpush.bf16.msra.mxu2 %v3378_v39 }
 0x1c1   : > { %v1712_v40 = vpop.permute.xlu2 %1711  ;;  %v2309_v15 = vpop.permute.xlu1 %2308 }
 0x1c2   : > { %v1713_v8 = vrot.slane %v1712_v40, 4  ;;  %v2310_v41 = vrot.slane %v2309_v15, 4  ;;  %v2301_v42 = vpop.permute.xlu0 %2300 }
 0x1c3   : > { %v2302_v43 = vrot.slane %v2301_v42, 4 }
 0x1c4   : > { %v1714_v44 = vsel %vm1697_vm7, %v1712_v40, %v1713_v8  ;;  %v2311_v55 = vsel %vm1664_vm8, %v2309_v15, %v2310_v41 }
 0x1c5   : > { %1716 = vst [vmem:[#allocation2 + $0xc0] sm:$0xf] %v1714_v44  ;;  %v2303_v45 = vsel %vm1664_vm8, %v2301_v42, %v2302_v43  ;;  %v3407_v62 = vld [vmem:[#allocation2 + $0x70] sm:$0xff] }
 0x1c6   : > { %2313 = vst [vmem:[#allocation2 + $0xac] sm:$0xf] %v2311_v55  ;;  %v3388_v47 = vld [vmem:[#allocation2 + $0x98] sm:$0xff] }
 0x1c7   : > { %2305 = vst [vmem:[#allocation2 + $0xa8] sm:$0xf] %v2303_v45  ;;  %1964 = vmatpush.bf16.msra.mxu0 %v3388_v47 }
 0x1c9   : > { %v1462_v49 = vpop.permute.xlu1 %1461  ;;  %v1606_v51 = vpop.permute.xlu2 %1605 }
 0x1ca   : > { %v1463_v50 = vrot.slane %v1462_v49, 4  ;;  %v1454_v48 = vpop.permute.xlu0 %1453  ;;  %v1607_v56 = vrot.slane %v1606_v51, 4 }
 0x1cb   : > { %v1455_v52 = vrot.slane %v1454_v48, 4 }
 0x1cc   : > { %v1464_v53 = vsel %vm320_vm1, %v1462_v49, %v1463_v50  ;;  %v1767_v4 = vld [vmem:[#allocation2 + $0xc0] sm:$0xf]  ;;  %v1608_v58 = vsel %vm320_vm1, %v1606_v51, %v1607_v56 }
 0x1cd   : > { %1466 = vst [vmem:[#allocation2 + $0x44] sm:$0xf] %v1464_v53  ;;  %v1456_v33 = vsel %vm320_vm1, %v1454_v48, %v1455_v52  ;;  %v1878_v54 = vunpack.c.l.b16 %v1767_v4 }
 0x1ce   : > { %1458 = vst [vmem:[#allocation2 + $0x40] sm:$0xf] %v1456_v33  ;;  %v3414_v1 = vld [vmem:[#allocation2 + $0xa8] sm:$0xff] }
 0x1cf   : > { %v1903_v3 = vpack.c.b16 %v1878_v54, %v1878_v54  ;;  %1610 = vst [vmem:[#allocation2 + $0x8c] sm:$0xf] %v1608_v58 }
 0x1d1   : > { %v2173_v5 = vpop.permute.xlu1 %2172  ;;  %v1932_v59 = vsel %vm700_vm3, %v1903_v3, 0 }
 0x1d2   : > { %v2174_v7 = vrot.slane %v2173_v5, 4  ;;  %v1622_v25 = vpop.permute.xlu0 %1621  ;;  %1980 = vmatpush.bf16.msra.mxu1 %v1932_v59 }
 0x1d3   : > { %v1623_v36 = vrot.slane %v1622_v25, 4  ;;  %v2269_v26 = vpop.permute.xlu2 %2268 }
 0x1d4   : > { %v2175_v31 = vsel %vm353_vm2, %v2173_v5, %v2174_v7  ;;  %v2270_v6 = vrot.slane %v2269_v26, 4 }
 0x1d5   : > { %2177 = vst [vmem:[#allocation2 + $0x68] sm:$0xf] %v2175_v31  ;;  %v1624_v11 = vsel %vm320_vm1, %v1622_v25, %v1623_v36  ;;  %v3377_v61 = vld [vmem:[#allocation2 + $0x40] sm:$0xff]  ;;  %3175 = vmatmul.msk.bf16.vlgmr.msra.gmra.mxu1 %vm696_vm5, %v4118_v29 }
 0x1d6   : > { %2585 = vmatpush.bf16.msrb.mxu1 %v3408_v60  ;;  %1626 = vst [vmem:[#allocation2 + $0x94] sm:$0xf] %v1624_v11  ;;  %1954 = vmatpush.bf16.msra.mxu2 %v3377_v61  ;;  %v2271_v16 = vsel %vm353_vm2, %v2269_v26, %v2270_v6 }
 0x1d7   : > { %2273 = vst [vmem:[#allocation2 + $0x98] sm:$0xf] %v2271_v16 }
 0x1d9   : > { %v2293_v17 = vpop.permute.xlu1 %2292  ;;  %1955 = vmatmul.bf16.vlgmr.msra.gmra.mxu2 %v4089_v30 }
 0x1da   : > { %2586 = vmatpush.bf16.msrb.mxu1 %v3407_v62  ;;  %2598 = vmatpush.bf16.msrb.mxu2 %v3416_v63  ;;  %v2294_v18 = vrot.slane %v2293_v17, 4  ;;  %v2285_v35 = vpop.permute.xlu0 %2284 }
 0x1db   : > { %v2286_v46 = vrot.slane %v2285_v35, 4  ;;  %v2017_v22 = vpop.permute.xlu2 %2016 }
 0x1dc   : > { %v2295_v20 = vsel %vm986_vm6, %v2293_v17, %v2294_v18  ;;  %v3406_v21 = vld [vmem:[#allocation2 + $0x68] sm:$0xff]  ;;  %v2018_v14 = vrot.slane %v2017_v22, 4 }
 0x1dd   : > { %2297 = vst [vmem:[#allocation2 + $0xa4] sm:$0xf] %v2295_v20  ;;  %v2287_v23 = vsel %vm353_vm2, %v2285_v35, %v2286_v46  ;;  %v3387_v24 = vld [vmem:[#allocation2 + $0x90] sm:$0xff] }
 0x1de   : > { %2599 = vmatpush.bf16.msrb.mxu2 %v3415_v19  ;;  %2289 = vst [vmem:[#allocation2 + $0xa0] sm:$0xf] %v2287_v23  ;;  %2587 = vmatpush.bf16.msrb.mxu1 %v3406_v21  ;;  %v2019_v27 = vsel %vm187_vm0, %v2017_v22, %v2018_v14 }
 0x1df   : > { %1965 = vmatpush.bf16.msra.mxu0 %v3387_v24  ;;  %2021 = vst [vmem:[#allocation2 + $0x14] sm:$0xf] %v2019_v27 }
 0x1e1   : > { %v1598_v30 = vpop.permute.xlu1 %1597 }
 0x1e2   : > { %2600 = vmatpush.bf16.msrb.mxu2 %v3414_v1  ;;  %v1599_v28 = vrot.slane %v1598_v30, 4  ;;  %v2025_v12 = vpop.permute.xlu0 %2024 }
 0x1e3   : > { %v2026_v13 = vrot.slane %v2025_v12, 4  ;;  %v2141_v34 = vpop.permute.xlu2 %2140 }
 0x1e4   : > { %v1600_v32 = vsel %vm353_vm2, %v1598_v30, %v1599_v28  ;;  %v2142_v9 = vrot.slane %v2141_v34, 4 }
 0x1e5   : > { %1602 = vst [vmem:[#allocation2 + $0x88] sm:$0xf] %v1600_v32  ;;  %v2027_v10 = vsel %vm797_vm4, %v2025_v12, %v2026_v13  ;;  %v3413_v37 = vld [vmem:[#allocation2 + $0xa0] sm:$0xff] }
 0x1e6   : > { %2029 = vst [vmem:[#allocation2 + $0x18] sm:$0xf] %v2027_v10  ;;  %2601 = vmatpush.bf16.msrb.mxu2 %v3413_v37  ;;  %v2143_v38 = vsel %vm320_vm1, %v2141_v34, %v2142_v9  ;;  %v2355_v34 = vld [vmem:[%s4205_s1] sm:$0xff] }
 0x1e7   : > { %2145 = vst [vmem:[#allocation2 + $0x58] sm:$0xf] %v2143_v38  ;;  %v2408_v38 = vunpack.c.l.b16 %v2355_v34 }
 0x1e9   : > { %v2165_v57 = vpop.permute.xlu1 %2164 }
 0x1ea   : > { %v2166_v2 = vrot.slane %v2165_v57, 4  ;;  %v2157_v39 = vpop.permute.xlu0 %2156 }
 0x1eb   : > { %v2158_v40 = vrot.slane %v2157_v39, 4  ;;  %v2261_v41 = vpop.permute.xlu2 %2260 }
 0x1ec   : > { %v2167_v15 = vsel %vm353_vm2, %v2165_v57, %v2166_v2  ;;  %v3386_v8 = vld [vmem:[#allocation2 + $0x88] sm:$0xff]  ;;  %v2262_v44 = vrot.slane %v2261_v41, 4  ;;  %v3393_v57 = vld [vmem:[#allocation2] sm:$0xff] }
 0x1ed   : > { %2169 = vst [vmem:[#allocation2 + $0x64] sm:$0xf] %v2167_v15  ;;  %v2159_v42 = vsel %vm353_vm2, %v2157_v39, %v2158_v40  ;;  %v3396_v43 = vld [vmem:[#allocation2 + $0x18] sm:$0xff]  ;;  %1966 = vmatpush.bf16.msra.mxu0 %v3386_v8  ;;  %v2412_v15 = vpack.c.b16 %v2408_v38, %v2408_v38 }
 0x1ee   : > { %2161 = vst [vmem:[#allocation2 + $0x60] sm:$0xf] %v2159_v42  ;;  %2576 = vmatpush.bf16.msrb.mxu3 %v3396_v43  ;;  %v2263_v55 = vsel %vm353_vm2, %v2261_v41, %v2262_v44 }
 0x1ef   : > { %2265 = vst [vmem:[#allocation2 + $0x94] sm:$0xf] %v2263_v55  ;;  %v739_v55 = vpop.f32.mrf.mxu2 }
 0x1f1   : > { %v2009_v45 = vpop.permute.xlu1 %2008 }
 0x1f2   : > { %v2010_v47 = vrot.slane %v2009_v45, 4  ;;  %v2277_v49 = vpop.permute.xlu0 %2276 }
 0x1f3   : > { %v2278_v50 = vrot.slane %v2277_v49, 4  ;;  %v2125_v52 = vpop.permute.xlu2 %2124 }
 0x1f4   : > { %v2011_v48 = vsel %vm187_vm0, %v2009_v45, %v2010_v47  ;;  %v2126_v51 = vrot.slane %v2125_v52, 4  ;;  %v752_v45 = vpop.f32.mrf.mxu3  ;;  %v713_v47 = vpop.f32.mrf.mxu0 }
 0x1f5   : > { %2013 = vst [vmem:[#allocation2 + $0x10] sm:$0xf] %v2011_v48  ;;  %v2279_v53 = vsel %vm353_vm2, %v2277_v49, %v2278_v50  ;;  %v3405_v4 = vld [vmem:[#allocation2 + $0x60] sm:$0xff] }
 0x1f6   : > { %2281 = vst [vmem:[#allocation2 + $0x9c] sm:$0xf] %v2279_v53  ;;  %2588 = vmatpush.bf16.msrb.mxu1 %v3405_v4  ;;  %v2127_v33 = vsel %vm986_vm6, %v2125_v52, %v2126_v51 }
 0x1f7   : > { %2129 = vst [vmem:[#allocation2 + $0x50] sm:$0xf] %v2127_v33 }
 0x1f9   : > { %v1590_v54 = vpop.permute.xlu1 %1589 }
 0x1fa   : > { %v1591_v56 = vrot.slane %v1590_v54, 4  ;;  %v1582_v3 = vpop.permute.xlu0 %1581 }
 0x1fb   : > { %v1583_v58 = vrot.slane %v1582_v3, 4  ;;  %v2245_v60 = vpop.permute.xlu2 %2244 }
 0x1fc   : > { %v1592_v5 = vsel %vm353_vm2, %v1590_v54, %v1591_v56  ;;  %v3395_v59 = vld [vmem:[#allocation2 + $0x10] sm:$0xff]  ;;  %v2246_v36 = vrot.slane %v2245_v60, 4  ;;  %v741_v54 = vpop.f32.mrf.mxu2  ;;  %v754_v56 = vpop.f32.mrf.mxu3 }
 0x1fd   : > { %1594 = vst [vmem:[#allocation2 + $0x84] sm:$0xf] %v1592_v5  ;;  %v1584_v7 = vsel %vm353_vm2, %v1582_v3, %v1583_v58  ;;  %v3412_v25 = vld [vmem:[#allocation2 + $0x98] sm:$0xff]  ;;  %2577 = vmatpush.bf16.msrb.mxu3 %v3395_v59  ;;  %v715_v3 = vpop.f32.mrf.mxu0  ;;  %v2409_v58 = vunpack.c.h.b16 %v2355_v34 }
 0x1fe   : > { %1586 = vst [vmem:[#allocation2 + $0x80] sm:$0xf] %v1584_v7  ;;  %2602 = vmatpush.bf16.msrb.mxu2 %v3412_v25  ;;  %v2247_v31 = vsel %vm320_vm1, %v2245_v60, %v2246_v36  ;;  %v726_v53 = vpop.f32.mrf.mxu1 }
 0x1ff   : > { %2249 = vst [vmem:[#allocation2 + $0x8c] sm:$0xf] %v2247_v31  ;;  %v2413_v31 = vpack.c.b16 %v2409_v58, %v2409_v58 }
 0x201   : > { %v2253_v26 = vpop.permute.xlu1 %2252 }
 0x202   : > { %v2254_v11 = vrot.slane %v2253_v26, 4  ;;  %v2149_v61 = vpop.permute.xlu0 %2148 }
 0x203   : > { %v2150_v62 = vrot.slane %v2149_v61, 4  ;;  %v2221_v63 = vpop.permute.xlu2 %2220 }
 0x204   : > { %v2255_v6 = vsel %vm320_vm1, %v2253_v26, %v2254_v11  ;;  %v2222_v18 = vrot.slane %v2221_v63, 4  ;;  %v1328_v26 = vpop.f32.mrf.mxu3 }
 0x205   : > { %2257 = vst [vmem:[#allocation2 + $0x90] sm:$0xf] %v2255_v6  ;;  %v2151_v16 = vsel %vm353_vm2, %v2149_v61, %v2150_v62  ;;  %v3385_v17 = vld [vmem:[#allocation2 + $0x80] sm:$0xff]  ;;  %v1341_v11 = vpop.f32.mrf.mxu0 }
 0x206   : > { %2153 = vst [vmem:[#allocation2 + $0x5c] sm:$0xf] %v2151_v16  ;;  %1967 = vmatpush.bf16.msra.mxu0 %v3385_v17  ;;  %v2223_v35 = vsel %vm353_vm2, %v2221_v63, %v2222_v18  ;;  %v728_v60 = vpop.f32.mrf.mxu1 }
 0x207   : > { %2225 = vst [vmem:[#allocation2 + $0x80] sm:$0xf] %v2223_v35 }
 0x209   : > { %v2001_v19 = vpop.permute.xlu1 %2000  ;;  %1968 = vmatmul.bf16.vlgmr.msra.gmra.mxu0 %v4113_v0 }
 0x20a   : > { %v2002_v46 = vrot.slane %v2001_v19, 4  ;;  %v1993_v20 = vpop.permute.xlu0 %1992 }
 0x20b   : > { %v1994_v21 = vrot.slane %v1993_v20, 4  ;;  %v2101_v24 = vpop.permute.xlu2 %2100 }
 0x20c   : > { %v2003_v22 = vsel %vm187_vm0, %v2001_v19, %v2002_v46  ;;  %v3411_v23 = vld [vmem:[#allocation2 + $0x90] sm:$0xff]  ;;  %v2102_v27 = vrot.slane %v2101_v24, 4  ;;  %v1330_v63 = vpop.f32.mrf.mxu3 }
 0x20d   : > { %2005 = vst [vmem:[#allocation2 + $0xc] sm:$0xf] %v2003_v22  ;;  %v1995_v14 = vsel %vm187_vm0, %v1993_v20, %v1994_v21  ;;  %v3404_v1 = vld [vmem:[#allocation2 + $0x58] sm:$0xff]  ;;  %2603 = vmatpush.bf16.msrb.mxu2 %v3411_v23  ;;  %v1343_v16 = vpop.f32.mrf.mxu0  ;;  %v727_v22 = vadd.f32 %v726_v53, %v713_v47  ;;  %v1342_v23 = vadd.f32 %v1341_v11, %v1328_v26 }
 0x20e   : > { %1997 = vst [vmem:[#allocation2 + $0x8] sm:$0xf] %v1995_v14  ;;  %2589 = vmatpush.bf16.msrb.mxu1 %v3404_v1  ;;  %v2103_v30 = vsel %vm353_vm2, %v2101_v24, %v2102_v27 }
 0x20f   : > { %2105 = vst [vmem:[#allocation2 + $0x44] sm:$0xf] %v2103_v30  ;;  %v4180_v30 = vld [vmem:[%s4206_s2] ss:$0 sm:$0xff] }
 0x211   : > { %v2237_v28 = vpop.permute.xlu1 %2236 }
 0x212   : > { %v2238_v12 = vrot.slane %v2237_v28, 4  ;;  %v2133_v13 = vpop.permute.xlu0 %2132 }
 0x213   : > { %v2134_v32 = vrot.slane %v2133_v13, 4 }
 0x214   : > { %v2239_v10 = vsel %vm986_vm6, %v2237_v28, %v2238_v12 }
 0x215   : > { %2241 = vst [vmem:[#allocation2 + $0x88] sm:$0xf] %v2239_v10  ;;  %v2135_v37 = vsel %vm320_vm1, %v2133_v13, %v2134_v32  ;;  %v3394_v9 = vld [vmem:[#allocation2 + $0x8] sm:$0xff] }
 0x216   : > { %2137 = vst [vmem:[#allocation2 + $0x54] sm:$0xf] %v2135_v37  ;;  %2578 = vmatpush.bf16.msrb.mxu3 %v3394_v9 }
 0x219   : > { %v2117_v2 = vpop.permute.xlu1 %2116 }
 0x21a   : > { %v2118_v39 = vrot.slane %v2117_v2, 4  ;;  %v2109_v40 = vpop.permute.xlu0 %2108  ;;  %2579 = vmatpush.bf16.msrb.mxu3 %v3393_v57 }
 0x21b   : > { %v2110_v8 = vrot.slane %v2109_v40, 4 }
 0x21c   : > { %v2119_v41 = vsel %vm353_vm2, %v2117_v2, %v2118_v39  ;;  %v3410_v42 = vld [vmem:[#allocation2 + $0x88] sm:$0xff] }
 0x21d   : > { %2121 = vst [vmem:[#allocation2 + $0x4c] sm:$0xf] %v2119_v41  ;;  %v2111_v43 = vsel %vm353_vm2, %v2109_v40, %v2110_v8  ;;  %v3403_v44 = vld [vmem:[#allocation2 + $0x50] sm:$0xff]  ;;  %2604 = vmatpush.bf16.msrb.mxu2 %v3410_v42  ;;  %2580 = vmatmul.bf16.vlgmr.msrb.gmra.mxu3 %v2412_v15 }
 0x21e   : > { %2113 = vst [vmem:[#allocation2 + $0x48] sm:$0xf] %v2111_v43  ;;  %2590 = vmatpush.bf16.msrb.mxu1 %v3403_v44 }
 0x221   : > { %v2093_v49 = vpop.permute.xlu1 %2092 }
 0x222   : > { %v2229_v50 = vpop.permute.xlu0 %2228  ;;  %v2094_v48 = vrot.slane %v2093_v49, 4 }
 0x223   : > { %v2230_v52 = vrot.slane %v2229_v50, 4 }
 0x224   : > { %v2095_v4 = vsel %vm353_vm2, %v2093_v49, %v2094_v48  ;;  %v1943_v46 = vpop.f32.mrf.mxu3 }
 0x225   : > { %v2231_v51 = vsel %vm353_vm2, %v2229_v50, %v2230_v52  ;;  %v3402_v33 = vld [vmem:[#allocation2 + $0x48] sm:$0xff]  ;;  %2097 = vst [vmem:[#allocation2 + $0x40] sm:$0xf] %v2095_v4 }
 0x226   : > { %2233 = vst [vmem:[#allocation2 + $0x84] sm:$0xf] %v2231_v51  ;;  %2591 = vmatpush.bf16.msrb.mxu1 %v3402_v33 }
 0x22a   : > { %v2349_v5 = vpop.permute.xlu0 %2348 }
 0x22b   : > { %v2350_v59 = vrot.slane %v2349_v5, 4  ;;  %v1354_v61 = vpop.f32.mrf.mxu1 }
 0x22c   : > { %v3401_v7 = vld [vmem:[#allocation2 + $0x40] sm:$0xff]  ;;  %v1945_v21 = vpop.f32.mrf.mxu3  ;;  %v1355_v24 = vadd.f32 %v1354_v61, %v1342_v23 }
 0x22d   : > { %v2352_v25 = vsel %vm2351_vm9, %v2349_v5, %v2350_v59  ;;  %v3409_v36 = vld [vmem:[#allocation2 + $0x80] sm:$0xff]  ;;  %2592 = vmatpush.bf16.msrb.mxu1 %v3401_v7 }
 0x22e   : > { %2354 = vst [vmem:[#allocation2 + $0xc0] sm:$0xf] %v2352_v25  ;;  %2605 = vmatpush.bf16.msrb.mxu2 %v3409_v36 }
 0x230   : > { %2593 = vmatmul.bf16.vlgmr.msrb.gmra.mxu1 %v2413_v31 }
 0x231   : > { %2606 = vmatmul.bf16.vlgmr.msrb.gmra.mxu2 %v4113_v0  ;;  %v1367_v19 = vpop.f32.mrf.mxu2  ;;  %v740_v0 = vadd.f32 %v739_v55, %v727_v22 }
 0x232   : > { %v4175_v1 = vadd.f32 %v1367_v19, %v1355_v24 }
 0x233   : > { %v1356_v35 = vpop.f32.mrf.mxu1  ;;  %v4173_v14 = vadd.f32 %v752_v45, %v740_v0 }
 0x234   : > { %v2631_v28 = vmul.f32 %v4180_v30, %v4175_v1 }
 0x235   : > { %v2405_v62 = vld [vmem:[#allocation2 + $0xc0] sm:$0xf]  ;;  %v2669_v21 = vmax.f32 %v4173_v14, %v4175_v1 }
 0x236   : > { %v2516_v6 = vunpack.c.l.b16 %v2405_v62  ;;  %2632 = vadd.xlane.f32.xlu2 %v2631_v28 }
 0x238   : > { %v2541_v17 = vpack.c.b16 %v2516_v6, %v2516_v6 }
 0x239   : > { %v1369_v20 = vpop.f32.mrf.mxu2 }
 0x23a   : > { %v2570_v18 = vsel %vm700_vm3, %v2541_v17, 0 }
 0x23b   : > { %2618 = vmatpush.bf16.msrb.mxu0 %v2570_v18 }
 0x23e   : > { %3317 = vmatmul.msk.bf16.vlgmr.msrb.gmra.mxu0 %vm696_vm5, %v4118_v29  ;;  %v2627_v29 = vmul.f32 %v4180_v30, %v4173_v14 }
 0x240   : > { %2628 = vadd.xlane.f32.xlu1 %v2627_v29 }
 0x252   : > { %v1982_v13 = vpop.f32.mrf.mxu1 }
 0x25a   : > { %v1984_v32 = vpop.f32.mrf.mxu1 }
 0x25c   : > { %v1956_v27 = vpop.f32.mrf.mxu2 }
 0x25d   : > { %v1957_v34 = vadd.f32 %v1956_v27, %v1943_v46 }
 0x264   : > { %v1958_v12 = vpop.f32.mrf.mxu2 }
 0x286   : > { %v1969_v10 = vpop.f32.mrf.mxu0 }
 0x287   : > { %v1970_v37 = vadd.f32 %v1969_v10, %v1957_v34 }
 0x289   : > { %v1983_v9 = vadd.f32 %v1982_v13, %v1970_v37 }
 0x28b   : > { %v2635_v38 = vmul.f32 %v4180_v30, %v1983_v9  ;;  %v2670_v23 = vmax.f32 %v2669_v21, %v1983_v9 }
 0x28d   : > { %2636 = vadd.xlane.f32.xlu0 %v2635_v38 }
 0x28e   : > { %v1971_v57 = vpop.f32.mrf.mxu0 }
 0x2a0   : > { %v2581_v2 = vpop.f32.mrf.mxu3 }
 0x2a8   : > { %v2583_v39 = vpop.f32.mrf.mxu3 }
 0x2a9   : > { %v2633_v49 = vpop.xlane.xlu2 %2632 }
 0x2ad   : > { %v2594_v40 = vpop.f32.mrf.mxu1 }
 0x2ae   : > { %v2595_v15 = vadd.f32 %v2594_v40, %v2581_v2 }
 0x2b3   : > { %v2629_v50 = vpop.xlane.xlu1 %2628 }
 0x2b4   : > { %v2607_v8 = vpop.f32.mrf.mxu2  ;;  %v2634_v52 = vadd.f32 %v2633_v49, %v2629_v50 }
 0x2b5   : > { %v2596_v41 = vpop.f32.mrf.mxu1  ;;  %v2608_v42 = vadd.f32 %v2607_v8, %v2595_v15 }
 0x2bb   : > { %v2620_v43 = vpop.f32.mrf.mxu0 }
 0x2bc   : > { %v2621_v44 = vadd.f32 %v2620_v43, %v2608_v42  ;;  %v2609_v55 = vpop.f32.mrf.mxu2 }
 0x2be   : > { %v2639_v45 = vmul.f32 %v4180_v30, %v2621_v44  ;;  %v2671_v24 = vmax.f32 %v2670_v23, %v2621_v44 }
 0x2c0   : > { %2640 = vadd.xlane.f32.xlu2 %v2639_v45 }
 0x2c3   : > { %v2622_v47 = vpop.f32.mrf.mxu0 }
 0x300   : > { %v2637_v48 = vpop.xlane.xlu0 %2636 }
 0x301   : > { %v2638_v53 = vadd.f32 %v2637_v48, %v2634_v52 }
 0x333   : > { %v2641_v4 = vpop.xlane.xlu2 %2640 }
 0x334   : > { %v2642_v51 = vadd.f32 %v2641_v4, %v2638_v53 }
 0x336   : > { %v2643_v33 = vmul.f32 0.00390625, %v2642_v51 }
 0x338   : > { %v2656_v54 = vsub.f32 %v1983_v9, %v2643_v33  ;;  %v2650_v56 = vsub.f32 %v4175_v1, %v2643_v33  ;;  %v2644_v3 = vsub.f32 %v4173_v14, %v2643_v33  ;;  %v2662_v36 = vsub.f32 %v2621_v44, %v2643_v33 }
 0x339   : > { %v2672_v29 = vsub.f32 %v2671_v24, %v2643_v33 }
 0x33a   : > { %v2657_v58 = vmul.f32 %v4180_v30, %v2656_v54  ;;  %v2651_v5 = vmul.f32 %v4180_v30, %v2650_v56  ;;  %v2645_v59 = vmul.f32 %v4180_v30, %v2644_v3  ;;  %v2663_v31 = vmul.f32 %v4180_v30, %v2662_v36 }
 0x33c   : > { %v2658_v60 = vmul.f32 %v2657_v58, %v2657_v58  ;;  %v2652_v7 = vmul.f32 %v2651_v5, %v2651_v5  ;;  %v2646_v25 = vmul.f32 %v2645_v59, %v2645_v59  ;;  %v2664_v26 = vmul.f32 %v2663_v31, %v2663_v31 }
 0x33e   : > { %2659 = vadd.xlane.f32.xlu0 %v2658_v60  ;;  %2653 = vadd.xlane.f32.xlu2 %v2652_v7 }
 0x33f   : > { %2647 = vadd.xlane.f32.xlu1 %v2646_v25 }
 0x347   : > { %2665 = vadd.xlane.f32.xlu1 %v2664_v26 }
 0x3b1   : > { %v2654_v11 = vpop.xlane.xlu2 %2653  ;;  %v2660_v6 = vpop.xlane.xlu0 %2659 }
 0x3b2   : > { %v2648_v61 = vpop.xlane.xlu1 %2647 }
 0x3b3   : > { %v2655_v62 = vadd.f32 %v2654_v11, %v2648_v61 }
 0x3b5   : > { %v2661_v63 = vadd.f32 %v2660_v6, %v2655_v62 }
 0x3ba   : > { %v2666_v16 = vpop.xlane.xlu1 %2665 }
 0x3bb   : > { %v2667_v17 = vadd.f32 %v2666_v16, %v2661_v63 }
 0x3bd   : > { %v2668_v18 = vmul.f32 0.00390625, %v2667_v17 }
 0x3bf   : > { %v2673_v35 = vadd.f32 1e-05, %v2668_v18 }
 0x3c1   : > { %3434 = vrsqrt.f32 %v2673_v35  ;;  %vm2680_vm11 = vweird.f32 %v2673_v35 }
 0x3c7   : > { %v3435_v19 = vpop.eup %3434 }
 0x3c8   : > { %v2675_v46 = vmul.f32 %v3435_v19, %v2673_v35  ;;  %vm2681_vm10 = vweird.f32 %v3435_v19 }
 0x3c9   : > { %vm2682_vm12 = vmor %vm2680_vm11, %vm2681_vm10 }
 0x3ca   : > { %v2676_v20 = vmul.f32 %v3435_v19, %v2675_v46 }
 0x3cc   : > { %v2677_v22 = vmul.f32 0.5, %v2676_v20 }
 0x3ce   : > { %v2678_v0 = vsub.f32 1.5, %v2677_v22 }
 0x3d0   : > { %v2679_v27 = vmul.f32 %v3435_v19, %v2678_v0 }
 0x3d2   : > { %v2683_v28 = vsel %vm2682_vm12, %v3435_v19, %v2679_v27 }
 0x3d3   : > { %v2684_v12 = vmul.f32 %v2683_v28, %v2672_v29 }
 0x3d5   : > { %v2685_v13 = vmax.f32 %v2684_v12, 0.0 }
 0x3d7   : > { %v2686_v32 = vmul.f32 %v4180_v30, %v2685_v13 }
 0x3d9   : > { %v2687_v14 = vpack.c.bf16 %v2686_v32, %v2686_v32 }
 0x3db   : > { %2688 = vst [vmem:[%s168_s14] sm:$0xf] %v2687_v14 }
 0x3dc PF: > { %s13_s12 = sadd.s32 1, %s3442_s12  }
 0x3dd   : > { %p10_p4 = scmp.ge.s32.totalorder %s13_s12, 4  }
 0x3df   :  { %12 = sbr.rel (!%p10_p4) target bundleno = 1 (0x1), region = 77 }

// kernel: resnet_backbone_forward.9
= control target key start
LH: loop header
LB: loop body
LE: loop exit
PB: predicated region body
PF: predicated region fallthrough
CT: control target
= control target key end

     0   :  { %s1113_s15 = smov 0   ;;  %s1251_s0 = inlined_call_operand.vmem [shape: bf16[2,1,16,256], index: 0, kind: input, shape index: {}]   ;;  %s1252_s1 = inlined_call_operand.vmem [shape: bf16[16,144], index: 1, kind: input, shape index: {}]   ;;  %s1253_s2 = inlined_call_operand.vmem [shape: bf16[16,144], index: 2, kind: input, shape index: {}]   ;;  %s1254_s3 = inlined_call_operand.vmem [shape: f32[1,128], index: 3, kind: input, shape index: {}]   ;;  %s1255_s4 = inlined_call_operand.vmem [shape: bf16[2,16,128], index: 4, kind: output, shape index: {}]  }
   0x1 LB: > { %s895_s16 = sadd.s32 4294967295, %s1072_s15   ;;  %p899_p0 = scmp.ge.s32.totalorder %s1072_s15, 1  ;;  %s1072_s15 = sphi %s1113_s15, %s14_s15  }
   0x2   : > { %p162_p1 = scmp.lt.s32.totalorder %s1072_s15, 3 }
   0x4   : > { %p163_p2 = pnand %p899_p0, %p162_p1 }
   0x5   : > { %p188_p3 = scmp.lt.s32.totalorder (!%p163_p2), %s895_s16, 1  ;;  %s1074_s21 = smov (!%p163_p2), 113  }
   0x6   : > { %166 = sbr.rel (%p163_p2) target bundleno = 1176 (0x498), region = 36  ;;  %s1075_s22 = smov (!%p163_p2), 114  }
   0x7   : > { %s1076_s23 = smov (!%p163_p2), 119   ;;  %s1077_s24 = smov (!%p163_p2), 120  }
   0x8   : > { %s1078_s25 = smov (!%p163_p2), 121   ;;  %s1079_s26 = smov (!%p163_p2), 126  }
   0x9   : > { %s1080_s27 = smov (!%p163_p2), 127   ;;  %s1081_s28 = smov (!%p163_p2), 112  }
   0xa   : > { %s1083_s13 = smov (!%p163_p2), 122   ;;  %s1084_s14 = smov (!%p163_p2), 1  }
   0xb   : > { %s1257_s16 = smov (!%p188_p3, %s895_s16), 1  ;;  %vm282_vm0 = vcmask 973824   ;;  %vm248_vm1 = vcmask 990208   ;;  %vm316_vm2 = vcmask 924672   ;;  %vm299_vm3 = vcmask 932864   ;;  %s1086_s18 = smov 7  }
   0xc   : > { %s996_s17 = sshll.u32 %s1257_s16, 4  ;;  %vm231_vm4 = vcmask 1031168   ;;  %vm333_vm5 = vcmask 916480   ;;  %vm265_vm6 = vcmask 982016   ;;  %vm214_vm7 = vcmask 1039360   ;;  %s1087_s19 = smov 6  }
   0xd   : > { %s1127_s20 = scalar_lea.vmem %s1251_s0, %s996_s17  ;;  %v906_v60 = vld [vmem:[%s1252_s1] sm:$0xf]  ;;  %v999_v61 = vld [vmem:[%s1252_s1 + $0x4] sm:$0xf0]  ;;  %v998_v63 = vld [vmem:[%s1252_s1 + $0x4] sm:$0xf] }
   0xe   : > { %v1130_v0 = vld [vmem:[%s1127_s20] sm:$0xff]  ;;  %v1136_v1 = vld [vmem:[%s1127_s20 + $0x8] sm:$0xff]  ;;  %v907_v62 = vor.u32 %v999_v61, %v906_v60  ;;  %vm423_vm8 = vcmask 130048   ;;  %s1085_s17 = smov 8   ;;  %vm610_vm15 = vcmask 998400  }
   0xf   : > { %310 = vrot.lane.b32.xlu0 %v1130_v0, %s1074_s21  ;;  %293 = vrot.lane.b32.xlu1 %v1130_v0, %s1075_s22  ;;  %v200_v22 = vld [vmem:[%s1127_s20] sm:$0xf]  ;;  %v201_v23 = vld [vmem:[%s1127_s20 + $0x8] sm:$0xf] }
  0x10   : > { %276 = vrot.lane.b32.xlu2 %v1130_v0, %s1076_s23  ;;  %202 = vst [vmem:[#allocation2] sm:$0xf] %v200_v22 }
  0x11   : > { %203 = vst [vmem:[#allocation2 + $0x4] sm:$0xf] %v201_v23 }
  0x17   : > { %312 = vrot.lane.b32.xlu0 %v1136_v1, %s1074_s21  ;;  %295 = vrot.lane.b32.xlu1 %v1136_v1, %s1075_s22 }
  0x18   : > { %278 = vrot.lane.b32.xlu2 %v1136_v1, %s1076_s23  ;;  %v1000_v59 = vld [vmem:[#allocation2] sm:$0xff] }
  0x1f   : > { %261 = vrot.lane.b32.xlu1 %v1136_v1, %s1077_s24  ;;  %259 = vrot.lane.b32.xlu0 %v1130_v0, %s1077_s24 }
  0x20   : > { %242 = vrot.lane.b32.xlu2 %v1130_v0, %s1078_s25 }
  0x27   : > { %244 = vrot.lane.b32.xlu0 %v1136_v1, %s1078_s25  ;;  %225 = vrot.lane.b32.xlu1 %v1130_v0, %s1079_s26 }
  0x28   : > { %227 = vrot.lane.b32.xlu2 %v1136_v1, %s1079_s26 }
  0x2f   : > { %210 = vrot.lane.b32.xlu1 %v1136_v1, %s1080_s27  ;;  %208 = vrot.lane.b32.xlu0 %v1130_v0, %s1080_s27 }
  0x30   : > { %327 = vrot.lane.b32.xlu2 %v1130_v0, %s1081_s28 }
  0x37   : > { %329 = vrot.lane.b32.xlu0 %v1136_v1, %s1081_s28 }
  0x6a   : > { %v277_v2 = vpop.permute.xlu2 %276 }
  0x6b   : > { %v280_v3 = vrot.slane %v277_v2, 4 }
  0x6d   : > { %v283_v4 = vsel %vm282_vm0, %v277_v2, %v280_v3  ;;  %v908_v2 = vld [vmem:[%s1252_s1 + $0x8] sm:$0xf0] }
  0x6e   : > { %287 = vst [vmem:[#allocation2 + $0x28] sm:$0xf] %v283_v4  ;;  %v911_v4 = vor.u32 %v998_v63, %v908_v2 }
  0x72   : > { %v279_v5 = vpop.permute.xlu2 %278 }
  0x73   : > { %v281_v6 = vrot.slane %v279_v5, 4 }
  0x75   : > { %v284_v7 = vsel %vm282_vm0, %v279_v5, %v281_v6  ;;  %v1189_v6 = vld [vmem:[%s1254_s3] ss:$0 sm:$0xff]  ;;  %vm556_vm0 = vcmask 48128  }
  0x76   : > { %288 = vst [vmem:[#allocation2 + $0x2c] sm:$0xf] %v284_v7 }
  0x7a   : > { %v243_v8 = vpop.permute.xlu2 %242 }
  0x7b   : > { %v246_v9 = vrot.slane %v243_v8, 4 }
  0x7d   : > { %v249_v10 = vsel %vm248_vm1, %v243_v8, %v246_v9  ;;  %v1005_v45 = vld [vmem:[#allocation2 + $0x28] sm:$0xff] }
  0x7e   : > { %253 = vst [vmem:[#allocation2 + $0x18] sm:$0xf] %v249_v10 }
  0x81   : > { %v311_v11 = vpop.permute.xlu0 %310  ;;  %v294_v12 = vpop.permute.xlu1 %293 }
  0x82   : > { %v314_v13 = vrot.slane %v311_v11, 4  ;;  %v297_v14 = vrot.slane %v294_v12, 4  ;;  %v228_v15 = vpop.permute.xlu2 %227 }
  0x83   : > { %v230_v16 = vrot.slane %v228_v15, 4 }
  0x84   : > { %v317_v17 = vsel %vm316_vm2, %v311_v11, %v314_v13  ;;  %v300_v18 = vsel %vm299_vm3, %v294_v12, %v297_v14  ;;  %v1082_v14 = vmov 0  }
  0x85   : > { %321 = vst [vmem:[#allocation2 + $0x38] sm:$0xf] %v317_v17  ;;  %v233_v19 = vsel %vm231_vm4, %v228_v15, %v230_v16 }
  0x86   : > { %304 = vst [vmem:[#allocation2 + $0x30] sm:$0xf] %v300_v18 }
  0x87   : > { %237 = vst [vmem:[#allocation2 + $0x14] sm:$0xf] %v233_v19 }
  0x88   : > { %504 = vst [vmem:[#allocation3] sm:$0xff] %v1082_v14 }
  0x89   : > { %v313_v20 = vpop.permute.xlu0 %312  ;;  %v296_v21 = vpop.permute.xlu1 %295  ;;  %505 = vst [vmem:[#allocation3 + $0x8] sm:$0xf] %v1082_v14 }
  0x8a   : > { %v315_v24 = vrot.slane %v313_v20, 4  ;;  %v298_v25 = vrot.slane %v296_v21, 4  ;;  %v328_v26 = vpop.permute.xlu2 %327  ;;  %507 = vst [vmem:[#allocation3 + $0x14] sm:$0xf] %v1082_v14 }
  0x8b   : > { %v331_v27 = vrot.slane %v328_v26, 4  ;;  %506 = vst [vmem:[#allocation3 + $0xc] sm:$0xff] %v1082_v14 }
  0x8c   : > { %v318_v28 = vsel %vm316_vm2, %v313_v20, %v315_v24  ;;  %v301_v29 = vsel %vm299_vm3, %v296_v21, %v298_v25  ;;  %vm573_vm2 = vcmask 7168   ;;  %vm539_vm3 = vcmask 56320  }
  0x8d   : > { %322 = vst [vmem:[#allocation2 + $0x3c] sm:$0xf] %v318_v28  ;;  %v334_v30 = vsel %vm333_vm5, %v328_v26, %v331_v27 }
  0x8e   : > { %305 = vst [vmem:[#allocation2 + $0x34] sm:$0xf] %v301_v29 }
  0x8f   : > { %338 = vst [vmem:[#allocation2 + $0x40] sm:$0xf] %v334_v30 }
  0x91   : > { %v262_v31 = vpop.permute.xlu1 %261  ;;  %v260_v32 = vpop.permute.xlu0 %259 }
  0x92   : > { %v264_v33 = vrot.slane %v262_v31, 4  ;;  %v263_v34 = vrot.slane %v260_v32, 4 }
  0x94   : > { %v267_v35 = vsel %vm265_vm6, %v262_v31, %v264_v33  ;;  %v266_v36 = vsel %vm265_vm6, %v260_v32, %v263_v34  ;;  %v1007_v37 = vld [vmem:[#allocation2 + $0x38] sm:$0xff] }
  0x95   : > { %271 = vst [vmem:[#allocation2 + $0x24] sm:$0xf] %v267_v35  ;;  %427 = vmatpush.bf16.msra.mxu0 %v1007_v37  ;;  %v1006_v38 = vld [vmem:[#allocation2 + $0x30] sm:$0xff] }
  0x96   : > { %270 = vst [vmem:[#allocation2 + $0x20] sm:$0xf] %v266_v36 }
  0x99   : > { %v245_v39 = vpop.permute.xlu0 %244  ;;  %v226_v40 = vpop.permute.xlu1 %225  ;;  %428 = vmatpush.bf16.msra.mxu0 %v1006_v38 }
  0x9a   : > { %v247_v41 = vrot.slane %v245_v39, 4  ;;  %v229_v42 = vrot.slane %v226_v40, 4 }
  0x9c   : > { %v250_v43 = vsel %vm248_vm1, %v245_v39, %v247_v41  ;;  %v232_v44 = vsel %vm231_vm4, %v226_v40, %v229_v42 }
  0x9d   : > { %254 = vst [vmem:[#allocation2 + $0x1c] sm:$0xf] %v250_v43  ;;  %429 = vmatpush.bf16.msra.mxu0 %v1005_v45  ;;  %v1004_v46 = vld [vmem:[#allocation2 + $0x20] sm:$0xff] }
  0x9e   : > { %236 = vst [vmem:[#allocation2 + $0x10] sm:$0xf] %v232_v44 }
  0xa1   : > { %v211_v47 = vpop.permute.xlu1 %210  ;;  %v209_v48 = vpop.permute.xlu0 %208  ;;  %430 = vmatpush.bf16.msra.mxu0 %v1004_v46 }
  0xa2   : > { %v213_v49 = vrot.slane %v211_v47, 4  ;;  %v212_v50 = vrot.slane %v209_v48, 4 }
  0xa4   : > { %v216_v51 = vsel %vm214_vm7, %v211_v47, %v213_v49  ;;  %v215_v52 = vsel %vm214_vm7, %v209_v48, %v212_v50  ;;  %v1003_v53 = vld [vmem:[#allocation2 + $0x18] sm:$0xff] }
  0xa5   : > { %220 = vst [vmem:[#allocation2 + $0xc] sm:$0xf] %v216_v51  ;;  %431 = vmatpush.bf16.msra.mxu0 %v1003_v53  ;;  %v1002_v54 = vld [vmem:[#allocation2 + $0x10] sm:$0xff] }
  0xa6   : > { %219 = vst [vmem:[#allocation2 + $0x8] sm:$0xf] %v215_v52 }
  0xa9   : > { %v330_v55 = vpop.permute.xlu0 %329  ;;  %432 = vmatpush.bf16.msra.mxu0 %v1002_v54 }
  0xaa   : > { %v332_v56 = vrot.slane %v330_v55, 4 }
  0xac   : > { %v335_v57 = vsel %vm333_vm5, %v330_v55, %v332_v56 }
  0xad   : > { %339 = vst [vmem:[#allocation2 + $0x44] sm:$0xf] %v335_v57  ;;  %v1001_v58 = vld [vmem:[#allocation2 + $0x8] sm:$0xff] }
  0xae   : > { %433 = vmatpush.bf16.msra.mxu0 %v1001_v58 }
  0xb2   : > { %434 = vmatpush.bf16.msra.mxu0 %v1000_v59 }
  0xb4   : > { %v1008_v3 = vld [vmem:[#allocation2 + $0x40] sm:$0xff] }
  0xb5   : > { %435 = vmatmul.bf16.vlgmr.msra.gmra.mxu0 %v907_v62  ;;  %448 = vmatpush.bf16.msra.mxu1 %v1008_v3 }
  0xb8   : > { %948 = vmatmul.msk.bf16.vlgmr.msra.gmra.mxu1 %vm423_vm8, %v911_v4 }
 0x132   : > { %v436_v5 = vpop.f32.mrf.mxu0 }
 0x135   : > { %v450_v7 = vpop.f32.mrf.mxu1 }
 0x136   : > { %v451_v8 = vadd.f32 %v450_v7, %v436_v5 }
 0x138   : > { %v458_v9 = vmul.f32 %v1189_v6, %v451_v8 }
 0x13a   : > { %460 = vadd.xlane.f32.xlu1 %v458_v9  ;;  %v438_v10 = vpop.f32.mrf.mxu0 }
 0x13d   : > { %v452_v11 = vpop.f32.mrf.mxu1 }
 0x13e   : > { %v453_v12 = vadd.f32 %v452_v11, %v438_v10 }
 0x140   : > { %v459_v13 = vmul.f32 %v1189_v6, %v453_v12 }
 0x142   : > { %462 = vadd.xlane.f32.xlu2 %v459_v13 }
 0x1ad   : > { %v461_v15 = vpop.xlane.xlu1 %460 }
 0x1ae   : > { %v464_v16 = vmul.f32 0.0625, %v461_v15 }
 0x1b0   : > { %v466_v17 = vsub.f32 %v451_v8, %v464_v16 }
 0x1b2   : > { %v468_v18 = vmul.f32 %v1189_v6, %v466_v17 }
 0x1b4   : > { %v470_v19 = vmul.f32 %v468_v18, %v468_v18 }
 0x1b5   : > { %v463_v20 = vpop.xlane.xlu2 %462 }
 0x1b6   : > { %v465_v21 = vmul.f32 0.0625, %v463_v20  ;;  %472 = vadd.xlane.f32.xlu0 %v470_v19 }
 0x1b8   : > { %v467_v22 = vsub.f32 %v453_v12, %v465_v21 }
 0x1ba   : > { %v469_v23 = vmul.f32 %v1189_v6, %v467_v22 }
 0x1bc   : > { %v471_v24 = vmul.f32 %v469_v23, %v469_v23 }
 0x1be   : > { %474 = vadd.xlane.f32.xlu2 %v471_v24 }
 0x229   : > { %v473_v25 = vpop.xlane.xlu0 %472 }
 0x22a   : > { %v476_v26 = vmul.f32 0.0625, %v473_v25 }
 0x22c   : > { %v478_v27 = vadd.f32 1e-05, %v476_v26 }
 0x22e   : > { %1058 = vrsqrt.f32 %v478_v27  ;;  %vm486_vm10 = vweird.f32 %v478_v27 }
 0x231   : > { %v475_v28 = vpop.xlane.xlu2 %474 }
 0x232   : > { %v477_v29 = vmul.f32 0.0625, %v475_v28 }
 0x234   : > { %v1059_v30 = vpop.eup %1058  ;;  %v479_v31 = vadd.f32 1e-05, %v477_v29 }
 0x235   : > { %v481_v32 = vmul.f32 %v1059_v30, %v478_v27  ;;  %vm487_vm9 = vweird.f32 %v1059_v30 }
 0x236   : > { %1060 = vrsqrt.f32 %v479_v31  ;;  %vm488_vm11 = vmor %vm486_vm10, %vm487_vm9  ;;  %vm496_vm13 = vweird.f32 %v479_v31 }
 0x237   : > { %v482_v33 = vmul.f32 %v1059_v30, %v481_v32 }
 0x239   : > { %v483_v34 = vmul.f32 0.5, %v482_v33 }
 0x23b   : > { %v484_v35 = vsub.f32 1.5, %v483_v34 }
 0x23c   : > { %v1061_v36 = vpop.eup %1060 }
 0x23d   : > { %v485_v37 = vmul.f32 %v1059_v30, %v484_v35  ;;  %v491_v38 = vmul.f32 %v1061_v36, %v479_v31  ;;  %vm497_vm12 = vweird.f32 %v1061_v36 }
 0x23e   : > { %vm498_vm14 = vmor %vm496_vm13, %vm497_vm12 }
 0x23f   : > { %v489_v39 = vsel %vm488_vm11, %v1059_v30, %v485_v37  ;;  %v492_v40 = vmul.f32 %v1061_v36, %v491_v38 }
 0x240   : > { %v500_v41 = vmul.f32 %v489_v39, %v468_v18 }
 0x241   : > { %v493_v42 = vmul.f32 0.5, %v492_v40 }
 0x242   : > { %v502_v43 = vmax.f32 %v500_v41, 0.0 }
 0x243   : > { %v494_v44 = vsub.f32 1.5, %v493_v42 }
 0x244   : > { %v508_v45 = vpack.c.bf16 %v502_v43, %v502_v43 }
 0x245   : > { %v495_v46 = vmul.f32 %v1061_v36, %v494_v44 }
 0x246   : > { %510 = vst [vmem:[#allocation3 + $0x4] sm:$0xf] %v508_v45 }
 0x247   : > { %v499_v47 = vsel %vm498_vm14, %v1061_v36, %v495_v46 }
 0x248   : > { %v501_v48 = vmul.f32 %v499_v47, %v469_v23 }
 0x24a   : > { %v503_v49 = vmax.f32 %v501_v48, 0.0 }
 0x24c   : > { %v509_v50 = vpack.c.bf16 %v503_v49, %v503_v49 }
 0x24d   : > { %v617_v51 = vld [vmem:[#allocation3 + $0x4] sm:$0xff] }
 0x24e   : > { %v580_v52 = vld [vmem:[#allocation3 + $0x4] sm:$0xf]  ;;  %511 = vst [vmem:[#allocation3 + $0x10] sm:$0xf] %v509_v50  ;;  %621 = vrot.lane.b32.xlu1 %v617_v51, %s1078_s25  ;;  %604 = vrot.lane.b32.xlu0 %v617_v51, %s1083_s13 }
 0x24f   : > { %582 = vst [vmem:[#allocation4 + $0x20] sm:$0xf] %v580_v52  ;;  %v563_v53 = vld [vmem:[#allocation3] sm:$0xff] }
 0x250   : > { %v1010_v52 = vld [vmem:[%s1253_s2 + $0x4] sm:$0xf0] }
 0x255   : > { %v618_v54 = vld [vmem:[#allocation3 + $0x10] sm:$0xff] }
 0x256   : > { %v581_v55 = vld [vmem:[#allocation3 + $0x10] sm:$0xf]  ;;  %588 = vrot.lane.b32.xlu0 %v617_v51, %s1080_s27  ;;  %567 = vrot.lane.b32.xlu1 %v563_v53, %s1084_s14 }
 0x257   : > { %583 = vst [vmem:[#allocation4 + $0x24] sm:$0xf] %v581_v55  ;;  %623 = vrot.lane.b32.xlu2 %v618_v54, %s1078_s25  ;;  %v564_v56 = vld [vmem:[#allocation3 + $0xc] sm:$0xff] }
 0x25e   : > { %606 = vrot.lane.b32.xlu1 %v618_v54, %s1083_s13  ;;  %569 = vrot.lane.b32.xlu0 %v564_v56, %s1084_s14  ;;  %v1015_v44 = vld [vmem:[#allocation4 + $0x20] sm:$0xff] }
 0x25f   : > { %590 = vrot.lane.b32.xlu2 %v618_v54, %s1080_s27 }
 0x266   : > { %516 = vrot.lane.b32.xlu1 %v563_v53, %s1085_s17  ;;  %533 = vrot.lane.b32.xlu0 %v563_v53, %s1086_s18 }
 0x267   : > { %550 = vrot.lane.b32.xlu2 %v563_v53, %s1087_s19  ;;  %v1009_v53 = vld [vmem:[%s1253_s2 + $0x4] sm:$0xf] }
 0x26e   : > { %552 = vrot.lane.b32.xlu1 %v564_v56, %s1087_s19  ;;  %518 = vrot.lane.b32.xlu0 %v564_v56, %s1085_s17 }
 0x26f   : > { %535 = vrot.lane.b32.xlu2 %v564_v56, %s1086_s18 }
 0x276   : > { %639 = vrot.lane.b32.xlu1 %v618_v54, %s1077_s24  ;;  %v953_v54 = vld [vmem:[%s1253_s2 + $0x8] sm:$0xf0] }
 0x277   : > { %637 = vrot.lane.b32.xlu2 %v617_v51, %s1077_s24  ;;  %v951_v51 = vld [vmem:[%s1253_s2] sm:$0xf] }
 0x2b1   : > { %v624_v57 = vpop.permute.xlu2 %623 }
 0x2b2   : > { %v626_v58 = vrot.slane %v624_v57, 4 }
 0x2b4   : > { %v628_v59 = vsel %vm248_vm1, %v624_v57, %v626_v58  ;;  %v952_v57 = vor.u32 %v1010_v52, %v951_v51  ;;  %v956_v58 = vor.u32 %v1009_v53, %v953_v54 }
 0x2b5   : > { %632 = vst [vmem:[#allocation4 + $0x3c] sm:$0xf] %v628_v59 }
 0x2b9   : > { %v591_v60 = vpop.permute.xlu2 %590 }
 0x2ba   : > { %v593_v61 = vrot.slane %v591_v60, 4 }
 0x2bc   : > { %v595_v62 = vsel %vm214_vm7, %v591_v60, %v593_v61 }
 0x2bd   : > { %599 = vst [vmem:[#allocation4 + $0x2c] sm:$0xf] %v595_v62 }
 0x2c0   : > { %v622_v63 = vpop.permute.xlu1 %621  ;;  %v605_v2 = vpop.permute.xlu0 %604 }
 0x2c1   : > { %v625_v3 = vrot.slane %v622_v63, 4  ;;  %v608_v4 = vrot.slane %v605_v2, 4  ;;  %v551_v5 = vpop.permute.xlu2 %550 }
 0x2c2   : > { %v554_v7 = vrot.slane %v551_v5, 4 }
 0x2c3   : > { %v627_v8 = vsel %vm248_vm1, %v622_v63, %v625_v3  ;;  %v611_v9 = vsel %vm610_vm15, %v605_v2, %v608_v4  ;;  %vm522_vm1 = vcmask 64512  }
 0x2c4   : > { %631 = vst [vmem:[#allocation4 + $0x38] sm:$0xf] %v627_v8  ;;  %v557_v10 = vsel %vm556_vm0, %v551_v5, %v554_v7  ;;  %v809_v8 = vunpack.c.l.bf16 %v1130_v0 }
 0x2c5   : > { %615 = vst [vmem:[#allocation4 + $0x30] sm:$0xf] %v611_v9  ;;  %v810_v9 = vunpack.c.h.bf16 %v1130_v0 }
 0x2c6   : > { %561 = vst [vmem:[#allocation4 + $0x10] sm:$0xf] %v557_v10 }
 0x2c8   : > { %v589_v11 = vpop.permute.xlu0 %588  ;;  %v568_v12 = vpop.permute.xlu1 %567 }
 0x2c9   : > { %v592_v13 = vrot.slane %v589_v11, 4  ;;  %v571_v14 = vrot.slane %v568_v12, 4  ;;  %v536_v15 = vpop.permute.xlu2 %535 }
 0x2ca   : > { %v538_v16 = vrot.slane %v536_v15, 4 }
 0x2cb   : > { %v594_v17 = vsel %vm214_vm7, %v589_v11, %v592_v13  ;;  %v574_v18 = vsel %vm573_vm2, %v568_v12, %v571_v14  ;;  %v1018_v19 = vld [vmem:[#allocation4 + $0x38] sm:$0xff]  ;;  %v1047_v11 = vpack.i.bf16 %v810_v9, %v809_v8 }
 0x2cc   : > { %598 = vst [vmem:[#allocation4 + $0x28] sm:$0xf] %v594_v17  ;;  %v541_v20 = vsel %vm539_vm3, %v536_v15, %v538_v16  ;;  %735 = vmatpush.bf16.msra.mxu2 %v1018_v19  ;;  %v811_v19 = vunpack.c.l.bf16 %v1136_v1 }
 0x2cd   : > { %578 = vst [vmem:[#allocation4 + $0x18] sm:$0xf] %v574_v18 }
 0x2ce   : > { %545 = vst [vmem:[#allocation4 + $0xc] sm:$0xf] %v541_v20  ;;  %v812_v20 = vunpack.c.h.bf16 %v1136_v1 }
 0x2d0   : > { %v607_v21 = vpop.permute.xlu1 %606  ;;  %v570_v22 = vpop.permute.xlu0 %569  ;;  %v1052_v0 = vpack.i.bf16 %v812_v20, %v811_v19 }
 0x2d1   : > { %v609_v23 = vrot.slane %v607_v21, 4  ;;  %v572_v24 = vrot.slane %v570_v22, 4  ;;  %v638_v25 = vpop.permute.xlu2 %637 }
 0x2d2   : > { %v641_v26 = vrot.slane %v638_v25, 4 }
 0x2d3   : > { %v612_v27 = vsel %vm610_vm15, %v607_v21, %v609_v23  ;;  %v575_v28 = vsel %vm573_vm2, %v570_v22, %v572_v24  ;;  %v1016_v37 = vld [vmem:[#allocation4 + $0x28] sm:$0xff] }
 0x2d4   : > { %616 = vst [vmem:[#allocation4 + $0x34] sm:$0xf] %v612_v27  ;;  %v643_v29 = vsel %vm265_vm6, %v638_v25, %v641_v26 }
 0x2d5   : > { %579 = vst [vmem:[#allocation4 + $0x1c] sm:$0xf] %v575_v28 }
 0x2d6   : > { %647 = vst [vmem:[#allocation4 + $0x40] sm:$0xf] %v643_v29 }
 0x2d8   : > { %v517_v30 = vpop.permute.xlu1 %516  ;;  %v534_v31 = vpop.permute.xlu0 %533 }
 0x2d9   : > { %v520_v32 = vrot.slane %v517_v30, 4  ;;  %v537_v33 = vrot.slane %v534_v31, 4 }
 0x2db   : > { %v523_v34 = vsel %vm522_vm1, %v517_v30, %v520_v32  ;;  %v540_v35 = vsel %vm539_vm3, %v534_v31, %v537_v33  ;;  %v1017_v36 = vld [vmem:[#allocation4 + $0x30] sm:$0xff] }
 0x2dc   : > { %527 = vst [vmem:[#allocation4] sm:$0xf] %v523_v34  ;;  %736 = vmatpush.bf16.msra.mxu2 %v1017_v36  ;;  %v1014_v45 = vld [vmem:[#allocation4 + $0x18] sm:$0xff] }
 0x2dd   : > { %544 = vst [vmem:[#allocation4 + $0x8] sm:$0xf] %v540_v35 }
 0x2e0   : > { %v553_v38 = vpop.permute.xlu1 %552  ;;  %v519_v39 = vpop.permute.xlu0 %518  ;;  %737 = vmatpush.bf16.msra.mxu2 %v1016_v37 }
 0x2e1   : > { %v555_v40 = vrot.slane %v553_v38, 4  ;;  %v521_v41 = vrot.slane %v519_v39, 4 }
 0x2e3   : > { %v558_v42 = vsel %vm556_vm0, %v553_v38, %v555_v40  ;;  %v524_v43 = vsel %vm522_vm1, %v519_v39, %v521_v41 }
 0x2e4   : > { %562 = vst [vmem:[#allocation4 + $0x14] sm:$0xf] %v558_v42  ;;  %738 = vmatpush.bf16.msra.mxu2 %v1015_v44  ;;  %v1012_v50 = vld [vmem:[#allocation4 + $0x8] sm:$0xff] }
 0x2e5   : > { %528 = vst [vmem:[#allocation4 + $0x4] sm:$0xf] %v524_v43 }
 0x2e8   : > { %v640_v46 = vpop.permute.xlu1 %639  ;;  %739 = vmatpush.bf16.msra.mxu2 %v1014_v45 }
 0x2e9   : > { %v642_v47 = vrot.slane %v640_v46, 4 }
 0x2eb   : > { %v644_v48 = vsel %vm265_vm6, %v640_v46, %v642_v47  ;;  %v1013_v49 = vld [vmem:[#allocation4 + $0x10] sm:$0xff] }
 0x2ec   : > { %648 = vst [vmem:[#allocation4 + $0x44] sm:$0xf] %v644_v48  ;;  %740 = vmatpush.bf16.msra.mxu2 %v1013_v49  ;;  %v1011_v55 = vld [vmem:[#allocation4] sm:$0xff] }
 0x2f0   : > { %741 = vmatpush.bf16.msra.mxu2 %v1012_v50 }
 0x2f3   : > { %v1019_v56 = vld [vmem:[#allocation4 + $0x40] sm:$0xff] }
 0x2f4   : > { %742 = vmatpush.bf16.msra.mxu2 %v1011_v55  ;;  %756 = vmatpush.bf16.msra.mxu3 %v1019_v56 }
 0x2f7   : > { %743 = vmatmul.bf16.vlgmr.msra.gmra.mxu2 %v952_v57  ;;  %993 = vmatmul.msk.bf16.vlgmr.msra.gmra.mxu3 %vm423_vm8, %v956_v58 }
 0x37a   : > { %v744_v59 = vpop.f32.mrf.mxu2  ;;  %v758_v60 = vpop.f32.mrf.mxu3 }
 0x37b   : > { %v759_v61 = vadd.f32 %v758_v60, %v744_v59 }
 0x37d   : > { %v763_v62 = vmul.f32 %v1189_v6, %v759_v61 }
 0x37f   : > { %765 = vadd.xlane.f32.xlu0 %v763_v62 }
 0x382   : > { %v746_v63 = vpop.f32.mrf.mxu2  ;;  %v760_v2 = vpop.f32.mrf.mxu3 }
 0x383   : > { %v761_v3 = vadd.f32 %v760_v2, %v746_v63 }
 0x385   : > { %v764_v4 = vmul.f32 %v1189_v6, %v761_v3 }
 0x387   : > { %767 = vadd.xlane.f32.xlu2 %v764_v4 }
 0x39f   : > { %1048 = vrot.lane.b32.xlu2 %v1047_v11, %s1077_s24 }
 0x3f2   : > { %v766_v5 = vpop.xlane.xlu0 %765 }
 0x3f3   : > { %v769_v7 = vmul.f32 0.0625, %v766_v5 }
 0x3f5   : > { %v771_v10 = vsub.f32 %v759_v61, %v769_v7 }
 0x3f7   : > { %v773_v12 = vmul.f32 %v1189_v6, %v771_v10 }
 0x3f9   : > { %v775_v13 = vmul.f32 %v773_v12, %v773_v12 }
 0x3fa   : > { %v768_v14 = vpop.xlane.xlu2 %767 }
 0x3fb   : > { %v770_v15 = vmul.f32 0.0625, %v768_v14  ;;  %777 = vadd.xlane.f32.xlu1 %v775_v13 }
 0x3fd   : > { %v772_v16 = vsub.f32 %v761_v3, %v770_v15 }
 0x3ff   : > { %v774_v17 = vmul.f32 %v1189_v6, %v772_v16 }
 0x401   : > { %v776_v18 = vmul.f32 %v774_v17, %v774_v17 }
 0x402   : > { %v1049_v32 = vpop.permute.xlu2 %1048 }
 0x403   : > { %779 = vadd.xlane.f32.xlu0 %v776_v18  ;;  %v1051_v35 = vunpack.i.h.bf16 %v1049_v32  ;;  %v1050_v36 = vunpack.i.l.bf16 %v1049_v32 }
 0x405   : > { %v826_v42 = vsel %vm265_vm6, %v1050_v36, %v1051_v35 }
 0x414   : > { %1053 = vrot.lane.b32.xlu1 %v1052_v0, %s1077_s24  ;;  %s997_s24 = sshll.u32 %s1257_s16, 3 }
 0x415   : > { %s197_s5 = scalar_lea.vmem %s1255_s4, %s997_s24 }
 0x46e   : > { %v778_v21 = vpop.xlane.xlu1 %777 }
 0x46f   : > { %v781_v22 = vmul.f32 0.0625, %v778_v21 }
 0x471   : > { %v783_v23 = vadd.f32 1e-05, %v781_v22 }
 0x473   : > { %1062 = vrsqrt.f32 %v783_v23  ;;  %vm791_vm5 = vweird.f32 %v783_v23 }
 0x476   : > { %v780_v24 = vpop.xlane.xlu0 %779 }
 0x477   : > { %v782_v25 = vmul.f32 0.0625, %v780_v24 }
 0x479   : > { %v1063_v26 = vpop.eup %1062  ;;  %v784_v27 = vadd.f32 1e-05, %v782_v25 }
 0x47a   : > { %v786_v28 = vmul.f32 %v1063_v26, %v783_v23  ;;  %vm792_vm4 = vweird.f32 %v1063_v26 }
 0x47b   : > { %1064 = vrsqrt.f32 %v784_v27  ;;  %vm793_vm7 = vmor %vm791_vm5, %vm792_vm4  ;;  %vm801_vm9 = vweird.f32 %v784_v27 }
 0x47c   : > { %v787_v29 = vmul.f32 %v1063_v26, %v786_v28 }
 0x47e   : > { %v788_v30 = vmul.f32 0.5, %v787_v29 }
 0x480   : > { %v789_v31 = vsub.f32 1.5, %v788_v30 }
 0x481   : > { %v1065_v33 = vpop.eup %1064 }
 0x482   : > { %v790_v1 = vmul.f32 %v1063_v26, %v789_v31  ;;  %v796_v34 = vmul.f32 %v1065_v33, %v784_v27  ;;  %vm802_vm8 = vweird.f32 %v1065_v33 }
 0x483   : > { %vm803_vm10 = vmor %vm801_vm9, %vm802_vm8 }
 0x484   : > { %v794_v37 = vsel %vm793_vm7, %v1063_v26, %v790_v1  ;;  %v797_v38 = vmul.f32 %v1065_v33, %v796_v34 }
 0x485   : > { %v805_v41 = vmul.f32 %v794_v37, %v773_v12 }
 0x486   : > { %v798_v39 = vmul.f32 0.5, %v797_v38  ;;  %v1054_v40 = vpop.permute.xlu1 %1053 }
 0x487   : > { %v1056_v44 = vunpack.i.h.bf16 %v1054_v40  ;;  %v1055_v45 = vunpack.i.l.bf16 %v1054_v40  ;;  %v830_v47 = vadd.f32 %v826_v42, %v805_v41 }
 0x488   : > { %v799_v43 = vsub.f32 1.5, %v798_v39 }
 0x489   : > { %v827_v49 = vsel %vm265_vm6, %v1055_v45, %v1056_v44  ;;  %v832_v51 = vmax.f32 %v830_v47, 0.0 }
 0x48a   : > { %v800_v46 = vmul.f32 %v1065_v33, %v799_v43 }
 0x48b   : > { %v834_v54 = vmul.f32 %v1189_v6, %v832_v51 }
 0x48c   : > { %v804_v48 = vsel %vm803_vm10, %v1065_v33, %v800_v46 }
 0x48d   : > { %v806_v50 = vmul.f32 %v804_v48, %v774_v17 }
 0x48f   : > { %v831_v52 = vadd.f32 %v827_v49, %v806_v50 }
 0x491   : > { %v833_v53 = vmax.f32 %v831_v52, 0.0 }
 0x493   : > { %v835_v55 = vmul.f32 %v1189_v6, %v833_v53 }
 0x495   : > { %v1023_v56 = vpack.c.bf16 %v835_v55, %v834_v54 }
 0x497   : > { %1024 = vst [vmem:[%s197_s5] sm:$0xff] %v1023_v56  }
 0x498 PF: > { %s14_s15 = sadd.s32 1, %s1072_s15  }
 0x499   : > { %p11_p4 = scmp.ge.s32.totalorder %s14_s15, 4  }
 0x49b   :  { %13 = sbr.rel (!%p11_p4) target bundleno = 1 (0x1), region = 66 }

</bundles_post_ra>
